<compile_context>
chip_gen: v7x
topology: tpu7x:2x2x1
jax: 0.10.0
libtpu: 0.0.40
codegen_flags: <defaults>
</compile_context>

<pallas_src>
import functools
import math

import numpy as np
import jax
import jax.numpy as jnp
from jax import lax
from jax.experimental import pallas as pl
from jax.experimental.pallas import tpu as pltpu

LN_EPS = 1e-5
NEG_INF = -1e9


def _round_up(x, m):
    return ((x + m - 1) // m) * m


def _ln(y, g, b):
    m = jnp.mean(y, axis=-1, keepdims=True)
    v = jnp.mean(jnp.square(y - m), axis=-1, keepdims=True)
    return (y - m) * lax.rsqrt(v + LN_EPS) * g + b


# ----------------------------------------------------------------------------
# The single fused kernel
# ----------------------------------------------------------------------------
def _ll_encoder_kernel(
    feats_ref, sel_ref, bias_ref,
    pw, pb, pg, pbe,
    w11, b11, g11, be11,
    w12, b12, g12, be12,
    w21t, w21b, b21, g21, be21,
    w22, b22, g22, be22,
    ang, anb,
    wqkv, bqkv, wo, bo,
    l1g, l1b,
    fw1, fb1, fw2, fb2,
    l2g, l2b,
    ng, nb,
    o_ref, *, nl, pp, kd, scale):

    def lin_ln_relu(x, w, b, g, be):
        y = jnp.dot(x, w[...], preferred_element_type=jnp.float32) + b[...]
        return jnp.maximum(_ln(y, g[...], be[...]), 0.0)

    # ---------------- point path: lane_proj + PointAggregateBlock ----------
    x0 = feats_ref[...]                                       # (nl*pp, Din)
    x = lin_ln_relu(x0, pw, pb, pg, pbe)                      # lane_proj (R, H)
    h = lin_ln_relu(x, w11, b11, g11, be11)                   # fc1 layer 1
    h = lin_ln_relu(h, w12, b12, g12, be12)                   # fc1 layer 2
    hdim = h.shape[-1]
    hmax = jnp.max(h.reshape(nl, pp, hdim), axis=1)           # (nl, H) point maxpool
    # concat([h, broadcast(hmax)]) @ fc2_w1 == h @ W_top + hmax @ W_bottom
    fbot = jnp.dot(hmax, w21b[...], preferred_element_type=jnp.float32)   # (nl, H)
    f = jnp.dot(h, w21t[...], preferred_element_type=jnp.float32) + b21[...]
    f = (f.reshape(nl, pp, hdim) + fbot[:, None, :]).reshape(nl * pp, hdim)
    f = jnp.maximum(_ln(f, g21[...], be21[...]), 0.0)         # fc2 layer 1
    f = lin_ln_relu(f, w22, b22, g22, be22)                   # fc2 layer 2
    z = _ln(x + f, ang[...], anb[...])                        # LN(x_inp + fc2)
    lane_features = jnp.max(z.reshape(nl, pp, hdim), axis=1)  # (nl, H) aggre_out

    # ---------------- scene path: gather + RP_GAFormer + encoder LN --------
    # gather lane_features[idcs] for every scene via one one-hot MXU matmul
    lf = jnp.dot(sel_ref[...], lane_features,
                 preferred_element_type=jnp.float32)          # (Npad, H)
    qkv = jnp.dot(lf, wqkv[...], preferred_element_type=jnp.float32) + bqkv[...]
    q = qkv[:, 0 * kd:1 * kd]                                 # 128-lane aligned views
    k = qkv[:, 1 * kd:2 * kd]
    v = qkv[:, 2 * kd:3 * kd]
    scores = lax.dot_general(q, k, (((1,), (1,)), ((), ())),
                             preferred_element_type=jnp.float32) * scale
    # block-diagonal rpe bias; cross-scene and padded keys carry NEG_INF
    scores = scores + bias_ref[...]
    m = jnp.max(scores, axis=-1, keepdims=True)
    p = jnp.exp(scores - m)
    attn = p * pl.reciprocal(jnp.sum(p, axis=-1, keepdims=True), approx=True)
    a = jnp.dot(attn, v, preferred_element_type=jnp.float32)  # (Npad, kd)
    o = jnp.dot(a, wo[...], preferred_element_type=jnp.float32) + bo[...]
    x1 = _ln(lf + o, l1g[...], l1b[...])
    hm = jnp.maximum(
        jnp.dot(x1, fw1[...], preferred_element_type=jnp.float32) + fb1[...], 0.0)
    h2 = jnp.dot(hm, fw2[...], preferred_element_type=jnp.float32) + fb2[...]
    x2 = _ln(x1 + h2, l2g[...], l2b[...])
    o_ref[...] = _ln(lf + x2, ng[...], nb[...])               # encoder-level norm


# ----------------------------------------------------------------------------
# Wrapper
# ----------------------------------------------------------------------------
def ll_encoder_forward(params, feats, lane_idcs, rpe_lanes):
    NL, P, Din = feats.shape
    H = params['proj_w'].shape[1]
    ag, cr = params['aggre'], params['cross']
    key_dim = cr['wq'].shape[1]
    value_dim = cr['wv'].shape[1]
    d_rpe = cr['wr'].shape[0]
    KD_PAD = 128                                   # lane-aligned q/k/v width

    # ---- static layout (Python/numpy at trace time -> constants) ----------
    ns = [int(i.shape[0]) for i in lane_idcs]
    n_total = sum(ns)
    NLp = _round_up(NL, 8)
    Pp = _round_up(P, 8)
    Npad = _round_up(max(n_total, 8), 8)           # mild 8-row bucketing
    offs = np.concatenate([[0], np.cumsum(ns)]).astype(np.int64)

    # ---- feats: pad lanes & points by edge replication, flatten to 2D -----
    feats_flat = jnp.pad(feats.astype(jnp.float32),
                         ((0, NLp - NL), (0, Pp - P), (0, 0)),
                         mode='edge').reshape(NLp * Pp, Din)

    # ---- one-hot gather matrix (scene rows packed contiguously) -----------
    idx = jnp.concatenate([jnp.asarray(i, jnp.int32) for i in lane_idcs])
    idx = jnp.pad(idx, (0, Npad - n_total), constant_values=NLp)  # OOR -> zero row
    sel = jax.nn.one_hot(idx, NLp, dtype=jnp.float32)             # (Npad, NLp)

    # ---- block-diagonal rpe bias + scene / key-padding mask ----------------
    scene_id = np.full((Npad,), -1, np.int64)
    for s, n in enumerate(ns):
        scene_id[int(offs[s]):int(offs[s]) + n] = s
    same = (scene_id[:, None] == scene_id[None, :]) & (scene_id[:, None] >= 0)
    mask = jnp.asarray(np.where(same, 0.0, NEG_INF), jnp.float32)  # constant
    rpe_blocks = jnp.zeros((Npad, Npad, d_rpe), jnp.float32)
    # TODO(synk): ragged per-scene rpe tensors need per-scene placement (static
    #   offsets); the rpe->bias projection itself is one batched tensordot.
    for s, rpe in enumerate(rpe_lanes):
        rpe_blocks = lax.dynamic_update_slice(
            rpe_blocks, rpe.astype(jnp.float32), (int(offs[s]), int(offs[s]), 0))
    bias = jnp.tensordot(rpe_blocks, cr['wr'], axes=([2], [0])) + cr['br'][0] + mask

    # ---- host-side weight prep (split fc2_w1, fused lane-padded qkv) ------
    w21t = ag['fc2_w1'][:H]
    w21b = ag['fc2_w1'][H:]
    wqkv = jnp.concatenate(
        [jnp.pad(cr['wq'], ((0, 0), (0, KD_PAD - key_dim))),
         jnp.pad(cr['wk'], ((0, 0), (0, KD_PAD - key_dim))),
         jnp.pad(cr['wv'], ((0, 0), (0, KD_PAD - value_dim)))], axis=1)
    bqkv = jnp.concatenate(
        [jnp.pad(cr['bq'], (0, KD_PAD - key_dim)),
         jnp.pad(cr['bk'], (0, KD_PAD - key_dim)),
         jnp.pad(cr['bv'], (0, KD_PAD - value_dim))]).reshape(1, -1)
    wo_p = jnp.pad(cr['wo'], ((0, KD_PAD - value_dim), (0, 0)))

    r = lambda vvec: vvec.reshape(1, -1)
    weights = [
        params['proj_w'], r(params['proj_b']), r(params['proj_g']), r(params['proj_be']),
        ag['fc1_w1'], r(ag['fc1_b1']), r(ag['fc1_g1']), r(ag['fc1_be1']),
        ag['fc1_w2'], r(ag['fc1_b2']), r(ag['fc1_g2']), r(ag['fc1_be2']),
        w21t, w21b, r(ag['fc2_b1']), r(ag['fc2_g1']), r(ag['fc2_be1']),
        ag['fc2_w2'], r(ag['fc2_b2']), r(ag['fc2_g2']), r(ag['fc2_be2']),
        r(ag['norm_g']), r(ag['norm_b']),
        wqkv, bqkv, wo_p, r(cr['bo']),
        r(cr['ln1_g']), r(cr['ln1_b']),
        cr['ffn_w1'], r(cr['ffn_b1']), cr['ffn_w2'], r(cr['ffn_b2']),
        r(cr['ln2_g']), r(cr['ln2_b']),
        r(params['norm_g']), r(params['norm_b']),
    ]

    vspec = pl.BlockSpec(memory_space=pltpu.MemorySpace.VMEM)
    out = pl.pallas_call(
        functools.partial(_ll_encoder_kernel, nl=NLp, pp=Pp, kd=KD_PAD,
                          scale=1.0 / math.sqrt(key_dim)),
        out_shape=jax.ShapeDtypeStruct((Npad, H), jnp.float32),
        in_specs=[vspec] * (3 + len(weights)),
        out_specs=vspec,
    )(feats_flat, sel, bias, *weights)
    return out[:n_total]                           # single un-pad slice


# ----------------------------------------------------------------------------
# Pure-JAX reference (for verification)
# ----------------------------------------------------------------------------
def _ref_lin(x, w, b, g=None, be=None, do_ln=False, do_relu=False):
    y = x @ w + b
    if do_ln:
        y = _ln(y, g, be)
    if do_relu:
        y = jnp.maximum(y, 0.0)
    return y


def ref_forward(params, feats, lane_idcs, rpe_lanes):
    NL, P, Din = feats.shape
    H = params['proj_w'].shape[1]
    ag, cr = params['aggre'], params['cross']
    x = _ref_lin(feats.reshape(NL * P, Din), params['proj_w'], params['proj_b'],
                 params['proj_g'], params['proj_be'], True, True)
    h = _ref_lin(x, ag['fc1_w1'], ag['fc1_b1'], ag['fc1_g1'], ag['fc1_be1'], True, True)
    h = _ref_lin(h, ag['fc1_w2'], ag['fc1_b2'], ag['fc1_g2'], ag['fc1_be2'], True, True)
    h3 = h.reshape(NL, P, H)
    hmax = jnp.max(h3, axis=1)
    cat = jnp.concatenate([h3, jnp.broadcast_to(hmax[:, None, :], (NL, P, H))],
                          axis=-1).reshape(NL * P, 2 * H)
    f = _ref_lin(cat, ag['fc2_w1'], ag['fc2_b1'], ag['fc2_g1'], ag['fc2_be1'], True, True)
    f = _ref_lin(f, ag['fc2_w2'], ag['fc2_b2'], ag['fc2_g2'], ag['fc2_be2'], True, True)
    z = _ln(x + f, ag['norm_g'], ag['norm_b'])
    lane_features = jnp.max(z.reshape(NL, P, H), axis=1)

    outs = []
    for idcs, rpe in zip(lane_idcs, rpe_lanes):
        lf = jnp.take(lane_features, idcs, axis=0)
        q = lf @ cr['wq'] + cr['bq']
        k = lf @ cr['wk'] + cr['bk']
        v = lf @ cr['wv'] + cr['bv']
        scale = 1.0 / math.sqrt(q.shape[1])
        scores = (q @ k.T * scale
                  + jnp.tensordot(rpe, cr['wr'], axes=([2], [0])) + cr['br'][0])
        attn = jax.nn.softmax(scores, axis=-1)
        o = attn @ v @ cr['wo'] + cr['bo']
        x1 = _ln(lf + o, cr['ln1_g'], cr['ln1_b'])
        hm = jnp.maximum(x1 @ cr['ffn_w1'] + cr['ffn_b1'], 0.0)
        x2 = _ln(x1 + hm @ cr['ffn_w2'] + cr['ffn_b2'], cr['ln2_g'], cr['ln2_b'])
        outs.append(_ln(lf + x2, params['norm_g'], params['norm_b']))
    return jnp.concatenate(outs, axis=0)


# ----------------------------------------------------------------------------
# Deterministic parameter init (PyTorch-like uniform fan-in init)
# ----------------------------------------------------------------------------
def _init_linear(key, fi, fo):
    k1, k2 = jax.random.split(key)
    bound = 1.0 / math.sqrt(fi)
    w = jax.random.uniform(k1, (fi, fo), jnp.float32, -bound, bound)
    b = jax.random.uniform(k2, (fo,), jnp.float32, -bound, bound)
    return w, b


def init_params(key, in_size, hidden, d_rpe, key_dim=64, value_dim=64, ffn_dim=256):
    ks = iter(jax.random.split(key, 64))
    ones = lambda n: jnp.ones((n,), jnp.float32)
    zeros = lambda n: jnp.zeros((n,), jnp.float32)
    lin = lambda fi, fo: _init_linear(next(ks), fi, fo)

    p = {}
    p['proj_w'], p['proj_b'] = lin(in_size, hidden)
    p['proj_g'], p['proj_be'] = ones(hidden), zeros(hidden)

    ag = {}
    ag['fc1_w1'], ag['fc1_b1'] = lin(hidden, hidden)
    ag['fc1_g1'], ag['fc1_be1'] = ones(hidden), zeros(hidden)
    ag['fc1_w2'], ag['fc1_b2'] = lin(hidden, hidden)
    ag['fc1_g2'], ag['fc1_be2'] = ones(hidden), zeros(hidden)
    ag['fc2_w1'], ag['fc2_b1'] = lin(2 * hidden, hidden)
    ag['fc2_g1'], ag['fc2_be1'] = ones(hidden), zeros(hidden)
    ag['fc2_w2'], ag['fc2_b2'] = lin(hidden, hidden)
    ag['fc2_g2'], ag['fc2_be2'] = ones(hidden), zeros(hidden)
    ag['norm_g'], ag['norm_b'] = ones(hidden), zeros(hidden)
    p['aggre'] = ag

    cr = {}
    cr['wq'], cr['bq'] = lin(hidden, key_dim)
    cr['wk'], cr['bk'] = lin(hidden, key_dim)
    cr['wv'], cr['bv'] = lin(hidden, value_dim)
    cr['wo'], cr['bo'] = lin(value_dim, hidden)
    wr, br = lin(d_rpe, 1)
    cr['wr'], cr['br'] = wr.reshape(d_rpe), br.reshape(1)
    cr['ln1_g'], cr['ln1_b'] = ones(hidden), zeros(hidden)
    cr['ffn_w1'], cr['ffn_b1'] = lin(hidden, ffn_dim)
    cr['ffn_w2'], cr['ffn_b2'] = lin(ffn_dim, hidden)
    cr['ln2_g'], cr['ln2_b'] = ones(hidden), zeros(hidden)
    p['cross'] = cr

    p['norm_g'], p['norm_b'] = ones(hidden), zeros(hidden)
    # TODO(synk): feature_fusion params exist in __init__ but are unused in forward.
    return p


# ----------------------------------------------------------------------------
if __name__ == "__main__":
    key = jax.random.PRNGKey(0)
    k_feat, k_rpe0, k_rpe1, k_param = jax.random.split(key, 4)

    NL, P, IN_SIZE, HIDDEN, D_RPE = 12, 10, 10, 128, 5
    feats = jax.random.normal(k_feat, (NL, P, IN_SIZE), jnp.float32)
    lane_idcs = [jnp.arange(0, 7, dtype=jnp.int32),
                 jnp.arange(7, 12, dtype=jnp.int32)]
    rpe_lanes = [jax.random.normal(k_rpe0, (7, 7, D_RPE), jnp.float32),
                 jax.random.normal(k_rpe1, (5, 5, D_RPE), jnp.float32)]

    params = init_params(k_param, IN_SIZE, HIDDEN, D_RPE)

    fwd = jax.jit(ll_encoder_forward)
    out = jax.block_until_ready(fwd(params, feats, lane_idcs, rpe_lanes))

    ref = jax.block_until_ready(ref_forward(params, feats, lane_idcs, rpe_lanes))

    assert out.shape == (NL, HIDDEN), out.shape
    max_err = float(jnp.max(jnp.abs(out - ref)))
    assert max_err < 5e-2, f"mismatch vs reference, max_err={max_err}"
    print("KERNEL_OK")
</pallas_src>

<mosaic_0001>
module attributes {stable_mosaic.version = 11 : i64} {
  func.func @_ll_encoder_kernel(%arg0: memref<256x10xf32, #tpu.memory_space<vmem>>, %arg1: memref<16x16xf32, #tpu.memory_space<vmem>>, %arg2: memref<16x16xf32, #tpu.memory_space<vmem>>, %arg3: memref<10x128xf32, #tpu.memory_space<vmem>>, %arg4: memref<1x128xf32, #tpu.memory_space<vmem>>, %arg5: memref<1x128xf32, #tpu.memory_space<vmem>>, %arg6: memref<1x128xf32, #tpu.memory_space<vmem>>, %arg7: memref<128x128xf32, #tpu.memory_space<vmem>>, %arg8: memref<1x128xf32, #tpu.memory_space<vmem>>, %arg9: memref<1x128xf32, #tpu.memory_space<vmem>>, %arg10: memref<1x128xf32, #tpu.memory_space<vmem>>, %arg11: memref<128x128xf32, #tpu.memory_space<vmem>>, %arg12: memref<1x128xf32, #tpu.memory_space<vmem>>, %arg13: memref<1x128xf32, #tpu.memory_space<vmem>>, %arg14: memref<1x128xf32, #tpu.memory_space<vmem>>, %arg15: memref<128x128xf32, #tpu.memory_space<vmem>>, %arg16: memref<128x128xf32, #tpu.memory_space<vmem>>, %arg17: memref<1x128xf32, #tpu.memory_space<vmem>>, %arg18: memref<1x128xf32, #tpu.memory_space<vmem>>, %arg19: memref<1x128xf32, #tpu.memory_space<vmem>>, %arg20: memref<128x128xf32, #tpu.memory_space<vmem>>, %arg21: memref<1x128xf32, #tpu.memory_space<vmem>>, %arg22: memref<1x128xf32, #tpu.memory_space<vmem>>, %arg23: memref<1x128xf32, #tpu.memory_space<vmem>>, %arg24: memref<1x128xf32, #tpu.memory_space<vmem>>, %arg25: memref<1x128xf32, #tpu.memory_space<vmem>>, %arg26: memref<128x384xf32, #tpu.memory_space<vmem>>, %arg27: memref<1x384xf32, #tpu.memory_space<vmem>>, %arg28: memref<128x128xf32, #tpu.memory_space<vmem>>, %arg29: memref<1x128xf32, #tpu.memory_space<vmem>>, %arg30: memref<1x128xf32, #tpu.memory_space<vmem>>, %arg31: memref<1x128xf32, #tpu.memory_space<vmem>>, %arg32: memref<128x256xf32, #tpu.memory_space<vmem>>, %arg33: memref<1x256xf32, #tpu.memory_space<vmem>>, %arg34: memref<256x128xf32, #tpu.memory_space<vmem>>, %arg35: memref<1x128xf32, #tpu.memory_space<vmem>>, %arg36: memref<1x128xf32, #tpu.memory_space<vmem>>, %arg37: memref<1x128xf32, #tpu.memory_space<vmem>>, %arg38: memref<1x128xf32, #tpu.memory_space<vmem>>, %arg39: memref<1x128xf32, #tpu.memory_space<vmem>>, %arg40: memref<16x128xf32, #tpu.memory_space<vmem>>) attributes {dimension_semantics = [], scalar_prefetch = 0 : i64, scratch_operands = 0 : i64, tpu.core_type = #tpu.core_type<tc>} {
    %c0 = arith.constant 0 : index
    %c0_0 = arith.constant 0 : index
    %0 = vector.load %arg0[%c0, %c0_0] : memref<256x10xf32, #tpu.memory_space<vmem>>, vector<256x10xf32>
    %c0_1 = arith.constant 0 : index
    %c0_2 = arith.constant 0 : index
    %1 = vector.load %arg3[%c0_1, %c0_2] : memref<10x128xf32, #tpu.memory_space<vmem>>, vector<10x128xf32>
    %cst = arith.constant dense<0.000000e+00> : vector<256x128xf32>
    %2 = tpu.matmul %0, %1, %cst {dimension_numbers = #tpu.dot_dimension_numbers<[1], [0], [0], [1], [0, 0, 1, 1], [], []>} : vector<256x10xf32>, vector<10x128xf32>, vector<256x128xf32> -> vector<256x128xf32>
    %c0_3 = arith.constant 0 : index
    %c0_4 = arith.constant 0 : index
    %3 = vector.load %arg4[%c0_3, %c0_4] : memref<1x128xf32, #tpu.memory_space<vmem>>, vector<1x128xf32>
    %4 = vector.broadcast %3 : vector<1x128xf32> to vector<256x128xf32>
    %5 = arith.addf %2, %4 : vector<256x128xf32>
    %c0_5 = arith.constant 0 : index
    %c0_6 = arith.constant 0 : index
    %6 = vector.load %arg5[%c0_5, %c0_6] : memref<1x128xf32, #tpu.memory_space<vmem>>, vector<1x128xf32>
    %c0_7 = arith.constant 0 : index
    %c0_8 = arith.constant 0 : index
    %7 = vector.load %arg6[%c0_7, %c0_8] : memref<1x128xf32, #tpu.memory_space<vmem>>, vector<1x128xf32>
    %cst_9 = arith.constant dense<0.000000e+00> : vector<256xf32>
    %8 = vector.multi_reduction <add>, %5, %cst_9 [1] : vector<256x128xf32> to vector<256xf32>
    %9 = vector.shape_cast %8 : vector<256xf32> to vector<256x1xf32>
    %cst_10 = arith.constant 1.280000e+02 : f32
    %10 = vector.broadcast %cst_10 : f32 to vector<256x1xf32>
    %11 = arith.divf %9, %10 : vector<256x1xf32>
    %12 = vector.broadcast %11 : vector<256x1xf32> to vector<256x128xf32>
    %13 = arith.subf %5, %12 : vector<256x128xf32>
    %14 = arith.mulf %13, %13 : vector<256x128xf32>
    %cst_11 = arith.constant dense<0.000000e+00> : vector<256xf32>
    %15 = vector.multi_reduction <add>, %14, %cst_11 [1] : vector<256x128xf32> to vector<256xf32>
    %16 = vector.shape_cast %15 : vector<256xf32> to vector<256x1xf32>
    %cst_12 = arith.constant 1.280000e+02 : f32
    %17 = vector.broadcast %cst_12 : f32 to vector<256x1xf32>
    %18 = arith.divf %16, %17 : vector<256x1xf32>
    %19 = vector.broadcast %11 : vector<256x1xf32> to vector<256x128xf32>
    %20 = arith.subf %5, %19 : vector<256x128xf32>
    %cst_13 = arith.constant 9.99999974E-6 : f32
    %21 = vector.broadcast %cst_13 : f32 to vector<256x1xf32>
    %22 = arith.addf %18, %21 : vector<256x1xf32>
    %23 = math.rsqrt %22 : vector<256x1xf32>
    %24 = vector.broadcast %23 : vector<256x1xf32> to vector<256x128xf32>
    %25 = arith.mulf %20, %24 : vector<256x128xf32>
    %26 = vector.broadcast %6 : vector<1x128xf32> to vector<256x128xf32>
    %27 = arith.mulf %25, %26 : vector<256x128xf32>
    %28 = vector.broadcast %7 : vector<1x128xf32> to vector<256x128xf32>
    %29 = arith.addf %27, %28 : vector<256x128xf32>
    %cst_14 = arith.constant 0.000000e+00 : f32
    %30 = vector.broadcast %cst_14 : f32 to vector<256x128xf32>
    %31 = arith.maximumf %29, %30 : vector<256x128xf32>
    %c0_15 = arith.constant 0 : index
    %c0_16 = arith.constant 0 : index
    %32 = vector.load %arg7[%c0_15, %c0_16] : memref<128x128xf32, #tpu.memory_space<vmem>>, vector<128x128xf32>
    %cst_17 = arith.constant dense<0.000000e+00> : vector<256x128xf32>
    %33 = tpu.matmul %31, %32, %cst_17 {dimension_numbers = #tpu.dot_dimension_numbers<[1], [0], [0], [1], [0, 0, 1, 1], [], []>} : vector<256x128xf32>, vector<128x128xf32>, vector<256x128xf32> -> vector<256x128xf32>
    %c0_18 = arith.constant 0 : index
    %c0_19 = arith.constant 0 : index
    %34 = vector.load %arg8[%c0_18, %c0_19] : memref<1x128xf32, #tpu.memory_space<vmem>>, vector<1x128xf32>
    %35 = vector.broadcast %34 : vector<1x128xf32> to vector<256x128xf32>
    %36 = arith.addf %33, %35 : vector<256x128xf32>
    %c0_20 = arith.constant 0 : index
    %c0_21 = arith.constant 0 : index
    %37 = vector.load %arg9[%c0_20, %c0_21] : memref<1x128xf32, #tpu.memory_space<vmem>>, vector<1x128xf32>
    %c0_22 = arith.constant 0 : index
    %c0_23 = arith.constant 0 : index
    %38 = vector.load %arg10[%c0_22, %c0_23] : memref<1x128xf32, #tpu.memory_space<vmem>>, vector<1x128xf32>
    %cst_24 = arith.constant dense<0.000000e+00> : vector<256xf32>
    %39 = vector.multi_reduction <add>, %36, %cst_24 [1] : vector<256x128xf32> to vector<256xf32>
    %40 = vector.shape_cast %39 : vector<256xf32> to vector<256x1xf32>
    %cst_25 = arith.constant 1.280000e+02 : f32
    %41 = vector.broadcast %cst_25 : f32 to vector<256x1xf32>
    %42 = arith.divf %40, %41 : vector<256x1xf32>
    %43 = vector.broadcast %42 : vector<256x1xf32> to vector<256x128xf32>
    %44 = arith.subf %36, %43 : vector<256x128xf32>
    %45 = arith.mulf %44, %44 : vector<256x128xf32>
    %cst_26 = arith.constant dense<0.000000e+00> : vector<256xf32>
    %46 = vector.multi_reduction <add>, %45, %cst_26 [1] : vector<256x128xf32> to vector<256xf32>
    %47 = vector.shape_cast %46 : vector<256xf32> to vector<256x1xf32>
    %cst_27 = arith.constant 1.280000e+02 : f32
    %48 = vector.broadcast %cst_27 : f32 to vector<256x1xf32>
    %49 = arith.divf %47, %48 : vector<256x1xf32>
    %50 = vector.broadcast %42 : vector<256x1xf32> to vector<256x128xf32>
    %51 = arith.subf %36, %50 : vector<256x128xf32>
    %cst_28 = arith.constant 9.99999974E-6 : f32
    %52 = vector.broadcast %cst_28 : f32 to vector<256x1xf32>
    %53 = arith.addf %49, %52 : vector<256x1xf32>
    %54 = math.rsqrt %53 : vector<256x1xf32>
    %55 = vector.broadcast %54 : vector<256x1xf32> to vector<256x128xf32>
    %56 = arith.mulf %51, %55 : vector<256x128xf32>
    %57 = vector.broadcast %37 : vector<1x128xf32> to vector<256x128xf32>
    %58 = arith.mulf %56, %57 : vector<256x128xf32>
    %59 = vector.broadcast %38 : vector<1x128xf32> to vector<256x128xf32>
    %60 = arith.addf %58, %59 : vector<256x128xf32>
    %cst_29 = arith.constant 0.000000e+00 : f32
    %61 = vector.broadcast %cst_29 : f32 to vector<256x128xf32>
    %62 = arith.maximumf %60, %61 : vector<256x128xf32>
    %c0_30 = arith.constant 0 : index
    %c0_31 = arith.constant 0 : index
    %63 = vector.load %arg11[%c0_30, %c0_31] : memref<128x128xf32, #tpu.memory_space<vmem>>, vector<128x128xf32>
    %cst_32 = arith.constant dense<0.000000e+00> : vector<256x128xf32>
    %64 = tpu.matmul %62, %63, %cst_32 {dimension_numbers = #tpu.dot_dimension_numbers<[1], [0], [0], [1], [0, 0, 1, 1], [], []>} : vector<256x128xf32>, vector<128x128xf32>, vector<256x128xf32> -> vector<256x128xf32>
    %c0_33 = arith.constant 0 : index
    %c0_34 = arith.constant 0 : index
    %65 = vector.load %arg12[%c0_33, %c0_34] : memref<1x128xf32, #tpu.memory_space<vmem>>, vector<1x128xf32>
    %66 = vector.broadcast %65 : vector<1x128xf32> to vector<256x128xf32>
    %67 = arith.addf %64, %66 : vector<256x128xf32>
    %c0_35 = arith.constant 0 : index
    %c0_36 = arith.constant 0 : index
    %68 = vector.load %arg13[%c0_35, %c0_36] : memref<1x128xf32, #tpu.memory_space<vmem>>, vector<1x128xf32>
    %c0_37 = arith.constant 0 : index
    %c0_38 = arith.constant 0 : index
    %69 = vector.load %arg14[%c0_37, %c0_38] : memref<1x128xf32, #tpu.memory_space<vmem>>, vector<1x128xf32>
    %cst_39 = arith.constant dense<0.000000e+00> : vector<256xf32>
    %70 = vector.multi_reduction <add>, %67, %cst_39 [1] : vector<256x128xf32> to vector<256xf32>
    %71 = vector.shape_cast %70 : vector<256xf32> to vector<256x1xf32>
    %cst_40 = arith.constant 1.280000e+02 : f32
    %72 = vector.broadcast %cst_40 : f32 to vector<256x1xf32>
    %73 = arith.divf %71, %72 : vector<256x1xf32>
    %74 = vector.broadcast %73 : vector<256x1xf32> to vector<256x128xf32>
    %75 = arith.subf %67, %74 : vector<256x128xf32>
    %76 = arith.mulf %75, %75 : vector<256x128xf32>
    %cst_41 = arith.constant dense<0.000000e+00> : vector<256xf32>
    %77 = vector.multi_reduction <add>, %76, %cst_41 [1] : vector<256x128xf32> to vector<256xf32>
    %78 = vector.shape_cast %77 : vector<256xf32> to vector<256x1xf32>
    %cst_42 = arith.constant 1.280000e+02 : f32
    %79 = vector.broadcast %cst_42 : f32 to vector<256x1xf32>
    %80 = arith.divf %78, %79 : vector<256x1xf32>
    %81 = vector.broadcast %73 : vector<256x1xf32> to vector<256x128xf32>
    %82 = arith.subf %67, %81 : vector<256x128xf32>
    %cst_43 = arith.constant 9.99999974E-6 : f32
    %83 = vector.broadcast %cst_43 : f32 to vector<256x1xf32>
    %84 = arith.addf %80, %83 : vector<256x1xf32>
    %85 = math.rsqrt %84 : vector<256x1xf32>
    %86 = vector.broadcast %85 : vector<256x1xf32> to vector<256x128xf32>
    %87 = arith.mulf %82, %86 : vector<256x128xf32>
    %88 = vector.broadcast %68 : vector<1x128xf32> to vector<256x128xf32>
    %89 = arith.mulf %87, %88 : vector<256x128xf32>
    %90 = vector.broadcast %69 : vector<1x128xf32> to vector<256x128xf32>
    %91 = arith.addf %89, %90 : vector<256x128xf32>
    %cst_44 = arith.constant 0.000000e+00 : f32
    %92 = vector.broadcast %cst_44 : f32 to vector<256x128xf32>
    %93 = arith.maximumf %91, %92 : vector<256x128xf32>
    %94 = vector.shape_cast %93 : vector<256x128xf32> to vector<16x16x128xf32>
    %cst_45 = arith.constant dense<0xFF800000> : vector<16x128xf32>
    %95 = vector.multi_reduction <maximumf>, %94, %cst_45 [1] : vector<16x16x128xf32> to vector<16x128xf32>
    %c0_46 = arith.constant 0 : index
    %c0_47 = arith.constant 0 : index
    %96 = vector.load %arg16[%c0_46, %c0_47] : memref<128x128xf32, #tpu.memory_space<vmem>>, vector<128x128xf32>
    %cst_48 = arith.constant dense<0.000000e+00> : vector<16x128xf32>
    %97 = tpu.matmul %95, %96, %cst_48 {dimension_numbers = #tpu.dot_dimension_numbers<[1], [0], [0], [1], [0, 0, 1, 1], [], []>} : vector<16x128xf32>, vector<128x128xf32>, vector<16x128xf32> -> vector<16x128xf32>
    %c0_49 = arith.constant 0 : index
    %c0_50 = arith.constant 0 : index
    %98 = vector.load %arg15[%c0_49, %c0_50] : memref<128x128xf32, #tpu.memory_space<vmem>>, vector<128x128xf32>
    %cst_51 = arith.constant dense<0.000000e+00> : vector<256x128xf32>
    %99 = tpu.matmul %93, %98, %cst_51 {dimension_numbers = #tpu.dot_dimension_numbers<[1], [0], [0], [1], [0, 0, 1, 1], [], []>} : vector<256x128xf32>, vector<128x128xf32>, vector<256x128xf32> -> vector<256x128xf32>
    %c0_52 = arith.constant 0 : index
    %c0_53 = arith.constant 0 : index
    %100 = vector.load %arg17[%c0_52, %c0_53] : memref<1x128xf32, #tpu.memory_space<vmem>>, vector<1x128xf32>
    %101 = vector.broadcast %100 : vector<1x128xf32> to vector<256x128xf32>
    %102 = arith.addf %99, %101 : vector<256x128xf32>
    %103 = vector.shape_cast %102 : vector<256x128xf32> to vector<16x16x128xf32>
    %104 = vector.shape_cast %97 : vector<16x128xf32> to vector<16x1x128xf32>
    %105 = vector.broadcast %104 : vector<16x1x128xf32> to vector<16x16x128xf32>
    %106 = arith.addf %103, %105 : vector<16x16x128xf32>
    %107 = vector.shape_cast %106 : vector<16x16x128xf32> to vector<256x128xf32>
    %c0_54 = arith.constant 0 : index
    %c0_55 = arith.constant 0 : index
    %108 = vector.load %arg18[%c0_54, %c0_55] : memref<1x128xf32, #tpu.memory_space<vmem>>, vector<1x128xf32>
    %c0_56 = arith.constant 0 : index
    %c0_57 = arith.constant 0 : index
    %109 = vector.load %arg19[%c0_56, %c0_57] : memref<1x128xf32, #tpu.memory_space<vmem>>, vector<1x128xf32>
    %cst_58 = arith.constant dense<0.000000e+00> : vector<256xf32>
    %110 = vector.multi_reduction <add>, %107, %cst_58 [1] : vector<256x128xf32> to vector<256xf32>
    %111 = vector.shape_cast %110 : vector<256xf32> to vector<256x1xf32>
    %cst_59 = arith.constant 1.280000e+02 : f32
    %112 = vector.broadcast %cst_59 : f32 to vector<256x1xf32>
    %113 = arith.divf %111, %112 : vector<256x1xf32>
    %114 = vector.broadcast %113 : vector<256x1xf32> to vector<256x128xf32>
    %115 = arith.subf %107, %114 : vector<256x128xf32>
    %116 = arith.mulf %115, %115 : vector<256x128xf32>
    %cst_60 = arith.constant dense<0.000000e+00> : vector<256xf32>
    %117 = vector.multi_reduction <add>, %116, %cst_60 [1] : vector<256x128xf32> to vector<256xf32>
    %118 = vector.shape_cast %117 : vector<256xf32> to vector<256x1xf32>
    %cst_61 = arith.constant 1.280000e+02 : f32
    %119 = vector.broadcast %cst_61 : f32 to vector<256x1xf32>
    %120 = arith.divf %118, %119 : vector<256x1xf32>
    %121 = vector.broadcast %113 : vector<256x1xf32> to vector<256x128xf32>
    %122 = arith.subf %107, %121 : vector<256x128xf32>
    %cst_62 = arith.constant 9.99999974E-6 : f32
    %123 = vector.broadcast %cst_62 : f32 to vector<256x1xf32>
    %124 = arith.addf %120, %123 : vector<256x1xf32>
    %125 = math.rsqrt %124 : vector<256x1xf32>
    %126 = vector.broadcast %125 : vector<256x1xf32> to vector<256x128xf32>
    %127 = arith.mulf %122, %126 : vector<256x128xf32>
    %128 = vector.broadcast %108 : vector<1x128xf32> to vector<256x128xf32>
    %129 = arith.mulf %127, %128 : vector<256x128xf32>
    %130 = vector.broadcast %109 : vector<1x128xf32> to vector<256x128xf32>
    %131 = arith.addf %129, %130 : vector<256x128xf32>
    %cst_63 = arith.constant 0.000000e+00 : f32
    %132 = vector.broadcast %cst_63 : f32 to vector<256x128xf32>
    %133 = arith.maximumf %131, %132 : vector<256x128xf32>
    %c0_64 = arith.constant 0 : index
    %c0_65 = arith.constant 0 : index
    %134 = vector.load %arg20[%c0_64, %c0_65] : memref<128x128xf32, #tpu.memory_space<vmem>>, vector<128x128xf32>
    %cst_66 = arith.constant dense<0.000000e+00> : vector<256x128xf32>
    %135 = tpu.matmul %133, %134, %cst_66 {dimension_numbers = #tpu.dot_dimension_numbers<[1], [0], [0], [1], [0, 0, 1, 1], [], []>} : vector<256x128xf32>, vector<128x128xf32>, vector<256x128xf32> -> vector<256x128xf32>
    %c0_67 = arith.constant 0 : index
    %c0_68 = arith.constant 0 : index
    %136 = vector.load %arg21[%c0_67, %c0_68] : memref<1x128xf32, #tpu.memory_space<vmem>>, vector<1x128xf32>
    %137 = vector.broadcast %136 : vector<1x128xf32> to vector<256x128xf32>
    %138 = arith.addf %135, %137 : vector<256x128xf32>
    %c0_69 = arith.constant 0 : index
    %c0_70 = arith.constant 0 : index
    %139 = vector.load %arg22[%c0_69, %c0_70] : memref<1x128xf32, #tpu.memory_space<vmem>>, vector<1x128xf32>
    %c0_71 = arith.constant 0 : index
    %c0_72 = arith.constant 0 : index
    %140 = vector.load %arg23[%c0_71, %c0_72] : memref<1x128xf32, #tpu.memory_space<vmem>>, vector<1x128xf32>
    %cst_73 = arith.constant dense<0.000000e+00> : vector<256xf32>
    %141 = vector.multi_reduction <add>, %138, %cst_73 [1] : vector<256x128xf32> to vector<256xf32>
    %142 = vector.shape_cast %141 : vector<256xf32> to vector<256x1xf32>
    %cst_74 = arith.constant 1.280000e+02 : f32
    %143 = vector.broadcast %cst_74 : f32 to vector<256x1xf32>
    %144 = arith.divf %142, %143 : vector<256x1xf32>
    %145 = vector.broadcast %144 : vector<256x1xf32> to vector<256x128xf32>
    %146 = arith.subf %138, %145 : vector<256x128xf32>
    %147 = arith.mulf %146, %146 : vector<256x128xf32>
    %cst_75 = arith.constant dense<0.000000e+00> : vector<256xf32>
    %148 = vector.multi_reduction <add>, %147, %cst_75 [1] : vector<256x128xf32> to vector<256xf32>
    %149 = vector.shape_cast %148 : vector<256xf32> to vector<256x1xf32>
    %cst_76 = arith.constant 1.280000e+02 : f32
    %150 = vector.broadcast %cst_76 : f32 to vector<256x1xf32>
    %151 = arith.divf %149, %150 : vector<256x1xf32>
    %152 = vector.broadcast %144 : vector<256x1xf32> to vector<256x128xf32>
    %153 = arith.subf %138, %152 : vector<256x128xf32>
    %cst_77 = arith.constant 9.99999974E-6 : f32
    %154 = vector.broadcast %cst_77 : f32 to vector<256x1xf32>
    %155 = arith.addf %151, %154 : vector<256x1xf32>
    %156 = math.rsqrt %155 : vector<256x1xf32>
    %157 = vector.broadcast %156 : vector<256x1xf32> to vector<256x128xf32>
    %158 = arith.mulf %153, %157 : vector<256x128xf32>
    %159 = vector.broadcast %139 : vector<1x128xf32> to vector<256x128xf32>
    %160 = arith.mulf %158, %159 : vector<256x128xf32>
    %161 = vector.broadcast %140 : vector<1x128xf32> to vector<256x128xf32>
    %162 = arith.addf %160, %161 : vector<256x128xf32>
    %cst_78 = arith.constant 0.000000e+00 : f32
    %163 = vector.broadcast %cst_78 : f32 to vector<256x128xf32>
    %164 = arith.maximumf %162, %163 : vector<256x128xf32>
    %165 = arith.addf %31, %164 : vector<256x128xf32>
    %c0_79 = arith.constant 0 : index
    %c0_80 = arith.constant 0 : index
    %166 = vector.load %arg24[%c0_79, %c0_80] : memref<1x128xf32, #tpu.memory_space<vmem>>, vector<1x128xf32>
    %c0_81 = arith.constant 0 : index
    %c0_82 = arith.constant 0 : index
    %167 = vector.load %arg25[%c0_81, %c0_82] : memref<1x128xf32, #tpu.memory_space<vmem>>, vector<1x128xf32>
    %cst_83 = arith.constant dense<0.000000e+00> : vector<256xf32>
    %168 = vector.multi_reduction <add>, %165, %cst_83 [1] : vector<256x128xf32> to vector<256xf32>
    %169 = vector.shape_cast %168 : vector<256xf32> to vector<256x1xf32>
    %cst_84 = arith.constant 1.280000e+02 : f32
    %170 = vector.broadcast %cst_84 : f32 to vector<256x1xf32>
    %171 = arith.divf %169, %170 : vector<256x1xf32>
    %172 = vector.broadcast %171 : vector<256x1xf32> to vector<256x128xf32>
    %173 = arith.subf %165, %172 : vector<256x128xf32>
    %174 = arith.mulf %173, %173 : vector<256x128xf32>
    %cst_85 = arith.constant dense<0.000000e+00> : vector<256xf32>
    %175 = vector.multi_reduction <add>, %174, %cst_85 [1] : vector<256x128xf32> to vector<256xf32>
    %176 = vector.shape_cast %175 : vector<256xf32> to vector<256x1xf32>
    %cst_86 = arith.constant 1.280000e+02 : f32
    %177 = vector.broadcast %cst_86 : f32 to vector<256x1xf32>
    %178 = arith.divf %176, %177 : vector<256x1xf32>
    %179 = vector.broadcast %171 : vector<256x1xf32> to vector<256x128xf32>
    %180 = arith.subf %165, %179 : vector<256x128xf32>
    %cst_87 = arith.constant 9.99999974E-6 : f32
    %181 = vector.broadcast %cst_87 : f32 to vector<256x1xf32>
    %182 = arith.addf %178, %181 : vector<256x1xf32>
    %183 = math.rsqrt %182 : vector<256x1xf32>
    %184 = vector.broadcast %183 : vector<256x1xf32> to vector<256x128xf32>
    %185 = arith.mulf %180, %184 : vector<256x128xf32>
    %186 = vector.broadcast %166 : vector<1x128xf32> to vector<256x128xf32>
    %187 = arith.mulf %185, %186 : vector<256x128xf32>
    %188 = vector.broadcast %167 : vector<1x128xf32> to vector<256x128xf32>
    %189 = arith.addf %187, %188 : vector<256x128xf32>
    %190 = vector.shape_cast %189 : vector<256x128xf32> to vector<16x16x128xf32>
    %cst_88 = arith.constant dense<0xFF800000> : vector<16x128xf32>
    %191 = vector.multi_reduction <maximumf>, %190, %cst_88 [1] : vector<16x16x128xf32> to vector<16x128xf32>
    %c0_89 = arith.constant 0 : index
    %c0_90 = arith.constant 0 : index
    %192 = vector.load %arg1[%c0_89, %c0_90] : memref<16x16xf32, #tpu.memory_space<vmem>>, vector<16x16xf32>
    %cst_91 = arith.constant dense<0.000000e+00> : vector<16x128xf32>
    %193 = tpu.matmul %192, %191, %cst_91 {dimension_numbers = #tpu.dot_dimension_numbers<[1], [0], [0], [1], [0, 0, 1, 1], [], []>} : vector<16x16xf32>, vector<16x128xf32>, vector<16x128xf32> -> vector<16x128xf32>
    %c0_92 = arith.constant 0 : index
    %c0_93 = arith.constant 0 : index
    %194 = vector.load %arg26[%c0_92, %c0_93] : memref<128x384xf32, #tpu.memory_space<vmem>>, vector<128x384xf32>
    %cst_94 = arith.constant dense<0.000000e+00> : vector<16x384xf32>
    %195 = tpu.matmul %193, %194, %cst_94 {dimension_numbers = #tpu.dot_dimension_numbers<[1], [0], [0], [1], [0, 0, 1, 1], [], []>} : vector<16x128xf32>, vector<128x384xf32>, vector<16x384xf32> -> vector<16x384xf32>
    %c0_95 = arith.constant 0 : index
    %c0_96 = arith.constant 0 : index
    %196 = vector.load %arg27[%c0_95, %c0_96] : memref<1x384xf32, #tpu.memory_space<vmem>>, vector<1x384xf32>
    %197 = vector.broadcast %196 : vector<1x384xf32> to vector<16x384xf32>
    %198 = arith.addf %195, %197 : vector<16x384xf32>
    %199 = vector.extract_strided_slice %198 {offsets = [0, 0], sizes = [16, 128], strides = [1, 1]} : vector<16x384xf32> to vector<16x128xf32>
    %200 = vector.extract_strided_slice %198 {offsets = [0, 128], sizes = [16, 128], strides = [1, 1]} : vector<16x384xf32> to vector<16x128xf32>
    %201 = vector.extract_strided_slice %198 {offsets = [0, 256], sizes = [16, 128], strides = [1, 1]} : vector<16x384xf32> to vector<16x128xf32>
    %cst_97 = arith.constant dense<0.000000e+00> : vector<16x16xf32>
    %202 = tpu.matmul %199, %200, %cst_97 {dimension_numbers = #tpu.dot_dimension_numbers<[1], [1], [0], [0], [0, 0, 1, 0], [], []>} : vector<16x128xf32>, vector<16x128xf32>, vector<16x16xf32> -> vector<16x16xf32>
    %cst_98 = arith.constant 1.250000e-01 : f32
    %203 = vector.broadcast %cst_98 : f32 to vector<16x16xf32>
    %204 = arith.mulf %202, %203 : vector<16x16xf32>
    %c0_99 = arith.constant 0 : index
    %c0_100 = arith.constant 0 : index
    %205 = vector.load %arg2[%c0_99, %c0_100] : memref<16x16xf32, #tpu.memory_space<vmem>>, vector<16x16xf32>
    %206 = arith.addf %204, %205 : vector<16x16xf32>
    %cst_101 = arith.constant dense<0xFF800000> : vector<16xf32>
    %207 = vector.multi_reduction <maximumf>, %206, %cst_101 [1] : vector<16x16xf32> to vector<16xf32>
    %208 = vector.shape_cast %207 : vector<16xf32> to vector<16x1xf32>
    %209 = vector.broadcast %208 : vector<16x1xf32> to vector<16x16xf32>
    %210 = arith.subf %206, %209 : vector<16x16xf32>
    %211 = math.exp %210 : vector<16x16xf32>
    %cst_102 = arith.constant dense<0.000000e+00> : vector<16xf32>
    %212 = vector.multi_reduction <add>, %211, %cst_102 [1] : vector<16x16xf32> to vector<16xf32>
    %213 = vector.shape_cast %212 : vector<16xf32> to vector<16x1xf32>
    %214 = tpu.reciprocal %213 {approx = true} : vector<16x1xf32> -> vector<16x1xf32>
    %215 = vector.broadcast %214 : vector<16x1xf32> to vector<16x16xf32>
    %216 = arith.mulf %211, %215 : vector<16x16xf32>
    %cst_103 = arith.constant dense<0.000000e+00> : vector<16x128xf32>
    %217 = tpu.matmul %216, %201, %cst_103 {dimension_numbers = #tpu.dot_dimension_numbers<[1], [0], [0], [1], [0, 0, 1, 1], [], []>} : vector<16x16xf32>, vector<16x128xf32>, vector<16x128xf32> -> vector<16x128xf32>
    %c0_104 = arith.constant 0 : index
    %c0_105 = arith.constant 0 : index
    %218 = vector.load %arg28[%c0_104, %c0_105] : memref<128x128xf32, #tpu.memory_space<vmem>>, vector<128x128xf32>
    %cst_106 = arith.constant dense<0.000000e+00> : vector<16x128xf32>
    %219 = tpu.matmul %217, %218, %cst_106 {dimension_numbers = #tpu.dot_dimension_numbers<[1], [0], [0], [1], [0, 0, 1, 1], [], []>} : vector<16x128xf32>, vector<128x128xf32>, vector<16x128xf32> -> vector<16x128xf32>
    %c0_107 = arith.constant 0 : index
    %c0_108 = arith.constant 0 : index
    %220 = vector.load %arg29[%c0_107, %c0_108] : memref<1x128xf32, #tpu.memory_space<vmem>>, vector<1x128xf32>
    %221 = vector.broadcast %220 : vector<1x128xf32> to vector<16x128xf32>
    %222 = arith.addf %219, %221 : vector<16x128xf32>
    %223 = arith.addf %193, %222 : vector<16x128xf32>
    %c0_109 = arith.constant 0 : index
    %c0_110 = arith.constant 0 : index
    %224 = vector.load %arg30[%c0_109, %c0_110] : memref<1x128xf32, #tpu.memory_space<vmem>>, vector<1x128xf32>
    %c0_111 = arith.constant 0 : index
    %c0_112 = arith.constant 0 : index
    %225 = vector.load %arg31[%c0_111, %c0_112] : memref<1x128xf32, #tpu.memory_space<vmem>>, vector<1x128xf32>
    %cst_113 = arith.constant dense<0.000000e+00> : vector<16xf32>
    %226 = vector.multi_reduction <add>, %223, %cst_113 [1] : vector<16x128xf32> to vector<16xf32>
    %227 = vector.shape_cast %226 : vector<16xf32> to vector<16x1xf32>
    %cst_114 = arith.constant 1.280000e+02 : f32
    %228 = vector.broadcast %cst_114 : f32 to vector<16x1xf32>
    %229 = arith.divf %227, %228 : vector<16x1xf32>
    %230 = vector.broadcast %229 : vector<16x1xf32> to vector<16x128xf32>
    %231 = arith.subf %223, %230 : vector<16x128xf32>
    %232 = arith.mulf %231, %231 : vector<16x128xf32>
    %cst_115 = arith.constant dense<0.000000e+00> : vector<16xf32>
    %233 = vector.multi_reduction <add>, %232, %cst_115 [1] : vector<16x128xf32> to vector<16xf32>
    %234 = vector.shape_cast %233 : vector<16xf32> to vector<16x1xf32>
    %cst_116 = arith.constant 1.280000e+02 : f32
    %235 = vector.broadcast %cst_116 : f32 to vector<16x1xf32>
    %236 = arith.divf %234, %235 : vector<16x1xf32>
    %237 = vector.broadcast %229 : vector<16x1xf32> to vector<16x128xf32>
    %238 = arith.subf %223, %237 : vector<16x128xf32>
    %cst_117 = arith.constant 9.99999974E-6 : f32
    %239 = vector.broadcast %cst_117 : f32 to vector<16x1xf32>
    %240 = arith.addf %236, %239 : vector<16x1xf32>
    %241 = math.rsqrt %240 : vector<16x1xf32>
    %242 = vector.broadcast %241 : vector<16x1xf32> to vector<16x128xf32>
    %243 = arith.mulf %238, %242 : vector<16x128xf32>
    %244 = vector.broadcast %224 : vector<1x128xf32> to vector<16x128xf32>
    %245 = arith.mulf %243, %244 : vector<16x128xf32>
    %246 = vector.broadcast %225 : vector<1x128xf32> to vector<16x128xf32>
    %247 = arith.addf %245, %246 : vector<16x128xf32>
    %c0_118 = arith.constant 0 : index
    %c0_119 = arith.constant 0 : index
    %248 = vector.load %arg32[%c0_118, %c0_119] : memref<128x256xf32, #tpu.memory_space<vmem>>, vector<128x256xf32>
    %cst_120 = arith.constant dense<0.000000e+00> : vector<16x256xf32>
    %249 = tpu.matmul %247, %248, %cst_120 {dimension_numbers = #tpu.dot_dimension_numbers<[1], [0], [0], [1], [0, 0, 1, 1], [], []>} : vector<16x128xf32>, vector<128x256xf32>, vector<16x256xf32> -> vector<16x256xf32>
    %c0_121 = arith.constant 0 : index
    %c0_122 = arith.constant 0 : index
    %250 = vector.load %arg33[%c0_121, %c0_122] : memref<1x256xf32, #tpu.memory_space<vmem>>, vector<1x256xf32>
    %251 = vector.broadcast %250 : vector<1x256xf32> to vector<16x256xf32>
    %252 = arith.addf %249, %251 : vector<16x256xf32>
    %cst_123 = arith.constant 0.000000e+00 : f32
    %253 = vector.broadcast %cst_123 : f32 to vector<16x256xf32>
    %254 = arith.maximumf %252, %253 : vector<16x256xf32>
    %c0_124 = arith.constant 0 : index
    %c0_125 = arith.constant 0 : index
    %255 = vector.load %arg34[%c0_124, %c0_125] : memref<256x128xf32, #tpu.memory_space<vmem>>, vector<256x128xf32>
    %cst_126 = arith.constant dense<0.000000e+00> : vector<16x128xf32>
    %256 = tpu.matmul %254, %255, %cst_126 {dimension_numbers = #tpu.dot_dimension_numbers<[1], [0], [0], [1], [0, 0, 1, 1], [], []>} : vector<16x256xf32>, vector<256x128xf32>, vector<16x128xf32> -> vector<16x128xf32>
    %c0_127 = arith.constant 0 : index
    %c0_128 = arith.constant 0 : index
    %257 = vector.load %arg35[%c0_127, %c0_128] : memref<1x128xf32, #tpu.memory_space<vmem>>, vector<1x128xf32>
    %258 = vector.broadcast %257 : vector<1x128xf32> to vector<16x128xf32>
    %259 = arith.addf %256, %258 : vector<16x128xf32>
    %260 = arith.addf %247, %259 : vector<16x128xf32>
    %c0_129 = arith.constant 0 : index
    %c0_130 = arith.constant 0 : index
    %261 = vector.load %arg36[%c0_129, %c0_130] : memref<1x128xf32, #tpu.memory_space<vmem>>, vector<1x128xf32>
    %c0_131 = arith.constant 0 : index
    %c0_132 = arith.constant 0 : index
    %262 = vector.load %arg37[%c0_131, %c0_132] : memref<1x128xf32, #tpu.memory_space<vmem>>, vector<1x128xf32>
    %cst_133 = arith.constant dense<0.000000e+00> : vector<16xf32>
    %263 = vector.multi_reduction <add>, %260, %cst_133 [1] : vector<16x128xf32> to vector<16xf32>
    %264 = vector.shape_cast %263 : vector<16xf32> to vector<16x1xf32>
    %cst_134 = arith.constant 1.280000e+02 : f32
    %265 = vector.broadcast %cst_134 : f32 to vector<16x1xf32>
    %266 = arith.divf %264, %265 : vector<16x1xf32>
    %267 = vector.broadcast %266 : vector<16x1xf32> to vector<16x128xf32>
    %268 = arith.subf %260, %267 : vector<16x128xf32>
    %269 = arith.mulf %268, %268 : vector<16x128xf32>
    %cst_135 = arith.constant dense<0.000000e+00> : vector<16xf32>
    %270 = vector.multi_reduction <add>, %269, %cst_135 [1] : vector<16x128xf32> to vector<16xf32>
    %271 = vector.shape_cast %270 : vector<16xf32> to vector<16x1xf32>
    %cst_136 = arith.constant 1.280000e+02 : f32
    %272 = vector.broadcast %cst_136 : f32 to vector<16x1xf32>
    %273 = arith.divf %271, %272 : vector<16x1xf32>
    %274 = vector.broadcast %266 : vector<16x1xf32> to vector<16x128xf32>
    %275 = arith.subf %260, %274 : vector<16x128xf32>
    %cst_137 = arith.constant 9.99999974E-6 : f32
    %276 = vector.broadcast %cst_137 : f32 to vector<16x1xf32>
    %277 = arith.addf %273, %276 : vector<16x1xf32>
    %278 = math.rsqrt %277 : vector<16x1xf32>
    %279 = vector.broadcast %278 : vector<16x1xf32> to vector<16x128xf32>
    %280 = arith.mulf %275, %279 : vector<16x128xf32>
    %281 = vector.broadcast %261 : vector<1x128xf32> to vector<16x128xf32>
    %282 = arith.mulf %280, %281 : vector<16x128xf32>
    %283 = vector.broadcast %262 : vector<1x128xf32> to vector<16x128xf32>
    %284 = arith.addf %282, %283 : vector<16x128xf32>
    %285 = arith.addf %193, %284 : vector<16x128xf32>
    %c0_138 = arith.constant 0 : index
    %c0_139 = arith.constant 0 : index
    %286 = vector.load %arg38[%c0_138, %c0_139] : memref<1x128xf32, #tpu.memory_space<vmem>>, vector<1x128xf32>
    %c0_140 = arith.constant 0 : index
    %c0_141 = arith.constant 0 : index
    %287 = vector.load %arg39[%c0_140, %c0_141] : memref<1x128xf32, #tpu.memory_space<vmem>>, vector<1x128xf32>
    %cst_142 = arith.constant dense<0.000000e+00> : vector<16xf32>
    %288 = vector.multi_reduction <add>, %285, %cst_142 [1] : vector<16x128xf32> to vector<16xf32>
    %289 = vector.shape_cast %288 : vector<16xf32> to vector<16x1xf32>
    %cst_143 = arith.constant 1.280000e+02 : f32
    %290 = vector.broadcast %cst_143 : f32 to vector<16x1xf32>
    %291 = arith.divf %289, %290 : vector<16x1xf32>
    %292 = vector.broadcast %291 : vector<16x1xf32> to vector<16x128xf32>
    %293 = arith.subf %285, %292 : vector<16x128xf32>
    %294 = arith.mulf %293, %293 : vector<16x128xf32>
    %cst_144 = arith.constant dense<0.000000e+00> : vector<16xf32>
    %295 = vector.multi_reduction <add>, %294, %cst_144 [1] : vector<16x128xf32> to vector<16xf32>
    %296 = vector.shape_cast %295 : vector<16xf32> to vector<16x1xf32>
    %cst_145 = arith.constant 1.280000e+02 : f32
    %297 = vector.broadcast %cst_145 : f32 to vector<16x1xf32>
    %298 = arith.divf %296, %297 : vector<16x1xf32>
    %299 = vector.broadcast %291 : vector<16x1xf32> to vector<16x128xf32>
    %300 = arith.subf %285, %299 : vector<16x128xf32>
    %cst_146 = arith.constant 9.99999974E-6 : f32
    %301 = vector.broadcast %cst_146 : f32 to vector<16x1xf32>
    %302 = arith.addf %298, %301 : vector<16x1xf32>
    %303 = math.rsqrt %302 : vector<16x1xf32>
    %304 = vector.broadcast %303 : vector<16x1xf32> to vector<16x128xf32>
    %305 = arith.mulf %300, %304 : vector<16x128xf32>
    %306 = vector.broadcast %286 : vector<1x128xf32> to vector<16x128xf32>
    %307 = arith.mulf %305, %306 : vector<16x128xf32>
    %308 = vector.broadcast %287 : vector<1x128xf32> to vector<16x128xf32>
    %309 = arith.addf %307, %308 : vector<16x128xf32>
    %c0_147 = arith.constant 0 : index
    %c0_148 = arith.constant 0 : index
    %310 = vector.load %arg40[%c0_147, %c0_148] : memref<16x128xf32, #tpu.memory_space<vmem>>, vector<16x128xf32>
    tpu.vector_store %arg40[%c0_147, %c0_148], %309 {strides = array<i32>} : memref<16x128xf32, #tpu.memory_space<vmem>>, vector<16x128xf32>,
    return
  }
}

</mosaic_0001>

<bundles_post_ra>
// kernel: ll_encoder_forward.1
= control target key start
LH: loop header
LB: loop body
LE: loop exit
PB: predicated region body
PF: predicated region fallthrough
CT: control target
= control target key end

     0   :  { %s7607_s6 = smov 1   ;;  %s7608_s10 = smov 2   ;;  %s11134_s0 = inlined_call_operand.smem [shape: u32[41], index: -1, kind: input, shape index: {}] }
   0x1   :  { %s7661_s5 = sld [smem:[%s11134_s0]]   ;;  %s7609_s14 = smov 3  }
   0x2   :  { %s7666_s9 = sld [smem:[%s11134_s0 + %s7607_s6]]   ;;  %s7610_s18 = smov 4  }
   0x3   :  { %s7671_s13 = sld [smem:[%s11134_s0 + %s7608_s10]]   ;;  %s7611_s22 = smov 5  }
   0x4   :  { %s7676_s17 = sld [smem:[%s11134_s0 + %s7609_s14]]   ;;  %s7612_s26 = smov 6  }
   0x5   :  { %s7681_s21 = sld [smem:[%s11134_s0 + %s7610_s18]]   ;;  %s7613_s30 = smov 7  }
   0x6   :  { %s7686_s25 = sld [smem:[%s11134_s0 + %s7611_s22]]   ;;  %s7614_s4 = smov 8  }
   0x7   :  { %s7691_s29 = sld [smem:[%s11134_s0 + %s7612_s26]]   ;;  %s7615_s10 = smov 9  }
   0x8   :  { %11225 = sst [smem:[#allocation5_spill]] %s7666_s9  ;;  %s7616_s15 = smov 10  }
   0x9   :  { %11226 = sst [smem:[#allocation6_spill]] %s7671_s13  ;;  %s7617_s20 = smov 11  }
   0xa   :  { %s7696_s3 = sld [smem:[%s11134_s0 + %s7613_s30]]   ;;  %s7618_s26 = smov 12  }
   0xb   :  { %s7701_s8 = sld [smem:[%s11134_s0 + %s7614_s4]]   ;;  %s7619_s1 = smov 13  }
   0xc   :  { %s7706_s14 = sld [smem:[%s11134_s0 + %s7615_s10]]   ;;  %s7620_s7 = smov 14  }
   0xd   :  { %s7711_s19 = sld [smem:[%s11134_s0 + %s7616_s15]]   ;;  %s7621_s15 = smov 15  }
   0xe   :  { %s7716_s24 = sld [smem:[%s11134_s0 + %s7617_s20]]   ;;  %s7622_s22 = smov 16  }
   0xf   :  { %s7721_s30 = sld [smem:[%s11134_s0 + %s7618_s26]]   ;;  %s7623_s28 = smov 17  }
  0x10   :  { %s7726_s6 = sld [smem:[%s11134_s0 + %s7619_s1]]  }
  0x11   :  { %s7731_s12 = sld [smem:[%s11134_s0 + %s7620_s7]]   ;;  %s7624_s7 = smov 18  }
  0x12   :  { %s7736_s20 = sld [smem:[%s11134_s0 + %s7621_s15]]   ;;  %s7625_s15 = smov 19  }
  0x13   :  { %s7741_s27 = sld [smem:[%s11134_s0 + %s7622_s22]]   ;;  %s7626_s22 = smov 20  }
  0x14   :  { %s7746_s4 = sld [smem:[%s11134_s0 + %s7623_s28]]   ;;  %s7627_s28 = smov 21  }
  0x15   :  { %s7751_s13 = sld [smem:[%s11134_s0 + %s7624_s7]]   ;;  %s7628_s7 = smov 22  }
  0x16   :  { %s7756_s9 = sld [smem:[%s11134_s0 + %s7625_s15]]   ;;  %s7629_s15 = smov 23  }
  0x17   :  { %11227 = sst [smem:[#allocation7_spill]] %s7731_s12 }
  0x18   :  { %s7761_s12 = sld [smem:[%s11134_s0 + %s7626_s22]]   ;;  %s7630_s22 = smov 24  }
  0x1a   :  { %11228 = sst [smem:[#allocation8_spill]] %s7746_s4 }
  0x1b   :  { %11229 = sst [smem:[#allocation9_spill]] %s7751_s13 }
  0x1c   :  { %11230 = sst [smem:[#allocation10_spill]] %s7756_s9 }
  0x1d   :  { %s7766_s4 = sld [smem:[%s11134_s0 + %s7627_s28]]   ;;  %s7631_s28 = smov 25  }
  0x1e   :  { %11231 = sst [smem:[#allocation11_spill]] %s7761_s12 }
  0x1f   :  { %s7771_s13 = sld [smem:[%s11134_s0 + %s7628_s7]]   ;;  %s7632_s7 = smov 26  }
  0x20   :  { %s7776_s9 = sld [smem:[%s11134_s0 + %s7629_s15]]   ;;  %s7633_s15 = smov 27  }
  0x21   :  { %s7781_s12 = sld [smem:[%s11134_s0 + %s7630_s22]]   ;;  %s7634_s22 = smov 28  }
  0x23   :  { %11232 = sst [smem:[#allocation12_spill]] %s7766_s4 }
  0x24   :  { %s7786_s4 = sld [smem:[%s11134_s0 + %s7631_s28]]   ;;  %s7635_s28 = smov 29  }
  0x25   :  { %11233 = sst [smem:[#allocation13_spill]] %s7771_s13 }
  0x26   :  { %11234 = sst [smem:[#allocation14_spill]] %s7776_s9 }
  0x27   :  { %11235 = sst [smem:[#allocation15_spill]] %s7781_s12 }
  0x28   :  { %s7791_s13 = sld [smem:[%s11134_s0 + %s7632_s7]]   ;;  %s7636_s7 = smov 30  }
  0x29   :  { %s7796_s9 = sld [smem:[%s11134_s0 + %s7633_s15]]   ;;  %s7637_s15 = smov 31  }
  0x2a   :  { %11236 = sst [smem:[#allocation16_spill]] %s7786_s4 }
  0x2b   :  { %s7801_s12 = sld [smem:[%s11134_s0 + %s7634_s22]]   ;;  %s7638_s22 = smov 32  }
  0x2c   :  { %s7806_s4 = sld [smem:[%s11134_s0 + %s7635_s28]]   ;;  %s7639_s28 = smov 33  }
  0x2e   :  { %11237 = sst [smem:[#allocation17_spill]] %s7791_s13 }
  0x2f   :  { %11238 = sst [smem:[#allocation18_spill]] %s7796_s9 }
  0x30   :  { %s7811_s13 = sld [smem:[%s11134_s0 + %s7636_s7]]   ;;  %s7640_s7 = smov 34  }
  0x31   :  { %11239 = sst [smem:[#allocation19_spill]] %s7801_s12 }
  0x32   :  { %11240 = sst [smem:[#allocation20_spill]] %s7806_s4 }
  0x33   :  { %s7816_s9 = sld [smem:[%s11134_s0 + %s7637_s15]]   ;;  %s7641_s15 = smov 35  }
  0x34   :  { %s7821_s12 = sld [smem:[%s11134_s0 + %s7638_s22]]   ;;  %s7642_s22 = smov 36  }
  0x35   :  { %s7826_s4 = sld [smem:[%s11134_s0 + %s7639_s28]]   ;;  %s7643_s28 = smov 37  }
  0x36   :  { %11241 = sst [smem:[#allocation21_spill]] %s7811_s13 }
  0x37   :  { %s7831_s13 = sld [smem:[%s11134_s0 + %s7640_s7]]   ;;  %s7644_s7 = smov 38  }
  0x39   :  { %11242 = sst [smem:[#allocation22_spill]] %s7816_s9 }
  0x3a   :  { %11243 = sst [smem:[#allocation23_spill]] %s7821_s12 }
  0x3b   :  { %11244 = sst [smem:[#allocation24_spill]] %s7826_s4 }
  0x3c   :  { %s7836_s9 = sld [smem:[%s11134_s0 + %s7641_s15]]   ;;  %s7645_s15 = smov 39  }
  0x3d   :  { %11245 = sst [smem:[#allocation25_spill]] %s7831_s13 }
  0x3e   :  { %s7841_s12 = sld [smem:[%s11134_s0 + %s7642_s22]]   ;;  %s7646_s22 = smov 40  }
  0x3f   :  { %s7846_s4 = sld [smem:[%s11134_s0 + %s7643_s28]]  }
  0x40   :  { %s7851_s13 = sld [smem:[%s11134_s0 + %s7644_s7]]  }
  0x42   :  { %11246 = sst [smem:[#allocation26_spill]] %s7836_s9 }
  0x43   :  { %s7856_s9 = sld [smem:[%s11134_s0 + %s7645_s15]]  }
  0x44   :  { %11247 = sst [smem:[#allocation27_spill]] %s7841_s12 }
  0x45   :  { %s7861_s12 = sld [smem:[%s11134_s0 + %s7646_s22]]  }
  0x46   :  { %v199_v0 = vld [vmem:[%s7676_s17] sm:$0xff]  ;;  %v200_v1 = vld [vmem:[%s7676_s17 + $0x8] sm:$0x3]  ;;  %vm305_vm0 = vcmask 1041408   ;;  %vm7647_vm1 = vmmov 1   ;;  %vm208_vm3 = vcmask 80896  }
  0x47   :  { %v167_v2 = vld [vmem:[%s7661_s5] sm:$0xff]  ;;  %v6793_v3 = vpack.c.bf16 %v200_v1, %v199_v0  ;;  %vm6794_vm2 = vmpackc.low %vm305_vm0, %vm7647_vm1  ;;  %v168_v4 = vld [vmem:[%s7661_s5 + $0x8] sm:$0xff] }
  0x48   :  { %6299 = vmatprep.mubr.msk.f32.mxu0 %vm208_vm3, %v167_v2  ;;  %v169_v5 = vld [vmem:[%s7661_s5 + $0x10] sm:$0xff]  ;;  %v183_v6 = vld [vmem:[%s7661_s5 + $0x80] sm:$0xff]  ;;  %v184_v7 = vld [vmem:[%s7661_s5 + $0x88] sm:$0xff] }
  0x49   :  { %6795 = vmatprep.subr.msk.bf16.mxu0 %vm6794_vm2, %v6793_v3  ;;  %7131 = vmatprep.subr.msk.bf16.mxu1 %vm6794_vm2, %v6793_v3  ;;  %v185_v8 = vld [vmem:[%s7661_s5 + $0x90] sm:$0xff]  ;;  %v170_v9 = vld [vmem:[%s7661_s5 + $0x18] sm:$0xff]  ;;  %v171_v10 = vld [vmem:[%s7661_s5 + $0x20] sm:$0xff] }
  0x4a   :  { %6798 = vmatpush3.bf16.msk.msra.mxu0 %vm6794_vm2, %v6793_v3  ;;  %7132 = vmatpush3.bf16.msk.msra.mxu1 %vm6794_vm2, %v6793_v3  ;;  %v186_v11 = vld [vmem:[%s7661_s5 + $0x98] sm:$0xff]  ;;  %v187_v12 = vld [vmem:[%s7661_s5 + $0xa0] sm:$0xff] }
  0x4b   :  { %6323 = vmatprep.mubr.msk.f32.mxu1 %vm208_vm3, %v183_v6 }
  0x4d   :  { %6300 = vmatmul.mubr.msk.f32.vlgmr.msra.gmra.mrb[0].mxu0 %vm208_vm3, %v168_v4  ;;  %6324 = vmatmul.mubr.msk.f32.vlgmr.msra.gmra.mrb[0].mxu1 %vm208_vm3, %v184_v7 }
  0x4e   :  { %6302 = vmatprep.mubr.msk.f32.mxu0 %vm208_vm3, %v169_v5  ;;  %6326 = vmatprep.mubr.msk.f32.mxu1 %vm208_vm3, %v185_v8 }
  0x51   :  { %6303 = vmatmul.mubr.msk.f32.gmra.mrb[2].mxu0 %vm208_vm3, %v170_v9 }
  0x52   :  { %86 = vsyncpa [#allocation3], 0  ;;  %6305 = vmatprep.mubr.msk.f32.mxu0 %vm208_vm3, %v171_v10  ;;  %v172_v13 = vld [vmem:[%s7661_s5 + $0x28] sm:$0xff]  ;;  %6327 = vmatmul.mubr.msk.f32.gmra.mrb[2].mxu1 %vm208_vm3, %v186_v11  ;;  %v173_v14 = vld [vmem:[%s7661_s5 + $0x30] sm:$0xff]  ;;  %s11280_s0 = sld [smem:[#allocation7_spill]]  ;;  %vm2561_vm4 = vcmask 1041409  }
  0x53   :  { %6329 = vmatprep.mubr.msk.f32.mxu1 %vm208_vm3, %v187_v12  ;;  %v188_v15 = vld [vmem:[%s7661_s5 + $0xa8] sm:$0xff]  ;;  %v189_v16 = vld [vmem:[%s7661_s5 + $0xb0] sm:$0xff]  ;;  %v174_v17 = vld [vmem:[%s7661_s5 + $0x38] sm:$0xff]  ;;  %vm2563_vm5 = vcmask 1042434   ;;  %vm2565_vm6 = vcmask 1043459   ;;  %vm2567_vm7 = vcmask 1044484  }
  0x54   :  { %v175_v18 = vld [vmem:[%s7661_s5 + $0x40] sm:$0xff]  ;;  %v190_v19 = vld [vmem:[%s7661_s5 + $0xb8] sm:$0xff]  ;;  %v176_v21 = vld [vmem:[%s7661_s5 + $0x48] sm:$0xff]  ;;  %vm2569_vm8 = vcmask 1045509   ;;  %vm2571_vm9 = vcmask 1046534   ;;  %vm2573_vm10 = vcmask 1047559  }
  0x55   :  { %6306 = vmatmul.mubr.msk.f32.gmra.mrb[4].mxu0 %vm208_vm3, %v172_v13  ;;  %v191_v20 = vld [vmem:[%s7661_s5 + $0xc0] sm:$0xff]  ;;  %v177_v22 = vld [vmem:[%s7661_s5 + $0x50] sm:$0xff]  ;;  %v192_v23 = vld [vmem:[%s7661_s5 + $0xc8] sm:$0xff]  ;;  %s11331_s17 = sld [smem:[#allocation11_spill]]  ;;  %vm4899_vm11 = vcmask 130048   ;;  %s11408_s28 = sld [smem:[#allocation20_spill]] }
  0x56   :  { %6308 = vmatprep.mubr.msk.f32.mxu0 %vm208_vm3, %v173_v14  ;;  %6330 = vmatmul.mubr.msk.f32.gmra.mrb[4].mxu1 %vm208_vm3, %v188_v15  ;;  %v193_v24 = vld [vmem:[%s7661_s5 + $0xd0] sm:$0xff]  ;;  %v178_v25 = vld [vmem:[%s7661_s5 + $0x58] sm:$0xff]  ;;  %v179_v26 = vld [vmem:[%s7661_s5 + $0x60] sm:$0xff]  ;;  %s11409_s1 = sld [smem:[#allocation23_spill]]  ;;  %s11410_s2 = sld [smem:[#allocation25_spill]] }
  0x57   :  { %6332 = vmatprep.mubr.msk.f32.mxu1 %vm208_vm3, %v189_v16  ;;  %v194_v27 = vld [vmem:[%s7661_s5 + $0xd8] sm:$0xff]  ;;  %v195_v28 = vld [vmem:[%s7661_s5 + $0xe0] sm:$0xff]  ;;  %v180_v29 = vld [vmem:[%s7661_s5 + $0x68] sm:$0xff]  ;;  %s11411_s7 = sld [smem:[#allocation21_spill]]  ;;  %s11412_s10 = sld [smem:[#allocation22_spill]] }
  0x58   :  { %v181_v30 = vld [vmem:[%s7661_s5 + $0x70] sm:$0xff]  ;;  %v196_v31 = vld [vmem:[%s7661_s5 + $0xe8] sm:$0xff]  ;;  %v182_v33 = vld [vmem:[%s7661_s5 + $0x78] sm:$0xff]  ;;  %s11413_s11 = sld [smem:[#allocation24_spill]]  ;;  %s11414_s15 = sld [smem:[#allocation26_spill]] }
  0x59   :  { %6309 = vmatmul.mubr.msk.f32.gmra.mrb[6].mxu0 %vm208_vm3, %v174_v17  ;;  %v197_v32 = vld [vmem:[%s7661_s5 + $0xf0] sm:$0xff]  ;;  %v198_v34 = vld [vmem:[%s7661_s5 + $0xf8] sm:$0xff]  ;;  %v7930_v35 = vld [vmem:[%s7681_s21] ss:$0 sm:$0xff]  ;;  %s11330_s5 = sld [smem:[#allocation8_spill]]  ;;  %s11332_s21 = sld [smem:[#allocation9_spill]] }
  0x5a   :  { %6311 = vmatprep.mubr.msk.f32.mxu0 %vm208_vm3, %v175_v18  ;;  %6333 = vmatmul.mubr.msk.f32.gmra.mrb[6].mxu1 %vm208_vm3, %v190_v19  ;;  %s11415_s16 = sld [smem:[#allocation27_spill]] }
  0x5b   :  { %6335 = vmatprep.mubr.msk.f32.mxu1 %vm208_vm3, %v191_v20 }
  0x5d   :  { %6312 = vmatmul.mubr.msk.f32.gmra.mrb[8].mxu0 %vm208_vm3, %v176_v21 }
  0x5e   :  { %6314 = vmatprep.mubr.msk.f32.mxu0 %vm208_vm3, %v177_v22  ;;  %6336 = vmatmul.mubr.msk.f32.gmra.mrb[8].mxu1 %vm208_vm3, %v192_v23 }
  0x5f   :  { %6338 = vmatprep.mubr.msk.f32.mxu1 %vm208_vm3, %v193_v24 }
  0x61   :  { %6315 = vmatmul.mubr.msk.f32.gmra.mrb[10].mxu0 %vm208_vm3, %v178_v25 }
  0x62   :  { %6317 = vmatprep.mubr.msk.f32.mxu0 %vm208_vm3, %v179_v26  ;;  %6339 = vmatmul.mubr.msk.f32.gmra.mrb[10].mxu1 %vm208_vm3, %v194_v27 }
  0x63   :  { %6341 = vmatprep.mubr.msk.f32.mxu1 %vm208_vm3, %v195_v28 }
  0x65   :  { %6318 = vmatmul.mubr.msk.f32.gmra.mrb[12].mxu0 %vm208_vm3, %v180_v29 }
  0x66   :  { %6320 = vmatprep.mubr.msk.f32.mxu0 %vm208_vm3, %v181_v30  ;;  %6342 = vmatmul.mubr.msk.f32.gmra.mrb[12].mxu1 %vm208_vm3, %v196_v31 }
  0x67   :  { %6344 = vmatprep.mubr.msk.f32.mxu1 %vm208_vm3, %v197_v32 }
  0x69   :  { %6321 = vmatmul.mubr.msk.f32.gmra.mrb[14].mxu0 %vm208_vm3, %v182_v33 }
  0x6a   :  { %6345 = vmatmul.mubr.msk.f32.gmra.mrb[14].mxu1 %vm208_vm3, %v198_v34 }
 0x120   :  { %v6301_v36 = vpop.f32.mrb[0].mxu0  ;;  %v7932_v38 = vpop.f32.mrb[0].mxu1 }
 0x121   :  { %v375_v37 = vpop.f32.mrb[1].mxu0  ;;  %v455_v40 = vpop.f32.mrb[1].mxu1  ;;  %v7941_v44 = vadd.f32 %v6301_v36, %v7930_v35  ;;  %v8012_v23 = vadd.f32 %v7932_v38, %v7930_v35  ;;  %v998_v38 = vld [vmem:[%s7696_s3 + $0x8] sm:$0xff] }
 0x122   :  { %v7935_v39 = vadd.f32 %v7930_v35, %v375_v37  ;;  %v8000_v20 = vadd.f32 %v7930_v35, %v455_v40  ;;  %v997_v37 = vld [vmem:[%s7696_s3] sm:$0xff]  ;;  %v999_v40 = vld [vmem:[%s7696_s3 + $0x10] sm:$0xff] }
 0x124   :  { %v6304_v41 = vpop.f32.mrb[2].mxu0  ;;  %536 = vadd.xlane.f32.xlu0 %v7935_v39 }
 0x125   :  { %v385_v42 = vpop.f32.mrb[3].mxu0  ;;  %v7938_v43 = vpop.f32.mrb[2].mxu1  ;;  %v7949_v50 = vadd.f32 %v6304_v41, %v7930_v35  ;;  %v6799_v41 = vpack.c.bf16 %v998_v38, %v997_v37 }
 0x126   :  { %v7944_v45 = vadd.f32 %v7930_v35, %v385_v42  ;;  %v465_v46 = vpop.f32.mrb[3].mxu1  ;;  %v8021_v25 = vadd.f32 %v7938_v43, %v7930_v35  ;;  %v1000_v42 = vld [vmem:[%s7696_s3 + $0x18] sm:$0xff] }
 0x127   :  { %v8008_v22 = vadd.f32 %v7930_v35, %v465_v46  ;;  %v6803_v43 = vpack.c.bf16 %v1000_v42, %v999_v40  ;;  %6800 = vmatprep.subr.bf16.mxu1 %v6799_v41 }
 0x128   :  { %v6307_v47 = vpop.f32.mrb[4].mxu0  ;;  %540 = vadd.xlane.f32.xlu1 %v7944_v45  ;;  %538 = vadd.xlane.f32.xlu0 %v7941_v44 }
 0x129   :  { %v395_v48 = vpop.f32.mrb[5].mxu0  ;;  %v6331_v49 = vpop.f32.mrb[4].mxu1  ;;  %v7957_v56 = vadd.f32 %v6307_v47, %v7930_v35  ;;  %6802 = vmatpush3.bf16.msra.mxu1 %v6799_v41 }
 0x12a   :  { %v7952_v51 = vadd.f32 %v7930_v35, %v395_v48  ;;  %v475_v52 = vpop.f32.mrb[5].mxu1  ;;  %v8029_v27 = vadd.f32 %v6331_v49, %v7930_v35  ;;  %6804 = vmatprep.subr.bf16.mxu1 %v6803_v43 }
 0x12b   :  { %v8017_v24 = vadd.f32 %v7930_v35, %v475_v52 }
 0x12c   :  { %v6310_v53 = vpop.f32.mrb[6].mxu0  ;;  %542 = vadd.xlane.f32.xlu1 %v7949_v50  ;;  %544 = vadd.xlane.f32.xlu0 %v7952_v51 }
 0x12d   :  { %v405_v54 = vpop.f32.mrb[7].mxu0  ;;  %v6334_v55 = vpop.f32.mrb[6].mxu1  ;;  %v7965_v62 = vadd.f32 %v6310_v53, %v7930_v35  ;;  %6806 = vmatpush3.bf16.msra.mxu1 %v6803_v43 }
 0x12e   :  { %v7960_v57 = vadd.f32 %v7930_v35, %v405_v54  ;;  %v485_v58 = vpop.f32.mrb[7].mxu1  ;;  %v8037_v29 = vadd.f32 %v6334_v55, %v7930_v35 }
 0x12f   :  { %v8026_v26 = vadd.f32 %v7930_v35, %v485_v58 }
 0x130   :  { %v6313_v59 = vpop.f32.mrb[8].mxu0  ;;  %546 = vadd.xlane.f32.xlu1 %v7957_v56  ;;  %548 = vadd.xlane.f32.xlu0 %v7960_v57 }
 0x131   :  { %v415_v60 = vpop.f32.mrb[9].mxu0  ;;  %v6337_v61 = vpop.f32.mrb[8].mxu1  ;;  %v7973_v4 = vadd.f32 %v6313_v59, %v7930_v35 }
 0x132   :  { %v7968_v63 = vadd.f32 %v7930_v35, %v415_v60  ;;  %v495_v0 = vpop.f32.mrb[9].mxu1  ;;  %v8045_v31 = vadd.f32 %v6337_v61, %v7930_v35 }
 0x133   :  { %v8034_v28 = vadd.f32 %v7930_v35, %v495_v0 }
 0x134   :  { %v6316_v1 = vpop.f32.mrb[10].mxu0  ;;  %550 = vadd.xlane.f32.xlu1 %v7965_v62  ;;  %552 = vadd.xlane.f32.xlu0 %v7968_v63 }
 0x135   :  { %v425_v2 = vpop.f32.mrb[11].mxu0  ;;  %v6340_v3 = vpop.f32.mrb[10].mxu1  ;;  %v7981_v10 = vadd.f32 %v6316_v1, %v7930_v35 }
 0x136   :  { %v7976_v5 = vadd.f32 %v7930_v35, %v425_v2  ;;  %v505_v6 = vpop.f32.mrb[11].mxu1  ;;  %v8053_v33 = vadd.f32 %v6340_v3, %v7930_v35 }
 0x137   :  { %v8042_v30 = vadd.f32 %v7930_v35, %v505_v6 }
 0x138   :  { %v6319_v7 = vpop.f32.mrb[12].mxu0  ;;  %554 = vadd.xlane.f32.xlu1 %v7973_v4  ;;  %556 = vadd.xlane.f32.xlu0 %v7976_v5 }
 0x139   :  { %v435_v8 = vpop.f32.mrb[13].mxu0  ;;  %v6343_v9 = vpop.f32.mrb[12].mxu1  ;;  %v7989_v16 = vadd.f32 %v6319_v7, %v7930_v35 }
 0x13a   :  { %v7984_v11 = vadd.f32 %v7930_v35, %v435_v8  ;;  %v515_v12 = vpop.f32.mrb[13].mxu1  ;;  %v8061_v36 = vadd.f32 %v6343_v9, %v7930_v35 }
 0x13b   :  { %v8050_v32 = vadd.f32 %v7930_v35, %v515_v12 }
 0x13c   :  { %v6322_v13 = vpop.f32.mrb[14].mxu0  ;;  %558 = vadd.xlane.f32.xlu1 %v7981_v10  ;;  %560 = vadd.xlane.f32.xlu0 %v7984_v11 }
 0x13d   :  { %v445_v14 = vpop.f32.mrb[15].mxu0  ;;  %v6346_v15 = vpop.f32.mrb[14].mxu1  ;;  %v8003_v21 = vadd.f32 %v6322_v13, %v7930_v35 }
 0x13e   :  { %v7992_v17 = vadd.f32 %v7930_v35, %v445_v14  ;;  %v7995_v18 = vadd.f32 %v6346_v15, %v7930_v35  ;;  %v525_v19 = vpop.f32.mrb[15].mxu1 }
 0x13f   :  { %v8058_v34 = vadd.f32 %v7930_v35, %v525_v19 }
 0x140   :  { %562 = vadd.xlane.f32.xlu1 %v7989_v16  ;;  %564 = vadd.xlane.f32.xlu0 %v7992_v17 }
 0x144   :  { %566 = vadd.xlane.f32.xlu1 %v8003_v21  ;;  %568 = vadd.xlane.f32.xlu0 %v8000_v20 }
 0x148   :  { %570 = vadd.xlane.f32.xlu1 %v8012_v23  ;;  %572 = vadd.xlane.f32.xlu0 %v8008_v22 }
 0x14c   :  { %574 = vadd.xlane.f32.xlu1 %v8021_v25  ;;  %576 = vadd.xlane.f32.xlu0 %v8017_v24 }
 0x150   :  { %578 = vadd.xlane.f32.xlu1 %v8029_v27  ;;  %580 = vadd.xlane.f32.xlu0 %v8026_v26 }
 0x154   :  { %582 = vadd.xlane.f32.xlu1 %v8037_v29  ;;  %584 = vadd.xlane.f32.xlu0 %v8034_v28 }
 0x158   :  { %586 = vadd.xlane.f32.xlu1 %v8045_v31  ;;  %588 = vadd.xlane.f32.xlu0 %v8042_v30 }
 0x15c   :  { %590 = vadd.xlane.f32.xlu1 %v8053_v33  ;;  %592 = vadd.xlane.f32.xlu0 %v8050_v32 }
 0x160   :  { %594 = vadd.xlane.f32.xlu1 %v8061_v36  ;;  %596 = vadd.xlane.f32.xlu0 %v8058_v34 }
 0x164   :  { %598 = vadd.xlane.f32.xlu1 %v7995_v18 }
 0x1b1   :  { %v537_v46 = vpop.xlane.xlu0 %536 }
 0x1b2   :  { %v601_v47 = vmul.f32 0.0078125, %v537_v46 }
 0x1b4   :  { %v8071_v35 = vsub.f32 %v7935_v39, %v601_v47  ;;  %v1001_v47 = vld [vmem:[%s7696_s3 + $0x20] sm:$0xff] }
 0x1b5   :  { %v541_v48 = vpop.xlane.xlu1 %540  ;;  %v539_v49 = vpop.xlane.xlu0 %538 }
 0x1b6   :  { %v603_v52 = vmul.f32 0.0078125, %v541_v48  ;;  %v602_v53 = vmul.f32 0.0078125, %v539_v49  ;;  %v665_v54 = vmul.f32 %v8071_v35, %v8071_v35  ;;  %v1002_v48 = vld [vmem:[%s7696_s3 + $0x28] sm:$0xff] }
 0x1b7   :  { %v6807_v49 = vpack.c.bf16 %v1002_v48, %v1001_v47 }
 0x1b8   :  { %697 = vadd.xlane.f32.xlu0 %v665_v54  ;;  %v8076_v55 = vsub.f32 %v7944_v45, %v603_v52  ;;  %v8079_v58 = vsub.f32 %v7941_v44, %v602_v53 }
 0x1b9   :  { %v543_v59 = vpop.xlane.xlu1 %542  ;;  %v545_v60 = vpop.xlane.xlu0 %544  ;;  %6808 = vmatprep.subr.bf16.mxu1 %v6807_v49 }
 0x1ba   :  { %v604_v61 = vmul.f32 0.0078125, %v543_v59  ;;  %v605_v0 = vmul.f32 0.0078125, %v545_v60  ;;  %v667_v39 = vmul.f32 %v8076_v55, %v8076_v55  ;;  %v666_v1 = vmul.f32 %v8079_v58, %v8079_v58  ;;  %6810 = vmatpush3.bf16.msra.mxu1 %v6807_v49 }
 0x1bc   :  { %701 = vadd.xlane.f32.xlu0 %v667_v39  ;;  %699 = vadd.xlane.f32.xlu1 %v666_v1  ;;  %v8086_v2 = vsub.f32 %v7949_v50, %v604_v61  ;;  %v8089_v45 = vsub.f32 %v7952_v51, %v605_v0  ;;  %v1003_v0 = vld [vmem:[%s7696_s3 + $0x30] sm:$0xff] }
 0x1bd   :  { %v547_v44 = vpop.xlane.xlu1 %546  ;;  %v549_v3 = vpop.xlane.xlu0 %548 }
 0x1be   :  { %v606_v6 = vmul.f32 0.0078125, %v547_v44  ;;  %v607_v7 = vmul.f32 0.0078125, %v549_v3  ;;  %v668_v8 = vmul.f32 %v8086_v2, %v8086_v2  ;;  %v669_v9 = vmul.f32 %v8089_v45, %v8089_v45 }
 0x1c0   :  { %703 = vadd.xlane.f32.xlu1 %v668_v8  ;;  %705 = vadd.xlane.f32.xlu0 %v669_v9  ;;  %v8096_v12 = vsub.f32 %v7957_v56, %v606_v6  ;;  %v8099_v50 = vsub.f32 %v7960_v57, %v607_v7 }
 0x1c1   :  { %v551_v51 = vpop.xlane.xlu1 %550  ;;  %v553_v13 = vpop.xlane.xlu0 %552 }
 0x1c2   :  { %v608_v14 = vmul.f32 0.0078125, %v551_v51  ;;  %v609_v15 = vmul.f32 0.0078125, %v553_v13  ;;  %v670_v19 = vmul.f32 %v8096_v12, %v8096_v12  ;;  %v671_v37 = vmul.f32 %v8099_v50, %v8099_v50  ;;  %v1005_v51 = vld [vmem:[%s7696_s3 + $0x40] sm:$0xff] }
 0x1c4   :  { %707 = vadd.xlane.f32.xlu1 %v670_v19  ;;  %709 = vadd.xlane.f32.xlu0 %v671_v37  ;;  %v8106_v56 = vsub.f32 %v7965_v62, %v608_v14  ;;  %v8109_v57 = vsub.f32 %v7968_v63, %v609_v15 }
 0x1c5   :  { %v555_v38 = vpop.xlane.xlu1 %554  ;;  %v557_v40 = vpop.xlane.xlu0 %556 }
 0x1c6   :  { %v610_v41 = vmul.f32 0.0078125, %v555_v38  ;;  %v611_v42 = vmul.f32 0.0078125, %v557_v40  ;;  %v672_v43 = vmul.f32 %v8106_v56, %v8106_v56  ;;  %v673_v46 = vmul.f32 %v8109_v57, %v8109_v57 }
 0x1c8   :  { %711 = vadd.xlane.f32.xlu1 %v672_v43  ;;  %713 = vadd.xlane.f32.xlu0 %v673_v46  ;;  %v8118_v62 = vsub.f32 %v7973_v4, %v610_v41  ;;  %v8121_v63 = vsub.f32 %v7976_v5, %v611_v42  ;;  %v1004_v4 = vld [vmem:[%s7696_s3 + $0x38] sm:$0xff]  ;;  %v1007_v42 = vld [vmem:[%s7696_s3 + $0x50] sm:$0xff] }
 0x1c9   :  { %v559_v52 = vpop.xlane.xlu1 %558  ;;  %v561_v53 = vpop.xlane.xlu0 %560  ;;  %v6811_v1 = vpack.c.bf16 %v1004_v4, %v1003_v0 }
 0x1ca   :  { %v612_v54 = vmul.f32 0.0078125, %v559_v52  ;;  %v613_v59 = vmul.f32 0.0078125, %v561_v53  ;;  %v674_v60 = vmul.f32 %v8118_v62, %v8118_v62  ;;  %v675_v61 = vmul.f32 %v8121_v63, %v8121_v63 }
 0x1cb   :  { %6812 = vmatprep.subr.bf16.mxu1 %v6811_v1 }
 0x1cc   :  { %715 = vadd.xlane.f32.xlu1 %v674_v60  ;;  %717 = vadd.xlane.f32.xlu0 %v675_v61  ;;  %v8130_v5 = vsub.f32 %v7981_v10, %v612_v54  ;;  %v8133_v39 = vsub.f32 %v7984_v11, %v613_v59  ;;  %v1006_v10 = vld [vmem:[%s7696_s3 + $0x48] sm:$0xff]  ;;  %v1009_v59 = vld [vmem:[%s7696_s3 + $0x60] sm:$0xff] }
 0x1cd   :  { %v563_v44 = vpop.xlane.xlu1 %562  ;;  %v565_v3 = vpop.xlane.xlu0 %564  ;;  %6814 = vmatpush3.bf16.msra.mxu1 %v6811_v1  ;;  %v6815_v14 = vpack.c.bf16 %v1006_v10, %v1005_v51 }
 0x1ce   :  { %v614_v6 = vmul.f32 0.0078125, %v563_v44  ;;  %v615_v7 = vmul.f32 0.0078125, %v565_v3  ;;  %v676_v8 = vmul.f32 %v8130_v5, %v8130_v5  ;;  %v677_v9 = vmul.f32 %v8133_v39, %v8133_v39 }
 0x1cf   :  { %6816 = vmatprep.subr.bf16.mxu1 %v6815_v14 }
 0x1d0   :  { %719 = vadd.xlane.f32.xlu1 %v676_v8  ;;  %721 = vadd.xlane.f32.xlu0 %v677_v9  ;;  %v8142_v11 = vsub.f32 %v7989_v16, %v614_v6  ;;  %v8145_v13 = vsub.f32 %v7992_v17, %v615_v7  ;;  %v1008_v16 = vld [vmem:[%s7696_s3 + $0x58] sm:$0xff]  ;;  %v1011_v7 = vld [vmem:[%s7696_s3 + $0x70] sm:$0xff] }
 0x1d1   :  { %v567_v15 = vpop.xlane.xlu1 %566  ;;  %v569_v19 = vpop.xlane.xlu0 %568  ;;  %6818 = vmatpush3.bf16.msra.mxu1 %v6815_v14  ;;  %v6819_v46 = vpack.c.bf16 %v1008_v16, %v1007_v42  ;;  %v1012_v8 = vld [vmem:[%s7696_s3 + $0x78] sm:$0xff] }
 0x1d2   :  { %v616_v37 = vmul.f32 0.0078125, %v567_v15  ;;  %v617_v38 = vmul.f32 0.0078125, %v569_v19  ;;  %v678_v40 = vmul.f32 %v8142_v11, %v8142_v11  ;;  %v679_v41 = vmul.f32 %v8145_v13, %v8145_v13 }
 0x1d3   :  { %6820 = vmatprep.subr.bf16.mxu1 %v6819_v46  ;;  %v6827_v9 = vpack.c.bf16 %v1012_v8, %v1011_v7 }
 0x1d4   :  { %723 = vadd.xlane.f32.xlu1 %v678_v40  ;;  %725 = vadd.xlane.f32.xlu0 %v679_v41  ;;  %v8154_v17 = vsub.f32 %v8003_v21, %v616_v37  ;;  %v8157_v43 = vsub.f32 %v8000_v20, %v617_v38  ;;  %v1010_v21 = vld [vmem:[%s7696_s3 + $0x68] sm:$0xff]  ;;  %s11335_s3 = sld [smem:[#allocation13_spill]] }
 0x1d5   :  { %v571_v47 = vpop.xlane.xlu1 %570  ;;  %v573_v48 = vpop.xlane.xlu0 %572  ;;  %6822 = vmatpush3.bf16.msra.mxu1 %v6819_v46  ;;  %v6823_v61 = vpack.c.bf16 %v1010_v21, %v1009_v59 }
 0x1d6   :  { %v618_v49 = vmul.f32 0.0078125, %v571_v47  ;;  %v619_v52 = vmul.f32 0.0078125, %v573_v48  ;;  %v680_v53 = vmul.f32 %v8154_v17, %v8154_v17  ;;  %v681_v54 = vmul.f32 %v8157_v43, %v8157_v43 }
 0x1d7   :  { %6824 = vmatprep.subr.bf16.mxu1 %v6823_v61 }
 0x1d8   :  { %727 = vadd.xlane.f32.xlu1 %v680_v53  ;;  %729 = vadd.xlane.f32.xlu0 %v681_v54  ;;  %v8166_v20 = vsub.f32 %v8012_v23, %v618_v49  ;;  %v8169_v60 = vsub.f32 %v8008_v22, %v619_v52 }
 0x1d9   :  { %v575_v0 = vpop.xlane.xlu1 %574  ;;  %v577_v4 = vpop.xlane.xlu0 %576  ;;  %6826 = vmatpush3.bf16.msra.mxu1 %v6823_v61 }
 0x1da   :  { %v620_v1 = vmul.f32 0.0078125, %v575_v0  ;;  %v621_v44 = vmul.f32 0.0078125, %v577_v4  ;;  %v682_v3 = vmul.f32 %v8166_v20, %v8166_v20  ;;  %v683_v6 = vmul.f32 %v8169_v60, %v8169_v60  ;;  %6828 = vmatprep.subr.bf16.mxu1 %v6827_v9 }
 0x1dc   :  { %731 = vadd.xlane.f32.xlu1 %v682_v3  ;;  %733 = vadd.xlane.f32.xlu0 %v683_v6  ;;  %v8178_v22 = vsub.f32 %v8021_v25, %v620_v1  ;;  %v8181_v23 = vsub.f32 %v8017_v24, %v621_v44 }
 0x1dd   :  { %v579_v51 = vpop.xlane.xlu1 %578  ;;  %v581_v10 = vpop.xlane.xlu0 %580  ;;  %6830 = vmatpush3.bf16.msra.mxu1 %v6827_v9 }
 0x1de   :  { %v622_v14 = vmul.f32 0.0078125, %v579_v51  ;;  %v623_v15 = vmul.f32 0.0078125, %v581_v10  ;;  %v684_v19 = vmul.f32 %v8178_v22, %v8178_v22  ;;  %v685_v37 = vmul.f32 %v8181_v23, %v8181_v23 }
 0x1e0   :  { %735 = vadd.xlane.f32.xlu1 %v684_v19  ;;  %737 = vadd.xlane.f32.xlu0 %v685_v37  ;;  %v8188_v25 = vsub.f32 %v8029_v27, %v622_v14  ;;  %v8191_v24 = vsub.f32 %v8026_v26, %v623_v15 }
 0x1e1   :  { %v583_v38 = vpop.xlane.xlu1 %582  ;;  %v585_v40 = vpop.xlane.xlu0 %584 }
 0x1e2   :  { %v624_v41 = vmul.f32 0.0078125, %v583_v38  ;;  %v625_v42 = vmul.f32 0.0078125, %v585_v40  ;;  %v686_v16 = vmul.f32 %v8188_v25, %v8188_v25  ;;  %v687_v46 = vmul.f32 %v8191_v24, %v8191_v24 }
 0x1e4   :  { %739 = vadd.xlane.f32.xlu1 %v686_v16  ;;  %741 = vadd.xlane.f32.xlu0 %v687_v46  ;;  %v8198_v47 = vsub.f32 %v8037_v29, %v624_v41  ;;  %v8201_v27 = vsub.f32 %v8034_v28, %v625_v42 }
 0x1e5   :  { %v587_v26 = vpop.xlane.xlu1 %586  ;;  %v589_v48 = vpop.xlane.xlu0 %588 }
 0x1e6   :  { %v626_v49 = vmul.f32 0.0078125, %v587_v26  ;;  %v627_v52 = vmul.f32 0.0078125, %v589_v48  ;;  %v688_v53 = vmul.f32 %v8198_v47, %v8198_v47  ;;  %v689_v54 = vmul.f32 %v8201_v27, %v8201_v27 }
 0x1e8   :  { %743 = vadd.xlane.f32.xlu1 %v688_v53  ;;  %745 = vadd.xlane.f32.xlu0 %v689_v54  ;;  %v8208_v59 = vsub.f32 %v8045_v31, %v626_v49  ;;  %v8211_v29 = vsub.f32 %v8042_v30, %v627_v52 }
 0x1e9   :  { %v591_v28 = vpop.xlane.xlu1 %590  ;;  %v593_v21 = vpop.xlane.xlu0 %592 }
 0x1ea   :  { %v628_v61 = vmul.f32 0.0078125, %v591_v28  ;;  %v629_v0 = vmul.f32 0.0078125, %v593_v21  ;;  %v690_v4 = vmul.f32 %v8208_v59, %v8208_v59  ;;  %v691_v1 = vmul.f32 %v8211_v29, %v8211_v29 }
 0x1ec   :  { %747 = vadd.xlane.f32.xlu1 %v690_v4  ;;  %749 = vadd.xlane.f32.xlu0 %v691_v1  ;;  %v8218_v44 = vsub.f32 %v8053_v33, %v628_v61  ;;  %v8221_v31 = vsub.f32 %v8050_v32, %v629_v0 }
 0x1ed   :  { %v595_v30 = vpop.xlane.xlu1 %594  ;;  %v597_v3 = vpop.xlane.xlu0 %596 }
 0x1ee   :  { %v630_v6 = vmul.f32 0.0078125, %v595_v30  ;;  %v631_v7 = vmul.f32 0.0078125, %v597_v3  ;;  %v692_v8 = vmul.f32 %v8218_v44, %v8218_v44  ;;  %v693_v9 = vmul.f32 %v8221_v31, %v8221_v31  ;;  %v8243_v3 = vld [vmem:[%s7686_s25] ss:$0 sm:$0xff]  ;;  %s11333_s25 = sld [smem:[#allocation10_spill]] }
 0x1f0   :  { %751 = vadd.xlane.f32.xlu1 %v692_v8  ;;  %753 = vadd.xlane.f32.xlu0 %v693_v9  ;;  %v8228_v51 = vsub.f32 %v8061_v36, %v630_v6  ;;  %v8231_v33 = vsub.f32 %v8058_v34, %v631_v7 }
 0x1f1   :  { %v599_v32 = vpop.xlane.xlu1 %598 }
 0x1f2   :  { %v632_v10 = vmul.f32 0.0078125, %v599_v32  ;;  %v694_v14 = vmul.f32 %v8228_v51, %v8228_v51  ;;  %v695_v15 = vmul.f32 %v8231_v33, %v8231_v33 }
 0x1f4   :  { %755 = vadd.xlane.f32.xlu1 %v694_v14  ;;  %757 = vadd.xlane.f32.xlu0 %v695_v15  ;;  %v8238_v19 = vsub.f32 %v7995_v18, %v632_v10  ;;  %v8247_v10 = vld [vmem:[%s7691_s29] ss:$0 sm:$0xff]  ;;  %s11334_s29 = sld [smem:[#allocation12_spill]] }
 0x1f6   :  { %v696_v36 = vmul.f32 %v8238_v19, %v8238_v19 }
 0x1f8   :  { %759 = vadd.xlane.f32.xlu1 %v696_v36 }
 0x245   :  { %v698_v37 = vpop.xlane.xlu0 %697 }
 0x246   :  { %v761_v34 = vmul.f32 0.0078125, %v698_v37 }
 0x248   :  { %v793_v38 = vadd.f32 1e-05, %v761_v34 }
 0x249   :  { %v700_v40 = vpop.xlane.xlu1 %699  ;;  %v702_v41 = vpop.xlane.xlu0 %701 }
 0x24a   :  { %7179 = vrsqrt.f32 %v793_v38  ;;  %v762_v42 = vmul.f32 0.0078125, %v700_v40  ;;  %v763_v16 = vmul.f32 0.0078125, %v702_v41 }
 0x24c   :  { %v794_v46 = vadd.f32 1e-05, %v762_v42  ;;  %v795_v26 = vadd.f32 1e-05, %v763_v16 }
 0x24d   :  { %v704_v48 = vpop.xlane.xlu1 %703  ;;  %v706_v49 = vpop.xlane.xlu0 %705 }
 0x24e   :  { %7181 = vrsqrt.f32 %v794_v46  ;;  %v764_v18 = vmul.f32 0.0078125, %v704_v48  ;;  %v765_v52 = vmul.f32 0.0078125, %v706_v49 }
 0x24f   :  { %7183 = vrsqrt.f32 %v795_v26 }
 0x250   :  { %v796_v53 = vadd.f32 1e-05, %v764_v18  ;;  %v797_v54 = vadd.f32 1e-05, %v765_v52 }
 0x251   :  { %v708_v28 = vpop.xlane.xlu1 %707  ;;  %v710_v21 = vpop.xlane.xlu0 %709 }
 0x252   :  { %7185 = vrsqrt.f32 %v796_v53  ;;  %v766_v61 = vmul.f32 0.0078125, %v708_v28  ;;  %v767_v0 = vmul.f32 0.0078125, %v710_v21 }
 0x253   :  { %7187 = vrsqrt.f32 %v797_v54 }
 0x254   :  { %v7180_v4 = vpop.eup %7179  ;;  %v798_v1 = vadd.f32 1e-05, %v766_v61  ;;  %v799_v30 = vadd.f32 1e-05, %v767_v0 }
 0x255   :  { %v712_v6 = vpop.xlane.xlu1 %711  ;;  %v714_v7 = vpop.xlane.xlu0 %713  ;;  %v857_v8 = vmul.f32 %v7180_v4, %v8071_v35 }
 0x256   :  { %7189 = vrsqrt.f32 %v798_v1  ;;  %v768_v9 = vmul.f32 0.0078125, %v712_v6  ;;  %v769_v32 = vmul.f32 0.0078125, %v714_v7 }
 0x257   :  { %7191 = vrsqrt.f32 %v799_v30  ;;  %v895_v14 = vmul.f32 %v8243_v3, %v857_v8 }
 0x258   :  { %v7182_v15 = vpop.eup %7181  ;;  %v800_v36 = vadd.f32 1e-05, %v768_v9  ;;  %v801_v37 = vadd.f32 1e-05, %v769_v32 }
 0x259   :  { %v7184_v34 = vpop.eup %7183  ;;  %v858_v38 = vmul.f32 %v7182_v15, %v8079_v58  ;;  %v716_v40 = vpop.xlane.xlu1 %715  ;;  %v8252_v42 = vadd.f32 %v8247_v10, %v895_v14 }
 0x25a   :  { %v718_v41 = vpop.xlane.xlu0 %717  ;;  %7193 = vrsqrt.f32 %v800_v36  ;;  %v770_v35 = vmul.f32 0.0078125, %v716_v40  ;;  %v859_v46 = vmul.f32 %v7184_v34, %v8076_v55 }
 0x25b   :  { %11248 = vst [vmem:[#allocation28_spill] sm:$0xff] %v8252_v42  ;;  %v771_v16 = vmul.f32 0.0078125, %v718_v41  ;;  %7195 = vrsqrt.f32 %v801_v37  ;;  %v11172_v26 = vmax.f32 %v8252_v42, 0.0  ;;  %v896_v48 = vmul.f32 %v8243_v3, %v858_v38 }
 0x25c   :  { %v7186_v49 = vpop.eup %7185  ;;  %v802_v18 = vadd.f32 1e-05, %v770_v35  ;;  %v897_v58 = vmul.f32 %v8243_v3, %v859_v46 }
 0x25d   :  { %v803_v52 = vadd.f32 1e-05, %v771_v16  ;;  %v7188_v53 = vpop.eup %7187  ;;  %v720_v54 = vpop.xlane.xlu1 %719  ;;  %6379 = vmatprep.mubr.f32.mxu1 %v11172_v26  ;;  %v8261_v21 = vadd.f32 %v8247_v10, %v896_v48  ;;  %v860_v55 = vmul.f32 %v7186_v49, %v8086_v2 }
 0x25e   :  { %v722_v28 = vpop.xlane.xlu0 %721  ;;  %7197 = vrsqrt.f32 %v802_v18  ;;  %v772_v61 = vmul.f32 0.0078125, %v720_v54  ;;  %v8265_v4 = vadd.f32 %v8247_v10, %v897_v58  ;;  %v861_v6 = vmul.f32 %v7188_v53, %v8089_v45 }
 0x25f   :  { %11249 = vst [vmem:[#allocation29_spill] sm:$0xff] %v8261_v21  ;;  %v773_v0 = vmul.f32 0.0078125, %v722_v28  ;;  %7199 = vrsqrt.f32 %v803_v52  ;;  %v11173_v1 = vmax.f32 %v8261_v21, 0.0  ;;  %v898_v30 = vmul.f32 %v8243_v3, %v860_v55 }
 0x260   :  { %11250 = vst [vmem:[#allocation30_spill] sm:$0xff] %v8265_v4  ;;  %v7190_v7 = vpop.eup %7189  ;;  %v804_v8 = vadd.f32 1e-05, %v772_v61  ;;  %v11170_v32 = vmax.f32 %v8265_v4, 0.0  ;;  %v899_v37 = vmul.f32 %v8243_v3, %v861_v6 }
 0x261   :  { %v805_v9 = vadd.f32 1e-05, %v773_v0  ;;  %v7192_v14 = vpop.eup %7191  ;;  %v724_v2 = vpop.xlane.xlu1 %723  ;;  %6380 = vmatmul.mubr.f32.vlgmr.msra.gmra.mrb[16].mxu1 %v11173_v1  ;;  %v8274_v36 = vadd.f32 %v8247_v10, %v898_v30  ;;  %v862_v34 = vmul.f32 %v7190_v7, %v8096_v12 }
 0x262   :  { %v726_v15 = vpop.xlane.xlu0 %725  ;;  %7201 = vrsqrt.f32 %v804_v8  ;;  %v774_v45 = vmul.f32 0.0078125, %v724_v2  ;;  %6382 = vmatprep.mubr.f32.mxu1 %v11170_v32  ;;  %v863_v40 = vmul.f32 %v7192_v14, %v8099_v50  ;;  %v8283_v35 = vadd.f32 %v8247_v10, %v899_v37 }
 0x263   :  { %11251 = vst [vmem:[#allocation31_spill] sm:$0xff] %v8274_v36  ;;  %v775_v38 = vmul.f32 0.0078125, %v726_v15  ;;  %7203 = vrsqrt.f32 %v805_v9  ;;  %v11171_v41 = vmax.f32 %v8274_v36, 0.0  ;;  %v900_v16 = vmul.f32 %v8243_v3, %v862_v34 }
 0x264   :  { %11252 = vst [vmem:[#allocation32_spill] sm:$0xff] %v8283_v35  ;;  %v7194_v46 = vpop.eup %7193  ;;  %v806_v48 = vadd.f32 1e-05, %v774_v45  ;;  %v901_v12 = vmul.f32 %v8243_v3, %v863_v40  ;;  %v11168_v50 = vmax.f32 %v8283_v35, 0.0 }
 0x265   :  { %v807_v49 = vadd.f32 1e-05, %v775_v38  ;;  %v7196_v18 = vpop.eup %7195  ;;  %v728_v52 = vpop.xlane.xlu1 %727  ;;  %6383 = vmatmul.mubr.f32.gmra.mrb[18].mxu1 %v11171_v41  ;;  %v8291_v53 = vadd.f32 %v8247_v10, %v900_v16  ;;  %v864_v54 = vmul.f32 %v7194_v46, %v8106_v56 }
 0x266   :  { %v730_v58 = vpop.xlane.xlu0 %729  ;;  %7205 = vrsqrt.f32 %v806_v48  ;;  %v776_v28 = vmul.f32 0.0078125, %v728_v52  ;;  %v8295_v61 = vadd.f32 %v8247_v10, %v901_v12  ;;  %6385 = vmatprep.mubr.f32.mxu1 %v11168_v50  ;;  %v865_v6 = vmul.f32 %v7196_v18, %v8109_v57 }
 0x267   :  { %11253 = vst [vmem:[#allocation33_spill] sm:$0xff] %v8291_v53  ;;  %v777_v55 = vmul.f32 0.0078125, %v730_v58  ;;  %7207 = vrsqrt.f32 %v807_v49  ;;  %v11169_v0 = vmax.f32 %v8291_v53, 0.0  ;;  %v902_v30 = vmul.f32 %v8243_v3, %v864_v54 }
 0x268   :  { %11254 = vst [vmem:[#allocation34_spill] sm:$0xff] %v8295_v61  ;;  %v7198_v7 = vpop.eup %7197  ;;  %v808_v8 = vadd.f32 1e-05, %v776_v28  ;;  %v11166_v56 = vmax.f32 %v8295_v61, 0.0  ;;  %v903_v34 = vmul.f32 %v8243_v3, %v865_v6 }
 0x269   :  { %v809_v9 = vadd.f32 1e-05, %v777_v55  ;;  %v7200_v14 = vpop.eup %7199  ;;  %v732_v2 = vpop.xlane.xlu1 %731  ;;  %6386 = vmatmul.mubr.f32.gmra.mrb[20].mxu1 %v11169_v0  ;;  %v8306_v37 = vadd.f32 %v8247_v10, %v902_v30  ;;  %v866_v45 = vmul.f32 %v7198_v7, %v8118_v62 }
 0x26a   :  { %v734_v15 = vpop.xlane.xlu0 %733  ;;  %7209 = vrsqrt.f32 %v808_v8  ;;  %v778_v57 = vmul.f32 0.0078125, %v732_v2  ;;  %6388 = vmatprep.mubr.f32.mxu1 %v11166_v56  ;;  %v867_v40 = vmul.f32 %v7200_v14, %v8121_v63  ;;  %v8315_v46 = vadd.f32 %v8247_v10, %v903_v34 }
 0x26b   :  { %11255 = vst [vmem:[#allocation35_spill] sm:$0xff] %v8306_v37  ;;  %v779_v38 = vmul.f32 0.0078125, %v734_v15  ;;  %7211 = vrsqrt.f32 %v809_v9  ;;  %v11167_v16 = vmax.f32 %v8306_v37, 0.0  ;;  %v904_v48 = vmul.f32 %v8243_v3, %v866_v45 }
 0x26c   :  { %11256 = vst [vmem:[#allocation36_spill] sm:$0xff] %v8315_v46  ;;  %v7202_v49 = vpop.eup %7201  ;;  %v810_v12 = vadd.f32 1e-05, %v778_v57  ;;  %v905_v62 = vmul.f32 %v8243_v3, %v867_v40  ;;  %v11164_v63 = vmax.f32 %v8315_v46, 0.0 }
 0x26d   :  { %v811_v18 = vadd.f32 1e-05, %v779_v38  ;;  %v7204_v52 = vpop.eup %7203  ;;  %v736_v58 = vpop.xlane.xlu1 %735  ;;  %6389 = vmatmul.mubr.f32.gmra.mrb[22].mxu1 %v11167_v16  ;;  %v8323_v28 = vadd.f32 %v8247_v10, %v904_v48  ;;  %v868_v55 = vmul.f32 %v7202_v49, %v8130_v5 }
 0x26e   :  { %v738_v54 = vpop.xlane.xlu0 %737  ;;  %7213 = vrsqrt.f32 %v810_v12  ;;  %v780_v30 = vmul.f32 0.0078125, %v736_v58  ;;  %v8327_v7 = vadd.f32 %v8247_v10, %v905_v62  ;;  %6391 = vmatprep.mubr.f32.mxu1 %v11164_v63  ;;  %v869_v14 = vmul.f32 %v7204_v52, %v8133_v39 }
 0x26f   :  { %11257 = vst [vmem:[#allocation37_spill] sm:$0xff] %v8323_v28  ;;  %v781_v6 = vmul.f32 0.0078125, %v738_v54  ;;  %7215 = vrsqrt.f32 %v811_v18  ;;  %v11165_v8 = vmax.f32 %v8323_v28, 0.0  ;;  %v906_v9 = vmul.f32 %v8243_v3, %v868_v55 }
 0x270   :  { %11258 = vst [vmem:[#allocation38_spill] sm:$0xff] %v8327_v7  ;;  %v7206_v2 = vpop.eup %7205  ;;  %v812_v15 = vadd.f32 1e-05, %v780_v30  ;;  %v11162_v5 = vmax.f32 %v8327_v7, 0.0  ;;  %v907_v48 = vmul.f32 %v8243_v3, %v869_v14 }
 0x271   :  { %v813_v34 = vadd.f32 1e-05, %v781_v6  ;;  %v7208_v45 = vpop.eup %7207  ;;  %v740_v57 = vpop.xlane.xlu1 %739  ;;  %6392 = vmatmul.mubr.f32.gmra.mrb[24].mxu1 %v11165_v8  ;;  %v8338_v40 = vadd.f32 %v8247_v10, %v906_v9  ;;  %v870_v49 = vmul.f32 %v7206_v2, %v8142_v11 }
 0x272   :  { %v742_v38 = vpop.xlane.xlu0 %741  ;;  %7217 = vrsqrt.f32 %v812_v15  ;;  %v782_v39 = vmul.f32 0.0078125, %v740_v57  ;;  %6394 = vmatprep.mubr.f32.mxu1 %v11162_v5  ;;  %v871_v18 = vmul.f32 %v7208_v45, %v8145_v13  ;;  %v8347_v52 = vadd.f32 %v8247_v10, %v907_v48 }
 0x273   :  { %11259 = vst [vmem:[#allocation39_spill] sm:$0xff] %v8338_v40  ;;  %v783_v12 = vmul.f32 0.0078125, %v742_v38  ;;  %7219 = vrsqrt.f32 %v813_v34  ;;  %v11163_v62 = vmax.f32 %v8338_v40, 0.0  ;;  %v908_v58 = vmul.f32 %v8243_v3, %v870_v49 }
 0x274   :  { %11260 = vst [vmem:[#allocation40_spill] sm:$0xff] %v8347_v52  ;;  %v7210_v54 = vpop.eup %7209  ;;  %v814_v55 = vadd.f32 1e-05, %v782_v39  ;;  %v909_v11 = vmul.f32 %v8243_v3, %v871_v18  ;;  %v11142_v13 = vmax.f32 %v8347_v52, 0.0 }
 0x275   :  { %v815_v30 = vadd.f32 1e-05, %v783_v12  ;;  %v7212_v6 = vpop.eup %7211  ;;  %v744_v9 = vpop.xlane.xlu1 %743  ;;  %6395 = vmatmul.mubr.f32.gmra.mrb[26].mxu1 %v11163_v62  ;;  %v8355_v2 = vadd.f32 %v8247_v10, %v908_v58  ;;  %v872_v15 = vmul.f32 %v7210_v54, %v8154_v17 }
 0x276   :  { %v746_v14 = vpop.xlane.xlu0 %745  ;;  %7221 = vrsqrt.f32 %v814_v55  ;;  %v784_v34 = vmul.f32 0.0078125, %v744_v9  ;;  %v8359_v57 = vadd.f32 %v8247_v10, %v909_v11  ;;  %6397 = vmatprep.mubr.f32.mxu1 %v11142_v13  ;;  %v873_v49 = vmul.f32 %v7212_v6, %v8157_v43 }
 0x277   :  { %11261 = vst [vmem:[#allocation41_spill] sm:$0xff] %v8355_v2  ;;  %v785_v45 = vmul.f32 0.0078125, %v746_v14  ;;  %7223 = vrsqrt.f32 %v815_v30  ;;  %v11161_v38 = vmax.f32 %v8355_v2, 0.0  ;;  %v910_v48 = vmul.f32 %v8243_v3, %v872_v15 }
 0x278   :  { %11262 = vst [vmem:[#allocation42_spill] sm:$0xff] %v8359_v57  ;;  %v7214_v39 = vpop.eup %7213  ;;  %v816_v12 = vadd.f32 1e-05, %v784_v34  ;;  %v11143_v17 = vmax.f32 %v8359_v57, 0.0  ;;  %v911_v11 = vmul.f32 %v8243_v3, %v873_v49 }
 0x279   :  { %v817_v18 = vadd.f32 1e-05, %v785_v45  ;;  %v7216_v58 = vpop.eup %7215  ;;  %v748_v54 = vpop.xlane.xlu1 %747  ;;  %6398 = vmatmul.mubr.f32.gmra.mrb[28].mxu1 %v11161_v38  ;;  %v8370_v30 = vadd.f32 %v8247_v10, %v910_v48  ;;  %v874_v9 = vmul.f32 %v7214_v39, %v8166_v20 }
 0x27a   :  { %v750_v55 = vpop.xlane.xlu0 %749  ;;  %7225 = vrsqrt.f32 %v816_v12  ;;  %v786_v43 = vmul.f32 0.0078125, %v748_v54  ;;  %6400 = vmatprep.mubr.f32.mxu1 %v11143_v17  ;;  %v875_v14 = vmul.f32 %v7216_v58, %v8169_v60  ;;  %v8379_v34 = vadd.f32 %v8247_v10, %v911_v11 }
 0x27b   :  { %11263 = vst [vmem:[#allocation43_spill] sm:$0xff] %v8370_v30  ;;  %v787_v6 = vmul.f32 0.0078125, %v750_v55  ;;  %7227 = vrsqrt.f32 %v817_v18  ;;  %v11144_v15 = vmax.f32 %v8370_v30, 0.0  ;;  %v912_v45 = vmul.f32 %v8243_v3, %v874_v9 }
 0x27c   :  { %11264 = vst [vmem:[#allocation44_spill] sm:$0xff] %v8379_v34  ;;  %v7218_v48 = vpop.eup %7217  ;;  %v818_v49 = vadd.f32 1e-05, %v786_v43  ;;  %v913_v20 = vmul.f32 %v8243_v3, %v875_v14  ;;  %v11145_v60 = vmax.f32 %v8379_v34, 0.0 }
 0x27d   :  { %v819_v13 = vadd.f32 1e-05, %v787_v6  ;;  %v7220_v39 = vpop.eup %7219  ;;  %v752_v12 = vpop.xlane.xlu1 %751  ;;  %6401 = vmatmul.mubr.f32.gmra.mrb[30].mxu1 %v11144_v15  ;;  %v8387_v18 = vadd.f32 %v8247_v10, %v912_v45  ;;  %v876_v58 = vmul.f32 %v7218_v48, %v8178_v22 }
 0x27e   :  { %v754_v54 = vpop.xlane.xlu0 %753  ;;  %7229 = vrsqrt.f32 %v818_v49  ;;  %v788_v55 = vmul.f32 0.0078125, %v752_v12  ;;  %v8391_v9 = vadd.f32 %v8247_v10, %v913_v20  ;;  %6403 = vmatprep.mubr.f32.mxu1 %v11145_v60  ;;  %v877_v14 = vmul.f32 %v7220_v39, %v8181_v23 }
 0x27f   :  { %11265 = vst [vmem:[#allocation45_spill] sm:$0xff] %v8387_v18  ;;  %v789_v11 = vmul.f32 0.0078125, %v754_v54  ;;  %7231 = vrsqrt.f32 %v819_v13  ;;  %v11146_v43 = vmax.f32 %v8387_v18, 0.0  ;;  %v914_v6 = vmul.f32 %v8243_v3, %v876_v58 }
 0x280   :  { %11266 = vst [vmem:[#allocation46_spill] sm:$0xff] %v8391_v9  ;;  %v7222_v45 = vpop.eup %7221  ;;  %v820_v17 = vadd.f32 1e-05, %v788_v55  ;;  %v11159_v22 = vmax.f32 %v8391_v9, 0.0  ;;  %v915_v12 = vmul.f32 %v8243_v3, %v877_v14 }
 0x281   :  { %v821_v15 = vadd.f32 1e-05, %v789_v11  ;;  %v7224_v48 = vpop.eup %7223  ;;  %v756_v49 = vpop.xlane.xlu1 %755  ;;  %6404 = vmatmul.mubr.f32.gmra.mrb[32].mxu1 %v11146_v43  ;;  %v8402_v20 = vadd.f32 %v8247_v10, %v914_v6  ;;  %v878_v54 = vmul.f32 %v7222_v45, %v8188_v25 }
 0x282   :  { %v758_v13 = vpop.xlane.xlu0 %757  ;;  %7233 = vrsqrt.f32 %v820_v17  ;;  %v790_v23 = vmul.f32 0.0078125, %v756_v49  ;;  %6406 = vmatprep.mubr.f32.mxu1 %v11159_v22  ;;  %v879_v58 = vmul.f32 %v7224_v48, %v8191_v24  ;;  %v8411_v11 = vadd.f32 %v8247_v10, %v915_v12 }
 0x283   :  { %11267 = vst [vmem:[#allocation47_spill] sm:$0xff] %v8402_v20  ;;  %v791_v39 = vmul.f32 0.0078125, %v758_v13  ;;  %7235 = vrsqrt.f32 %v821_v15  ;;  %v11160_v55 = vmax.f32 %v8402_v20, 0.0  ;;  %v916_v6 = vmul.f32 %v8243_v3, %v878_v54 }
 0x284   :  { %11268 = vst [vmem:[#allocation48_spill] sm:$0xff] %v8411_v11  ;;  %v7226_v60 = vpop.eup %7225  ;;  %v822_v14 = vadd.f32 1e-05, %v790_v23  ;;  %v917_v25 = vmul.f32 %v8243_v3, %v879_v58  ;;  %v11157_v24 = vmax.f32 %v8411_v11, 0.0 }
 0x285   :  { %v823_v43 = vadd.f32 1e-05, %v791_v39  ;;  %v7228_v17 = vpop.eup %7227  ;;  %v760_v45 = vpop.xlane.xlu1 %759  ;;  %6407 = vmatmul.mubr.f32.gmra.mrb[34].mxu1 %v11160_v55  ;;  %v8419_v15 = vadd.f32 %v8247_v10, %v916_v6  ;;  %v880_v48 = vmul.f32 %v7226_v60, %v8198_v47 }
 0x286   :  { %7237 = vrsqrt.f32 %v822_v14  ;;  %v792_v49 = vmul.f32 0.0078125, %v760_v45  ;;  %v8423_v13 = vadd.f32 %v8247_v10, %v917_v25  ;;  %v881_v12 = vmul.f32 %v7228_v17, %v8201_v27  ;;  %6409 = vmatprep.mubr.f32.mxu1 %v11157_v24 }
 0x287   :  { %11269 = vst [vmem:[#allocation49_spill] sm:$0xff] %v8419_v15  ;;  %7239 = vrsqrt.f32 %v823_v43  ;;  %v11158_v54 = vmax.f32 %v8419_v15, 0.0  ;;  %v918_v23 = vmul.f32 %v8243_v3, %v880_v48 }
 0x288   :  { %11270 = vst [vmem:[#allocation50_spill] sm:$0xff] %v8423_v13  ;;  %v7230_v39 = vpop.eup %7229  ;;  %v824_v58 = vadd.f32 1e-05, %v792_v49  ;;  %v11147_v6 = vmax.f32 %v8423_v13, 0.0  ;;  %v919_v47 = vmul.f32 %v8243_v3, %v881_v12 }
 0x289   :  { %v7232_v60 = vpop.eup %7231  ;;  %6410 = vmatmul.mubr.f32.gmra.mrb[36].mxu1 %v11158_v54  ;;  %v8435_v27 = vadd.f32 %v8247_v10, %v918_v23  ;;  %v882_v43 = vmul.f32 %v7230_v39, %v8208_v59 }
 0x28a   :  { %7241 = vrsqrt.f32 %v824_v58  ;;  %6412 = vmatprep.mubr.f32.mxu1 %v11147_v6  ;;  %v8441_v14 = vadd.f32 %v8247_v10, %v919_v47  ;;  %v883_v25 = vmul.f32 %v7232_v60, %v8211_v29 }
 0x28b   :  { %11271 = vst [vmem:[#allocation51_spill] sm:$0xff] %v8435_v27  ;;  %v11156_v17 = vmax.f32 %v8435_v27, 0.0  ;;  %v920_v45 = vmul.f32 %v8243_v3, %v882_v43 }
 0x28c   :  { %11272 = vst [vmem:[#allocation52_spill] sm:$0xff] %v8441_v14  ;;  %v7234_v48 = vpop.eup %7233  ;;  %v11148_v49 = vmax.f32 %v8441_v14, 0.0  ;;  %v921_v12 = vmul.f32 %v8243_v3, %v883_v25 }
 0x28d   :  { %v7236_v23 = vpop.eup %7235  ;;  %6413 = vmatmul.mubr.f32.gmra.mrb[38].mxu1 %v11156_v17  ;;  %v8451_v59 = vadd.f32 %v8247_v10, %v920_v45  ;;  %v884_v39 = vmul.f32 %v7234_v48, %v8218_v44 }
 0x28e   :  { %6415 = vmatprep.mubr.f32.mxu1 %v11148_v49  ;;  %v8457_v29 = vadd.f32 %v8247_v10, %v921_v12  ;;  %v885_v58 = vmul.f32 %v7236_v23, %v8221_v31 }
 0x28f   :  { %11273 = vst [vmem:[#allocation53_spill] sm:$0xff] %v8451_v59  ;;  %v11155_v47 = vmax.f32 %v8451_v59, 0.0  ;;  %v922_v60 = vmul.f32 %v8243_v3, %v884_v39  ;;  %v1710_v59 = vld [vmem:[%s7716_s24 + $0x18] sm:$0xff] }
 0x290   :  { %11274 = vst [vmem:[#allocation54_spill] sm:$0xff] %v8457_v29  ;;  %v7238_v43 = vpop.eup %7237  ;;  %v11153_v25 = vmax.f32 %v8457_v29, 0.0  ;;  %v923_v45 = vmul.f32 %v8243_v3, %v885_v58 }
 0x291   :  { %v7240_v6 = vpop.eup %7239  ;;  %6416 = vmatmul.mubr.f32.gmra.mrb[40].mxu1 %v11155_v47  ;;  %v8467_v44 = vadd.f32 %v8247_v10, %v922_v60  ;;  %v886_v48 = vmul.f32 %v7238_v43, %v8228_v51 }
 0x292   :  { %6418 = vmatprep.mubr.f32.mxu1 %v11153_v25  ;;  %v8473_v31 = vadd.f32 %v8247_v10, %v923_v45  ;;  %v887_v12 = vmul.f32 %v7240_v6, %v8231_v33 }
 0x293   :  { %11275 = vst [vmem:[#allocation55_spill] sm:$0xff] %v8467_v44  ;;  %v11154_v23 = vmax.f32 %v8467_v44, 0.0  ;;  %v924_v39 = vmul.f32 %v8243_v3, %v886_v48  ;;  %v1708_v44 = vld [vmem:[%s7716_s24 + $0x8] sm:$0xff] }
 0x294   :  { %11276 = vst [vmem:[#allocation56_spill] sm:$0xff] %v8473_v31  ;;  %v7242_v58 = vpop.eup %7241  ;;  %v11151_v49 = vmax.f32 %v8473_v31, 0.0  ;;  %v925_v60 = vmul.f32 %v8243_v3, %v887_v12 }
 0x295   :  { %6419 = vmatmul.mubr.f32.gmra.mrb[42].mxu1 %v11154_v23  ;;  %v8483_v51 = vadd.f32 %v8247_v10, %v924_v39  ;;  %v888_v43 = vmul.f32 %v7242_v58, %v8238_v19  ;;  %v8505_v39 = vld [vmem:[%s7701_s8] ss:$0 sm:$0xff]  ;;  %s11336_s8 = sld [smem:[#allocation14_spill]] }
 0x296   :  { %6421 = vmatprep.mubr.f32.mxu1 %v11151_v49  ;;  %v8489_v33 = vadd.f32 %v8247_v10, %v925_v60 }
 0x297   :  { %11277 = vst [vmem:[#allocation57_spill] sm:$0xff] %v8483_v51  ;;  %v11152_v6 = vmax.f32 %v8483_v51, 0.0  ;;  %v926_v45 = vmul.f32 %v8243_v3, %v888_v43 }
 0x298   :  { %11278 = vst [vmem:[#allocation58_spill] sm:$0xff] %v8489_v33  ;;  %v11149_v48 = vmax.f32 %v8489_v33, 0.0 }
 0x299   :  { %6422 = vmatmul.mubr.f32.gmra.mrb[44].mxu1 %v11152_v6  ;;  %v8497_v12 = vadd.f32 %v8247_v10, %v926_v45 }
 0x29a   :  { %6424 = vmatprep.mubr.f32.mxu1 %v11149_v48 }
 0x29b   :  { %11279 = vst [vmem:[#allocation59_spill] sm:$0xff] %v8497_v12  ;;  %v11150_v19 = vmax.f32 %v8497_v12, 0.0 }
 0x29d   :  { %6425 = vmatmul.mubr.f32.gmra.mrb[46].mxu1 %v11150_v19 }
 0x334   :  { %v6381_v58 = vpop.f32.mrb[16].mxu1 }
 0x335   :  { %v8508_v3 = vadd.f32 %v6381_v58, %v8505_v39  ;;  %v1086_v60 = vpop.f32.mrb[17].mxu1 }
 0x336   :  { %v8511_v43 = vadd.f32 %v8505_v39, %v1086_v60 }
 0x337   :  { %1249 = vadd.xlane.f32.xlu1 %v8508_v3 }
 0x338   :  { %1247 = vadd.xlane.f32.xlu0 %v8511_v43  ;;  %v6384_v10 = vpop.f32.mrb[18].mxu1 }
 0x339   :  { %v8516_v45 = vadd.f32 %v6384_v10, %v8505_v39  ;;  %v1096_v48 = vpop.f32.mrb[19].mxu1 }
 0x33a   :  { %v8519_v19 = vadd.f32 %v8505_v39, %v1096_v48 }
 0x33b   :  { %1253 = vadd.xlane.f32.xlu1 %v8516_v45 }
 0x33c   :  { %1251 = vadd.xlane.f32.xlu0 %v8519_v19  ;;  %v6387_v58 = vpop.f32.mrb[20].mxu1 }
 0x33d   :  { %v8524_v60 = vadd.f32 %v6387_v58, %v8505_v39  ;;  %v1106_v49 = vpop.f32.mrb[21].mxu1 }
 0x33e   :  { %v8527_v6 = vadd.f32 %v8505_v39, %v1106_v49 }
 0x33f   :  { %1257 = vadd.xlane.f32.xlu1 %v8524_v60 }
 0x340   :  { %1255 = vadd.xlane.f32.xlu0 %v8527_v6  ;;  %v6390_v10 = vpop.f32.mrb[22].mxu1 }
 0x341   :  { %v8532_v48 = vadd.f32 %v6390_v10, %v8505_v39  ;;  %v1116_v25 = vpop.f32.mrb[23].mxu1 }
 0x342   :  { %v8535_v23 = vadd.f32 %v8505_v39, %v1116_v25 }
 0x343   :  { %1261 = vadd.xlane.f32.xlu1 %v8532_v48 }
 0x344   :  { %1259 = vadd.xlane.f32.xlu0 %v8535_v23  ;;  %v6393_v58 = vpop.f32.mrb[24].mxu1 }
 0x345   :  { %v8540_v49 = vadd.f32 %v6393_v58, %v8505_v39  ;;  %v1126_v47 = vpop.f32.mrb[25].mxu1 }
 0x346   :  { %v8543_v17 = vadd.f32 %v8505_v39, %v1126_v47 }
 0x347   :  { %1265 = vadd.xlane.f32.xlu1 %v8540_v49 }
 0x348   :  { %1263 = vadd.xlane.f32.xlu0 %v8543_v17  ;;  %v6396_v10 = vpop.f32.mrb[26].mxu1 }
 0x349   :  { %v8548_v25 = vadd.f32 %v6396_v10, %v8505_v39  ;;  %v1136_v24 = vpop.f32.mrb[27].mxu1 }
 0x34a   :  { %v8551_v54 = vadd.f32 %v8505_v39, %v1136_v24 }
 0x34b   :  { %1269 = vadd.xlane.f32.xlu1 %v8548_v25 }
 0x34c   :  { %1267 = vadd.xlane.f32.xlu0 %v8551_v54  ;;  %v6399_v58 = vpop.f32.mrb[28].mxu1 }
 0x34d   :  { %v8556_v47 = vadd.f32 %v6399_v58, %v8505_v39  ;;  %v1146_v22 = vpop.f32.mrb[29].mxu1 }
 0x34e   :  { %v8559_v55 = vadd.f32 %v8505_v39, %v1146_v22 }
 0x34f   :  { %1273 = vadd.xlane.f32.xlu1 %v8556_v47 }
 0x350   :  { %1271 = vadd.xlane.f32.xlu0 %v8559_v55  ;;  %v6402_v10 = vpop.f32.mrb[30].mxu1 }
 0x351   :  { %v8564_v24 = vadd.f32 %v6402_v10, %v8505_v39  ;;  %v1156_v38 = vpop.f32.mrb[31].mxu1 }
 0x352   :  { %v8567_v5 = vadd.f32 %v8505_v39, %v1156_v38 }
 0x353   :  { %1277 = vadd.xlane.f32.xlu1 %v8564_v24 }
 0x354   :  { %1275 = vadd.xlane.f32.xlu0 %v8567_v5  ;;  %v6405_v58 = vpop.f32.mrb[32].mxu1 }
 0x355   :  { %v8572_v22 = vadd.f32 %v6405_v58, %v8505_v39  ;;  %v1166_v62 = vpop.f32.mrb[33].mxu1 }
 0x356   :  { %v8575_v63 = vadd.f32 %v8505_v39, %v1166_v62 }
 0x357   :  { %1281 = vadd.xlane.f32.xlu1 %v8572_v22 }
 0x358   :  { %1279 = vadd.xlane.f32.xlu0 %v8575_v63  ;;  %v6408_v10 = vpop.f32.mrb[34].mxu1 }
 0x359   :  { %v8580_v38 = vadd.f32 %v6408_v10, %v8505_v39  ;;  %v1176_v8 = vpop.f32.mrb[35].mxu1 }
 0x35a   :  { %v8583_v56 = vadd.f32 %v8505_v39, %v1176_v8 }
 0x35b   :  { %1285 = vadd.xlane.f32.xlu1 %v8580_v38 }
 0x35c   :  { %1283 = vadd.xlane.f32.xlu0 %v8583_v56  ;;  %v6411_v58 = vpop.f32.mrb[36].mxu1 }
 0x35d   :  { %v8588_v62 = vadd.f32 %v6411_v58, %v8505_v39  ;;  %v1186_v16 = vpop.f32.mrb[37].mxu1 }
 0x35e   :  { %v8591_v50 = vadd.f32 %v8505_v39, %v1186_v16 }
 0x35f   :  { %1289 = vadd.xlane.f32.xlu1 %v8588_v62 }
 0x360   :  { %1287 = vadd.xlane.f32.xlu0 %v8591_v50  ;;  %v6414_v10 = vpop.f32.mrb[38].mxu1 }
 0x361   :  { %v8596_v8 = vadd.f32 %v6414_v10, %v8505_v39  ;;  %v1196_v0 = vpop.f32.mrb[39].mxu1 }
 0x362   :  { %v8599_v32 = vadd.f32 %v8505_v39, %v1196_v0 }
 0x363   :  { %1293 = vadd.xlane.f32.xlu1 %v8596_v8 }
 0x364   :  { %1291 = vadd.xlane.f32.xlu0 %v8599_v32  ;;  %v6417_v58 = vpop.f32.mrb[40].mxu1 }
 0x365   :  { %v8604_v16 = vadd.f32 %v6417_v58, %v8505_v39  ;;  %v1206_v41 = vpop.f32.mrb[41].mxu1 }
 0x366   :  { %v8607_v26 = vadd.f32 %v8505_v39, %v1206_v41 }
 0x367   :  { %1297 = vadd.xlane.f32.xlu1 %v8604_v16 }
 0x368   :  { %1295 = vadd.xlane.f32.xlu0 %v8607_v26  ;;  %v6420_v10 = vpop.f32.mrb[42].mxu1 }
 0x369   :  { %v8612_v0 = vadd.f32 %v6420_v10, %v8505_v39  ;;  %v1216_v1 = vpop.f32.mrb[43].mxu1 }
 0x36a   :  { %v8615_v33 = vadd.f32 %v8505_v39, %v1216_v1 }
 0x36b   :  { %1301 = vadd.xlane.f32.xlu1 %v8612_v0 }
 0x36c   :  { %1299 = vadd.xlane.f32.xlu0 %v8615_v33  ;;  %v6423_v41 = vpop.f32.mrb[44].mxu1 }
 0x36d   :  { %v8620_v58 = vadd.f32 %v6423_v41, %v8505_v39  ;;  %v1226_v12 = vpop.f32.mrb[45].mxu1  ;;  %v1707_v41 = vld [vmem:[%s7716_s24] sm:$0xff] }
 0x36e   :  { %v8623_v10 = vadd.f32 %v8505_v39, %v1226_v12  ;;  %v1709_v12 = vld [vmem:[%s7716_s24 + $0x10] sm:$0xff]  ;;  %v6831_v14 = vpack.c.bf16 %v1708_v44, %v1707_v41 }
 0x36f   :  { %1305 = vadd.xlane.f32.xlu1 %v8620_v58  ;;  %v6835_v13 = vpack.c.bf16 %v1710_v59, %v1709_v12 }
 0x370   :  { %1303 = vadd.xlane.f32.xlu0 %v8623_v10  ;;  %v6426_v1 = vpop.f32.mrb[46].mxu1  ;;  %6832 = vmatprep.subr.bf16.mxu0 %v6831_v14 }
 0x371   :  { %v8628_v31 = vadd.f32 %v6426_v1, %v8505_v39  ;;  %v1236_v51 = vpop.f32.mrb[47].mxu1  ;;  %6834 = vmatpush3.bf16.msra.mxu0 %v6831_v14 }
 0x372   :  { %v8631_v29 = vadd.f32 %v8505_v39, %v1236_v51  ;;  %6836 = vmatprep.subr.bf16.mxu0 %v6835_v13 }
 0x373   :  { %1309 = vadd.xlane.f32.xlu1 %v8628_v31 }
 0x374   :  { %1307 = vadd.xlane.f32.xlu0 %v8631_v29 }
 0x375   :  { %6838 = vmatpush3.bf16.msra.mxu0 %v6835_v13 }
 0x3c4   :  { %v1250_v1 = vpop.xlane.xlu1 %1249 }
 0x3c5   :  { %v1312_v27 = vmul.f32 0.0078125, %v1250_v1  ;;  %v1248_v11 = vpop.xlane.xlu0 %1247 }
 0x3c6   :  { %v1311_v15 = vmul.f32 0.0078125, %v1248_v11 }
 0x3c7   :  { %v8640_v51 = vsub.f32 %v8508_v3, %v1312_v27 }
 0x3c8   :  { %v1254_v39 = vpop.xlane.xlu1 %1253  ;;  %v8643_v9 = vsub.f32 %v8511_v43, %v1311_v15 }
 0x3c9   :  { %v1314_v20 = vmul.f32 0.0078125, %v1254_v39  ;;  %v1252_v34 = vpop.xlane.xlu0 %1251  ;;  %v1376_v59 = vmul.f32 %v8640_v51, %v8640_v51 }
 0x3ca   :  { %v1313_v44 = vmul.f32 0.0078125, %v1252_v34  ;;  %v1375_v13 = vmul.f32 %v8643_v9, %v8643_v9 }
 0x3cb   :  { %v8650_v14 = vsub.f32 %v8516_v45, %v1314_v20  ;;  %1409 = vadd.xlane.f32.xlu1 %v1376_v59 }
 0x3cc   :  { %v8653_v11 = vsub.f32 %v8519_v19, %v1313_v44  ;;  %v1258_v27 = vpop.xlane.xlu1 %1257  ;;  %1407 = vadd.xlane.f32.xlu0 %v1375_v13 }
 0x3cd   :  { %v1316_v15 = vmul.f32 0.0078125, %v1258_v27  ;;  %v1256_v3 = vpop.xlane.xlu0 %1255  ;;  %v1378_v43 = vmul.f32 %v8650_v14, %v8650_v14 }
 0x3ce   :  { %v1315_v41 = vmul.f32 0.0078125, %v1256_v3  ;;  %v1377_v34 = vmul.f32 %v8653_v11, %v8653_v11 }
 0x3cf   :  { %v8660_v12 = vsub.f32 %v8524_v60, %v1316_v15  ;;  %1413 = vadd.xlane.f32.xlu1 %v1378_v43 }
 0x3d0   :  { %v8663_v20 = vsub.f32 %v8527_v6, %v1315_v41  ;;  %v1262_v19 = vpop.xlane.xlu1 %1261  ;;  %1411 = vadd.xlane.f32.xlu0 %v1377_v34 }
 0x3d1   :  { %v1318_v45 = vmul.f32 0.0078125, %v1262_v19  ;;  %v1260_v1 = vpop.xlane.xlu0 %1259  ;;  %v1380_v39 = vmul.f32 %v8660_v12, %v8660_v12 }
 0x3d2   :  { %v1317_v59 = vmul.f32 0.0078125, %v1260_v1  ;;  %v1379_v44 = vmul.f32 %v8663_v20, %v8663_v20 }
 0x3d3   :  { %v8670_v13 = vsub.f32 %v8532_v48, %v1318_v45  ;;  %1417 = vadd.xlane.f32.xlu1 %v1380_v39  ;;  %v1711_v39 = vld [vmem:[%s7716_s24 + $0x20] sm:$0xff] }
 0x3d4   :  { %v8673_v60 = vsub.f32 %v8535_v23, %v1317_v59  ;;  %v1266_v6 = vpop.xlane.xlu1 %1265  ;;  %1415 = vadd.xlane.f32.xlu0 %v1379_v44  ;;  %v1712_v59 = vld [vmem:[%s7716_s24 + $0x28] sm:$0xff] }
 0x3d5   :  { %v1320_v27 = vmul.f32 0.0078125, %v1266_v6  ;;  %v1264_v15 = vpop.xlane.xlu0 %1263  ;;  %v1382_v3 = vmul.f32 %v8670_v13, %v8670_v13  ;;  %v6839_v6 = vpack.c.bf16 %v1712_v59, %v1711_v39 }
 0x3d6   :  { %v1319_v43 = vmul.f32 0.0078125, %v1264_v15  ;;  %v1381_v41 = vmul.f32 %v8673_v60, %v8673_v60 }
 0x3d7   :  { %v8680_v48 = vsub.f32 %v8540_v49, %v1320_v27  ;;  %1421 = vadd.xlane.f32.xlu1 %v1382_v3  ;;  %6840 = vmatprep.subr.bf16.mxu0 %v6839_v6 }
 0x3d8   :  { %v8683_v23 = vsub.f32 %v8543_v17, %v1319_v43  ;;  %v1270_v34 = vpop.xlane.xlu1 %1269  ;;  %1419 = vadd.xlane.f32.xlu0 %v1381_v41  ;;  %6842 = vmatpush3.bf16.msra.mxu0 %v6839_v6 }
 0x3d9   :  { %v1322_v19 = vmul.f32 0.0078125, %v1270_v34  ;;  %v1268_v45 = vpop.xlane.xlu0 %1267  ;;  %v1384_v1 = vmul.f32 %v8680_v48, %v8680_v48  ;;  %v1713_v34 = vld [vmem:[%s7716_s24 + $0x30] sm:$0xff] }
 0x3da   :  { %v1321_v44 = vmul.f32 0.0078125, %v1268_v45  ;;  %v1383_v49 = vmul.f32 %v8683_v23, %v8683_v23  ;;  %v1714_v45 = vld [vmem:[%s7716_s24 + $0x38] sm:$0xff] }
 0x3db   :  { %v8692_v27 = vsub.f32 %v8548_v25, %v1322_v19  ;;  %1425 = vadd.xlane.f32.xlu1 %v1384_v1  ;;  %v6843_v19 = vpack.c.bf16 %v1714_v45, %v1713_v34 }
 0x3dc   :  { %v8695_v17 = vsub.f32 %v8551_v54, %v1321_v44  ;;  %v1274_v15 = vpop.xlane.xlu1 %1273  ;;  %1423 = vadd.xlane.f32.xlu0 %v1383_v49 }
 0x3dd   :  { %v1324_v3 = vmul.f32 0.0078125, %v1274_v15  ;;  %v1272_v43 = vpop.xlane.xlu0 %1271  ;;  %v1386_v41 = vmul.f32 %v8692_v27, %v8692_v27  ;;  %6844 = vmatprep.subr.bf16.mxu0 %v6843_v19  ;;  %v1715_v15 = vld [vmem:[%s7716_s24 + $0x40] sm:$0xff] }
 0x3de   :  { %v1323_v39 = vmul.f32 0.0078125, %v1272_v43  ;;  %v1385_v25 = vmul.f32 %v8695_v17, %v8695_v17  ;;  %6846 = vmatpush3.bf16.msra.mxu0 %v6843_v19  ;;  %v1716_v43 = vld [vmem:[%s7716_s24 + $0x48] sm:$0xff] }
 0x3df   :  { %v8704_v54 = vsub.f32 %v8556_v47, %v1324_v3  ;;  %1429 = vadd.xlane.f32.xlu1 %v1386_v41  ;;  %v6847_v3 = vpack.c.bf16 %v1716_v43, %v1715_v15 }
 0x3e0   :  { %v8707_v1 = vsub.f32 %v8559_v55, %v1323_v39  ;;  %v1278_v59 = vpop.xlane.xlu1 %1277  ;;  %1427 = vadd.xlane.f32.xlu0 %v1385_v25 }
 0x3e1   :  { %v1326_v44 = vmul.f32 0.0078125, %v1278_v59  ;;  %v1276_v49 = vpop.xlane.xlu0 %1275  ;;  %v1388_v6 = vmul.f32 %v8704_v54, %v8704_v54  ;;  %6848 = vmatprep.subr.bf16.mxu0 %v6847_v3  ;;  %v1717_v59 = vld [vmem:[%s7716_s24 + $0x50] sm:$0xff] }
 0x3e2   :  { %v1325_v34 = vmul.f32 0.0078125, %v1276_v49  ;;  %v1387_v47 = vmul.f32 %v8707_v1, %v8707_v1  ;;  %6850 = vmatpush3.bf16.msra.mxu0 %v6847_v3  ;;  %v1718_v49 = vld [vmem:[%s7716_s24 + $0x58] sm:$0xff] }
 0x3e3   :  { %v8716_v55 = vsub.f32 %v8564_v24, %v1326_v44  ;;  %1433 = vadd.xlane.f32.xlu1 %v1388_v6  ;;  %v6851_v44 = vpack.c.bf16 %v1718_v49, %v1717_v59 }
 0x3e4   :  { %v8719_v41 = vsub.f32 %v8567_v5, %v1325_v34  ;;  %v1282_v45 = vpop.xlane.xlu1 %1281  ;;  %1431 = vadd.xlane.f32.xlu0 %v1387_v47 }
 0x3e5   :  { %v1328_v39 = vmul.f32 0.0078125, %v1282_v45  ;;  %v1280_v25 = vpop.xlane.xlu0 %1279  ;;  %v1390_v19 = vmul.f32 %v8716_v55, %v8716_v55  ;;  %6852 = vmatprep.subr.bf16.mxu0 %v6851_v44  ;;  %v1719_v45 = vld [vmem:[%s7716_s24 + $0x60] sm:$0xff] }
 0x3e6   :  { %v1327_v15 = vmul.f32 0.0078125, %v1280_v25  ;;  %v1389_v24 = vmul.f32 %v8719_v41, %v8719_v41  ;;  %6854 = vmatpush3.bf16.msra.mxu0 %v6851_v44  ;;  %v1720_v25 = vld [vmem:[%s7716_s24 + $0x68] sm:$0xff] }
 0x3e7   :  { %v8728_v5 = vsub.f32 %v8572_v22, %v1328_v39  ;;  %1437 = vadd.xlane.f32.xlu1 %v1390_v19  ;;  %v6855_v39 = vpack.c.bf16 %v1720_v25, %v1719_v45 }
 0x3e8   :  { %v8731_v6 = vsub.f32 %v8575_v63, %v1327_v15  ;;  %v1286_v43 = vpop.xlane.xlu1 %1285  ;;  %1435 = vadd.xlane.f32.xlu0 %v1389_v24 }
 0x3e9   :  { %v1330_v34 = vmul.f32 0.0078125, %v1286_v43  ;;  %v1284_v47 = vpop.xlane.xlu0 %1283  ;;  %v1392_v3 = vmul.f32 %v8728_v5, %v8728_v5  ;;  %6856 = vmatprep.subr.bf16.mxu0 %v6855_v39  ;;  %v1721_v43 = vld [vmem:[%s7716_s24 + $0x70] sm:$0xff] }
 0x3ea   :  { %v1329_v59 = vmul.f32 0.0078125, %v1284_v47  ;;  %v1391_v22 = vmul.f32 %v8731_v6, %v8731_v6  ;;  %6858 = vmatpush3.bf16.msra.mxu0 %v6855_v39  ;;  %v1722_v47 = vld [vmem:[%s7716_s24 + $0x78] sm:$0xff]  ;;  %s11403_s24 = sld [smem:[#allocation15_spill]] }
 0x3eb   :  { %v8740_v63 = vsub.f32 %v8580_v38, %v1330_v34  ;;  %1441 = vadd.xlane.f32.xlu1 %v1392_v3  ;;  %v6859_v34 = vpack.c.bf16 %v1722_v47, %v1721_v43 }
 0x3ec   :  { %v8743_v19 = vsub.f32 %v8583_v56, %v1329_v59  ;;  %v1290_v49 = vpop.xlane.xlu1 %1289  ;;  %1439 = vadd.xlane.f32.xlu0 %v1391_v22 }
 0x3ed   :  { %v1332_v15 = vmul.f32 0.0078125, %v1290_v49  ;;  %v1288_v24 = vpop.xlane.xlu0 %1287  ;;  %v1394_v44 = vmul.f32 %v8740_v63, %v8740_v63  ;;  %6860 = vmatprep.subr.bf16.mxu0 %v6859_v34 }
 0x3ee   :  { %v1331_v18 = vmul.f32 0.0078125, %v1288_v24  ;;  %v1393_v38 = vmul.f32 %v8743_v19, %v8743_v19  ;;  %6862 = vmatpush3.bf16.msra.mxu0 %v6859_v34 }
 0x3ef   :  { %v8752_v3 = vsub.f32 %v8588_v62, %v1332_v15  ;;  %1445 = vadd.xlane.f32.xlu1 %v1394_v44 }
 0x3f0   :  { %v8755_v56 = vsub.f32 %v8591_v50, %v1331_v18  ;;  %v1294_v45 = vpop.xlane.xlu1 %1293  ;;  %1443 = vadd.xlane.f32.xlu0 %v1393_v38 }
 0x3f1   :  { %v1334_v25 = vmul.f32 0.0078125, %v1294_v45  ;;  %v1292_v59 = vpop.xlane.xlu0 %1291  ;;  %v1396_v22 = vmul.f32 %v8752_v3, %v8752_v3 }
 0x3f2   :  { %v1333_v39 = vmul.f32 0.0078125, %v1292_v59  ;;  %v1395_v49 = vmul.f32 %v8755_v56, %v8755_v56 }
 0x3f3   :  { %v8762_v62 = vsub.f32 %v8596_v8, %v1334_v25  ;;  %1449 = vadd.xlane.f32.xlu1 %v1396_v22 }
 0x3f4   :  { %v8765_v50 = vsub.f32 %v8599_v32, %v1333_v39  ;;  %v1298_v18 = vpop.xlane.xlu1 %1297  ;;  %1447 = vadd.xlane.f32.xlu0 %v1395_v49 }
 0x3f5   :  { %v1336_v15 = vmul.f32 0.0078125, %v1298_v18  ;;  %v1296_v24 = vpop.xlane.xlu0 %1295  ;;  %v1398_v44 = vmul.f32 %v8762_v62, %v8762_v62 }
 0x3f6   :  { %v1335_v43 = vmul.f32 0.0078125, %v1296_v24  ;;  %v1397_v47 = vmul.f32 %v8765_v50, %v8765_v50 }
 0x3f7   :  { %v8772_v38 = vsub.f32 %v8604_v16, %v1336_v15  ;;  %1453 = vadd.xlane.f32.xlu1 %v1398_v44 }
 0x3f8   :  { %v8775_v8 = vsub.f32 %v8607_v26, %v1335_v43  ;;  %v1302_v32 = vpop.xlane.xlu1 %1301  ;;  %1451 = vadd.xlane.f32.xlu0 %v1397_v47 }
 0x3f9   :  { %v1338_v34 = vmul.f32 0.0078125, %v1302_v32  ;;  %v1300_v45 = vpop.xlane.xlu0 %1299  ;;  %v1400_v25 = vmul.f32 %v8772_v38, %v8772_v38 }
 0x3fa   :  { %v1337_v59 = vmul.f32 0.0078125, %v1300_v45  ;;  %v1399_v22 = vmul.f32 %v8775_v8, %v8775_v8 }
 0x3fb   :  { %v8782_v39 = vsub.f32 %v8612_v0, %v1338_v34  ;;  %1457 = vadd.xlane.f32.xlu1 %v1400_v25 }
 0x3fc   :  { %v8785_v16 = vsub.f32 %v8615_v33, %v1337_v59  ;;  %v1306_v26 = vpop.xlane.xlu1 %1305  ;;  %1455 = vadd.xlane.f32.xlu0 %v1399_v22 }
 0x3fd   :  { %v1340_v49 = vmul.f32 0.0078125, %v1306_v26  ;;  %v1304_v18 = vpop.xlane.xlu0 %1303  ;;  %v1402_v15 = vmul.f32 %v8782_v39, %v8782_v39 }
 0x3fe   :  { %v1339_v24 = vmul.f32 0.0078125, %v1304_v18  ;;  %v1401_v44 = vmul.f32 %v8785_v16, %v8785_v16 }
 0x3ff   :  { %v8792_v43 = vsub.f32 %v8620_v58, %v1340_v49  ;;  %1461 = vadd.xlane.f32.xlu1 %v1402_v15 }
 0x400   :  { %v8795_v0 = vsub.f32 %v8623_v10, %v1339_v24  ;;  %v1310_v33 = vpop.xlane.xlu1 %1309  ;;  %1459 = vadd.xlane.f32.xlu0 %v1401_v44 }
 0x401   :  { %v1342_v47 = vmul.f32 0.0078125, %v1310_v33  ;;  %v1308_v32 = vpop.xlane.xlu0 %1307  ;;  %v1404_v34 = vmul.f32 %v8792_v43, %v8792_v43 }
 0x402   :  { %v1341_v45 = vmul.f32 0.0078125, %v1308_v32  ;;  %v1403_v25 = vmul.f32 %v8795_v0, %v8795_v0 }
 0x403   :  { %v8802_v59 = vsub.f32 %v8628_v31, %v1342_v47  ;;  %1465 = vadd.xlane.f32.xlu1 %v1404_v34 }
 0x404   :  { %v8805_v58 = vsub.f32 %v8631_v29, %v1341_v45  ;;  %1463 = vadd.xlane.f32.xlu0 %v1403_v25 }
 0x405   :  { %v1406_v10 = vmul.f32 %v8802_v59, %v8802_v59 }
 0x406   :  { %v1405_v22 = vmul.f32 %v8805_v58, %v8805_v58 }
 0x407   :  { %1469 = vadd.xlane.f32.xlu1 %v1406_v10 }
 0x408   :  { %1467 = vadd.xlane.f32.xlu0 %v1405_v22 }
 0x458   :  { %v1410_v26 = vpop.xlane.xlu1 %1409 }
 0x459   :  { %v1472_v49 = vmul.f32 0.0078125, %v1410_v26  ;;  %v1408_v18 = vpop.xlane.xlu0 %1407 }
 0x45a   :  { %v1471_v15 = vmul.f32 0.0078125, %v1408_v18 }
 0x45b   :  { %v1504_v24 = vadd.f32 1e-05, %v1472_v49 }
 0x45c   :  { %v1503_v31 = vadd.f32 1e-05, %v1471_v15  ;;  %v1414_v44 = vpop.xlane.xlu1 %1413 }
 0x45d   :  { %7243 = vrsqrt.f32 %v1504_v24  ;;  %v1474_v33 = vmul.f32 0.0078125, %v1414_v44  ;;  %v1412_v29 = vpop.xlane.xlu0 %1411 }
 0x45e   :  { %7245 = vrsqrt.f32 %v1503_v31  ;;  %v1473_v47 = vmul.f32 0.0078125, %v1412_v29 }
 0x45f   :  { %v1506_v32 = vadd.f32 1e-05, %v1474_v33  ;;  %v8812_v33 = vld [vmem:[%s7706_s14] ss:$0 sm:$0xff]  ;;  %s11401_s14 = sld [smem:[#allocation5_spill]] }
 0x460   :  { %v1505_v34 = vadd.f32 1e-05, %v1473_v47  ;;  %v1418_v45 = vpop.xlane.xlu1 %1417 }
 0x461   :  { %7247 = vrsqrt.f32 %v1506_v32  ;;  %v1476_v25 = vmul.f32 0.0078125, %v1418_v45  ;;  %v1416_v10 = vpop.xlane.xlu0 %1415 }
 0x462   :  { %7249 = vrsqrt.f32 %v1505_v34  ;;  %v1475_v22 = vmul.f32 0.0078125, %v1416_v10  ;;  %v8816_v10 = vld [vmem:[%s7711_s19] ss:$0 sm:$0xff]  ;;  %s11402_s19 = sld [smem:[#allocation17_spill]] }
 0x463   :  { %v1508_v26 = vadd.f32 1e-05, %v1476_v25 }
 0x464   :  { %v1507_v57 = vadd.f32 1e-05, %v1475_v22  ;;  %v1422_v18 = vpop.xlane.xlu1 %1421 }
 0x465   :  { %7251 = vrsqrt.f32 %v1508_v26  ;;  %v1478_v49 = vmul.f32 0.0078125, %v1422_v18  ;;  %v1420_v15 = vpop.xlane.xlu0 %1419 }
 0x466   :  { %7253 = vrsqrt.f32 %v1507_v57  ;;  %v1477_v24 = vmul.f32 0.0078125, %v1420_v15 }
 0x467   :  { %v7244_v31 = vpop.eup %7243  ;;  %v1510_v44 = vadd.f32 1e-05, %v1478_v49 }
 0x468   :  { %v7246_v29 = vpop.eup %7245  ;;  %v1568_v47 = vmul.f32 %v7244_v31, %v8640_v51  ;;  %v1509_v32 = vadd.f32 1e-05, %v1477_v24  ;;  %v1426_v45 = vpop.xlane.xlu1 %1425 }
 0x469   :  { %7255 = vrsqrt.f32 %v1510_v44  ;;  %v1480_v34 = vmul.f32 0.0078125, %v1426_v45  ;;  %v1424_v25 = vpop.xlane.xlu0 %1423  ;;  %v1567_v22 = vmul.f32 %v7246_v29, %v8643_v9 }
 0x46a   :  { %7257 = vrsqrt.f32 %v1509_v32  ;;  %v1479_v26 = vmul.f32 0.0078125, %v1424_v25  ;;  %v1606_v57 = vmul.f32 %v8812_v33, %v1568_v47 }
 0x46b   :  { %v7248_v18 = vpop.eup %7247  ;;  %v1512_v49 = vadd.f32 1e-05, %v1480_v34  ;;  %v1605_v15 = vmul.f32 %v8812_v33, %v1567_v22 }
 0x46c   :  { %v7250_v30 = vpop.eup %7249  ;;  %v1511_v52 = vadd.f32 1e-05, %v1479_v26  ;;  %v1430_v51 = vpop.xlane.xlu1 %1429  ;;  %v1644_v24 = vadd.f32 %v8816_v10, %v1606_v57  ;;  %v1570_v31 = vmul.f32 %v7248_v18, %v8650_v14 }
 0x46d   :  { %7259 = vrsqrt.f32 %v1512_v49  ;;  %v1482_v44 = vmul.f32 0.0078125, %v1430_v51  ;;  %v1428_v45 = vpop.xlane.xlu0 %1427  ;;  %v1643_v9 = vadd.f32 %v8816_v10, %v1605_v15  ;;  %v1569_v29 = vmul.f32 %v7250_v30, %v8653_v11 }
 0x46e   :  { %7261 = vrsqrt.f32 %v1511_v52  ;;  %v1481_v47 = vmul.f32 0.0078125, %v1428_v45  ;;  %v1608_v32 = vmul.f32 %v8812_v33, %v1570_v31  ;;  %v1676_v14 = vmax.f32 %v1644_v24, 0.0 }
 0x46f   :  { %v7252_v34 = vpop.eup %7251  ;;  %v1514_v25 = vadd.f32 1e-05, %v1482_v44  ;;  %v1675_v22 = vmax.f32 %v1643_v9, 0.0  ;;  %v1607_v26 = vmul.f32 %v8812_v33, %v1569_v29 }
 0x470   :  { %v7254_v2 = vpop.eup %7253  ;;  %v1513_v57 = vadd.f32 1e-05, %v1481_v47  ;;  %v1434_v7 = vpop.xlane.xlu1 %1433  ;;  %v1646_v18 = vadd.f32 %v8816_v10, %v1608_v32  ;;  %v1572_v49 = vmul.f32 %v7252_v34, %v8660_v12 }
 0x471   :  { %7263 = vrsqrt.f32 %v1514_v25  ;;  %v1484_v15 = vmul.f32 0.0078125, %v1434_v7  ;;  %6459 = vmatprep.mubr.f32.mxu0 %v1675_v22  ;;  %v1432_v52 = vpop.xlane.xlu0 %1431  ;;  %v1645_v30 = vadd.f32 %v8816_v10, %v1607_v26  ;;  %v1571_v11 = vmul.f32 %v7254_v2, %v8663_v20 }
 0x472   :  { %7265 = vrsqrt.f32 %v1513_v57  ;;  %v1483_v51 = vmul.f32 0.0078125, %v1432_v52  ;;  %6460 = vmatmul.mubr.f32.vlgmr.msra.gmra.mrb[16].mxu0 %v1676_v14  ;;  %v1610_v31 = vmul.f32 %v8812_v33, %v1572_v49  ;;  %v1678_v7 = vmax.f32 %v1646_v18, 0.0 }
 0x473   :  { %v7256_v44 = vpop.eup %7255  ;;  %v1516_v45 = vadd.f32 1e-05, %v1484_v15  ;;  %v1677_v24 = vmax.f32 %v1645_v30, 0.0  ;;  %v1609_v9 = vmul.f32 %v8812_v33, %v1571_v11 }
 0x474   :  { %v7258_v29 = vpop.eup %7257  ;;  %v1515_v12 = vadd.f32 1e-05, %v1483_v51  ;;  %v1438_v47 = vpop.xlane.xlu1 %1437  ;;  %v1648_v32 = vadd.f32 %v8816_v10, %v1610_v31  ;;  %v1574_v34 = vmul.f32 %v7256_v44, %v8670_v13 }
 0x475   :  { %7267 = vrsqrt.f32 %v1516_v45  ;;  %v1486_v2 = vmul.f32 0.0078125, %v1438_v47  ;;  %6462 = vmatprep.mubr.f32.mxu0 %v1677_v24  ;;  %v1436_v20 = vpop.xlane.xlu0 %1435  ;;  %v1647_v25 = vadd.f32 %v8816_v10, %v1609_v9  ;;  %v1573_v22 = vmul.f32 %v7258_v29, %v8673_v60 }
 0x476   :  { %7269 = vrsqrt.f32 %v1515_v12  ;;  %v1485_v26 = vmul.f32 0.0078125, %v1436_v20  ;;  %6463 = vmatmul.mubr.f32.gmra.mrb[18].mxu0 %v1678_v7  ;;  %v1612_v57 = vmul.f32 %v8812_v33, %v1574_v34  ;;  %v1680_v11 = vmax.f32 %v1648_v32, 0.0 }
 0x477   :  { %v7260_v14 = vpop.eup %7259  ;;  %v1518_v49 = vadd.f32 1e-05, %v1486_v2  ;;  %v1679_v18 = vmax.f32 %v1647_v25, 0.0  ;;  %v1611_v15 = vmul.f32 %v8812_v33, %v1573_v22 }
 0x478   :  { %v7262_v52 = vpop.eup %7261  ;;  %v1517_v13 = vadd.f32 1e-05, %v1485_v26  ;;  %v1442_v30 = vpop.xlane.xlu1 %1441  ;;  %v1650_v51 = vadd.f32 %v8816_v10, %v1612_v57  ;;  %v1576_v31 = vmul.f32 %v7260_v14, %v8680_v48 }
 0x479   :  { %7271 = vrsqrt.f32 %v1518_v49  ;;  %v1488_v60 = vmul.f32 0.0078125, %v1442_v30  ;;  %6465 = vmatprep.mubr.f32.mxu0 %v1679_v18  ;;  %v1440_v44 = vpop.xlane.xlu0 %1439  ;;  %v1649_v45 = vadd.f32 %v8816_v10, %v1611_v15  ;;  %v1575_v24 = vmul.f32 %v7262_v52, %v8683_v23 }
 0x47a   :  { %7273 = vrsqrt.f32 %v1517_v13  ;;  %v1487_v9 = vmul.f32 0.0078125, %v1440_v44  ;;  %6466 = vmatmul.mubr.f32.gmra.mrb[20].mxu0 %v1680_v11  ;;  %v1614_v29 = vmul.f32 %v8812_v33, %v1576_v31  ;;  %v1682_v20 = vmax.f32 %v1650_v51, 0.0 }
 0x47b   :  { %v7264_v12 = vpop.eup %7263  ;;  %v1520_v47 = vadd.f32 1e-05, %v1488_v60  ;;  %v1681_v7 = vmax.f32 %v1649_v45, 0.0  ;;  %v1613_v32 = vmul.f32 %v8812_v33, %v1575_v24 }
 0x47c   :  { %v7266_v34 = vpop.eup %7265  ;;  %v1519_v48 = vadd.f32 1e-05, %v1487_v9  ;;  %v1446_v2 = vpop.xlane.xlu1 %1445  ;;  %v1652_v25 = vadd.f32 %v8816_v10, %v1614_v29  ;;  %v1578_v22 = vmul.f32 %v7264_v12, %v8692_v27 }
 0x47d   :  { %7275 = vrsqrt.f32 %v1520_v47  ;;  %v1490_v23 = vmul.f32 0.0078125, %v1446_v2  ;;  %6468 = vmatprep.mubr.f32.mxu0 %v1681_v7  ;;  %v1444_v26 = vpop.xlane.xlu0 %1443  ;;  %v1651_v57 = vadd.f32 %v8816_v10, %v1613_v32  ;;  %v1577_v14 = vmul.f32 %v7266_v34, %v8695_v17 }
 0x47e   :  { %7277 = vrsqrt.f32 %v1519_v48  ;;  %v1489_v49 = vmul.f32 0.0078125, %v1444_v26  ;;  %6469 = vmatmul.mubr.f32.gmra.mrb[22].mxu0 %v1682_v20  ;;  %v1616_v18 = vmul.f32 %v8812_v33, %v1578_v22  ;;  %v1684_v31 = vmax.f32 %v1652_v25, 0.0 }
 0x47f   :  { %v7268_v15 = vpop.eup %7267  ;;  %v1522_v52 = vadd.f32 1e-05, %v1490_v23  ;;  %v1683_v13 = vmax.f32 %v1651_v57, 0.0  ;;  %v1615_v30 = vmul.f32 %v8812_v33, %v1577_v14 }
 0x480   :  { %v7270_v11 = vpop.eup %7269  ;;  %v1521_v27 = vadd.f32 1e-05, %v1489_v49  ;;  %v1450_v51 = vpop.xlane.xlu1 %1449  ;;  %v1654_v60 = vadd.f32 %v8816_v10, %v1616_v18  ;;  %v1580_v44 = vmul.f32 %v7268_v15, %v8704_v54 }
 0x481   :  { %7279 = vrsqrt.f32 %v1522_v52  ;;  %v1492_v17 = vmul.f32 0.0078125, %v1450_v51  ;;  %6471 = vmatprep.mubr.f32.mxu0 %v1683_v13  ;;  %v1448_v45 = vpop.xlane.xlu0 %1447  ;;  %v1653_v24 = vadd.f32 %v8816_v10, %v1615_v30  ;;  %v1579_v9 = vmul.f32 %v7270_v11, %v8707_v1 }
 0x482   :  { %7281 = vrsqrt.f32 %v1521_v27  ;;  %v1491_v29 = vmul.f32 0.0078125, %v1448_v45  ;;  %6472 = vmatmul.mubr.f32.gmra.mrb[24].mxu0 %v1684_v31  ;;  %v1618_v12 = vmul.f32 %v8812_v33, %v1580_v44  ;;  %v1686_v20 = vmax.f32 %v1654_v60, 0.0 }
 0x483   :  { %v7272_v47 = vpop.eup %7271  ;;  %v1524_v7 = vadd.f32 1e-05, %v1492_v17  ;;  %v1685_v32 = vmax.f32 %v1653_v24, 0.0  ;;  %v1617_v34 = vmul.f32 %v8812_v33, %v1579_v9 }
 0x484   :  { %v7274_v48 = vpop.eup %7273  ;;  %v1523_v54 = vadd.f32 1e-05, %v1491_v29  ;;  %v1454_v2 = vpop.xlane.xlu1 %1453  ;;  %v1656_v25 = vadd.f32 %v8816_v10, %v1618_v12  ;;  %v1582_v22 = vmul.f32 %v7272_v47, %v8716_v55 }
 0x485   :  { %7283 = vrsqrt.f32 %v1524_v7  ;;  %v1494_v1 = vmul.f32 0.0078125, %v1454_v2  ;;  %6474 = vmatprep.mubr.f32.mxu0 %v1685_v32  ;;  %v1452_v23 = vpop.xlane.xlu0 %1451  ;;  %v1655_v26 = vadd.f32 %v8816_v10, %v1617_v34  ;;  %v1581_v57 = vmul.f32 %v7274_v48, %v8719_v41 }
 0x486   :  { %7285 = vrsqrt.f32 %v1523_v54  ;;  %v1493_v14 = vmul.f32 0.0078125, %v1452_v23  ;;  %6475 = vmatmul.mubr.f32.gmra.mrb[26].mxu0 %v1686_v20  ;;  %v1620_v49 = vmul.f32 %v8812_v33, %v1582_v22  ;;  %v1688_v27 = vmax.f32 %v1656_v25, 0.0 }
 0x487   :  { %v7276_v18 = vpop.eup %7275  ;;  %v1526_v15 = vadd.f32 1e-05, %v1494_v1  ;;  %v1687_v52 = vmax.f32 %v1655_v26, 0.0  ;;  %v1619_v13 = vmul.f32 %v8812_v33, %v1581_v57 }
 0x488   :  { %v7278_v30 = vpop.eup %7277  ;;  %v1525_v55 = vadd.f32 1e-05, %v1493_v14  ;;  %v1458_v11 = vpop.xlane.xlu1 %1457  ;;  %v1658_v51 = vadd.f32 %v8816_v10, %v1620_v49  ;;  %v1584_v31 = vmul.f32 %v7276_v18, %v8728_v5 }
 0x489   :  { %7287 = vrsqrt.f32 %v1526_v15  ;;  %v1496_v41 = vmul.f32 0.0078125, %v1458_v11  ;;  %6477 = vmatprep.mubr.f32.mxu0 %v1687_v52  ;;  %v1456_v60 = vpop.xlane.xlu0 %1455  ;;  %v1657_v44 = vadd.f32 %v8816_v10, %v1619_v13  ;;  %v1583_v17 = vmul.f32 %v7278_v30, %v8731_v6 }
 0x48a   :  { %7289 = vrsqrt.f32 %v1525_v55  ;;  %v1495_v45 = vmul.f32 0.0078125, %v1456_v60  ;;  %6478 = vmatmul.mubr.f32.gmra.mrb[28].mxu0 %v1688_v27  ;;  %v1622_v24 = vmul.f32 %v8812_v33, %v1584_v31  ;;  %v1690_v34 = vmax.f32 %v1658_v51, 0.0 }
 0x48b   :  { %v7280_v9 = vpop.eup %7279  ;;  %v1528_v29 = vadd.f32 1e-05, %v1496_v41  ;;  %v1689_v12 = vmax.f32 %v1657_v44, 0.0  ;;  %v1621_v47 = vmul.f32 %v8812_v33, %v1583_v17 }
 0x48c   :  { %v7282_v7 = vpop.eup %7281  ;;  %v1527_v5 = vadd.f32 1e-05, %v1495_v45  ;;  %v1462_v32 = vpop.xlane.xlu1 %1461  ;;  %v1660_v48 = vadd.f32 %v8816_v10, %v1622_v24  ;;  %v1586_v54 = vmul.f32 %v7280_v9, %v8740_v63 }
 0x48d   :  { %7291 = vrsqrt.f32 %v1528_v29  ;;  %v1498_v6 = vmul.f32 0.0078125, %v1462_v32  ;;  %6480 = vmatprep.mubr.f32.mxu0 %v1689_v12  ;;  %v1460_v2 = vpop.xlane.xlu0 %1459  ;;  %v1659_v20 = vadd.f32 %v8816_v10, %v1621_v47  ;;  %v1585_v25 = vmul.f32 %v7282_v7, %v8743_v19 }
 0x48e   :  { %7293 = vrsqrt.f32 %v1527_v5  ;;  %v1497_v22 = vmul.f32 0.0078125, %v1460_v2  ;;  %6481 = vmatmul.mubr.f32.gmra.mrb[30].mxu0 %v1690_v34  ;;  %v1624_v1 = vmul.f32 %v8812_v33, %v1586_v54  ;;  %v1692_v15 = vmax.f32 %v1660_v48, 0.0 }
 0x48f   :  { %v7284_v23 = vpop.eup %7283  ;;  %v1530_v26 = vadd.f32 1e-05, %v1498_v6  ;;  %v1691_v57 = vmax.f32 %v1659_v20, 0.0  ;;  %v1623_v14 = vmul.f32 %v8812_v33, %v1585_v25 }
 0x490   :  { %v7286_v49 = vpop.eup %7285  ;;  %v1529_v63 = vadd.f32 1e-05, %v1497_v22  ;;  %v1466_v18 = vpop.xlane.xlu1 %1465  ;;  %v1662_v52 = vadd.f32 %v8816_v10, %v1624_v1  ;;  %v1588_v13 = vmul.f32 %v7284_v23, %v8752_v3 }
 0x491   :  { %7295 = vrsqrt.f32 %v1530_v26  ;;  %v1500_v19 = vmul.f32 0.0078125, %v1466_v18  ;;  %6483 = vmatprep.mubr.f32.mxu0 %v1691_v57  ;;  %v1464_v30 = vpop.xlane.xlu0 %1463  ;;  %v1661_v55 = vadd.f32 %v8816_v10, %v1623_v14  ;;  %v1587_v11 = vmul.f32 %v7286_v49, %v8755_v56 }
 0x492   :  { %7297 = vrsqrt.f32 %v1529_v63  ;;  %v1499_v27 = vmul.f32 0.0078125, %v1464_v30  ;;  %6484 = vmatmul.mubr.f32.gmra.mrb[32].mxu0 %v1692_v15  ;;  %v1626_v51 = vmul.f32 %v8812_v33, %v1588_v13  ;;  %v1694_v24 = vmax.f32 %v1662_v52, 0.0 }
 0x493   :  { %v7288_v31 = vpop.eup %7287  ;;  %v1532_v41 = vadd.f32 1e-05, %v1500_v19  ;;  %v1693_v60 = vmax.f32 %v1661_v55, 0.0  ;;  %v1625_v44 = vmul.f32 %v8812_v33, %v1587_v11 }
 0x494   :  { %v7290_v17 = vpop.eup %7289  ;;  %v1531_v3 = vadd.f32 1e-05, %v1499_v27  ;;  %v1470_v45 = vpop.xlane.xlu1 %1469  ;;  %v1664_v9 = vadd.f32 %v8816_v10, %v1626_v51  ;;  %v1590_v29 = vmul.f32 %v7288_v31, %v8762_v62 }
 0x495   :  { %7299 = vrsqrt.f32 %v1532_v41  ;;  %v1502_v56 = vmul.f32 0.0078125, %v1470_v45  ;;  %6486 = vmatprep.mubr.f32.mxu0 %v1693_v60  ;;  %v1468_v12 = vpop.xlane.xlu0 %1467  ;;  %v1663_v47 = vadd.f32 %v8816_v10, %v1625_v44  ;;  %v1589_v7 = vmul.f32 %v7290_v17, %v8765_v50 }
 0x496   :  { %7301 = vrsqrt.f32 %v1531_v3  ;;  %v1501_v5 = vmul.f32 0.0078125, %v1468_v12  ;;  %6487 = vmatmul.mubr.f32.gmra.mrb[34].mxu0 %v1694_v24  ;;  %v1628_v32 = vmul.f32 %v8812_v33, %v1590_v29  ;;  %v1696_v20 = vmax.f32 %v1664_v9, 0.0 }
 0x497   :  { %v7292_v34 = vpop.eup %7291  ;;  %v1534_v48 = vadd.f32 1e-05, %v1502_v56  ;;  %v1695_v54 = vmax.f32 %v1663_v47, 0.0  ;;  %v1627_v6 = vmul.f32 %v8812_v33, %v1589_v7 }
 0x498   :  { %v7294_v2 = vpop.eup %7293  ;;  %v1533_v62 = vadd.f32 1e-05, %v1501_v5  ;;  %v1666_v25 = vadd.f32 %v8816_v10, %v1628_v32  ;;  %v1592_v22 = vmul.f32 %v7292_v34, %v8772_v38  ;;  %v8914_v32 = vld [vmem:[%s7721_s30] ss:$0 sm:$0xff]  ;;  %s11404_s30 = sld [smem:[#allocation16_spill]] }
 0x499   :  { %7303 = vrsqrt.f32 %v1534_v48  ;;  %6489 = vmatprep.mubr.f32.mxu0 %v1695_v54  ;;  %v1665_v50 = vadd.f32 %v8816_v10, %v1627_v6  ;;  %v1591_v1 = vmul.f32 %v7294_v2, %v8775_v8 }
 0x49a   :  { %7305 = vrsqrt.f32 %v1533_v62  ;;  %6490 = vmatmul.mubr.f32.gmra.mrb[36].mxu0 %v1696_v20  ;;  %v1630_v23 = vmul.f32 %v8812_v33, %v1592_v22  ;;  %v1698_v63 = vmax.f32 %v1666_v25, 0.0 }
 0x49b   :  { %v7296_v26 = vpop.eup %7295  ;;  %v1697_v57 = vmax.f32 %v1665_v50, 0.0  ;;  %v1629_v14 = vmul.f32 %v8812_v33, %v1591_v1 }
 0x49c   :  { %v7298_v49 = vpop.eup %7297  ;;  %v1668_v18 = vadd.f32 %v8816_v10, %v1630_v23  ;;  %v1594_v38 = vmul.f32 %v7296_v26, %v8782_v39 }
 0x49d   :  { %6492 = vmatprep.mubr.f32.mxu0 %v1697_v57  ;;  %v1667_v15 = vadd.f32 %v8816_v10, %v1629_v14  ;;  %v1593_v52 = vmul.f32 %v7298_v49, %v8785_v16 }
 0x49e   :  { %6493 = vmatmul.mubr.f32.gmra.mrb[38].mxu0 %v1698_v63  ;;  %v1632_v8 = vmul.f32 %v8812_v33, %v1594_v38  ;;  %v1700_v11 = vmax.f32 %v1668_v18, 0.0 }
 0x49f   :  { %v7300_v13 = vpop.eup %7299  ;;  %v1699_v19 = vmax.f32 %v1667_v15, 0.0  ;;  %v1631_v30 = vmul.f32 %v8812_v33, %v1593_v52 }
 0x4a0   :  { %v7302_v55 = vpop.eup %7301  ;;  %v1670_v27 = vadd.f32 %v8816_v10, %v1632_v8  ;;  %v1596_v51 = vmul.f32 %v7300_v13, %v8792_v43 }
 0x4a1   :  { %6495 = vmatprep.mubr.f32.mxu0 %v1699_v19  ;;  %v1669_v39 = vadd.f32 %v8816_v10, %v1631_v30  ;;  %v1595_v31 = vmul.f32 %v7302_v55, %v8795_v0 }
 0x4a2   :  { %6496 = vmatmul.mubr.f32.gmra.mrb[40].mxu0 %v1700_v11  ;;  %v1634_v16 = vmul.f32 %v8812_v33, %v1596_v51  ;;  %v1702_v3 = vmax.f32 %v1670_v27, 0.0 }
 0x4a3   :  { %v7304_v41 = vpop.eup %7303  ;;  %v1701_v60 = vmax.f32 %v1669_v39, 0.0  ;;  %v1633_v44 = vmul.f32 %v8812_v33, %v1595_v31 }
 0x4a4   :  { %v7306_v17 = vpop.eup %7305  ;;  %v1672_v45 = vadd.f32 %v8816_v10, %v1634_v16  ;;  %v1598_v24 = vmul.f32 %v7304_v41, %v8802_v59 }
 0x4a5   :  { %6498 = vmatprep.mubr.f32.mxu0 %v1701_v60  ;;  %v1671_v43 = vadd.f32 %v8816_v10, %v1633_v44  ;;  %v1597_v9 = vmul.f32 %v7306_v17, %v8805_v58 }
 0x4a6   :  { %6499 = vmatmul.mubr.f32.gmra.mrb[42].mxu0 %v1702_v3  ;;  %v1636_v0 = vmul.f32 %v8812_v33, %v1598_v24  ;;  %v1704_v12 = vmax.f32 %v1672_v45, 0.0 }
 0x4a7   :  { %v1703_v29 = vmax.f32 %v1671_v43, 0.0  ;;  %v1635_v56 = vmul.f32 %v8812_v33, %v1597_v9 }
 0x4a8   :  { %v1674_v47 = vadd.f32 %v8816_v10, %v1636_v0 }
 0x4a9   :  { %6501 = vmatprep.mubr.f32.mxu0 %v1703_v29  ;;  %v1673_v7 = vadd.f32 %v8816_v10, %v1635_v56 }
 0x4aa   :  { %6502 = vmatmul.mubr.f32.gmra.mrb[44].mxu0 %v1704_v12  ;;  %v1706_v5 = vmax.f32 %v1674_v47, 0.0 }
 0x4ab   :  { %v1705_v59 = vmax.f32 %v1673_v7, 0.0 }
 0x4ad   :  { %6504 = vmatprep.mubr.f32.mxu0 %v1705_v59 }
 0x4ae   :  { %6505 = vmatmul.mubr.f32.gmra.mrb[46].mxu0 %v1706_v5 }
 0x545   :  { %v6461_v58 = vpop.f32.mrb[16].mxu0 }
 0x546   :  { %v8917_v34 = vadd.f32 %v6461_v58, %v8914_v32  ;;  %v1796_v48 = vpop.f32.mrb[17].mxu0 }
 0x547   :  { %v8920_v33 = vadd.f32 %v8914_v32, %v1796_v48 }
 0x548   :  { %1959 = vadd.xlane.f32.xlu1 %v8917_v34 }
 0x549   :  { %1957 = vadd.xlane.f32.xlu0 %v8920_v33  ;;  %v6464_v10 = vpop.f32.mrb[18].mxu0 }
 0x54a   :  { %v8925_v54 = vadd.f32 %v6464_v10, %v8914_v32  ;;  %v1806_v6 = vpop.f32.mrb[19].mxu0 }
 0x54b   :  { %v8928_v2 = vadd.f32 %v8914_v32, %v1806_v6 }
 0x54c   :  { %1963 = vadd.xlane.f32.xlu1 %v8925_v54 }
 0x54d   :  { %1961 = vadd.xlane.f32.xlu0 %v8928_v2  ;;  %v6467_v62 = vpop.f32.mrb[20].mxu0 }
 0x54e   :  { %v8933_v20 = vadd.f32 %v6467_v62, %v8914_v32  ;;  %v1816_v25 = vpop.f32.mrb[21].mxu0 }
 0x54f   :  { %v8936_v22 = vadd.f32 %v8914_v32, %v1816_v25 }
 0x550   :  { %1967 = vadd.xlane.f32.xlu1 %v8933_v20 }
 0x551   :  { %1965 = vadd.xlane.f32.xlu0 %v8936_v22  ;;  %v6470_v50 = vpop.f32.mrb[22].mxu0 }
 0x552   :  { %v8941_v1 = vadd.f32 %v6470_v50, %v8914_v32  ;;  %v1826_v23 = vpop.f32.mrb[23].mxu0 }
 0x553   :  { %v8944_v26 = vadd.f32 %v8914_v32, %v1826_v23 }
 0x554   :  { %1971 = vadd.xlane.f32.xlu1 %v8941_v1 }
 0x555   :  { %1969 = vadd.xlane.f32.xlu0 %v8944_v26  ;;  %v6473_v57 = vpop.f32.mrb[24].mxu0 }
 0x556   :  { %v8949_v14 = vadd.f32 %v6473_v57, %v8914_v32  ;;  %v1836_v49 = vpop.f32.mrb[25].mxu0 }
 0x557   :  { %v8952_v63 = vadd.f32 %v8914_v32, %v1836_v49 }
 0x558   :  { %1975 = vadd.xlane.f32.xlu1 %v8949_v14 }
 0x559   :  { %1973 = vadd.xlane.f32.xlu0 %v8952_v63  ;;  %v6476_v18 = vpop.f32.mrb[26].mxu0 }
 0x55a   :  { %v8957_v38 = vadd.f32 %v6476_v18, %v8914_v32  ;;  %v1846_v15 = vpop.f32.mrb[27].mxu0 }
 0x55b   :  { %v8960_v52 = vadd.f32 %v8914_v32, %v1846_v15 }
 0x55c   :  { %1979 = vadd.xlane.f32.xlu1 %v8957_v38 }
 0x55d   :  { %1977 = vadd.xlane.f32.xlu0 %v8960_v52  ;;  %v6479_v8 = vpop.f32.mrb[28].mxu0 }
 0x55e   :  { %v8965_v13 = vadd.f32 %v6479_v8, %v8914_v32  ;;  %v1856_v19 = vpop.f32.mrb[29].mxu0 }
 0x55f   :  { %v8968_v30 = vadd.f32 %v8914_v32, %v1856_v19 }
 0x560   :  { %1983 = vadd.xlane.f32.xlu1 %v8965_v13 }
 0x561   :  { %1981 = vadd.xlane.f32.xlu0 %v8968_v30  ;;  %v6482_v55 = vpop.f32.mrb[30].mxu0 }
 0x562   :  { %v8973_v11 = vadd.f32 %v6482_v55, %v8914_v32  ;;  %v1866_v27 = vpop.f32.mrb[31].mxu0 }
 0x563   :  { %v8976_v51 = vadd.f32 %v8914_v32, %v1866_v27 }
 0x564   :  { %1987 = vadd.xlane.f32.xlu1 %v8973_v11 }
 0x565   :  { %1985 = vadd.xlane.f32.xlu0 %v8976_v51  ;;  %v6485_v39 = vpop.f32.mrb[32].mxu0 }
 0x566   :  { %v8981_v31 = vadd.f32 %v6485_v39, %v8914_v32  ;;  %v1876_v16 = vpop.f32.mrb[33].mxu0 }
 0x567   :  { %v8984_v41 = vadd.f32 %v8914_v32, %v1876_v16 }
 0x568   :  { %1991 = vadd.xlane.f32.xlu1 %v8981_v31 }
 0x569   :  { %1989 = vadd.xlane.f32.xlu0 %v8984_v41  ;;  %v6488_v60 = vpop.f32.mrb[34].mxu0 }
 0x56a   :  { %v8989_v44 = vadd.f32 %v6488_v60, %v8914_v32  ;;  %v1886_v17 = vpop.f32.mrb[35].mxu0 }
 0x56b   :  { %v8992_v3 = vadd.f32 %v8914_v32, %v1886_v17 }
 0x56c   :  { %1995 = vadd.xlane.f32.xlu1 %v8989_v44 }
 0x56d   :  { %1993 = vadd.xlane.f32.xlu0 %v8992_v3  ;;  %v6491_v45 = vpop.f32.mrb[36].mxu0 }
 0x56e   :  { %v8997_v24 = vadd.f32 %v6491_v45, %v8914_v32  ;;  %v1896_v43 = vpop.f32.mrb[37].mxu0 }
 0x56f   :  { %v9000_v9 = vadd.f32 %v8914_v32, %v1896_v43 }
 0x570   :  { %1999 = vadd.xlane.f32.xlu1 %v8997_v24 }
 0x571   :  { %1997 = vadd.xlane.f32.xlu0 %v9000_v9  ;;  %v6494_v0 = vpop.f32.mrb[38].mxu0 }
 0x572   :  { %v9005_v29 = vadd.f32 %v6494_v0, %v8914_v32  ;;  %v1906_v56 = vpop.f32.mrb[39].mxu0 }
 0x573   :  { %v9008_v12 = vadd.f32 %v8914_v32, %v1906_v56 }
 0x574   :  { %2003 = vadd.xlane.f32.xlu1 %v9005_v29 }
 0x575   :  { %2001 = vadd.xlane.f32.xlu0 %v9008_v12  ;;  %v6497_v47 = vpop.f32.mrb[40].mxu0 }
 0x576   :  { %v9013_v7 = vadd.f32 %v6497_v47, %v8914_v32  ;;  %v1916_v59 = vpop.f32.mrb[41].mxu0 }
 0x577   :  { %v9016_v5 = vadd.f32 %v8914_v32, %v1916_v59 }
 0x578   :  { %2007 = vadd.xlane.f32.xlu1 %v9013_v7 }
 0x579   :  { %2005 = vadd.xlane.f32.xlu0 %v9016_v5  ;;  %v6500_v58 = vpop.f32.mrb[42].mxu0 }
 0x57a   :  { %v9021_v48 = vadd.f32 %v6500_v58, %v8914_v32  ;;  %v1926_v10 = vpop.f32.mrb[43].mxu0 }
 0x57b   :  { %v9024_v6 = vadd.f32 %v8914_v32, %v1926_v10 }
 0x57c   :  { %2011 = vadd.xlane.f32.xlu1 %v9021_v48 }
 0x57d   :  { %2009 = vadd.xlane.f32.xlu0 %v9024_v6  ;;  %v6503_v62 = vpop.f32.mrb[44].mxu0 }
 0x57e   :  { %v9029_v25 = vadd.f32 %v6503_v62, %v8914_v32  ;;  %v1936_v50 = vpop.f32.mrb[45].mxu0 }
 0x57f   :  { %v9032_v23 = vadd.f32 %v8914_v32, %v1936_v50 }
 0x580   :  { %2015 = vadd.xlane.f32.xlu1 %v9029_v25 }
 0x581   :  { %2013 = vadd.xlane.f32.xlu0 %v9032_v23  ;;  %v6506_v57 = vpop.f32.mrb[46].mxu0 }
 0x582   :  { %v9037_v49 = vadd.f32 %v6506_v57, %v8914_v32  ;;  %v1946_v18 = vpop.f32.mrb[47].mxu0 }
 0x583   :  { %v9040_v15 = vadd.f32 %v8914_v32, %v1946_v18 }
 0x584   :  { %2019 = vadd.xlane.f32.xlu1 %v9037_v49 }
 0x585   :  { %2017 = vadd.xlane.f32.xlu0 %v9040_v15 }
 0x5d5   :  { %v1960_v8 = vpop.xlane.xlu1 %1959 }
 0x5d6   :  { %v2022_v19 = vmul.f32 0.0078125, %v1960_v8  ;;  %v1958_v55 = vpop.xlane.xlu0 %1957 }
 0x5d7   :  { %v2021_v27 = vmul.f32 0.0078125, %v1958_v55 }
 0x5d8   :  { %v9045_v39 = vsub.f32 %v8917_v34, %v2022_v19 }
 0x5d9   :  { %v9048_v16 = vsub.f32 %v8920_v33, %v2021_v27  ;;  %v1964_v60 = vpop.xlane.xlu1 %1963 }
 0x5da   :  { %v2024_v17 = vmul.f32 0.0078125, %v1964_v60  ;;  %v1962_v45 = vpop.xlane.xlu0 %1961  ;;  %v2086_v32 = vmul.f32 %v9045_v39, %v9045_v39 }
 0x5db   :  { %v2023_v43 = vmul.f32 0.0078125, %v1962_v45  ;;  %v2085_v0 = vmul.f32 %v9048_v16, %v9048_v16 }
 0x5dc   :  { %v9055_v56 = vsub.f32 %v8925_v54, %v2024_v17  ;;  %2119 = vadd.xlane.f32.xlu1 %v2086_v32 }
 0x5dd   :  { %v9058_v34 = vsub.f32 %v8928_v2, %v2023_v43  ;;  %v1968_v47 = vpop.xlane.xlu1 %1967  ;;  %2117 = vadd.xlane.f32.xlu0 %v2085_v0 }
 0x5de   :  { %v2026_v33 = vmul.f32 0.0078125, %v1968_v47  ;;  %v1966_v59 = vpop.xlane.xlu0 %1965  ;;  %v2088_v58 = vmul.f32 %v9055_v56, %v9055_v56 }
 0x5df   :  { %v2025_v10 = vmul.f32 0.0078125, %v1966_v59  ;;  %v2087_v62 = vmul.f32 %v9058_v34, %v9058_v34 }
 0x5e0   :  { %v9065_v50 = vsub.f32 %v8933_v20, %v2026_v33  ;;  %2123 = vadd.xlane.f32.xlu1 %v2088_v58 }
 0x5e1   :  { %v9068_v54 = vsub.f32 %v8936_v22, %v2025_v10  ;;  %v1972_v2 = vpop.xlane.xlu1 %1971  ;;  %2121 = vadd.xlane.f32.xlu0 %v2087_v62 }
 0x5e2   :  { %v2028_v57 = vmul.f32 0.0078125, %v1972_v2  ;;  %v1970_v18 = vpop.xlane.xlu0 %1969  ;;  %v2090_v8 = vmul.f32 %v9065_v50, %v9065_v50 }
 0x5e3   :  { %v2027_v19 = vmul.f32 0.0078125, %v1970_v18  ;;  %v2089_v55 = vmul.f32 %v9068_v54, %v9068_v54 }
 0x5e4   :  { %v9075_v27 = vsub.f32 %v8941_v1, %v2028_v57  ;;  %2127 = vadd.xlane.f32.xlu1 %v2090_v8 }
 0x5e5   :  { %v9078_v20 = vsub.f32 %v8944_v26, %v2027_v19  ;;  %v1976_v22 = vpop.xlane.xlu1 %1975  ;;  %2125 = vadd.xlane.f32.xlu0 %v2089_v55 }
 0x5e6   :  { %v2030_v60 = vmul.f32 0.0078125, %v1976_v22  ;;  %v1974_v17 = vpop.xlane.xlu0 %1973  ;;  %v2092_v45 = vmul.f32 %v9075_v27, %v9075_v27 }
 0x5e7   :  { %v2029_v32 = vmul.f32 0.0078125, %v1974_v17  ;;  %v2091_v43 = vmul.f32 %v9078_v20, %v9078_v20 }
 0x5e8   :  { %v9085_v0 = vsub.f32 %v8949_v14, %v2030_v60  ;;  %2131 = vadd.xlane.f32.xlu1 %v2092_v45 }
 0x5e9   :  { %v9088_v1 = vsub.f32 %v8952_v63, %v2029_v32  ;;  %v1980_v26 = vpop.xlane.xlu1 %1979  ;;  %2129 = vadd.xlane.f32.xlu0 %v2091_v43 }
 0x5ea   :  { %v2032_v47 = vmul.f32 0.0078125, %v1980_v26  ;;  %v1978_v33 = vpop.xlane.xlu0 %1977  ;;  %v2094_v59 = vmul.f32 %v9085_v0, %v9085_v0 }
 0x5eb   :  { %v2031_v58 = vmul.f32 0.0078125, %v1978_v33  ;;  %v2093_v10 = vmul.f32 %v9088_v1, %v9088_v1 }
 0x5ec   :  { %v9095_v62 = vsub.f32 %v8957_v38, %v2032_v47  ;;  %2135 = vadd.xlane.f32.xlu1 %v2094_v59 }
 0x5ed   :  { %v9098_v14 = vsub.f32 %v8960_v52, %v2031_v58  ;;  %v1984_v63 = vpop.xlane.xlu1 %1983  ;;  %2133 = vadd.xlane.f32.xlu0 %v2093_v10 }
 0x5ee   :  { %v2034_v2 = vmul.f32 0.0078125, %v1984_v63  ;;  %v1982_v57 = vpop.xlane.xlu0 %1981  ;;  %v2096_v18 = vmul.f32 %v9095_v62, %v9095_v62 }
 0x5ef   :  { %v2033_v8 = vmul.f32 0.0078125, %v1982_v57  ;;  %v2095_v19 = vmul.f32 %v9098_v14, %v9098_v14 }
 0x5f0   :  { %v9105_v55 = vsub.f32 %v8965_v13, %v2034_v2  ;;  %2139 = vadd.xlane.f32.xlu1 %v2096_v18 }
 0x5f1   :  { %v9108_v38 = vsub.f32 %v8968_v30, %v2033_v8  ;;  %v1988_v52 = vpop.xlane.xlu1 %1987  ;;  %2137 = vadd.xlane.f32.xlu0 %v2095_v19 }
 0x5f2   :  { %v2036_v22 = vmul.f32 0.0078125, %v1988_v52  ;;  %v1986_v60 = vpop.xlane.xlu0 %1985  ;;  %v2098_v17 = vmul.f32 %v9105_v55, %v9105_v55 }
 0x5f3   :  { %v2035_v45 = vmul.f32 0.0078125, %v1986_v60  ;;  %v2097_v32 = vmul.f32 %v9108_v38, %v9108_v38 }
 0x5f4   :  { %v9115_v43 = vsub.f32 %v8973_v11, %v2036_v22  ;;  %2143 = vadd.xlane.f32.xlu1 %v2098_v17 }
 0x5f5   :  { %v9118_v13 = vsub.f32 %v8976_v51, %v2035_v45  ;;  %v1992_v30 = vpop.xlane.xlu1 %1991  ;;  %2141 = vadd.xlane.f32.xlu0 %v2097_v32 }
 0x5f6   :  { %v2038_v26 = vmul.f32 0.0078125, %v1992_v30  ;;  %v1990_v47 = vpop.xlane.xlu0 %1989  ;;  %v2100_v33 = vmul.f32 %v9115_v43, %v9115_v43 }
 0x5f7   :  { %v2037_v59 = vmul.f32 0.0078125, %v1990_v47  ;;  %v2099_v58 = vmul.f32 %v9118_v13, %v9118_v13 }
 0x5f8   :  { %v9125_v10 = vsub.f32 %v8981_v31, %v2038_v26  ;;  %2147 = vadd.xlane.f32.xlu1 %v2100_v33 }
 0x5f9   :  { %v9128_v11 = vsub.f32 %v8984_v41, %v2037_v59  ;;  %v1996_v51 = vpop.xlane.xlu1 %1995  ;;  %2145 = vadd.xlane.f32.xlu0 %v2099_v58 }
 0x5fa   :  { %v2040_v63 = vmul.f32 0.0078125, %v1996_v51  ;;  %v1994_v2 = vpop.xlane.xlu0 %1993  ;;  %v2102_v57 = vmul.f32 %v9125_v10, %v9125_v10 }
 0x5fb   :  { %v2039_v18 = vmul.f32 0.0078125, %v1994_v2  ;;  %v2101_v8 = vmul.f32 %v9128_v11, %v9128_v11 }
 0x5fc   :  { %v9135_v19 = vsub.f32 %v8989_v44, %v2040_v63  ;;  %2151 = vadd.xlane.f32.xlu1 %v2102_v57 }
 0x5fd   :  { %v9138_v31 = vsub.f32 %v8992_v3, %v2039_v18  ;;  %v2000_v41 = vpop.xlane.xlu1 %1999  ;;  %2149 = vadd.xlane.f32.xlu0 %v2101_v8 }
 0x5fe   :  { %v2042_v52 = vmul.f32 0.0078125, %v2000_v41  ;;  %v1998_v22 = vpop.xlane.xlu0 %1997  ;;  %v2104_v60 = vmul.f32 %v9135_v19, %v9135_v19 }
 0x5ff   :  { %v2041_v17 = vmul.f32 0.0078125, %v1998_v22  ;;  %v2103_v45 = vmul.f32 %v9138_v31, %v9138_v31 }
 0x600   :  { %v9145_v32 = vsub.f32 %v8997_v24, %v2042_v52  ;;  %2155 = vadd.xlane.f32.xlu1 %v2104_v60 }
 0x601   :  { %v9148_v44 = vsub.f32 %v9000_v9, %v2041_v17  ;;  %v2004_v3 = vpop.xlane.xlu1 %2003  ;;  %2153 = vadd.xlane.f32.xlu0 %v2103_v45 }
 0x602   :  { %v2044_v30 = vmul.f32 0.0078125, %v2004_v3  ;;  %v2002_v26 = vpop.xlane.xlu0 %2001  ;;  %v2106_v47 = vmul.f32 %v9145_v32, %v9145_v32 }
 0x603   :  { %v2043_v33 = vmul.f32 0.0078125, %v2002_v26  ;;  %v2105_v59 = vmul.f32 %v9148_v44, %v9148_v44 }
 0x604   :  { %v9155_v58 = vsub.f32 %v9005_v29, %v2044_v30  ;;  %2159 = vadd.xlane.f32.xlu1 %v2106_v47 }
 0x605   :  { %v9158_v24 = vsub.f32 %v9008_v12, %v2043_v33  ;;  %v2008_v9 = vpop.xlane.xlu1 %2007  ;;  %2157 = vadd.xlane.f32.xlu0 %v2105_v59 }
 0x606   :  { %v2046_v51 = vmul.f32 0.0078125, %v2008_v9  ;;  %v2006_v63 = vpop.xlane.xlu0 %2005  ;;  %v2108_v2 = vmul.f32 %v9155_v58, %v9155_v58 }
 0x607   :  { %v2045_v57 = vmul.f32 0.0078125, %v2006_v63  ;;  %v2107_v18 = vmul.f32 %v9158_v24, %v9158_v24 }
 0x608   :  { %v9165_v8 = vsub.f32 %v9013_v7, %v2046_v51  ;;  %2163 = vadd.xlane.f32.xlu1 %v2108_v2 }
 0x609   :  { %v9168_v29 = vsub.f32 %v9016_v5, %v2045_v57  ;;  %v2012_v12 = vpop.xlane.xlu1 %2011  ;;  %2161 = vadd.xlane.f32.xlu0 %v2107_v18 }
 0x60a   :  { %v2048_v41 = vmul.f32 0.0078125, %v2012_v12  ;;  %v2010_v52 = vpop.xlane.xlu0 %2009  ;;  %v2110_v22 = vmul.f32 %v9165_v8, %v9165_v8 }
 0x60b   :  { %v2047_v60 = vmul.f32 0.0078125, %v2010_v52  ;;  %v2109_v17 = vmul.f32 %v9168_v29, %v9168_v29  ;;  %v2530_v52 = vld [vmem:[%s7741_s27 + $0x8] sm:$0xff] }
 0x60c   :  { %v9175_v45 = vsub.f32 %v9021_v48, %v2048_v41  ;;  %2167 = vadd.xlane.f32.xlu1 %v2110_v22  ;;  %v2529_v41 = vld [vmem:[%s7741_s27] sm:$0xff]  ;;  %v2532_v22 = vld [vmem:[%s7741_s27 + $0x18] sm:$0xff] }
 0x60d   :  { %v9178_v7 = vsub.f32 %v9024_v6, %v2047_v60  ;;  %v2016_v5 = vpop.xlane.xlu1 %2015  ;;  %2165 = vadd.xlane.f32.xlu0 %v2109_v17  ;;  %v2533_v60 = vld [vmem:[%s7741_s27 + $0x20] sm:$0xff] }
 0x60e   :  { %v2050_v3 = vmul.f32 0.0078125, %v2016_v5  ;;  %v2014_v30 = vpop.xlane.xlu0 %2013  ;;  %v2112_v26 = vmul.f32 %v9175_v45, %v9175_v45  ;;  %v2534_v5 = vld [vmem:[%s7741_s27 + $0x28] sm:$0xff] }
 0x60f   :  { %v2049_v47 = vmul.f32 0.0078125, %v2014_v30  ;;  %v2111_v33 = vmul.f32 %v9178_v7, %v9178_v7  ;;  %v2535_v30 = vld [vmem:[%s7741_s27 + $0x30] sm:$0xff] }
 0x610   :  { %v9185_v59 = vsub.f32 %v9029_v25, %v2050_v3  ;;  %2171 = vadd.xlane.f32.xlu1 %v2112_v26  ;;  %v6871_v3 = vpack.c.bf16 %v2534_v5, %v2533_v60  ;;  %v2536_v26 = vld [vmem:[%s7741_s27 + $0x38] sm:$0xff] }
 0x611   :  { %v9188_v48 = vsub.f32 %v9032_v23, %v2049_v47  ;;  %v2020_v6 = vpop.xlane.xlu1 %2019  ;;  %2169 = vadd.xlane.f32.xlu0 %v2111_v33  ;;  %v6875_v47 = vpack.c.bf16 %v2536_v26, %v2535_v30  ;;  %v2537_v33 = vld [vmem:[%s7741_s27 + $0x40] sm:$0xff] }
 0x612   :  { %v2052_v9 = vmul.f32 0.0078125, %v2020_v6  ;;  %v2018_v51 = vpop.xlane.xlu0 %2017  ;;  %v2114_v63 = vmul.f32 %v9185_v59, %v9185_v59  ;;  %v2538_v6 = vld [vmem:[%s7741_s27 + $0x48] sm:$0xff] }
 0x613   :  { %v2051_v2 = vmul.f32 0.0078125, %v2018_v51  ;;  %v2113_v25 = vmul.f32 %v9188_v48, %v9188_v48  ;;  %v2539_v51 = vld [vmem:[%s7741_s27 + $0x50] sm:$0xff] }
 0x614   :  { %v9195_v57 = vsub.f32 %v9037_v49, %v2052_v9  ;;  %2175 = vadd.xlane.f32.xlu1 %v2114_v63  ;;  %v6863_v49 = vpack.c.bf16 %v2530_v52, %v2529_v41  ;;  %v6879_v9 = vpack.c.bf16 %v2538_v6, %v2537_v33  ;;  %v2540_v63 = vld [vmem:[%s7741_s27 + $0x58] sm:$0xff]  ;;  %v2543_v41 = vld [vmem:[%s7741_s27 + $0x70] sm:$0xff] }
 0x615   :  { %v9198_v23 = vsub.f32 %v9040_v15, %v2051_v2  ;;  %2173 = vadd.xlane.f32.xlu0 %v2113_v25  ;;  %v2531_v15 = vld [vmem:[%s7741_s27 + $0x10] sm:$0xff]  ;;  %v6883_v2 = vpack.c.bf16 %v2540_v63, %v2539_v51  ;;  %v2541_v25 = vld [vmem:[%s7741_s27 + $0x60] sm:$0xff]  ;;  %v2544_v52 = vld [vmem:[%s7741_s27 + $0x78] sm:$0xff] }
 0x616   :  { %v2116_v18 = vmul.f32 %v9195_v57, %v9195_v57  ;;  %6864 = vmatprep.subr.bf16.mxu1 %v6863_v49  ;;  %v6867_v17 = vpack.c.bf16 %v2532_v22, %v2531_v15  ;;  %v2659_v15 = vld [vmem:[%s7736_s20] sm:$0xff]  ;;  %v2660_v22 = vld [vmem:[%s7736_s20 + $0x8] sm:$0xff] }
 0x617   :  { %v2115_v12 = vmul.f32 %v9198_v23, %v9198_v23  ;;  %6866 = vmatpush3.bf16.msra.mxu1 %v6863_v49  ;;  %v6891_v49 = vpack.c.bf16 %v2544_v52, %v2543_v41  ;;  %v9222_v60 = vpack.c.bf16 %v2660_v22, %v2659_v15 }
 0x618   :  { %2179 = vadd.xlane.f32.xlu1 %v2116_v18  ;;  %6868 = vmatprep.subr.bf16.mxu1 %v6867_v17  ;;  %v2542_v18 = vld [vmem:[%s7741_s27 + $0x68] sm:$0xff]  ;;  %s11407_s27 = sld [smem:[#allocation19_spill]] }
 0x619   :  { %2177 = vadd.xlane.f32.xlu0 %v2115_v12  ;;  %v6887_v12 = vpack.c.bf16 %v2542_v18, %v2541_v25 }
 0x61b   :  { %6870 = vmatpush3.bf16.msra.mxu1 %v6867_v17 }
 0x61c   :  { %6872 = vmatprep.subr.bf16.mxu1 %v6871_v3 }
 0x61f   :  { %6874 = vmatpush3.bf16.msra.mxu1 %v6871_v3 }
 0x620   :  { %6876 = vmatprep.subr.bf16.mxu1 %v6875_v47 }
 0x623   :  { %6878 = vmatpush3.bf16.msra.mxu1 %v6875_v47 }
 0x624   :  { %6880 = vmatprep.subr.bf16.mxu1 %v6879_v9 }
 0x627   :  { %6882 = vmatpush3.bf16.msra.mxu1 %v6879_v9 }
 0x628   :  { %6884 = vmatprep.subr.bf16.mxu1 %v6883_v2 }
 0x62b   :  { %6886 = vmatpush3.bf16.msra.mxu1 %v6883_v2 }
 0x62c   :  { %6888 = vmatprep.subr.bf16.mxu1 %v6887_v12 }
 0x62f   :  { %6890 = vmatpush3.bf16.msra.mxu1 %v6887_v12 }
 0x630   :  { %6892 = vmatprep.subr.bf16.mxu1 %v6891_v49 }
 0x633   :  { %6894 = vmatpush3.bf16.msra.mxu1 %v6891_v49 }
 0x634   :  { %6896 = vmatprep.subr.bf16.mxu1 %v9222_v60 }
 0x669   :  { %v2120_v17 = vpop.xlane.xlu1 %2119 }
 0x66a   :  { %v2182_v5 = vmul.f32 0.0078125, %v2120_v17  ;;  %v2118_v3 = vpop.xlane.xlu0 %2117 }
 0x66b   :  { %v2181_v30 = vmul.f32 0.0078125, %v2118_v3 }
 0x66c   :  { %v2214_v26 = vadd.f32 1e-05, %v2182_v5 }
 0x66d   :  { %v2213_v47 = vadd.f32 1e-05, %v2181_v30  ;;  %v2124_v33 = vpop.xlane.xlu1 %2123  ;;  %v9226_v30 = vld [vmem:[%s7726_s6] ss:$0 sm:$0xff]  ;;  %s11405_s6 = sld [smem:[#allocation18_spill]] }
 0x66e   :  { %7307 = vrsqrt.f32 %v2214_v26  ;;  %v2184_v6 = vmul.f32 0.0078125, %v2124_v33  ;;  %v2122_v9 = vpop.xlane.xlu0 %2121 }
 0x66f   :  { %7309 = vrsqrt.f32 %v2213_v47  ;;  %v2183_v51 = vmul.f32 0.0078125, %v2122_v9 }
 0x670   :  { %v2216_v63 = vadd.f32 1e-05, %v2184_v6 }
 0x671   :  { %v2215_v2 = vadd.f32 1e-05, %v2183_v51  ;;  %v2128_v25 = vpop.xlane.xlu1 %2127  ;;  %v9230_v51 = vld [vmem:[%s11280_s0] ss:$0 sm:$0xff] }
 0x672   :  { %7311 = vrsqrt.f32 %v2216_v63  ;;  %v2186_v18 = vmul.f32 0.0078125, %v2128_v25  ;;  %v2126_v12 = vpop.xlane.xlu0 %2125 }
 0x673   :  { %7313 = vrsqrt.f32 %v2215_v2  ;;  %v2185_v41 = vmul.f32 0.0078125, %v2126_v12 }
 0x674   :  { %v2218_v52 = vadd.f32 1e-05, %v2186_v18 }
 0x675   :  { %v2217_v49 = vadd.f32 1e-05, %v2185_v41  ;;  %v2132_v15 = vpop.xlane.xlu1 %2131 }
 0x676   :  { %7315 = vrsqrt.f32 %v2218_v52  ;;  %v2188_v22 = vmul.f32 0.0078125, %v2132_v15  ;;  %v2130_v17 = vpop.xlane.xlu0 %2129 }
 0x677   :  { %7317 = vrsqrt.f32 %v2217_v49  ;;  %v2187_v5 = vmul.f32 0.0078125, %v2130_v17 }
 0x678   :  { %v7308_v3 = vpop.eup %7307  ;;  %v2220_v26 = vadd.f32 1e-05, %v2188_v22 }
 0x679   :  { %v7310_v47 = vpop.eup %7309  ;;  %v2278_v33 = vmul.f32 %v7308_v3, %v9045_v39  ;;  %v2219_v6 = vadd.f32 1e-05, %v2187_v5  ;;  %v2136_v9 = vpop.xlane.xlu1 %2135 }
 0x67a   :  { %v2277_v63 = vmul.f32 %v7310_v47, %v9048_v16  ;;  %7319 = vrsqrt.f32 %v2220_v26  ;;  %v2190_v2 = vmul.f32 0.0078125, %v2136_v9  ;;  %v2134_v25 = vpop.xlane.xlu0 %2133 }
 0x67b   :  { %v2316_v18 = vmul.f32 %v9226_v30, %v2278_v33  ;;  %7321 = vrsqrt.f32 %v2219_v6  ;;  %v2189_v12 = vmul.f32 0.0078125, %v2134_v25 }
 0x67c   :  { %v7312_v41 = vpop.eup %7311  ;;  %v2315_v52 = vmul.f32 %v9226_v30, %v2277_v63  ;;  %v2222_v49 = vadd.f32 1e-05, %v2190_v2 }
 0x67d   :  { %v7314_v15 = vpop.eup %7313  ;;  %v9236_v39 = vadd.f32 %v9230_v51, %v2316_v18  ;;  %v2280_v22 = vmul.f32 %v7312_v41, %v9055_v56  ;;  %v2221_v17 = vadd.f32 1e-05, %v2189_v12  ;;  %v2140_v5 = vpop.xlane.xlu1 %2139 }
 0x67e   :  { %v9240_v16 = vadd.f32 %v9230_v51, %v2315_v52  ;;  %v2279_v3 = vmul.f32 %v7314_v15, %v9058_v34  ;;  %7323 = vrsqrt.f32 %v2222_v49  ;;  %v2192_v26 = vmul.f32 0.0078125, %v2140_v5  ;;  %v2138_v47 = vpop.xlane.xlu0 %2137 }
 0x67f   :  { %v2318_v33 = vmul.f32 %v9226_v30, %v2280_v22  ;;  %7325 = vrsqrt.f32 %v2221_v17  ;;  %v2191_v6 = vmul.f32 0.0078125, %v2138_v47  ;;  %v11195_v63 = vmax.f32 %v9236_v39, 0.0 }
 0x680   :  { %v7316_v9 = vpop.eup %7315  ;;  %v11196_v2 = vmax.f32 %v9240_v16, 0.0  ;;  %v2317_v56 = vmul.f32 %v9226_v30, %v2279_v3  ;;  %v2224_v25 = vadd.f32 1e-05, %v2192_v26 }
 0x681   :  { %v7318_v18 = vpop.eup %7317  ;;  %v9248_v12 = vadd.f32 %v9230_v51, %v2318_v33  ;;  %v2282_v34 = vmul.f32 %v7316_v9, %v9065_v50  ;;  %v2223_v41 = vadd.f32 1e-05, %v2191_v6  ;;  %v2144_v52 = vpop.xlane.xlu1 %2143 }
 0x682   :  { %v9252_v49 = vadd.f32 %v9230_v51, %v2317_v56  ;;  %v2281_v15 = vmul.f32 %v7318_v18, %v9068_v54  ;;  %7327 = vrsqrt.f32 %v2224_v25  ;;  %v2142_v22 = vpop.xlane.xlu0 %2141  ;;  %v2194_v3 = vmul.f32 0.0078125, %v2144_v52 }
 0x683   :  { %v11198_v17 = vmax.f32 %v9248_v12, 0.0  ;;  %v2320_v5 = vmul.f32 %v9226_v30, %v2282_v34  ;;  %7329 = vrsqrt.f32 %v2223_v41  ;;  %v2417_v50 = vmax.f32 %v11196_v2, %v11195_v63 }
 0x684   :  { %v7320_v26 = vpop.eup %7319  ;;  %v11199_v47 = vmax.f32 %v9252_v49, 0.0  ;;  %v2319_v33 = vmul.f32 %v9226_v30, %v2281_v15  ;;  %v2193_v6 = vmul.f32 0.0078125, %v2142_v22  ;;  %v2226_v56 = vadd.f32 1e-05, %v2194_v3 }
 0x685   :  { %v7322_v54 = vpop.eup %7321  ;;  %v2284_v9 = vmul.f32 %v7320_v26, %v9075_v27  ;;  %v2148_v25 = vpop.xlane.xlu1 %2147  ;;  %v9269_v34 = vadd.f32 %v9230_v51, %v2320_v5  ;;  %v2418_v27 = vrot.slane %v2417_v50, 4 }
 0x686   :  { %v2424_v18 = vmax.f32 %v11199_v47, %v11198_v17  ;;  %v9272_v41 = vadd.f32 %v9230_v51, %v2319_v33  ;;  %v2283_v52 = vmul.f32 %v7322_v54, %v9078_v20  ;;  %v2146_v15 = vpop.xlane.xlu0 %2145  ;;  %7331 = vrsqrt.f32 %v2226_v56 }
 0x687   :  { %v2225_v22 = vadd.f32 1e-05, %v2193_v6  ;;  %v2322_v3 = vmul.f32 %v9226_v30, %v2284_v9  ;;  %v2196_v2 = vmul.f32 0.0078125, %v2148_v25  ;;  %v2195_v5 = vmul.f32 0.0078125, %v2146_v15 }
 0x688   :  { %v7324_v63 = vpop.eup %7323  ;;  %v2321_v26 = vmul.f32 %v9226_v30, %v2283_v52  ;;  %v2425_v33 = vrot.slane %v2424_v18, 4  ;;  %v2419_v61 = vmax.f32 %v2417_v50, %v2418_v27 }
 0x689   :  { %v7326_v40 = vpop.eup %7325  ;;  %v2286_v17 = vmul.f32 %v7324_v63, %v9085_v0  ;;  %7333 = vrsqrt.f32 %v2225_v22  ;;  %v2152_v47 = vpop.xlane.xlu1 %2151  ;;  %v2228_v56 = vadd.f32 1e-05, %v2196_v2  ;;  %v2227_v28 = vadd.f32 1e-05, %v2195_v5 }
 0x68a   :  { %v2150_v54 = vpop.xlane.xlu0 %2149  ;;  %v2285_v6 = vmul.f32 %v7326_v40, %v9088_v1  ;;  %v9282_v25 = vadd.f32 %v9230_v51, %v2322_v3  ;;  %v9285_v0 = vadd.f32 %v9230_v51, %v2321_v26  ;;  %v2198_v63 = vmul.f32 0.0078125, %v2152_v47 }
 0x68b   :  { %v2324_v15 = vmul.f32 %v9226_v30, %v2286_v17  ;;  %7335 = vrsqrt.f32 %v2228_v56  ;;  %v2197_v20 = vmul.f32 0.0078125, %v2150_v54  ;;  %v9289_v40 = vmax.f32 %v2424_v18, %v2425_v33 }
 0x68c   :  { %v7328_v9 = vpop.eup %7327  ;;  %v11281_v1 = vmax.f32 %v9269_v34, 0.0  ;;  %v11282_v2 = vmax.f32 %v9272_v41, 0.0  ;;  %v2323_v47 = vmul.f32 %v9226_v30, %v2285_v6  ;;  %7337 = vrsqrt.f32 %v2227_v28 }
 0x68d   :  { %v7330_v52 = vpop.eup %7329  ;;  %v2288_v22 = vmul.f32 %v7328_v9, %v9095_v62  ;;  %v2156_v46 = vpop.xlane.xlu1 %2155  ;;  %v2230_v17 = vadd.f32 1e-05, %v2198_v63  ;;  %v2229_v26 = vadd.f32 1e-05, %v2197_v20  ;;  %v11203_v62 = vmax.f32 %v9282_v25, 0.0 }
 0x68e   :  { %v9295_v50 = vmax.f32 %v11282_v2, %v11281_v1  ;;  %v2287_v27 = vmul.f32 %v7330_v52, %v9098_v14  ;;  %v2154_v3 = vpop.xlane.xlu0 %2153  ;;  %v2200_v18 = vmul.f32 0.0078125, %v2156_v46  ;;  %v9303_v9 = vadd.f32 %v9230_v51, %v2324_v15 }
 0x68f   :  { %v2326_v5 = vmul.f32 %v9226_v30, %v2288_v22  ;;  %v2199_v33 = vmul.f32 0.0078125, %v2154_v3  ;;  %7339 = vrsqrt.f32 %v2230_v17  ;;  %v2420_v52 = vrot.slane %v2419_v61, 2 }
 0x690   :  { %v7332_v54 = vpop.eup %7331  ;;  %v2325_v6 = vmul.f32 %v9226_v30, %v2287_v27  ;;  %7341 = vrsqrt.f32 %v2229_v26  ;;  %v2232_v20 = vadd.f32 1e-05, %v2200_v18  ;;  %v9308_v46 = vadd.f32 %v9230_v51, %v2323_v47 }
 0x691   :  { %v2160_v14 = vpop.xlane.xlu1 %2159  ;;  %v2290_v28 = vmul.f32 %v7332_v54, %v9105_v55  ;;  %v2231_v22 = vadd.f32 1e-05, %v2199_v33  ;;  %v9311_v15 = vadd.f32 %v9230_v51, %v2326_v5  ;;  %v2421_v18 = vmax.f32 %v2419_v61, %v2420_v52 }
 0x692   :  { %v2158_v63 = vpop.xlane.xlu0 %2157  ;;  %v2202_v2 = vmul.f32 0.0078125, %v2160_v14  ;;  %7343 = vrsqrt.f32 %v2232_v20  ;;  %v2432_v54 = vrot.slane %v9295_v50, 4  ;;  %v11283_v47 = vmax.f32 %v9285_v0, 0.0 }
 0x693   :  { %v7334_v1 = vpop.eup %7333  ;;  %v2201_v3 = vmul.f32 0.0078125, %v2158_v63  ;;  %v2328_v17 = vmul.f32 %v9226_v30, %v2290_v28  ;;  %7345 = vrsqrt.f32 %v2231_v22  ;;  %v9323_v5 = vadd.f32 %v9230_v51, %v2325_v6 }
 0x694   :  { %v2289_v56 = vmul.f32 %v7334_v1, %v9108_v38  ;;  %v2234_v55 = vadd.f32 1e-05, %v2202_v2  ;;  %v9320_v33 = vmax.f32 %v11283_v47, %v11203_v62  ;;  %v2427_v61 = vrot.slane %v9289_v40, 2 }
 0x695   :  { %v2233_v27 = vadd.f32 1e-05, %v2201_v3  ;;  %v2164_v26 = vpop.xlane.xlu1 %2163  ;;  %v7336_v38 = vpop.eup %7335  ;;  %v2422_v62 = vrot.slane %v2421_v18, 1 }
 0x696   :  { %v2204_v14 = vmul.f32 0.0078125, %v2164_v26  ;;  %v2162_v28 = vpop.xlane.xlu0 %2161  ;;  %7347 = vrsqrt.f32 %v2234_v55  ;;  %v2327_v1 = vmul.f32 %v9226_v30, %v2289_v56  ;;  %v7338_v2 = vpop.eup %7337  ;;  %v9331_v26 = vadd.f32 %v9230_v51, %v2328_v17 }
 0x697   :  { %v2203_v63 = vmul.f32 0.0078125, %v2162_v28  ;;  %7349 = vrsqrt.f32 %v2233_v27  ;;  %v2292_v28 = vmul.f32 %v7336_v38, %v9115_v43  ;;  %v9336_v27 = vmax.f32 %v9289_v40, %v2427_v61 }
 0x698   :  { %v2236_v22 = vadd.f32 1e-05, %v2204_v14  ;;  %v9339_v14 = vmax.f32 %v9295_v50, %v2432_v54  ;;  %v2291_v17 = vmul.f32 %v7338_v2, %v9118_v13  ;;  %v9344_v43 = vadd.f32 %v9230_v51, %v2327_v1 }
 0x699   :  { %v2235_v6 = vadd.f32 1e-05, %v2203_v63  ;;  %v2168_v47 = vpop.xlane.xlu1 %2167  ;;  %v7340_v37 = vpop.eup %7339  ;;  %v9348_v40 = vmax.f32 %v2421_v18, %v2422_v62  ;;  %v2330_v50 = vmul.f32 %v9226_v30, %v2292_v28 }
 0x69a   :  { %7351 = vrsqrt.f32 %v2236_v22  ;;  %v2206_v20 = vmul.f32 0.0078125, %v2168_v47  ;;  %v2166_v52 = vpop.xlane.xlu0 %2165  ;;  %v7342_v63 = vpop.eup %7341  ;;  %v2294_v3 = vmul.f32 %v7340_v37, %v9125_v10  ;;  %v9355_v2 = vmul.f32 %v9226_v30, %v2291_v17 }
 0x69b   :  { %7353 = vrsqrt.f32 %v2235_v6  ;;  %v2205_v56 = vmul.f32 0.0078125, %v2166_v52  ;;  %v2293_v38 = vmul.f32 %v7342_v63, %v9128_v11 }
 0x69c   :  { %v2238_v55 = vadd.f32 1e-05, %v2206_v20  ;;  %v7344_v61 = vpop.eup %7343  ;;  %v2332_v54 = vmul.f32 %v9226_v30, %v2294_v3 }
 0x69d   :  { %v2237_v22 = vadd.f32 1e-05, %v2205_v56  ;;  %v2172_v6 = vpop.xlane.xlu1 %2171  ;;  %v7346_v10 = vpop.eup %7345  ;;  %v2331_v20 = vmul.f32 %v9226_v30, %v2293_v38  ;;  %v2296_v1 = vmul.f32 %v7344_v61, %v9135_v19 }
 0x69e   :  { %7355 = vrsqrt.f32 %v2238_v55  ;;  %v2208_v13 = vmul.f32 0.0078125, %v2172_v6  ;;  %v2170_v37 = vpop.xlane.xlu0 %2169  ;;  %v9358_v62 = vadd.f32 %v9230_v51, %v2332_v54  ;;  %v2295_v18 = vmul.f32 %v7346_v10, %v9138_v31 }
 0x69f   :  { %7357 = vrsqrt.f32 %v2237_v22  ;;  %v2207_v11 = vmul.f32 0.0078125, %v2170_v37  ;;  %v9362_v55 = vadd.f32 %v9230_v51, %v2331_v20  ;;  %v2334_v28 = vmul.f32 %v9226_v30, %v2296_v1 }
 0x6a0   :  { %v2240_v47 = vadd.f32 1e-05, %v2208_v13  ;;  %v7348_v3 = vpop.eup %7347  ;;  %v11205_v17 = vmax.f32 %v9358_v62, 0.0  ;;  %v2333_v22 = vmul.f32 %v9226_v30, %v2295_v18 }
 0x6a1   :  { %v2239_v56 = vadd.f32 1e-05, %v2207_v11  ;;  %v2176_v63 = vpop.xlane.xlu1 %2175  ;;  %v7350_v38 = vpop.eup %7349  ;;  %v2298_v6 = vmul.f32 %v7348_v3, %v9145_v32  ;;  %v11206_v61 = vmax.f32 %v9362_v55, 0.0  ;;  %v9371_v54 = vadd.f32 %v9230_v51, %v2334_v28 }
 0x6a2   :  { %7359 = vrsqrt.f32 %v2240_v47  ;;  %v2174_v31 = vpop.xlane.xlu0 %2173  ;;  %v2297_v13 = vmul.f32 %v7350_v38, %v9148_v44  ;;  %v9375_v10 = vadd.f32 %v9230_v51, %v2333_v22  ;;  %v2210_v1 = vmul.f32 0.0078125, %v2176_v63 }
 0x6a3   :  { %7361 = vrsqrt.f32 %v2239_v56  ;;  %v2336_v20 = vmul.f32 %v9226_v30, %v2298_v6  ;;  %v2209_v11 = vmul.f32 0.0078125, %v2174_v31  ;;  %v2473_v32 = vmax.f32 %v11206_v61, %v11205_v17 }
 0x6a4   :  { %v7352_v37 = vpop.eup %7351  ;;  %v11207_v47 = vmax.f32 %v9371_v54, 0.0  ;;  %v2335_v3 = vmul.f32 %v9226_v30, %v2297_v13  ;;  %v11208_v28 = vmax.f32 %v9375_v10, 0.0  ;;  %v2242_v38 = vadd.f32 1e-05, %v2210_v1 }
 0x6a5   :  { %v7354_v18 = vpop.eup %7353  ;;  %v2300_v44 = vmul.f32 %v7352_v37, %v9155_v58  ;;  %v9387_v56 = vadd.f32 %v9230_v51, %v2336_v20  ;;  %v2474_v22 = vrot.slane %v2473_v32, 4  ;;  %v2241_v17 = vadd.f32 1e-05, %v2209_v11  ;;  %v2180_v11 = vpop.xlane.xlu1 %2179 }
 0x6a6   :  { %v2299_v63 = vmul.f32 %v7354_v18, %v9158_v24  ;;  %v9391_v6 = vadd.f32 %v9230_v51, %v2335_v3  ;;  %v2480_v58 = vmax.f32 %v11208_v28, %v11207_v47  ;;  %7363 = vrsqrt.f32 %v2242_v38  ;;  %v2178_v19 = vpop.xlane.xlu0 %2177 }
 0x6a7   :  { %v2338_v31 = vmul.f32 %v9226_v30, %v2300_v44  ;;  %v11209_v13 = vmax.f32 %v9387_v56, 0.0  ;;  %v9406_v3 = vadd.f32 %v9230_v51, %v2330_v50  ;;  %v2475_v44 = vmax.f32 %v2473_v32, %v2474_v22 }
 0x6a8   :  { %v7356_v61 = vpop.eup %7355  ;;  %v2337_v37 = vmul.f32 %v9226_v30, %v2299_v63  ;;  %v11210_v20 = vmax.f32 %v9391_v6, 0.0  ;;  %7365 = vrsqrt.f32 %v2241_v17  ;;  %v2481_v63 = vrot.slane %v2480_v58, 4 }
 0x6a9   :  { %v7358_v24 = vpop.eup %7357  ;;  %v9402_v1 = vadd.f32 %v9230_v51, %v2338_v31  ;;  %v2302_v18 = vmul.f32 %v7356_v61, %v9165_v8  ;;  %v2212_v22 = vmul.f32 0.0078125, %v2180_v11 }
 0x6aa   :  { %v9409_v47 = vadd.f32 %v9230_v51, %v2337_v37  ;;  %v2301_v28 = vmul.f32 %v7358_v24, %v9168_v29  ;;  %v2487_v38 = vmax.f32 %v11210_v20, %v11209_v13  ;;  %v2434_v37 = vrot.slane %v9339_v14, 2 }
 0x6ab   :  { %11284 = vst [vmem:[#allocation60_spill] sm:$0xff] %v9402_v1  ;;  %v11214_v31 = vmax.f32 %v9402_v1, 0.0  ;;  %v2340_v8 = vmul.f32 %v9226_v30, %v2302_v18  ;;  %v9427_v13 = vadd.f32 %v9230_v51, %v9355_v2  ;;  %v2476_v18 = vrot.slane %v2475_v44, 2 }
 0x6ac   :  { %v7360_v61 = vpop.eup %7359  ;;  %v11215_v50 = vmax.f32 %v9409_v47, 0.0  ;;  %v2339_v32 = vmul.f32 %v9226_v30, %v2301_v28  ;;  %v2488_v17 = vrot.slane %v2487_v38, 4  ;;  %v2244_v35 = vadd.f32 1e-05, %v2212_v22 }
 0x6ad   :  { %v7362_v29 = vpop.eup %7361  ;;  %v9422_v24 = vadd.f32 %v9230_v51, %v2340_v8  ;;  %v2304_v52 = vmul.f32 %v7360_v61, %v9175_v45  ;;  %v9437_v8 = vmax.f32 %v2480_v58, %v2481_v63  ;;  %v11287_v2 = vrot.slane %v9336_v27, 1 }
 0x6ae   :  { %v2494_v28 = vmax.f32 %v11215_v50, %v11214_v31  ;;  %v9434_v11 = vadd.f32 %v9230_v51, %v2339_v32  ;;  %v2303_v20 = vmul.f32 %v7362_v29, %v9178_v7  ;;  %v9445_v53 = vmax.f32 %v2487_v38, %v2488_v17 }
 0x6af   :  { %11285 = vst [vmem:[#allocation61_spill] sm:$0xff] %v9422_v24  ;;  %v9443_v61 = vmax.f32 %v9336_v27, %v11287_v2  ;;  %v2342_v31 = vmul.f32 %v9226_v30, %v2304_v52  ;;  %v11216_v7 = vmax.f32 %v9422_v24, 0.0  ;;  %7367 = vrsqrt.f32 %v2244_v35 }
 0x6b0   :  { %11286 = vst [vmem:[#allocation62_spill] sm:$0xff] %v9434_v11  ;;  %v2495_v4 = vrot.slane %v2494_v28, 4  ;;  %v11217_v58 = vmax.f32 %v9434_v11, 0.0  ;;  %v2211_v63 = vmul.f32 0.0078125, %v2178_v19  ;;  %v7364_v22 = vpop.eup %7363  ;;  %v9451_v29 = vmax.f32 %v2475_v44, %v2476_v18 }
 0x6b1   :  { %v2341_v50 = vmul.f32 %v9226_v30, %v2303_v20  ;;  %v11222_v27 = vmax.f32 %v9427_v13, 0.0  ;;  %v2435_v38 = vmax.f32 %v9339_v14, %v2434_v37  ;;  %v2306_v17 = vmul.f32 %v7364_v22, %v9185_v59 }
 0x6b2   :  { %v2243_v2 = vadd.f32 1e-05, %v2211_v63  ;;  %v2439_v32 = vrot.slane %v9320_v33, 4  ;;  %v7366_v45 = vpop.eup %7365  ;;  %v9460_v19 = vmax.f32 %v2494_v28, %v2495_v4  ;;  %v9463_v44 = vadd.f32 %v9230_v51, %v2342_v31 }
 0x6b3   :  { %v11288_v20 = vmax.f32 %v9303_v9, 0.0  ;;  %v11289_v14 = vmax.f32 %v9308_v46, 0.0  ;;  %v9473_v59 = vmax.f32 %v11217_v58, %v11216_v7  ;;  %v2305_v18 = vmul.f32 %v7366_v45, %v9188_v48 }
 0x6b4   :  { %7369 = vrsqrt.f32 %v2243_v2  ;;  %v2440_v4 = vmax.f32 %v9320_v33, %v2439_v32  ;;  %v9478_v31 = vadd.f32 %v9230_v51, %v2341_v50  ;;  %v11290_v63 = vmax.f32 %v9311_v15, 0.0 }
 0x6b5   :  { %v2445_v37 = vmax.f32 %v11289_v14, %v11288_v20  ;;  %v11291_v22 = vmax.f32 %v9323_v5, 0.0  ;;  %v11292_v14 = vmax.f32 %v9331_v26, 0.0  ;;  %v11293_v35 = vmax.f32 %v9344_v43, 0.0 }
 0x6b6   :  { %v2344_v58 = vmul.f32 %v9226_v30, %v2306_v17  ;;  %v2436_v48 = vrot.slane %v2435_v38, 1  ;;  %v2441_v45 = vrot.slane %v2440_v4, 2  ;;  %v11294_v33 = vmax.f32 %v9406_v3, 0.0 }
 0x6b7   :  { %v2446_v28 = vrot.slane %v2445_v37, 4  ;;  %v2452_v20 = vmax.f32 %v11291_v22, %v11290_v63  ;;  %v2459_v7 = vmax.f32 %v11293_v35, %v11292_v14  ;;  %v2502_v22 = vrot.slane %v9473_v59, 4 }
 0x6b8   :  { %v2466_v50 = vmax.f32 %v11222_v27, %v11294_v33  ;;  %v2343_v35 = vmul.f32 %v9226_v30, %v2305_v18  ;;  %v2442_v14 = vmax.f32 %v2440_v4, %v2441_v45  ;;  %v9498_v27 = vadd.f32 %v9230_v51, %v2344_v58 }
 0x6b9   :  { %v2447_v2 = vmax.f32 %v2445_v37, %v2446_v28  ;;  %v2453_v52 = vrot.slane %v2452_v20, 4  ;;  %v2460_v63 = vrot.slane %v2459_v7, 4  ;;  %v7368_v33 = vpop.eup %7367  ;;  %v2437_v37 = vmax.f32 %v2435_v38, %v2436_v48 }
 0x6ba   :  { %v2467_v17 = vrot.slane %v2466_v50, 4  ;;  %v2443_v28 = vrot.slane %v2442_v14, 1  ;;  %v2308_v11 = vmul.f32 %v7368_v33, %v9195_v57  ;;  %v9502_v1 = vadd.f32 %v9230_v51, %v2343_v35 }
 0x6bb   :  { %v2448_v42 = vrot.slane %v2447_v2, 2  ;;  %v2454_v21 = vmax.f32 %v2452_v20, %v2453_v52  ;;  %v2461_v24 = vmax.f32 %v2459_v7, %v2460_v63  ;;  %v2562_v7 = vsel %vm2561_vm4, %v9443_v61, %v9348_v40 }
 0x6bc   :  { %v2468_v32 = vmax.f32 %v2466_v50, %v2467_v17  ;;  %v2444_v36 = vmax.f32 %v2442_v14, %v2443_v28  ;;  %v2346_v58 = vmul.f32 %v9226_v30, %v2308_v11  ;;  %v11295_v57 = vmax.f32 %v9463_v44, 0.0 }
 0x6bd   :  { %v2449_v18 = vmax.f32 %v2447_v2, %v2448_v42  ;;  %v2455_v4 = vrot.slane %v2454_v21, 2  ;;  %v2462_v45 = vrot.slane %v2461_v24, 2  ;;  %v11296_v42 = vmax.f32 %v9478_v31, 0.0 }
 0x6be   :  { %v2469_v52 = vrot.slane %v2468_v32, 2  ;;  %v7370_v50 = vpop.eup %7369  ;;  %v2414_v63 = vmax.f32 %v9498_v27, 0.0  ;;  %v2564_v14 = vsel %vm2563_vm5, %v2437_v37, %v2562_v7  ;;  %v9515_v17 = vadd.f32 %v9230_v51, %v2346_v58 }
 0x6bf   :  { %v2450_v38 = vrot.slane %v2449_v18, 1  ;;  %v2456_v20 = vmax.f32 %v2454_v21, %v2455_v4  ;;  %v2463_v48 = vmax.f32 %v2461_v24, %v2462_v45  ;;  %v2508_v2 = vmax.f32 %v11296_v42, %v11295_v57 }
 0x6c0   :  { %v2470_v35 = vmax.f32 %v2468_v32, %v2469_v52  ;;  %v2307_v40 = vmul.f32 %v7370_v50, %v9198_v23  ;;  %v2413_v21 = vmax.f32 %v9502_v1, 0.0  ;;  %v2497_v28 = vrot.slane %v9460_v19, 2 }
 0x6c1   :  { %v2451_v11 = vmax.f32 %v2449_v18, %v2450_v38  ;;  %v2457_v61 = vrot.slane %v2456_v20, 1  ;;  %v2464_v24 = vrot.slane %v2463_v48, 1  ;;  %v11297_v4 = vrot.slane %v9437_v8, 2 }
 0x6c2   :  { %v2471_v33 = vrot.slane %v2470_v35, 1  ;;  %v2345_v32 = vmul.f32 %v9226_v30, %v2307_v40  ;;  %v2566_v52 = vsel %vm2565_vm6, %v2444_v36, %v2564_v14  ;;  %v2416_v18 = vmax.f32 %v9515_v17, 0.0 }
 0x6c3   :  { %v2484_v45 = vmax.f32 %v9437_v8, %v11297_v4  ;;  %v2458_v37 = vmax.f32 %v2456_v20, %v2457_v61  ;;  %v2465_v7 = vmax.f32 %v2463_v48, %v2464_v24  ;;  %v2568_v23 = vsel %vm2567_vm7, %v2451_v11, %v2566_v52 }
 0x6c4   :  { %v2472_v58 = vmax.f32 %v2470_v35, %v2471_v33  ;;  %v9528_v38 = vadd.f32 %v9230_v51, %v2345_v32  ;;  %v2503_v57 = vmax.f32 %v9473_v59, %v2502_v22  ;;  %v2509_v42 = vrot.slane %v2508_v2, 4 }
 0x6c5   :  { %v2570_v50 = vsel %vm2569_vm8, %v2458_v37, %v2568_v23  ;;  %v11298_v30 = vrot.slane %v9445_v53, 2  ;;  %v2498_v20 = vmax.f32 %v9460_v19, %v2497_v28  ;;  %v2515_v48 = vmax.f32 %v2413_v21, %v2414_v63 }
 0x6c6   :  { %v2572_v8 = vsel %vm2571_vm9, %v2465_v7, %v2570_v50  ;;  %v2415_v35 = vmax.f32 %v9528_v38, 0.0  ;;  %v2504_v14 = vrot.slane %v2503_v57, 2  ;;  %v2510_v59 = vmax.f32 %v2508_v2, %v2509_v42 }
 0x6c7   :  { %v2491_v36 = vmax.f32 %v9445_v53, %v11298_v30  ;;  %v2574_v51 = vsel %vm2573_vm10, %v2472_v58, %v2572_v8  ;;  %v2516_v22 = vrot.slane %v2515_v48, 4  ;;  %v2485_v40 = vrot.slane %v2484_v45, 1 }
 0x6c8   :  { %6539 = vmatprep.mubr.f32.mxu1 %v2574_v51  ;;  %v2505_v11 = vmax.f32 %v2503_v57, %v2504_v14  ;;  %v2511_v61 = vrot.slane %v2510_v59, 2  ;;  %v2522_v53 = vmax.f32 %v2415_v35, %v2416_v18  ;;  %v2478_v33 = vrot.slane %v9451_v29, 1 }
 0x6c9   :  { %v2492_v19 = vrot.slane %v2491_v36, 1  ;;  %v2517_v24 = vmax.f32 %v2515_v48, %v2516_v22  ;;  %v2499_v28 = vrot.slane %v2498_v20, 1  ;;  %v2486_v2 = vmax.f32 %v2484_v45, %v2485_v40 }
 0x6ca   :  { %v2512_v4 = vmax.f32 %v2510_v59, %v2511_v61  ;;  %v2523_v32 = vrot.slane %v2522_v53, 4  ;;  %v2506_v37 = vrot.slane %v2505_v11, 1  ;;  %v2479_v57 = vmax.f32 %v9451_v29, %v2478_v33  ;;  %v2662_v29 = vld [vmem:[%s7736_s20 + $0x18] sm:$0xff] }
 0x6cb   :  { %v2518_v52 = vrot.slane %v2517_v24, 2  ;;  %v2493_v23 = vmax.f32 %v2491_v36, %v2492_v19  ;;  %v2500_v42 = vmax.f32 %v2498_v20, %v2499_v28  ;;  %v2661_v36 = vld [vmem:[%s7736_s20 + $0x10] sm:$0xff]  ;;  %v2663_v28 = vld [vmem:[%s7736_s20 + $0x20] sm:$0xff] }
 0x6cc   :  { %v2513_v7 = vrot.slane %v2512_v4, 1  ;;  %v2524_v58 = vmax.f32 %v2522_v53, %v2523_v32  ;;  %v2507_v30 = vmax.f32 %v2505_v11, %v2506_v37  ;;  %v2575_v59 = vsel %vm2561_vm4, %v2486_v2, %v2479_v57  ;;  %v2666_v2 = vld [vmem:[%s7736_s20 + $0x38] sm:$0xff] }
 0x6cd   :  { %v2519_v50 = vmax.f32 %v2517_v24, %v2518_v52  ;;  %v2576_v45 = vsel %vm2563_vm5, %v2493_v23, %v2575_v59  ;;  %v6899_v24 = vpack.c.bf16 %v2662_v29, %v2661_v36  ;;  %v11299_v32 = vmax.f32 %v9240_v16, 0.0  ;;  %v2665_v52 = vld [vmem:[%s7736_s20 + $0x30] sm:$0xff]  ;;  %v2668_v23 = vld [vmem:[%s7736_s20 + $0x48] sm:$0xff]  ;;  %v2670_v57 = vld [vmem:[%s7736_s20 + $0x58] sm:$0xff] }
 0x6ce   :  { %v2525_v8 = vrot.slane %v2524_v58, 2  ;;  %v2514_v51 = vmax.f32 %v2512_v4, %v2513_v7  ;;  %v2577_v61 = vsel %vm2565_vm6, %v2500_v42, %v2576_v45  ;;  %v2664_v4 = vld [vmem:[%s7736_s20 + $0x28] sm:$0xff]  ;;  %v6907_v7 = vpack.c.bf16 %v2666_v2, %v2665_v52  ;;  %v2671_v42 = vld [vmem:[%s7736_s20 + $0x60] sm:$0xff] }
 0x6cf   :  { %v2520_v48 = vrot.slane %v2519_v50, 1  ;;  %v2578_v20 = vsel %vm2567_vm7, %v2507_v30, %v2577_v61  ;;  %v6903_v37 = vpack.c.bf16 %v2664_v4, %v2663_v28  ;;  %v11300_v59 = vmax.f32 %v9236_v39, 0.0 }
 0x6d0   :  { %v2526_v14 = vmax.f32 %v2524_v58, %v2525_v8  ;;  %v2579_v53 = vsel %vm2569_vm8, %v2514_v51, %v2578_v20  ;;  %v2667_v58 = vld [vmem:[%s7736_s20 + $0x40] sm:$0xff]  ;;  %v2672_v8 = vld [vmem:[%s7736_s20 + $0x68] sm:$0xff]  ;;  %v2674_v51 = vld [vmem:[%s7736_s20 + $0x78] sm:$0xff]  ;;  %v11302_v45 = vmax.f32 %v9248_v12, 0.0  ;;  %v11304_v61 = vmax.f32 %v9269_v34, 0.0 }
 0x6d1   :  { %v2521_v22 = vmax.f32 %v2519_v50, %v2520_v48  ;;  %v6911_v50 = vpack.c.bf16 %v2668_v23, %v2667_v58  ;;  %v6919_v30 = vpack.c.bf16 %v2672_v8, %v2671_v42  ;;  %v2673_v48 = vld [vmem:[%s7736_s20 + $0x70] sm:$0xff]  ;;  %v11305_v36 = vmax.f32 %v9285_v0, 0.0 }
 0x6d2   :  { %v2527_v40 = vrot.slane %v2526_v14, 1  ;;  %v11306_v29 = vmax.f32 %v9282_v25, 0.0  ;;  %v11307_v39 = vmax.f32 %v9308_v46, 0.0  ;;  %v11309_v12 = vmax.f32 %v9323_v5, 0.0 }
 0x6d3   :  { %v2580_v19 = vsel %vm2571_vm9, %v2521_v22, %v2579_v53  ;;  %v11301_v22 = vmax.f32 %v9252_v49, 0.0  ;;  %v11308_v49 = vmax.f32 %v9303_v9, 0.0  ;;  %v11311_v34 = vmax.f32 %v9344_v43, 0.0 }
 0x6d4   :  { %v2528_v11 = vmax.f32 %v2526_v14, %v2527_v40  ;;  %v6923_v14 = vpack.c.bf16 %v2674_v51, %v2673_v48  ;;  %v11303_v40 = vmax.f32 %v9272_v41, 0.0  ;;  %v11310_v41 = vmax.f32 %v9311_v15, 0.0 }
 0x6d5   :  { %v11312_v0 = vmax.f32 %v9331_v26, 0.0  ;;  %v11313_v25 = vmax.f32 %v9427_v13, 0.0  ;;  %v11314_v46 = vmax.f32 %v9406_v3, 0.0  ;;  %v11315_v9 = vmax.f32 %v9362_v55, 0.0  ;;  %v11322_v55 = vld [vmem:[#allocation60_spill] sm:$0xff] }
 0x6d6   :  { %v2581_v33 = vsel %vm2573_vm10, %v2528_v11, %v2580_v19  ;;  %v11316_v5 = vmax.f32 %v9358_v62, 0.0  ;;  %v11317_v15 = vmax.f32 %v9375_v10, 0.0  ;;  %v11318_v43 = vmax.f32 %v9371_v54, 0.0  ;;  %v11324_v62 = vld [vmem:[#allocation62_spill] sm:$0xff]  ;;  %v11326_v10 = vld [vmem:[#allocation61_spill] sm:$0xff] }
 0x6d7   :  { %6540 = vmatmul.mubr.f32.vlgmr.msra.gmra.mrb[48].mxu1 %v2581_v33  ;;  %v11319_v26 = vmax.f32 %v9391_v6, 0.0  ;;  %v11320_v13 = vmax.f32 %v9387_v56, 0.0  ;;  %v11321_v3 = vmax.f32 %v9409_v47, 0.0  ;;  %v11323_v20 = vmax.f32 %v11322_v55, 0.0 }
 0x6d8   :  { %6898 = vmatpush3.bf16.msra.mxu1 %v9222_v60  ;;  %6574 = vmatprep.mubr.f32.mxu1 %v11299_v32  ;;  %v2669_v60 = vld [vmem:[%s7736_s20 + $0x50] sm:$0xff]  ;;  %v11325_v11 = vmax.f32 %v11324_v62, 0.0  ;;  %v11327_v53 = vmax.f32 %v11326_v10, 0.0  ;;  %v11328_v54 = vmax.f32 %v9478_v31, 0.0  ;;  %v11329_v6 = vmax.f32 %v9463_v44, 0.0  ;;  %s11406_s20 = sld [smem:[#allocation6_spill]] }
 0x6d9   :  { %6900 = vmatprep.subr.bf16.mxu1 %v6899_v24  ;;  %v6915_v16 = vpack.c.bf16 %v2670_v57, %v2669_v60  ;;  %v7648_v31 = vmov 1966171168   ;;  %v2913_v44 = vlaneseq }
 0x6da   :  { %v2911_v19 = vunpack.c.l.s4 %v7648_v31 }
 0x6db   :  { %v9637_v33 = vshrl.u32 %v2913_v44, 7 }
 0x6dc   :  { %6902 = vmatpush3.bf16.msra.mxu1 %v6899_v24  ;;  %v2912_v24 = vunpack.c.0.s8 %v2911_v19 }
 0x6dd   :  { %6904 = vmatprep.subr.bf16.mxu1 %v6903_v37 }
 0x6de   :  { %v9640_v1 = vsub.s32 %v2912_v24, %v9637_v33 }
 0x6e0   :  { %6906 = vmatpush3.bf16.msra.mxu1 %v6903_v37 }
 0x6e1   :  { %6908 = vmatprep.subr.bf16.mxu1 %v6907_v7 }
 0x6e4   :  { %6910 = vmatpush3.bf16.msra.mxu1 %v6907_v7 }
 0x6e5   :  { %6912 = vmatprep.subr.bf16.mxu1 %v6911_v50 }
 0x6e8   :  { %6914 = vmatpush3.bf16.msra.mxu1 %v6911_v50 }
 0x6e9   :  { %6916 = vmatprep.subr.bf16.mxu1 %v6915_v16 }
 0x6ec   :  { %6918 = vmatpush3.bf16.msra.mxu1 %v6915_v16 }
 0x6ed   :  { %6920 = vmatprep.subr.bf16.mxu1 %v6919_v30 }
 0x6f0   :  { %6922 = vmatpush3.bf16.msra.mxu1 %v6919_v30 }
 0x6f1   :  { %6924 = vmatprep.subr.bf16.mxu1 %v6923_v14 }
 0x6f4   :  { %6926 = vmatpush3.bf16.msra.mxu1 %v6923_v14 }
 0x6f7   :  { %6575 = vmatmul.mubr.f32.vlgmr.msra.gmra.mrb[50].mxu1 %v11300_v59 }
 0x6f8   :  { %6577 = vmatprep.mubr.f32.mxu1 %v11301_v22 }
 0x6fb   :  { %6578 = vmatmul.mubr.f32.gmra.mrb[52].mxu1 %v11302_v45 }
 0x6fc   :  { %6580 = vmatprep.mubr.f32.mxu1 %v11303_v40 }
 0x6ff   :  { %6581 = vmatmul.mubr.f32.gmra.mrb[54].mxu1 %v11304_v61 }
 0x700   :  { %6583 = vmatprep.mubr.f32.mxu1 %v11305_v36 }
 0x703   :  { %6584 = vmatmul.mubr.f32.gmra.mrb[56].mxu1 %v11306_v29 }
 0x704   :  { %6586 = vmatprep.mubr.f32.mxu1 %v11307_v39 }
 0x707   :  { %6587 = vmatmul.mubr.f32.gmra.mrb[58].mxu1 %v11308_v49 }
 0x708   :  { %6589 = vmatprep.mubr.f32.mxu1 %v11309_v12 }
 0x70b   :  { %6590 = vmatmul.mubr.f32.gmra.mrb[60].mxu1 %v11310_v41 }
 0x70c   :  { %6592 = vmatprep.mubr.f32.mxu1 %v11311_v34 }
 0x70f   :  { %6593 = vmatmul.mubr.f32.gmra.mrb[62].mxu1 %v11312_v0 }
 0x710   :  { %6595 = vmatprep.mubr.f32.mxu1 %v11313_v25 }
 0x713   :  { %6596 = vmatmul.mubr.f32.gmra.mrb[64].mxu1 %v11314_v46 }
 0x714   :  { %6598 = vmatprep.mubr.f32.mxu1 %v11315_v9 }
 0x717   :  { %6599 = vmatmul.mubr.f32.gmra.mrb[66].mxu1 %v11316_v5 }
 0x718   :  { %6601 = vmatprep.mubr.f32.mxu1 %v11317_v15 }
 0x71b   :  { %6602 = vmatmul.mubr.f32.gmra.mrb[68].mxu1 %v11318_v43 }
 0x71c   :  { %6604 = vmatprep.mubr.f32.mxu1 %v11319_v26 }
 0x71f   :  { %6605 = vmatmul.mubr.f32.gmra.mrb[70].mxu1 %v11320_v13 }
 0x720   :  { %6607 = vmatprep.mubr.f32.mxu1 %v11321_v3 }
 0x723   :  { %6608 = vmatmul.mubr.f32.gmra.mrb[72].mxu1 %v11323_v20 }
 0x724   :  { %6610 = vmatprep.mubr.f32.mxu1 %v11325_v11 }
 0x727   :  { %6611 = vmatmul.mubr.f32.gmra.mrb[74].mxu1 %v11327_v53 }
 0x728   :  { %6613 = vmatprep.mubr.f32.mxu1 %v11328_v54 }
 0x72b   :  { %6614 = vmatmul.mubr.f32.gmra.mrb[76].mxu1 %v11329_v6 }
 0x72c   :  { %6616 = vmatprep.mubr.f32.mxu1 %v2413_v21 }
 0x72f   :  { %6617 = vmatmul.mubr.f32.gmra.mrb[78].mxu1 %v2414_v63  ;;  %v9644_v63 = vsub.s32 0, %v9637_v33 }
 0x730   :  { %6619 = vmatprep.mubr.f32.mxu1 %v2415_v35 }
 0x733   :  { %6620 = vmatmul.mubr.f32.gmra.mrb[80].mxu1 %v2416_v18  ;;  %v9648_v18 = vld [vmem:[%s11330_s5] ss:$0 sm:$0xff] }
 0x7aa   :  { %v9635_v47 = vpop.f32.mrb[48].mxu1 }
 0x7ab   :  { %v2650_v56 = vpop.f32.mrb[49].mxu1  ;;  %v2965_v31 = vrot.slane %v9635_v47, %v9640_v1 }
 0x7ac   :  { %v2916_v27 = vrot.slane %v2650_v56, %v9640_v1  ;;  %v2909_v58 = vcombine.high %v2650_v56, %v2650_v56 }
 0x7ae   :  { %v2924_v21 = vcombine.high %v2916_v27, %v2916_v27  ;;  %v2932_v17 = vrot.slane %v2916_v27, %v9640_v1  ;;  %v2923_v48 = vrot.slane %v2909_v58, %v9640_v1 }
 0x7b0   :  { %v2946_v35 = vrot.slane %v2924_v21, %v9640_v1  ;;  %v3010_v4 = vrot.slane %v2932_v17, %v9644_v63  ;;  %v2954_v23 = vcombine.high %v2932_v17, %v2932_v17  ;;  %v2925_v29 = vcombine.high %v2923_v48, %v2923_v48 }
 0x7b1   :  { %v2939_v39 = vrot.slane %v2923_v48, %v9640_v1 }
 0x7b2   :  { %v3014_v60 = vrot.slane %v2946_v35, %v9644_v63  ;;  %v3018_v14 = vrot.slane %v2954_v23, %v9644_v63  ;;  %v2956_v22 = vcombine.high %v2946_v35, %v2946_v35  ;;  %v2953_v43 = vrot.slane %v2925_v29, %v9640_v1 }
 0x7b3   :  { %v3026_v5 = vrot.slane %v2939_v39, %v9644_v63  ;;  %v2955_v10 = vcombine.high %v2939_v39, %v2939_v39 }
 0x7b4   :  { %v3022_v12 = vrot.slane %v2956_v22, %v9644_v63  ;;  %v3030_v62 = vrot.slane %v2953_v43, %v9644_v63  ;;  %v2957_v27 = vcombine.high %v2953_v43, %v2953_v43 }
 0x7b5   :  { %v3034_v44 = vrot.slane %v2955_v10, %v9644_v63 }
 0x7ca   :  { %v6576_v38 = vpop.f32.mrb[50].mxu1 }
 0x7cb   :  { %v2754_v28 = vadd.f32 %v6576_v38, %v9648_v18  ;;  %v2748_v32 = vpop.f32.mrb[51].mxu1 }
 0x7cc   :  { %v2749_v37 = vadd.f32 %v9648_v18, %v2748_v32 }
 0x7cd   :  { %v9654_v52 = vadd.f32 %v3010_v4, %v2754_v28  ;;  %v2973_v28 = vcombine.high %v2965_v31, %v2965_v31 }
 0x7ce   :  { %v9656_v2 = vadd.f32 %v3010_v4, %v2749_v37  ;;  %v6579_v7 = vpop.f32.mrb[52].mxu1  ;;  %v2981_v4 = vrot.slane %v2965_v31, %v9640_v1  ;;  %v3038_v37 = vrot.slane %v2957_v27, %v9644_v63 }
 0x7cf   :  { %v2764_v50 = vadd.f32 %v6579_v7, %v9648_v18  ;;  %3123 = vadd.xlane.f32.xlu1 %v9654_v52  ;;  %v2758_v57 = vpop.f32.mrb[53].mxu1 }
 0x7d0   :  { %v2759_v16 = vadd.f32 %v9648_v18, %v2758_v57  ;;  %3121 = vadd.xlane.f32.xlu0 %v9656_v2  ;;  %v2995_v57 = vrot.slane %v2973_v28, %v9640_v1 }
 0x7d1   :  { %v9663_v42 = vadd.f32 %v3014_v60, %v2764_v50 }
 0x7d2   :  { %v9665_v8 = vadd.f32 %v3014_v60, %v2759_v16  ;;  %v6582_v30 = vpop.f32.mrb[54].mxu1  ;;  %v3046_v39 = vrot.slane %v2995_v57, %v9644_v63  ;;  %v3005_v43 = vcombine.high %v2995_v57, %v2995_v57 }
 0x7d3   :  { %v2774_v51 = vadd.f32 %v6582_v30, %v9648_v18  ;;  %3127 = vadd.xlane.f32.xlu1 %v9663_v42  ;;  %v2768_v59 = vpop.f32.mrb[55].mxu1  ;;  %v3042_v30 = vrot.slane %v2981_v4, %v9644_v63 }
 0x7d4   :  { %v2769_v45 = vadd.f32 %v9648_v18, %v2768_v59  ;;  %3125 = vadd.xlane.f32.xlu0 %v9665_v8 }
 0x7d5   :  { %v9673_v40 = vadd.f32 %v3018_v14, %v2774_v51 }
 0x7d6   :  { %v9675_v61 = vadd.f32 %v3018_v14, %v2769_v45  ;;  %v6585_v36 = vpop.f32.mrb[56].mxu1  ;;  %v2958_v45 = vcombine.high %v9635_v47, %v9635_v47 }
 0x7d7   :  { %v2784_v49 = vadd.f32 %v6585_v36, %v9648_v18  ;;  %3131 = vadd.xlane.f32.xlu1 %v9673_v40  ;;  %v2778_v41 = vpop.f32.mrb[57].mxu1  ;;  %v3003_v36 = vcombine.high %v2981_v4, %v2981_v4 }
 0x7d8   :  { %v2779_v34 = vadd.f32 %v9648_v18, %v2778_v41  ;;  %3129 = vadd.xlane.f32.xlu0 %v9675_v61 }
 0x7d9   :  { %v9683_v0 = vadd.f32 %v3022_v12, %v2784_v49 }
 0x7da   :  { %v9685_v25 = vadd.f32 %v3022_v12, %v2779_v34  ;;  %v6588_v46 = vpop.f32.mrb[58].mxu1 }
 0x7db   :  { %v2794_v9 = vadd.f32 %v6588_v46, %v9648_v18  ;;  %3135 = vadd.xlane.f32.xlu1 %v9683_v0  ;;  %v2788_v15 = vpop.f32.mrb[59].mxu1 }
 0x7dc   :  { %v2789_v26 = vadd.f32 %v9648_v18, %v2788_v15  ;;  %3133 = vadd.xlane.f32.xlu0 %v9685_v25 }
 0x7dd   :  { %v9693_v13 = vadd.f32 %v3026_v5, %v2794_v9  ;;  %v2972_v9 = vrot.slane %v2958_v45, %v9640_v1 }
 0x7de   :  { %v9695_v3 = vadd.f32 %v3026_v5, %v2789_v26  ;;  %v6591_v55 = vpop.f32.mrb[60].mxu1  ;;  %v3050_v5 = vrot.slane %v3003_v36, %v9644_v63 }
 0x7df   :  { %v2804_v20 = vadd.f32 %v6591_v55, %v9648_v18  ;;  %3139 = vadd.xlane.f32.xlu1 %v9693_v13  ;;  %v2798_v11 = vpop.f32.mrb[61].mxu1  ;;  %v2988_v10 = vrot.slane %v2972_v9, %v9640_v1 }
 0x7e0   :  { %v2799_v53 = vadd.f32 %v9648_v18, %v2798_v11  ;;  %3137 = vadd.xlane.f32.xlu0 %v9695_v3  ;;  %v2974_v11 = vcombine.high %v2972_v9, %v2972_v9 }
 0x7e1   :  { %v9702_v54 = vadd.f32 %v3030_v62, %v2804_v20 }
 0x7e2   :  { %v9704_v6 = vadd.f32 %v3030_v62, %v2799_v53  ;;  %v6594_v56 = vpop.f32.mrb[62].mxu1  ;;  %v3002_v4 = vrot.slane %v2974_v11, %v9640_v1  ;;  %v3581_v11 = vld [vmem:[%s11331_s17] sm:$0xff] }
 0x7e3   :  { %v2814_v19 = vadd.f32 %v6594_v56, %v9648_v18  ;;  %3143 = vadd.xlane.f32.xlu1 %v9702_v54  ;;  %v2808_v24 = vpop.f32.mrb[63].mxu1  ;;  %v3054_v56 = vrot.slane %v3005_v43, %v9644_v63 }
 0x7e4   :  { %v2809_v21 = vadd.f32 %v9648_v18, %v2808_v24  ;;  %3141 = vadd.xlane.f32.xlu0 %v9704_v6  ;;  %v3062_v57 = vrot.slane %v3002_v4, %v9644_v63 }
 0x7e5   :  { %v9713_v17 = vadd.f32 %v3034_v44, %v2814_v19 }
 0x7e6   :  { %v9715_v38 = vadd.f32 %v3034_v44, %v2809_v21  ;;  %v6597_v35 = vpop.f32.mrb[64].mxu1 }
 0x7e7   :  { %v2824_v32 = vadd.f32 %v6597_v35, %v9648_v18  ;;  %3147 = vadd.xlane.f32.xlu1 %v9713_v17  ;;  %v2818_v7 = vpop.f32.mrb[65].mxu1  ;;  %v3058_v35 = vrot.slane %v2988_v10, %v9644_v63 }
 0x7e8   :  { %v2819_v58 = vadd.f32 %v9648_v18, %v2818_v7  ;;  %3145 = vadd.xlane.f32.xlu0 %v9715_v38 }
 0x7e9   :  { %v9723_v23 = vadd.f32 %v3038_v37, %v2824_v32 }
 0x7ea   :  { %v9725_v50 = vadd.f32 %v3038_v37, %v2819_v58  ;;  %v6600_v60 = vpop.f32.mrb[66].mxu1 }
 0x7eb   :  { %v2834_v16 = vadd.f32 %v6600_v60, %v9648_v18  ;;  %3151 = vadd.xlane.f32.xlu1 %v9723_v23  ;;  %v2828_v48 = vpop.f32.mrb[67].mxu1 }
 0x7ec   :  { %v2829_v51 = vadd.f32 %v9648_v18, %v2828_v48  ;;  %3149 = vadd.xlane.f32.xlu0 %v9725_v50 }
 0x7ed   :  { %v9733_v14 = vadd.f32 %v3042_v30, %v2834_v16 }
 0x7ee   :  { %v9735_v59 = vadd.f32 %v3042_v30, %v2829_v51  ;;  %v6603_v22 = vpop.f32.mrb[68].mxu1  ;;  %v3004_v30 = vcombine.high %v2988_v10, %v2988_v10  ;;  %v3582_v10 = vld [vmem:[%s11331_s17 + $0x8] sm:$0xff] }
 0x7ef   :  { %v2844_v29 = vadd.f32 %v6603_v22, %v9648_v18  ;;  %3155 = vadd.xlane.f32.xlu1 %v9733_v14  ;;  %v2838_v49 = vpop.f32.mrb[69].mxu1 }
 0x7f0   :  { %v2839_v12 = vadd.f32 %v9648_v18, %v2838_v49  ;;  %3153 = vadd.xlane.f32.xlu0 %v9735_v59  ;;  %v3066_v36 = vrot.slane %v3004_v30, %v9644_v63 }
 0x7f1   :  { %v9744_v41 = vadd.f32 %v3046_v39, %v2844_v29 }
 0x7f2   :  { %v9746_v34 = vadd.f32 %v3046_v39, %v2839_v12  ;;  %v6606_v46 = vpop.f32.mrb[70].mxu1  ;;  %v3006_v39 = vcombine.high %v3002_v4, %v3002_v4 }
 0x7f3   :  { %v2854_v47 = vadd.f32 %v6606_v46, %v9648_v18  ;;  %3159 = vadd.xlane.f32.xlu1 %v9744_v41  ;;  %v2848_v15 = vpop.f32.mrb[71].mxu1 }
 0x7f4   :  { %v2849_v26 = vadd.f32 %v9648_v18, %v2848_v15  ;;  %3157 = vadd.xlane.f32.xlu0 %v9746_v34 }
 0x7f5   :  { %v9754_v55 = vadd.f32 %v3050_v5, %v2854_v47 }
 0x7f6   :  { %v9756_v20 = vadd.f32 %v3050_v5, %v2849_v26  ;;  %v6609_v62 = vpop.f32.mrb[72].mxu1  ;;  %v3070_v5 = vrot.slane %v3006_v39, %v9644_v63 }
 0x7f7   :  { %v2864_v53 = vadd.f32 %v6609_v62, %v9648_v18  ;;  %3163 = vadd.xlane.f32.xlu1 %v9754_v55  ;;  %v2858_v31 = vpop.f32.mrb[73].mxu1 }
 0x7f8   :  { %v2859_v19 = vadd.f32 %v9648_v18, %v2858_v31  ;;  %3161 = vadd.xlane.f32.xlu0 %v9756_v20  ;;  %v3584_v31 = vld [vmem:[%s11331_s17 + $0x18] sm:$0xff] }
 0x7f9   :  { %v9764_v44 = vadd.f32 %v3054_v56, %v2864_v53  ;;  %v3583_v53 = vld [vmem:[%s11331_s17 + $0x10] sm:$0xff] }
 0x7fa   :  { %v9766_v24 = vadd.f32 %v3054_v56, %v2859_v19  ;;  %v6612_v27 = vpop.f32.mrb[74].mxu1  ;;  %v6927_v56 = vpack.c.bf16 %v3582_v10, %v3581_v11  ;;  %v6931_v19 = vpack.c.bf16 %v3584_v31, %v3583_v53 }
 0x7fb   :  { %v2874_v21 = vadd.f32 %v6612_v27, %v9648_v18  ;;  %3167 = vadd.xlane.f32.xlu1 %v9764_v44  ;;  %v2868_v28 = vpop.f32.mrb[75].mxu1 }
 0x7fc   :  { %v2869_v32 = vadd.f32 %v9648_v18, %v2868_v28  ;;  %3165 = vadd.xlane.f32.xlu0 %v9766_v24  ;;  %6928 = vmatprep.subr.bf16.mxu0 %v6927_v56 }
 0x7fd   :  { %v9774_v37 = vadd.f32 %v3058_v35, %v2874_v21  ;;  %6930 = vmatpush3.bf16.msra.mxu0 %v6927_v56 }
 0x7fe   :  { %v9776_v7 = vadd.f32 %v3058_v35, %v2869_v32  ;;  %v6615_v58 = vpop.f32.mrb[76].mxu1  ;;  %6932 = vmatprep.subr.bf16.mxu0 %v6931_v19 }
 0x7ff   :  { %v2884_v60 = vadd.f32 %v6615_v58, %v9648_v18  ;;  %3171 = vadd.xlane.f32.xlu1 %v9774_v37  ;;  %v2878_v16 = vpop.f32.mrb[77].mxu1 }
 0x800   :  { %v2879_v48 = vadd.f32 %v9648_v18, %v2878_v16  ;;  %3169 = vadd.xlane.f32.xlu0 %v9776_v7 }
 0x801   :  { %v9783_v1 = vadd.f32 %v3062_v57, %v2884_v60  ;;  %6934 = vmatpush3.bf16.msra.mxu0 %v6931_v19 }
 0x802   :  { %v9785_v51 = vadd.f32 %v3062_v57, %v2879_v48  ;;  %v6618_v22 = vpop.f32.mrb[78].mxu1 }
 0x803   :  { %v2894_v45 = vadd.f32 %v6618_v22, %v9648_v18  ;;  %3175 = vadd.xlane.f32.xlu1 %v9783_v1  ;;  %v2888_v29 = vpop.f32.mrb[79].mxu1 }
 0x804   :  { %v2889_v49 = vadd.f32 %v9648_v18, %v2888_v29  ;;  %3173 = vadd.xlane.f32.xlu0 %v9785_v51 }
 0x805   :  { %v9792_v12 = vadd.f32 %v3066_v36, %v2894_v45 }
 0x806   :  { %v9794_v46 = vadd.f32 %v3066_v36, %v2889_v49  ;;  %v6621_v9 = vpop.f32.mrb[80].mxu1 }
 0x807   :  { %v2904_v47 = vadd.f32 %v6621_v9, %v9648_v18  ;;  %3179 = vadd.xlane.f32.xlu1 %v9792_v12  ;;  %v2898_v15 = vpop.f32.mrb[81].mxu1 }
 0x808   :  { %v2899_v43 = vadd.f32 %v9648_v18, %v2898_v15  ;;  %3177 = vadd.xlane.f32.xlu0 %v9794_v46 }
 0x809   :  { %v9801_v26 = vadd.f32 %v3070_v5, %v2904_v47 }
 0x80a   :  { %v9803_v62 = vadd.f32 %v3070_v5, %v2899_v43 }
 0x80b   :  { %3183 = vadd.xlane.f32.xlu1 %v9801_v26 }
 0x80c   :  { %3181 = vadd.xlane.f32.xlu0 %v9803_v62 }
 0x85c   :  { %v3124_v18 = vpop.xlane.xlu1 %3123 }
 0x85d   :  { %v3186_v27 = vmul.f32 0.0078125, %v3124_v18  ;;  %v3122_v21 = vpop.xlane.xlu0 %3121 }
 0x85e   :  { %v3185_v35 = vmul.f32 0.0078125, %v3122_v21 }
 0x85f   :  { %v9812_v28 = vsub.f32 %v9654_v52, %v3186_v27 }
 0x860   :  { %v9815_v4 = vsub.f32 %v9656_v2, %v3185_v35  ;;  %v3128_v32 = vpop.xlane.xlu1 %3127 }
 0x861   :  { %v3188_v58 = vmul.f32 0.0078125, %v3128_v32  ;;  %v3126_v60 = vpop.xlane.xlu0 %3125  ;;  %v3250_v57 = vmul.f32 %v9812_v28, %v9812_v28 }
 0x862   :  { %v3187_v16 = vmul.f32 0.0078125, %v3126_v60  ;;  %v3249_v30 = vmul.f32 %v9815_v4, %v9815_v4 }
 0x863   :  { %v9822_v48 = vsub.f32 %v9663_v42, %v3188_v58  ;;  %3283 = vadd.xlane.f32.xlu1 %v3250_v57 }
 0x864   :  { %v9825_v52 = vsub.f32 %v9665_v8, %v3187_v16  ;;  %v3132_v22 = vpop.xlane.xlu1 %3131  ;;  %3281 = vadd.xlane.f32.xlu0 %v3249_v30 }
 0x865   :  { %v3190_v2 = vmul.f32 0.0078125, %v3132_v22  ;;  %v3130_v45 = vpop.xlane.xlu0 %3129  ;;  %v3252_v36 = vmul.f32 %v9822_v48, %v9822_v48 }
 0x866   :  { %v3189_v29 = vmul.f32 0.0078125, %v3130_v45  ;;  %v3251_v39 = vmul.f32 %v9825_v52, %v9825_v52 }
 0x867   :  { %v9832_v49 = vsub.f32 %v9673_v40, %v3190_v2  ;;  %3287 = vadd.xlane.f32.xlu1 %v3252_v36 }
 0x868   :  { %v9835_v42 = vsub.f32 %v9675_v61, %v3189_v29  ;;  %v3136_v8 = vpop.xlane.xlu1 %3135  ;;  %3285 = vadd.xlane.f32.xlu0 %v3251_v39 }
 0x869   :  { %v3192_v9 = vmul.f32 0.0078125, %v3136_v8  ;;  %v3134_v47 = vpop.xlane.xlu0 %3133  ;;  %v3254_v5 = vmul.f32 %v9832_v49, %v9832_v49 }
 0x86a   :  { %v3191_v15 = vmul.f32 0.0078125, %v3134_v47  ;;  %v3253_v43 = vmul.f32 %v9835_v42, %v9835_v42 }
 0x86b   :  { %v9842_v11 = vsub.f32 %v9683_v0, %v3192_v9  ;;  %3291 = vadd.xlane.f32.xlu1 %v3254_v5 }
 0x86c   :  { %v9845_v40 = vsub.f32 %v9685_v25, %v3191_v15  ;;  %v3140_v61 = vpop.xlane.xlu1 %3139  ;;  %3289 = vadd.xlane.f32.xlu0 %v3253_v43 }
 0x86d   :  { %v3194_v10 = vmul.f32 0.0078125, %v3140_v61  ;;  %v3138_v53 = vpop.xlane.xlu0 %3137  ;;  %v3256_v56 = vmul.f32 %v9842_v11, %v9842_v11 }
 0x86e   :  { %v3193_v31 = vmul.f32 0.0078125, %v3138_v53  ;;  %v3255_v19 = vmul.f32 %v9845_v40, %v9845_v40 }
 0x86f   :  { %v9852_v18 = vsub.f32 %v9693_v13, %v3194_v10  ;;  %3295 = vadd.xlane.f32.xlu1 %v3256_v56  ;;  %v3585_v56 = vld [vmem:[%s11331_s17 + $0x20] sm:$0xff] }
 0x870   :  { %v9855_v0 = vsub.f32 %v9695_v3, %v3193_v31  ;;  %v3144_v25 = vpop.xlane.xlu1 %3143  ;;  %3293 = vadd.xlane.f32.xlu0 %v3255_v19  ;;  %v3586_v31 = vld [vmem:[%s11331_s17 + $0x28] sm:$0xff]  ;;  %v3587_v19 = vld [vmem:[%s11331_s17 + $0x30] sm:$0xff] }
 0x871   :  { %v3196_v27 = vmul.f32 0.0078125, %v3144_v25  ;;  %v3142_v21 = vpop.xlane.xlu0 %3141  ;;  %v3258_v35 = vmul.f32 %v9852_v18, %v9852_v18 }
 0x872   :  { %v3195_v32 = vmul.f32 0.0078125, %v3142_v21  ;;  %v3257_v58 = vmul.f32 %v9855_v0, %v9855_v0 }
 0x873   :  { %v9862_v60 = vsub.f32 %v9702_v54, %v3196_v27  ;;  %3299 = vadd.xlane.f32.xlu1 %v3258_v35  ;;  %v6935_v35 = vpack.c.bf16 %v3586_v31, %v3585_v56  ;;  %v3594_v31 = vld [vmem:[%s11331_s17 + $0x68] sm:$0xff] }
 0x874   :  { %v9865_v13 = vsub.f32 %v9704_v6, %v3195_v32  ;;  %v3148_v3 = vpop.xlane.xlu1 %3147  ;;  %3297 = vadd.xlane.f32.xlu0 %v3257_v58  ;;  %v3588_v32 = vld [vmem:[%s11331_s17 + $0x38] sm:$0xff] }
 0x875   :  { %v3198_v57 = vmul.f32 0.0078125, %v3148_v3  ;;  %v3146_v16 = vpop.xlane.xlu0 %3145  ;;  %v3260_v30 = vmul.f32 %v9862_v60, %v9862_v60  ;;  %v6939_v3 = vpack.c.bf16 %v3588_v32, %v3587_v19  ;;  %6936 = vmatprep.subr.bf16.mxu0 %v6935_v35 }
 0x876   :  { %v3197_v22 = vmul.f32 0.0078125, %v3146_v16  ;;  %v3259_v2 = vmul.f32 %v9865_v13, %v9865_v13  ;;  %6938 = vmatpush3.bf16.msra.mxu0 %v6935_v35 }
 0x877   :  { %v9872_v45 = vsub.f32 %v9713_v17, %v3198_v57  ;;  %3303 = vadd.xlane.f32.xlu1 %v3260_v30  ;;  %v3589_v57 = vld [vmem:[%s11331_s17 + $0x40] sm:$0xff]  ;;  %6940 = vmatprep.subr.bf16.mxu0 %v6939_v3 }
 0x878   :  { %v9875_v54 = vsub.f32 %v9715_v38, %v3197_v22  ;;  %v3152_v6 = vpop.xlane.xlu1 %3151  ;;  %3301 = vadd.xlane.f32.xlu0 %v3259_v2 }
 0x879   :  { %v3200_v36 = vmul.f32 0.0078125, %v3152_v6  ;;  %v3150_v29 = vpop.xlane.xlu0 %3149  ;;  %v3262_v39 = vmul.f32 %v9872_v45, %v9872_v45 }
 0x87a   :  { %v3199_v8 = vmul.f32 0.0078125, %v3150_v29  ;;  %v3261_v9 = vmul.f32 %v9875_v54, %v9875_v54  ;;  %6942 = vmatpush3.bf16.msra.mxu0 %v6939_v3  ;;  %v3596_v3 = vld [vmem:[%s11331_s17 + $0x78] sm:$0xff] }
 0x87b   :  { %v9882_v47 = vsub.f32 %v9723_v23, %v3200_v36  ;;  %3307 = vadd.xlane.f32.xlu1 %v3262_v39 }
 0x87c   :  { %v9885_v17 = vsub.f32 %v9725_v50, %v3199_v8  ;;  %v3156_v38 = vpop.xlane.xlu1 %3155  ;;  %3305 = vadd.xlane.f32.xlu0 %v3261_v9  ;;  %v3591_v8 = vld [vmem:[%s11331_s17 + $0x50] sm:$0xff]  ;;  %v3592_v9 = vld [vmem:[%s11331_s17 + $0x58] sm:$0xff] }
 0x87d   :  { %v3202_v5 = vmul.f32 0.0078125, %v3156_v38  ;;  %v3154_v15 = vpop.xlane.xlu0 %3153  ;;  %v3264_v43 = vmul.f32 %v9882_v47, %v9882_v47 }
 0x87e   :  { %v3201_v61 = vmul.f32 0.0078125, %v3154_v15  ;;  %v3263_v10 = vmul.f32 %v9885_v17, %v9885_v17 }
 0x87f   :  { %v9892_v23 = vsub.f32 %v9733_v14, %v3202_v5  ;;  %3311 = vadd.xlane.f32.xlu1 %v3264_v43 }
 0x880   :  { %v9895_v50 = vsub.f32 %v9735_v59, %v3201_v61  ;;  %v3160_v53 = vpop.xlane.xlu1 %3159  ;;  %3309 = vadd.xlane.f32.xlu0 %v3263_v10  ;;  %v3590_v59 = vld [vmem:[%s11331_s17 + $0x48] sm:$0xff]  ;;  %v6947_v10 = vpack.c.bf16 %v3592_v9, %v3591_v8 }
 0x881   :  { %v3204_v25 = vmul.f32 0.0078125, %v3160_v53  ;;  %v3158_v27 = vpop.xlane.xlu0 %3157  ;;  %v3266_v21 = vmul.f32 %v9892_v23, %v9892_v23  ;;  %v6943_v29 = vpack.c.bf16 %v3590_v59, %v3589_v57 }
 0x882   :  { %v3203_v14 = vmul.f32 0.0078125, %v3158_v27  ;;  %v3265_v58 = vmul.f32 %v9895_v50, %v9895_v50 }
 0x883   :  { %v9908_v16 = vsub.f32 %v9744_v41, %v3204_v25  ;;  %3315 = vadd.xlane.f32.xlu1 %v3266_v21  ;;  %6944 = vmatprep.subr.bf16.mxu0 %v6943_v29 }
 0x884   :  { %v9911_v30 = vsub.f32 %v9746_v34, %v3203_v14  ;;  %v3164_v22 = vpop.xlane.xlu1 %3163  ;;  %3313 = vadd.xlane.f32.xlu0 %v3265_v58  ;;  %6946 = vmatpush3.bf16.msra.mxu0 %v6943_v29 }
 0x885   :  { %v3206_v2 = vmul.f32 0.0078125, %v3164_v22  ;;  %v3162_v6 = vpop.xlane.xlu0 %3161  ;;  %v3268_v36 = vmul.f32 %v9908_v16, %v9908_v16  ;;  %6948 = vmatprep.subr.bf16.mxu0 %v6947_v10 }
 0x886   :  { %v3205_v39 = vmul.f32 0.0078125, %v3162_v6  ;;  %v3267_v41 = vmul.f32 %v9911_v30, %v9911_v30 }
 0x887   :  { %v9920_v34 = vsub.f32 %v9754_v55, %v3206_v2  ;;  %3319 = vadd.xlane.f32.xlu1 %v3268_v36  ;;  %v3593_v55 = vld [vmem:[%s11331_s17 + $0x60] sm:$0xff] }
 0x888   :  { %v9923_v38 = vsub.f32 %v9756_v20, %v3205_v39  ;;  %v3168_v5 = vpop.xlane.xlu1 %3167  ;;  %3317 = vadd.xlane.f32.xlu0 %v3267_v41  ;;  %v6951_v32 = vpack.c.bf16 %v3594_v31, %v3593_v55  ;;  %6950 = vmatpush3.bf16.msra.mxu0 %v6947_v10 }
 0x889   :  { %v3208_v15 = vmul.f32 0.0078125, %v3168_v5  ;;  %v3166_v43 = vpop.xlane.xlu0 %3165  ;;  %v3270_v61 = vmul.f32 %v9920_v34, %v9920_v34 }
 0x88a   :  { %v3207_v53 = vmul.f32 0.0078125, %v3166_v43  ;;  %v3269_v56 = vmul.f32 %v9923_v38, %v9923_v38  ;;  %6952 = vmatprep.subr.bf16.mxu0 %v6951_v32 }
 0x88b   :  { %v9932_v20 = vsub.f32 %v9764_v44, %v3208_v15  ;;  %3323 = vadd.xlane.f32.xlu1 %v3270_v61  ;;  %v3595_v44 = vld [vmem:[%s11331_s17 + $0x70] sm:$0xff] }
 0x88c   :  { %v9935_v19 = vsub.f32 %v9766_v24, %v3207_v53  ;;  %v3172_v25 = vpop.xlane.xlu1 %3171  ;;  %3321 = vadd.xlane.f32.xlu0 %v3269_v56  ;;  %v6955_v36 = vpack.c.bf16 %v3596_v3, %v3595_v44  ;;  %6954 = vmatpush3.bf16.msra.mxu0 %v6951_v32 }
 0x88d   :  { %v3210_v27 = vmul.f32 0.0078125, %v3172_v25  ;;  %v3170_v21 = vpop.xlane.xlu0 %3169  ;;  %v3272_v35 = vmul.f32 %v9932_v20, %v9932_v20 }
 0x88e   :  { %v3209_v14 = vmul.f32 0.0078125, %v3170_v21  ;;  %v3271_v58 = vmul.f32 %v9935_v19, %v9935_v19  ;;  %6956 = vmatprep.subr.bf16.mxu0 %v6955_v36 }
 0x88f   :  { %v9944_v57 = vsub.f32 %v9774_v37, %v3210_v27  ;;  %3327 = vadd.xlane.f32.xlu1 %v3272_v35 }
 0x890   :  { %v9947_v24 = vsub.f32 %v9776_v7, %v3209_v14  ;;  %v3176_v59 = vpop.xlane.xlu1 %3175  ;;  %3325 = vadd.xlane.f32.xlu0 %v3271_v58  ;;  %6958 = vmatpush3.bf16.msra.mxu0 %v6955_v36 }
 0x891   :  { %v3212_v22 = vmul.f32 0.0078125, %v3176_v59  ;;  %v3174_v2 = vpop.xlane.xlu0 %3173  ;;  %v3274_v6 = vmul.f32 %v9944_v57, %v9944_v57 }
 0x892   :  { %v3211_v29 = vmul.f32 0.0078125, %v3174_v2  ;;  %v3273_v39 = vmul.f32 %v9947_v24, %v9947_v24 }
 0x893   :  { %v9954_v37 = vsub.f32 %v9783_v1, %v3212_v22  ;;  %3331 = vadd.xlane.f32.xlu1 %v3274_v6 }
 0x894   :  { %v9957_v7 = vsub.f32 %v9785_v51, %v3211_v29  ;;  %v3180_v41 = vpop.xlane.xlu1 %3179  ;;  %3329 = vadd.xlane.f32.xlu0 %v3273_v39 }
 0x895   :  { %v3214_v8 = vmul.f32 0.0078125, %v3180_v41  ;;  %v3178_v9 = vpop.xlane.xlu0 %3177  ;;  %v3276_v5 = vmul.f32 %v9954_v37, %v9954_v37 }
 0x896   :  { %v3213_v15 = vmul.f32 0.0078125, %v3178_v9  ;;  %v3275_v43 = vmul.f32 %v9957_v7, %v9957_v7 }
 0x897   :  { %v9964_v1 = vsub.f32 %v9792_v12, %v3214_v8  ;;  %3335 = vadd.xlane.f32.xlu1 %v3276_v5 }
 0x898   :  { %v9967_v51 = vsub.f32 %v9794_v46, %v3213_v15  ;;  %v3184_v61 = vpop.xlane.xlu1 %3183  ;;  %3333 = vadd.xlane.f32.xlu0 %v3275_v43 }
 0x899   :  { %v3216_v10 = vmul.f32 0.0078125, %v3184_v61  ;;  %v3182_v53 = vpop.xlane.xlu0 %3181  ;;  %v3278_v56 = vmul.f32 %v9964_v1, %v9964_v1 }
 0x89a   :  { %v3215_v55 = vmul.f32 0.0078125, %v3182_v53  ;;  %v3277_v31 = vmul.f32 %v9967_v51, %v9967_v51  ;;  %v9984_v53 = vld [vmem:[%s11332_s21] ss:$0 sm:$0xff] }
 0x89b   :  { %v9974_v25 = vsub.f32 %v9801_v26, %v3216_v10  ;;  %3339 = vadd.xlane.f32.xlu1 %v3278_v56 }
 0x89c   :  { %v9977_v12 = vsub.f32 %v9803_v62, %v3215_v55  ;;  %3337 = vadd.xlane.f32.xlu0 %v3277_v31 }
 0x89d   :  { %v3280_v46 = vmul.f32 %v9974_v25, %v9974_v25 }
 0x89e   :  { %v3279_v27 = vmul.f32 %v9977_v12, %v9977_v12 }
 0x89f   :  { %3343 = vadd.xlane.f32.xlu1 %v3280_v46 }
 0x8a0   :  { %3341 = vadd.xlane.f32.xlu0 %v3279_v27 }
 0x8f0   :  { %v3284_v21 = vpop.xlane.xlu1 %3283 }
 0x8f1   :  { %v3346_v35 = vmul.f32 0.0078125, %v3284_v21  ;;  %v3282_v32 = vpop.xlane.xlu0 %3281 }
 0x8f2   :  { %v3345_v14 = vmul.f32 0.0078125, %v3282_v32 }
 0x8f3   :  { %v3378_v58 = vadd.f32 1e-05, %v3346_v35  ;;  %v9988_v35 = vld [vmem:[%s11333_s25] ss:$0 sm:$0xff] }
 0x8f4   :  { %v3377_v26 = vadd.f32 1e-05, %v3345_v14  ;;  %v3288_v44 = vpop.xlane.xlu1 %3287 }
 0x8f5   :  { %7371 = vrsqrt.f32 %v3378_v58  ;;  %v3348_v3 = vmul.f32 0.0078125, %v3288_v44  ;;  %v3286_v62 = vpop.xlane.xlu0 %3285 }
 0x8f6   :  { %7373 = vrsqrt.f32 %v3377_v26  ;;  %v3347_v59 = vmul.f32 0.0078125, %v3286_v62 }
 0x8f7   :  { %v3380_v22 = vadd.f32 1e-05, %v3348_v3 }
 0x8f8   :  { %v3379_v2 = vadd.f32 1e-05, %v3347_v59  ;;  %v3292_v6 = vpop.xlane.xlu1 %3291 }
 0x8f9   :  { %7375 = vrsqrt.f32 %v3380_v22  ;;  %v3350_v36 = vmul.f32 0.0078125, %v3292_v6  ;;  %v3290_v29 = vpop.xlane.xlu0 %3289 }
 0x8fa   :  { %7377 = vrsqrt.f32 %v3379_v2  ;;  %v3349_v39 = vmul.f32 0.0078125, %v3290_v29 }
 0x8fb   :  { %v3382_v41 = vadd.f32 1e-05, %v3350_v36 }
 0x8fc   :  { %v3381_v8 = vadd.f32 1e-05, %v3349_v39  ;;  %v3296_v9 = vpop.xlane.xlu1 %3295 }
 0x8fd   :  { %7379 = vrsqrt.f32 %v3382_v41  ;;  %v3352_v5 = vmul.f32 0.0078125, %v3296_v9  ;;  %v3294_v15 = vpop.xlane.xlu0 %3293 }
 0x8fe   :  { %7381 = vrsqrt.f32 %v3381_v8  ;;  %v3351_v43 = vmul.f32 0.0078125, %v3294_v15 }
 0x8ff   :  { %v7372_v61 = vpop.eup %7371  ;;  %v3384_v10 = vadd.f32 1e-05, %v3352_v5 }
 0x900   :  { %v7374_v56 = vpop.eup %7373  ;;  %v3442_v55 = vmul.f32 %v7372_v61, %v9812_v28  ;;  %v3383_v31 = vadd.f32 1e-05, %v3351_v43  ;;  %v3300_v46 = vpop.xlane.xlu1 %3299 }
 0x901   :  { %7383 = vrsqrt.f32 %v3384_v10  ;;  %v3354_v27 = vmul.f32 0.0078125, %v3300_v46  ;;  %v3298_v21 = vpop.xlane.xlu0 %3297  ;;  %v3441_v32 = vmul.f32 %v7374_v56, %v9815_v4 }
 0x902   :  { %7385 = vrsqrt.f32 %v3383_v31  ;;  %v3353_v14 = vmul.f32 0.0078125, %v3298_v21  ;;  %v3480_v58 = vmul.f32 %v9984_v53, %v3442_v55 }
 0x903   :  { %v7376_v26 = vpop.eup %7375  ;;  %v3386_v44 = vadd.f32 1e-05, %v3354_v27  ;;  %v3479_v3 = vmul.f32 %v9984_v53, %v3441_v32 }
 0x904   :  { %v7378_v62 = vpop.eup %7377  ;;  %v3385_v59 = vadd.f32 1e-05, %v3353_v14  ;;  %v3304_v28 = vpop.xlane.xlu1 %3303  ;;  %v3518_v22 = vadd.f32 %v9988_v35, %v3480_v58  ;;  %v3444_v2 = vmul.f32 %v7376_v26, %v9822_v48 }
 0x905   :  { %7387 = vrsqrt.f32 %v3386_v44  ;;  %v3356_v6 = vmul.f32 0.0078125, %v3304_v28  ;;  %v3302_v36 = vpop.xlane.xlu0 %3301  ;;  %v3517_v4 = vadd.f32 %v9988_v35, %v3479_v3  ;;  %v3443_v29 = vmul.f32 %v7378_v62, %v9825_v52 }
 0x906   :  { %7389 = vrsqrt.f32 %v3385_v59  ;;  %v3355_v39 = vmul.f32 0.0078125, %v3302_v36  ;;  %v3482_v41 = vmul.f32 %v9984_v53, %v3444_v2  ;;  %v3550_v48 = vmax.f32 %v3518_v22, 0.0 }
 0x907   :  { %v7380_v8 = vpop.eup %7379  ;;  %v3388_v9 = vadd.f32 1e-05, %v3356_v6  ;;  %v3549_v5 = vmax.f32 %v3517_v4, 0.0  ;;  %v3481_v15 = vmul.f32 %v9984_v53, %v3443_v29 }
 0x908   :  { %v7382_v43 = vpop.eup %7381  ;;  %v3387_v61 = vadd.f32 1e-05, %v3355_v39  ;;  %v3308_v10 = vpop.xlane.xlu1 %3307  ;;  %v3520_v56 = vadd.f32 %v9988_v35, %v3482_v41  ;;  %v3446_v55 = vmul.f32 %v7380_v8, %v9832_v49 }
 0x909   :  { %7391 = vrsqrt.f32 %v3388_v9  ;;  %v3358_v31 = vmul.f32 0.0078125, %v3308_v10  ;;  %6654 = vmatprep.mubr.f32.mxu0 %v3549_v5  ;;  %v3306_v52 = vpop.xlane.xlu0 %3305  ;;  %v3519_v46 = vadd.f32 %v9988_v35, %v3481_v15  ;;  %v3445_v27 = vmul.f32 %v7382_v43, %v9835_v42 }
 0x90a   :  { %7393 = vrsqrt.f32 %v3387_v61  ;;  %v3357_v21 = vmul.f32 0.0078125, %v3306_v52  ;;  %6655 = vmatmul.mubr.f32.vlgmr.msra.gmra.mrb[48].mxu0 %v3550_v48  ;;  %v3484_v32 = vmul.f32 %v9984_v53, %v3446_v55  ;;  %v3552_v59 = vmax.f32 %v3520_v56, 0.0 }
 0x90b   :  { %v7384_v14 = vpop.eup %7383  ;;  %v3390_v58 = vadd.f32 1e-05, %v3358_v31  ;;  %v3551_v26 = vmax.f32 %v3519_v46, 0.0  ;;  %v3483_v44 = vmul.f32 %v9984_v53, %v3445_v27 }
 0x90c   :  { %v7386_v3 = vpop.eup %7385  ;;  %v3389_v49 = vadd.f32 1e-05, %v3357_v21  ;;  %v3312_v62 = vpop.xlane.xlu1 %3311  ;;  %v3522_v28 = vadd.f32 %v9988_v35, %v3484_v32  ;;  %v3448_v22 = vmul.f32 %v7384_v14, %v9842_v11 }
 0x90d   :  { %7395 = vrsqrt.f32 %v3390_v58  ;;  %v3360_v42 = vmul.f32 0.0078125, %v3312_v62  ;;  %6657 = vmatprep.mubr.f32.mxu0 %v3551_v26  ;;  %v3310_v2 = vpop.xlane.xlu0 %3309  ;;  %v3521_v6 = vadd.f32 %v9988_v35, %v3483_v44  ;;  %v3447_v36 = vmul.f32 %v7386_v3, %v9845_v40 }
 0x90e   :  { %7397 = vrsqrt.f32 %v3389_v49  ;;  %v3359_v4 = vmul.f32 0.0078125, %v3310_v2  ;;  %6658 = vmatmul.mubr.f32.gmra.mrb[50].mxu0 %v3552_v59  ;;  %v3486_v29 = vmul.f32 %v9984_v53, %v3448_v22  ;;  %v3554_v43 = vmax.f32 %v3522_v28, 0.0 }
 0x90f   :  { %v7388_v39 = vpop.eup %7387  ;;  %v3392_v41 = vadd.f32 1e-05, %v3360_v42  ;;  %v3553_v8 = vmax.f32 %v3521_v6, 0.0  ;;  %v3485_v9 = vmul.f32 %v9984_v53, %v3447_v36 }
 0x910   :  { %v7390_v5 = vpop.eup %7389  ;;  %v3391_v11 = vadd.f32 1e-05, %v3359_v4  ;;  %v3316_v15 = vpop.xlane.xlu1 %3315  ;;  %v3524_v61 = vadd.f32 %v9988_v35, %v3486_v29  ;;  %v3450_v10 = vmul.f32 %v7388_v39, %v9852_v18 }
 0x911   :  { %7399 = vrsqrt.f32 %v3392_v41  ;;  %v3362_v40 = vmul.f32 0.0078125, %v3316_v15  ;;  %6660 = vmatprep.mubr.f32.mxu0 %v3553_v8  ;;  %v3314_v48 = vpop.xlane.xlu0 %3313  ;;  %v3523_v56 = vadd.f32 %v9988_v35, %v3485_v9  ;;  %v3449_v55 = vmul.f32 %v7390_v5, %v9855_v0 }
 0x912   :  { %7401 = vrsqrt.f32 %v3391_v11  ;;  %v3361_v31 = vmul.f32 0.0078125, %v3314_v48  ;;  %6661 = vmatmul.mubr.f32.gmra.mrb[52].mxu0 %v3554_v43  ;;  %v3488_v52 = vmul.f32 %v9984_v53, %v3450_v10  ;;  %v3556_v26 = vmax.f32 %v3524_v61, 0.0 }
 0x913   :  { %v7392_v46 = vpop.eup %7391  ;;  %v3394_v27 = vadd.f32 1e-05, %v3362_v40  ;;  %v3555_v21 = vmax.f32 %v3523_v56, 0.0  ;;  %v3487_v32 = vmul.f32 %v9984_v53, %v3449_v55 }
 0x914   :  { %v7394_v14 = vpop.eup %7393  ;;  %v3393_v18 = vadd.f32 1e-05, %v3361_v31  ;;  %v3320_v58 = vpop.xlane.xlu1 %3319  ;;  %v3526_v44 = vadd.f32 %v9988_v35, %v3488_v52  ;;  %v3452_v3 = vmul.f32 %v7392_v46, %v9862_v60 }
 0x915   :  { %7403 = vrsqrt.f32 %v3394_v27  ;;  %v3364_v0 = vmul.f32 0.0078125, %v3320_v58  ;;  %6663 = vmatprep.mubr.f32.mxu0 %v3555_v21  ;;  %v3318_v49 = vpop.xlane.xlu0 %3317  ;;  %v3525_v62 = vadd.f32 %v9988_v35, %v3487_v32  ;;  %v3451_v59 = vmul.f32 %v7394_v14, %v9865_v13 }
 0x916   :  { %7405 = vrsqrt.f32 %v3393_v18  ;;  %v3363_v28 = vmul.f32 0.0078125, %v3318_v49  ;;  %6664 = vmatmul.mubr.f32.gmra.mrb[54].mxu0 %v3556_v26  ;;  %v3490_v22 = vmul.f32 %v9984_v53, %v3452_v3  ;;  %v3558_v39 = vmax.f32 %v3526_v44, 0.0 }
 0x917   :  { %v7396_v42 = vpop.eup %7395  ;;  %v3396_v2 = vadd.f32 1e-05, %v3364_v0  ;;  %v3557_v6 = vmax.f32 %v3525_v62, 0.0  ;;  %v3489_v36 = vmul.f32 %v9984_v53, %v3451_v59 }
 0x918   :  { %v7398_v4 = vpop.eup %7397  ;;  %v3395_v60 = vadd.f32 1e-05, %v3363_v28  ;;  %v3324_v29 = vpop.xlane.xlu1 %3323  ;;  %v3528_v41 = vadd.f32 %v9988_v35, %v3490_v22  ;;  %v3454_v8 = vmul.f32 %v7396_v42, %v9872_v45 }
 0x919   :  { %7407 = vrsqrt.f32 %v3396_v2  ;;  %v3366_v13 = vmul.f32 0.0078125, %v3324_v29  ;;  %6666 = vmatprep.mubr.f32.mxu0 %v3557_v6  ;;  %v3322_v9 = vpop.xlane.xlu0 %3321  ;;  %v3527_v5 = vadd.f32 %v9988_v35, %v3489_v36  ;;  %v3453_v11 = vmul.f32 %v7398_v4, %v9875_v54 }
 0x91a   :  { %7409 = vrsqrt.f32 %v3395_v60  ;;  %v3365_v15 = vmul.f32 0.0078125, %v3322_v9  ;;  %6667 = vmatmul.mubr.f32.gmra.mrb[56].mxu0 %v3558_v39  ;;  %v3492_v43 = vmul.f32 %v9984_v53, %v3454_v8  ;;  %v3560_v31 = vmax.f32 %v3528_v41, 0.0 }
 0x91b   :  { %v7400_v61 = vpop.eup %7399  ;;  %v3398_v10 = vadd.f32 1e-05, %v3366_v13  ;;  %v3559_v40 = vmax.f32 %v3527_v5, 0.0  ;;  %v3491_v48 = vmul.f32 %v9984_v53, %v3453_v11 }
 0x91c   :  { %v7402_v56 = vpop.eup %7401  ;;  %v3397_v45 = vadd.f32 1e-05, %v3365_v15  ;;  %v3328_v55 = vpop.xlane.xlu1 %3327  ;;  %v3530_v52 = vadd.f32 %v9988_v35, %v3492_v43  ;;  %v3456_v46 = vmul.f32 %v7400_v61, %v9882_v47 }
 0x91d   :  { %7411 = vrsqrt.f32 %v3398_v10  ;;  %v3368_v54 = vmul.f32 0.0078125, %v3328_v55  ;;  %6669 = vmatprep.mubr.f32.mxu0 %v3559_v40  ;;  %v3326_v27 = vpop.xlane.xlu0 %3325  ;;  %v3529_v21 = vadd.f32 %v9988_v35, %v3491_v48  ;;  %v3455_v32 = vmul.f32 %v7402_v56, %v9885_v17 }
 0x91e   :  { %7413 = vrsqrt.f32 %v3397_v45  ;;  %v3367_v14 = vmul.f32 0.0078125, %v3326_v27  ;;  %6670 = vmatmul.mubr.f32.gmra.mrb[58].mxu0 %v3560_v31  ;;  %v3494_v18 = vmul.f32 %v9984_v53, %v3456_v46  ;;  %v3562_v62 = vmax.f32 %v3530_v52, 0.0 }
 0x91f   :  { %v7404_v58 = vpop.eup %7403  ;;  %v3400_v26 = vadd.f32 1e-05, %v3368_v54  ;;  %v3561_v44 = vmax.f32 %v3529_v21, 0.0  ;;  %v3493_v3 = vmul.f32 %v9984_v53, %v3455_v32 }
 0x920   :  { %v7406_v0 = vpop.eup %7405  ;;  %v3399_v47 = vadd.f32 1e-05, %v3367_v14  ;;  %v3332_v49 = vpop.xlane.xlu1 %3331  ;;  %v3532_v59 = vadd.f32 %v9988_v35, %v3494_v18  ;;  %v3458_v28 = vmul.f32 %v7404_v58, %v9892_v23 }
 0x921   :  { %7415 = vrsqrt.f32 %v3400_v26  ;;  %v3370_v17 = vmul.f32 0.0078125, %v3332_v49  ;;  %6672 = vmatprep.mubr.f32.mxu0 %v3561_v44  ;;  %v3330_v22 = vpop.xlane.xlu0 %3329  ;;  %v3531_v42 = vadd.f32 %v9988_v35, %v3493_v3  ;;  %v3457_v2 = vmul.f32 %v7406_v0, %v9895_v50 }
 0x922   :  { %7417 = vrsqrt.f32 %v3399_v47  ;;  %v3369_v6 = vmul.f32 0.0078125, %v3330_v22  ;;  %6673 = vmatmul.mubr.f32.gmra.mrb[60].mxu0 %v3562_v62  ;;  %v3496_v36 = vmul.f32 %v9984_v53, %v3458_v28  ;;  %v3564_v13 = vmax.f32 %v3532_v59, 0.0 }
 0x923   :  { %v7408_v4 = vpop.eup %7407  ;;  %v3402_v60 = vadd.f32 1e-05, %v3370_v17  ;;  %v3563_v29 = vmax.f32 %v3531_v42, 0.0  ;;  %v3495_v39 = vmul.f32 %v9984_v53, %v3457_v2 }
 0x924   :  { %v7410_v41 = vpop.eup %7409  ;;  %v3401_v23 = vadd.f32 1e-05, %v3369_v6  ;;  %v3336_v8 = vpop.xlane.xlu1 %3335  ;;  %v3534_v9 = vadd.f32 %v9988_v35, %v3496_v36  ;;  %v3460_v5 = vmul.f32 %v7408_v4, %v9908_v16 }
 0x925   :  { %7419 = vrsqrt.f32 %v3402_v60  ;;  %v3372_v50 = vmul.f32 0.0078125, %v3336_v8  ;;  %6675 = vmatprep.mubr.f32.mxu0 %v3563_v29  ;;  %v3334_v11 = vpop.xlane.xlu0 %3333  ;;  %v3533_v15 = vadd.f32 %v9988_v35, %v3495_v39  ;;  %v3459_v43 = vmul.f32 %v7410_v41, %v9911_v30 }
 0x926   :  { %7421 = vrsqrt.f32 %v3401_v23  ;;  %v3371_v61 = vmul.f32 0.0078125, %v3334_v11  ;;  %6676 = vmatmul.mubr.f32.gmra.mrb[62].mxu0 %v3564_v13  ;;  %v3498_v10 = vmul.f32 %v9984_v53, %v3460_v5  ;;  %v3566_v52 = vmax.f32 %v3534_v9, 0.0 }
 0x927   :  { %v7412_v40 = vpop.eup %7411  ;;  %v3404_v48 = vadd.f32 1e-05, %v3372_v50  ;;  %v3565_v56 = vmax.f32 %v3533_v15, 0.0  ;;  %v3497_v45 = vmul.f32 %v9984_v53, %v3459_v43 }
 0x928   :  { %v7414_v55 = vpop.eup %7413  ;;  %v3403_v16 = vadd.f32 1e-05, %v3371_v61  ;;  %v3340_v31 = vpop.xlane.xlu1 %3339  ;;  %v3536_v46 = vadd.f32 %v9988_v35, %v3498_v10  ;;  %v3462_v54 = vmul.f32 %v7412_v40, %v9920_v34 }
 0x929   :  { %7423 = vrsqrt.f32 %v3404_v48  ;;  %v3374_v30 = vmul.f32 0.0078125, %v3340_v31  ;;  %6678 = vmatprep.mubr.f32.mxu0 %v3565_v56  ;;  %v3338_v27 = vpop.xlane.xlu0 %3337  ;;  %v3535_v21 = vadd.f32 %v9988_v35, %v3497_v45  ;;  %v3461_v32 = vmul.f32 %v7414_v55, %v9923_v38 }
 0x92a   :  { %7425 = vrsqrt.f32 %v3403_v16  ;;  %v3373_v14 = vmul.f32 0.0078125, %v3338_v27  ;;  %6679 = vmatmul.mubr.f32.gmra.mrb[64].mxu0 %v3566_v52  ;;  %v3500_v18 = vmul.f32 %v9984_v53, %v3462_v54  ;;  %v3568_v49 = vmax.f32 %v3536_v46, 0.0 }
 0x92b   :  { %v7416_v58 = vpop.eup %7415  ;;  %v3406_v26 = vadd.f32 1e-05, %v3374_v30  ;;  %v3567_v44 = vmax.f32 %v3535_v21, 0.0  ;;  %v3499_v3 = vmul.f32 %v9984_v53, %v3461_v32 }
 0x92c   :  { %v7418_v0 = vpop.eup %7417  ;;  %v3405_v34 = vadd.f32 1e-05, %v3373_v14  ;;  %v3344_v47 = vpop.xlane.xlu1 %3343  ;;  %v3538_v62 = vadd.f32 %v9988_v35, %v3500_v18  ;;  %v3464_v59 = vmul.f32 %v7416_v58, %v9932_v20 }
 0x92d   :  { %7427 = vrsqrt.f32 %v3406_v26  ;;  %v3376_v38 = vmul.f32 0.0078125, %v3344_v47  ;;  %6681 = vmatprep.mubr.f32.mxu0 %v3567_v44  ;;  %v3342_v28 = vpop.xlane.xlu0 %3341  ;;  %v3537_v17 = vadd.f32 %v9988_v35, %v3499_v3  ;;  %v3463_v22 = vmul.f32 %v7418_v0, %v9935_v19  ;;  %v10086_v47 = vld [vmem:[%s11334_s29] ss:$0 sm:$0xff] }
 0x92e   :  { %7429 = vrsqrt.f32 %v3405_v34  ;;  %v3375_v42 = vmul.f32 0.0078125, %v3342_v28  ;;  %6682 = vmatmul.mubr.f32.gmra.mrb[66].mxu0 %v3568_v49  ;;  %v3502_v2 = vmul.f32 %v9984_v53, %v3464_v59  ;;  %v3570_v39 = vmax.f32 %v3538_v62, 0.0 }
 0x92f   :  { %v7420_v6 = vpop.eup %7419  ;;  %v3408_v36 = vadd.f32 1e-05, %v3376_v38  ;;  %v3569_v4 = vmax.f32 %v3537_v17, 0.0  ;;  %v3501_v60 = vmul.f32 %v9984_v53, %v3463_v22 }
 0x930   :  { %v7422_v29 = vpop.eup %7421  ;;  %v3407_v20 = vadd.f32 1e-05, %v3375_v42  ;;  %v3540_v41 = vadd.f32 %v9988_v35, %v3502_v2  ;;  %v3466_v23 = vmul.f32 %v7420_v6, %v9944_v57 }
 0x931   :  { %7431 = vrsqrt.f32 %v3408_v36  ;;  %6684 = vmatprep.mubr.f32.mxu0 %v3569_v4  ;;  %v3539_v19 = vadd.f32 %v9988_v35, %v3501_v60  ;;  %v3465_v8 = vmul.f32 %v7422_v29, %v9947_v24 }
 0x932   :  { %7433 = vrsqrt.f32 %v3407_v20  ;;  %6685 = vmatmul.mubr.f32.gmra.mrb[68].mxu0 %v3570_v39  ;;  %v3504_v13 = vmul.f32 %v9984_v53, %v3466_v23  ;;  %v3572_v15 = vmax.f32 %v3540_v41, 0.0 }
 0x933   :  { %v7424_v9 = vpop.eup %7423  ;;  %v3571_v5 = vmax.f32 %v3539_v19, 0.0  ;;  %v3503_v50 = vmul.f32 %v9984_v53, %v3465_v8 }
 0x934   :  { %v7426_v11 = vpop.eup %7425  ;;  %v3542_v43 = vadd.f32 %v9988_v35, %v3504_v13  ;;  %v3468_v57 = vmul.f32 %v7424_v9, %v9954_v37 }
 0x935   :  { %6687 = vmatprep.mubr.f32.mxu0 %v3571_v5  ;;  %v3541_v61 = vadd.f32 %v9988_v35, %v3503_v50  ;;  %v3467_v10 = vmul.f32 %v7426_v11, %v9957_v7 }
 0x936   :  { %6688 = vmatmul.mubr.f32.gmra.mrb[70].mxu0 %v3572_v15  ;;  %v3506_v24 = vmul.f32 %v9984_v53, %v3468_v57  ;;  %v3574_v55 = vmax.f32 %v3542_v43, 0.0 }
 0x937   :  { %v7428_v40 = vpop.eup %7427  ;;  %v3573_v48 = vmax.f32 %v3541_v61, 0.0  ;;  %v3505_v56 = vmul.f32 %v9984_v53, %v3467_v10 }
 0x938   :  { %v7430_v45 = vpop.eup %7429  ;;  %v3544_v16 = vadd.f32 %v9988_v35, %v3506_v24  ;;  %v3470_v31 = vmul.f32 %v7428_v40, %v9964_v1 }
 0x939   :  { %6690 = vmatprep.mubr.f32.mxu0 %v3573_v48  ;;  %v3543_v37 = vadd.f32 %v9988_v35, %v3505_v56  ;;  %v3469_v52 = vmul.f32 %v7430_v45, %v9967_v51 }
 0x93a   :  { %6691 = vmatmul.mubr.f32.gmra.mrb[72].mxu0 %v3574_v55  ;;  %v3508_v7 = vmul.f32 %v9984_v53, %v3470_v31  ;;  %v3576_v21 = vmax.f32 %v3544_v16, 0.0 }
 0x93b   :  { %v7432_v46 = vpop.eup %7431  ;;  %v3575_v54 = vmax.f32 %v3543_v37, 0.0  ;;  %v3507_v30 = vmul.f32 %v9984_v53, %v3469_v52 }
 0x93c   :  { %v7434_v27 = vpop.eup %7433  ;;  %v3546_v32 = vadd.f32 %v9988_v35, %v3508_v7  ;;  %v3472_v14 = vmul.f32 %v7432_v46, %v9974_v25 }
 0x93d   :  { %6693 = vmatprep.mubr.f32.mxu0 %v3575_v54  ;;  %v3545_v1 = vadd.f32 %v9988_v35, %v3507_v30  ;;  %v3471_v18 = vmul.f32 %v7434_v27, %v9977_v12 }
 0x93e   :  { %6694 = vmatmul.mubr.f32.gmra.mrb[74].mxu0 %v3576_v21  ;;  %v3510_v51 = vmul.f32 %v9984_v53, %v3472_v14  ;;  %v3578_v44 = vmax.f32 %v3546_v32, 0.0 }
 0x93f   :  { %v3577_v58 = vmax.f32 %v3545_v1, 0.0  ;;  %v3509_v26 = vmul.f32 %v9984_v53, %v3471_v18 }
 0x940   :  { %v3548_v3 = vadd.f32 %v9988_v35, %v3510_v51 }
 0x941   :  { %6696 = vmatprep.mubr.f32.mxu0 %v3577_v58  ;;  %v3547_v0 = vadd.f32 %v9988_v35, %v3509_v26 }
 0x942   :  { %6697 = vmatmul.mubr.f32.gmra.mrb[76].mxu0 %v3578_v44  ;;  %v3580_v34 = vmax.f32 %v3548_v3, 0.0 }
 0x943   :  { %v3579_v25 = vmax.f32 %v3547_v0, 0.0 }
 0x945   :  { %6699 = vmatprep.mubr.f32.mxu0 %v3579_v25 }
 0x946   :  { %6700 = vmatmul.mubr.f32.gmra.mrb[78].mxu0 %v3580_v34 }
 0x9dd   :  { %v6656_v12 = vpop.f32.mrb[48].mxu0 }
 0x9de   :  { %v10089_v49 = vadd.f32 %v6656_v12, %v10086_v47  ;;  %v3670_v62 = vpop.f32.mrb[49].mxu0 }
 0x9df   :  { %v10092_v53 = vadd.f32 %v10086_v47, %v3670_v62 }
 0x9e0   :  { %3833 = vadd.xlane.f32.xlu1 %v10089_v49 }
 0x9e1   :  { %3831 = vadd.xlane.f32.xlu0 %v10092_v53  ;;  %v6659_v35 = vpop.f32.mrb[50].mxu0 }
 0x9e2   :  { %v10097_v59 = vadd.f32 %v6659_v35, %v10086_v47  ;;  %v3680_v38 = vpop.f32.mrb[51].mxu0 }
 0x9e3   :  { %v10100_v28 = vadd.f32 %v10086_v47, %v3680_v38 }
 0x9e4   :  { %3837 = vadd.xlane.f32.xlu1 %v10097_v59 }
 0x9e5   :  { %3835 = vadd.xlane.f32.xlu0 %v10100_v28  ;;  %v6662_v17 = vpop.f32.mrb[52].mxu0 }
 0x9e6   :  { %v10105_v22 = vadd.f32 %v6662_v17, %v10086_v47  ;;  %v3690_v42 = vpop.f32.mrb[53].mxu0 }
 0x9e7   :  { %v10108_v2 = vadd.f32 %v10086_v47, %v3690_v42 }
 0x9e8   :  { %3841 = vadd.xlane.f32.xlu1 %v10105_v22 }
 0x9e9   :  { %3839 = vadd.xlane.f32.xlu0 %v10108_v2  ;;  %v6665_v6 = vpop.f32.mrb[54].mxu0 }
 0x9ea   :  { %v10113_v36 = vadd.f32 %v6665_v6, %v10086_v47  ;;  %v3700_v4 = vpop.f32.mrb[55].mxu0 }
 0x9eb   :  { %v10116_v60 = vadd.f32 %v10086_v47, %v3700_v4 }
 0x9ec   :  { %3845 = vadd.xlane.f32.xlu1 %v10113_v36 }
 0x9ed   :  { %3843 = vadd.xlane.f32.xlu0 %v10116_v60  ;;  %v6668_v29 = vpop.f32.mrb[56].mxu0 }
 0x9ee   :  { %v10121_v20 = vadd.f32 %v6668_v29, %v10086_v47  ;;  %v3710_v39 = vpop.f32.mrb[57].mxu0 }
 0x9ef   :  { %v10124_v41 = vadd.f32 %v10086_v47, %v3710_v39 }
 0x9f0   :  { %3849 = vadd.xlane.f32.xlu1 %v10121_v20 }
 0x9f1   :  { %3847 = vadd.xlane.f32.xlu0 %v10124_v41  ;;  %v6671_v23 = vpop.f32.mrb[58].mxu0 }
 0x9f2   :  { %v10129_v19 = vadd.f32 %v6671_v23, %v10086_v47  ;;  %v3720_v8 = vpop.f32.mrb[59].mxu0 }
 0x9f3   :  { %v10132_v13 = vadd.f32 %v10086_v47, %v3720_v8 }
 0x9f4   :  { %3853 = vadd.xlane.f32.xlu1 %v10129_v19 }
 0x9f5   :  { %3851 = vadd.xlane.f32.xlu0 %v10132_v13  ;;  %v6674_v9 = vpop.f32.mrb[60].mxu0 }
 0x9f6   :  { %v10137_v5 = vadd.f32 %v6674_v9, %v10086_v47  ;;  %v3730_v50 = vpop.f32.mrb[61].mxu0 }
 0x9f7   :  { %v10140_v11 = vadd.f32 %v10086_v47, %v3730_v50 }
 0x9f8   :  { %3857 = vadd.xlane.f32.xlu1 %v10137_v5 }
 0x9f9   :  { %3855 = vadd.xlane.f32.xlu0 %v10140_v11  ;;  %v6677_v15 = vpop.f32.mrb[62].mxu0 }
 0x9fa   :  { %v10145_v43 = vadd.f32 %v6677_v15, %v10086_v47  ;;  %v3740_v57 = vpop.f32.mrb[63].mxu0 }
 0x9fb   :  { %v10148_v61 = vadd.f32 %v10086_v47, %v3740_v57 }
 0x9fc   :  { %3861 = vadd.xlane.f32.xlu1 %v10145_v43 }
 0x9fd   :  { %3859 = vadd.xlane.f32.xlu0 %v10148_v61  ;;  %v6680_v10 = vpop.f32.mrb[64].mxu0 }
 0x9fe   :  { %v10153_v24 = vadd.f32 %v6680_v10, %v10086_v47  ;;  %v3750_v40 = vpop.f32.mrb[65].mxu0 }
 0x9ff   :  { %v10156_v48 = vadd.f32 %v10086_v47, %v3750_v40 }
 0xa00   :  { %3865 = vadd.xlane.f32.xlu1 %v10153_v24 }
 0xa01   :  { %3863 = vadd.xlane.f32.xlu0 %v10156_v48  ;;  %v6683_v56 = vpop.f32.mrb[66].mxu0 }
 0xa02   :  { %v10161_v45 = vadd.f32 %v6683_v56, %v10086_v47  ;;  %v3760_v55 = vpop.f32.mrb[67].mxu0 }
 0xa03   :  { %v10164_v16 = vadd.f32 %v10086_v47, %v3760_v55 }
 0xa04   :  { %3869 = vadd.xlane.f32.xlu1 %v10161_v45 }
 0xa05   :  { %3867 = vadd.xlane.f32.xlu0 %v10164_v16  ;;  %v6686_v31 = vpop.f32.mrb[68].mxu0 }
 0xa06   :  { %v10169_v37 = vadd.f32 %v6686_v31, %v10086_v47  ;;  %v3770_v52 = vpop.f32.mrb[69].mxu0 }
 0xa07   :  { %v10172_v7 = vadd.f32 %v10086_v47, %v3770_v52 }
 0xa08   :  { %3873 = vadd.xlane.f32.xlu1 %v10169_v37 }
 0xa09   :  { %3871 = vadd.xlane.f32.xlu0 %v10172_v7  ;;  %v6689_v46 = vpop.f32.mrb[70].mxu0 }
 0xa0a   :  { %v10177_v54 = vadd.f32 %v6689_v46, %v10086_v47  ;;  %v3780_v30 = vpop.f32.mrb[71].mxu0 }
 0xa0b   :  { %v10180_v27 = vadd.f32 %v10086_v47, %v3780_v30 }
 0xa0c   :  { %3877 = vadd.xlane.f32.xlu1 %v10177_v54 }
 0xa0d   :  { %3875 = vadd.xlane.f32.xlu0 %v10180_v27  ;;  %v6692_v21 = vpop.f32.mrb[72].mxu0 }
 0xa0e   :  { %v10185_v32 = vadd.f32 %v6692_v21, %v10086_v47  ;;  %v3790_v14 = vpop.f32.mrb[73].mxu0 }
 0xa0f   :  { %v10188_v1 = vadd.f32 %v10086_v47, %v3790_v14 }
 0xa10   :  { %3881 = vadd.xlane.f32.xlu1 %v10185_v32 }
 0xa11   :  { %3879 = vadd.xlane.f32.xlu0 %v10188_v1  ;;  %v6695_v18 = vpop.f32.mrb[74].mxu0 }
 0xa12   :  { %v10193_v51 = vadd.f32 %v6695_v18, %v10086_v47  ;;  %v3800_v58 = vpop.f32.mrb[75].mxu0 }
 0xa13   :  { %v10196_v26 = vadd.f32 %v10086_v47, %v3800_v58 }
 0xa14   :  { %3885 = vadd.xlane.f32.xlu1 %v10193_v51 }
 0xa15   :  { %3883 = vadd.xlane.f32.xlu0 %v10196_v26  ;;  %v6698_v44 = vpop.f32.mrb[76].mxu0 }
 0xa16   :  { %v10201_v3 = vadd.f32 %v6698_v44, %v10086_v47  ;;  %v3810_v0 = vpop.f32.mrb[77].mxu0 }
 0xa17   :  { %v10204_v25 = vadd.f32 %v10086_v47, %v3810_v0 }
 0xa18   :  { %3889 = vadd.xlane.f32.xlu1 %v10201_v3 }
 0xa19   :  { %3887 = vadd.xlane.f32.xlu0 %v10204_v25  ;;  %v6701_v34 = vpop.f32.mrb[78].mxu0 }
 0xa1a   :  { %v10209_v12 = vadd.f32 %v6701_v34, %v10086_v47  ;;  %v3820_v62 = vpop.f32.mrb[79].mxu0 }
 0xa1b   :  { %v10212_v35 = vadd.f32 %v10086_v47, %v3820_v62 }
 0xa1c   :  { %3893 = vadd.xlane.f32.xlu1 %v10209_v12 }
 0xa1d   :  { %3891 = vadd.xlane.f32.xlu0 %v10212_v35 }
 0xa6d   :  { %v3834_v38 = vpop.xlane.xlu1 %3833 }
 0xa6e   :  { %v3896_v17 = vmul.f32 0.0078125, %v3834_v38  ;;  %v3832_v42 = vpop.xlane.xlu0 %3831 }
 0xa6f   :  { %v3895_v6 = vmul.f32 0.0078125, %v3832_v42 }
 0xa70   :  { %v10217_v4 = vsub.f32 %v10089_v49, %v3896_v17 }
 0xa71   :  { %v10220_v29 = vsub.f32 %v10092_v53, %v3895_v6  ;;  %v3838_v39 = vpop.xlane.xlu1 %3837 }
 0xa72   :  { %v3898_v23 = vmul.f32 0.0078125, %v3838_v39  ;;  %v3836_v8 = vpop.xlane.xlu0 %3835  ;;  %v3960_v47 = vmul.f32 %v10217_v4, %v10217_v4 }
 0xa73   :  { %v3897_v9 = vmul.f32 0.0078125, %v3836_v8  ;;  %v3959_v50 = vmul.f32 %v10220_v29, %v10220_v29 }
 0xa74   :  { %v10227_v15 = vsub.f32 %v10097_v59, %v3898_v23  ;;  %3993 = vadd.xlane.f32.xlu1 %v3960_v47 }
 0xa75   :  { %v10230_v49 = vsub.f32 %v10100_v28, %v3897_v9  ;;  %v3842_v57 = vpop.xlane.xlu1 %3841  ;;  %3991 = vadd.xlane.f32.xlu0 %v3959_v50 }
 0xa76   :  { %v3900_v53 = vmul.f32 0.0078125, %v3842_v57  ;;  %v3840_v10 = vpop.xlane.xlu0 %3839  ;;  %v3962_v40 = vmul.f32 %v10227_v15, %v10227_v15 }
 0xa77   :  { %v3899_v56 = vmul.f32 0.0078125, %v3840_v10  ;;  %v3961_v55 = vmul.f32 %v10230_v49, %v10230_v49 }
 0xa78   :  { %v10237_v31 = vsub.f32 %v10105_v22, %v3900_v53  ;;  %3997 = vadd.xlane.f32.xlu1 %v3962_v40 }
 0xa79   :  { %v10240_v59 = vsub.f32 %v10108_v2, %v3899_v56  ;;  %v3846_v28 = vpop.xlane.xlu1 %3845  ;;  %3995 = vadd.xlane.f32.xlu0 %v3961_v55 }
 0xa7a   :  { %v3902_v52 = vmul.f32 0.0078125, %v3846_v28  ;;  %v3844_v46 = vpop.xlane.xlu0 %3843  ;;  %v3964_v30 = vmul.f32 %v10237_v31, %v10237_v31 }
 0xa7b   :  { %v3901_v21 = vmul.f32 0.0078125, %v3844_v46  ;;  %v3963_v14 = vmul.f32 %v10240_v59, %v10240_v59 }
 0xa7c   :  { %v10247_v18 = vsub.f32 %v10113_v36, %v3902_v52  ;;  %4001 = vadd.xlane.f32.xlu1 %v3964_v30 }
 0xa7d   :  { %v10250_v22 = vsub.f32 %v10116_v60, %v3901_v21  ;;  %v3850_v2 = vpop.xlane.xlu1 %3849  ;;  %3999 = vadd.xlane.f32.xlu0 %v3963_v14 }
 0xa7e   :  { %v3904_v58 = vmul.f32 0.0078125, %v3850_v2  ;;  %v3848_v44 = vpop.xlane.xlu0 %3847  ;;  %v3966_v0 = vmul.f32 %v10247_v18, %v10247_v18 }
 0xa7f   :  { %v3903_v34 = vmul.f32 0.0078125, %v3848_v44  ;;  %v3965_v62 = vmul.f32 %v10250_v22, %v10250_v22 }
 0xa80   :  { %v10257_v38 = vsub.f32 %v10121_v20, %v3904_v58  ;;  %4005 = vadd.xlane.f32.xlu1 %v3966_v0 }
 0xa81   :  { %v10260_v36 = vsub.f32 %v10124_v41, %v3903_v34  ;;  %v3854_v60 = vpop.xlane.xlu1 %3853  ;;  %4003 = vadd.xlane.f32.xlu0 %v3965_v62 }
 0xa82   :  { %v3906_v17 = vmul.f32 0.0078125, %v3854_v60  ;;  %v3852_v42 = vpop.xlane.xlu0 %3851  ;;  %v3968_v6 = vmul.f32 %v10257_v38, %v10257_v38 }
 0xa83   :  { %v3905_v39 = vmul.f32 0.0078125, %v3852_v42  ;;  %v3967_v23 = vmul.f32 %v10260_v36, %v10260_v36 }
 0xa84   :  { %v10267_v8 = vsub.f32 %v10129_v19, %v3906_v17  ;;  %4009 = vadd.xlane.f32.xlu1 %v3968_v6 }
 0xa85   :  { %v10270_v20 = vsub.f32 %v10132_v13, %v3905_v39  ;;  %v3858_v41 = vpop.xlane.xlu1 %3857  ;;  %4007 = vadd.xlane.f32.xlu0 %v3967_v23 }
 0xa86   :  { %v3908_v47 = vmul.f32 0.0078125, %v3858_v41  ;;  %v3856_v9 = vpop.xlane.xlu0 %3855  ;;  %v3970_v50 = vmul.f32 %v10267_v8, %v10267_v8 }
 0xa87   :  { %v3907_v57 = vmul.f32 0.0078125, %v3856_v9  ;;  %v3969_v53 = vmul.f32 %v10270_v20, %v10270_v20 }
 0xa88   :  { %v10277_v10 = vsub.f32 %v10137_v5, %v3908_v47  ;;  %4013 = vadd.xlane.f32.xlu1 %v3970_v50 }
 0xa89   :  { %v10280_v19 = vsub.f32 %v10140_v11, %v3907_v57  ;;  %v3862_v13 = vpop.xlane.xlu1 %3861  ;;  %4011 = vadd.xlane.f32.xlu0 %v3969_v53 }
 0xa8a   :  { %v3910_v40 = vmul.f32 0.0078125, %v3862_v13  ;;  %v3860_v56 = vpop.xlane.xlu0 %3859  ;;  %v3972_v55 = vmul.f32 %v10277_v10, %v10277_v10 }
 0xa8b   :  { %v3909_v28 = vmul.f32 0.0078125, %v3860_v56  ;;  %v3971_v52 = vmul.f32 %v10280_v19, %v10280_v19 }
 0xa8c   :  { %v10287_v46 = vsub.f32 %v10145_v43, %v3910_v40  ;;  %4017 = vadd.xlane.f32.xlu1 %v3972_v55 }
 0xa8d   :  { %v10290_v5 = vsub.f32 %v10148_v61, %v3909_v28  ;;  %v3866_v11 = vpop.xlane.xlu1 %3865  ;;  %4015 = vadd.xlane.f32.xlu0 %v3971_v52 }
 0xa8e   :  { %v3912_v30 = vmul.f32 0.0078125, %v3866_v11  ;;  %v3864_v21 = vpop.xlane.xlu0 %3863  ;;  %v3974_v14 = vmul.f32 %v10287_v46, %v10287_v46 }
 0xa8f   :  { %v3911_v2 = vmul.f32 0.0078125, %v3864_v21  ;;  %v3973_v58 = vmul.f32 %v10290_v5, %v10290_v5 }
 0xa90   :  { %v10297_v44 = vsub.f32 %v10153_v24, %v3912_v30  ;;  %4021 = vadd.xlane.f32.xlu1 %v3974_v14 }
 0xa91   :  { %v10300_v43 = vsub.f32 %v10156_v48, %v3911_v2  ;;  %v3870_v61 = vpop.xlane.xlu1 %3869  ;;  %4019 = vadd.xlane.f32.xlu0 %v3973_v58 }
 0xa92   :  { %v3914_v0 = vmul.f32 0.0078125, %v3870_v61  ;;  %v3868_v34 = vpop.xlane.xlu0 %3867  ;;  %v3976_v62 = vmul.f32 %v10297_v44, %v10297_v44 }
 0xa93   :  { %v3913_v60 = vmul.f32 0.0078125, %v3868_v34  ;;  %v3975_v17 = vmul.f32 %v10300_v43, %v10300_v43 }
 0xa94   :  { %v10307_v42 = vsub.f32 %v10161_v45, %v3914_v0  ;;  %4025 = vadd.xlane.f32.xlu1 %v3976_v62 }
 0xa95   :  { %v10310_v24 = vsub.f32 %v10164_v16, %v3913_v60  ;;  %v3874_v48 = vpop.xlane.xlu1 %3873  ;;  %4023 = vadd.xlane.f32.xlu0 %v3975_v17 }
 0xa96   :  { %v3916_v6 = vmul.f32 0.0078125, %v3874_v48  ;;  %v3872_v39 = vpop.xlane.xlu0 %3871  ;;  %v3978_v23 = vmul.f32 %v10307_v42, %v10307_v42 }
 0xa97   :  { %v3915_v41 = vmul.f32 0.0078125, %v3872_v39  ;;  %v3977_v47 = vmul.f32 %v10310_v24, %v10310_v24 }
 0xa98   :  { %v10317_v9 = vsub.f32 %v10169_v37, %v3916_v6  ;;  %4029 = vadd.xlane.f32.xlu1 %v3978_v23 }
 0xa99   :  { %v10320_v45 = vsub.f32 %v10172_v7, %v3915_v41  ;;  %v3878_v16 = vpop.xlane.xlu1 %3877  ;;  %4027 = vadd.xlane.f32.xlu0 %v3977_v47 }
 0xa9a   :  { %v3918_v50 = vmul.f32 0.0078125, %v3878_v16  ;;  %v3876_v57 = vpop.xlane.xlu0 %3875  ;;  %v3980_v53 = vmul.f32 %v10317_v9, %v10317_v9 }
 0xa9b   :  { %v3917_v13 = vmul.f32 0.0078125, %v3876_v57  ;;  %v3979_v40 = vmul.f32 %v10320_v45, %v10320_v45 }
 0xa9c   :  { %v10327_v56 = vsub.f32 %v10177_v54, %v3918_v50  ;;  %4033 = vadd.xlane.f32.xlu1 %v3980_v53 }
 0xa9d   :  { %v10330_v37 = vsub.f32 %v10180_v27, %v3917_v13  ;;  %v3882_v7 = vpop.xlane.xlu1 %3881  ;;  %4031 = vadd.xlane.f32.xlu0 %v3979_v40 }
 0xa9e   :  { %v3920_v55 = vmul.f32 0.0078125, %v3882_v7  ;;  %v3880_v28 = vpop.xlane.xlu0 %3879  ;;  %v3982_v52 = vmul.f32 %v10327_v56, %v10327_v56 }
 0xa9f   :  { %v3919_v11 = vmul.f32 0.0078125, %v3880_v28  ;;  %v3981_v30 = vmul.f32 %v10330_v37, %v10330_v37 }
 0xaa0   :  { %v10337_v21 = vsub.f32 %v10185_v32, %v3920_v55  ;;  %4037 = vadd.xlane.f32.xlu1 %v3982_v52 }
 0xaa1   :  { %v10340_v54 = vsub.f32 %v10188_v1, %v3919_v11  ;;  %v3886_v27 = vpop.xlane.xlu1 %3885  ;;  %4035 = vadd.xlane.f32.xlu0 %v3981_v30 }
 0xaa2   :  { %v3922_v14 = vmul.f32 0.0078125, %v3886_v27  ;;  %v3884_v2 = vpop.xlane.xlu0 %3883  ;;  %v3984_v58 = vmul.f32 %v10337_v21, %v10337_v21 }
 0xaa3   :  { %v3921_v61 = vmul.f32 0.0078125, %v3884_v2  ;;  %v3983_v0 = vmul.f32 %v10340_v54, %v10340_v54 }
 0xaa4   :  { %v10347_v34 = vsub.f32 %v10193_v51, %v3922_v14  ;;  %4041 = vadd.xlane.f32.xlu1 %v3984_v58 }
 0xaa5   :  { %v10350_v32 = vsub.f32 %v10196_v26, %v3921_v61  ;;  %v3890_v1 = vpop.xlane.xlu1 %3889  ;;  %4039 = vadd.xlane.f32.xlu0 %v3983_v0 }
 0xaa6   :  { %v3924_v62 = vmul.f32 0.0078125, %v3890_v1  ;;  %v3888_v60 = vpop.xlane.xlu0 %3887  ;;  %v3986_v17 = vmul.f32 %v10347_v34, %v10347_v34 }
 0xaa7   :  { %v3923_v48 = vmul.f32 0.0078125, %v3888_v60  ;;  %v3985_v6 = vmul.f32 %v10350_v32, %v10350_v32 }
 0xaa8   :  { %v10357_v39 = vsub.f32 %v10201_v3, %v3924_v62  ;;  %4045 = vadd.xlane.f32.xlu1 %v3986_v17 }
 0xaa9   :  { %v10360_v51 = vsub.f32 %v10204_v25, %v3923_v48  ;;  %v3894_v26 = vpop.xlane.xlu1 %3893  ;;  %4043 = vadd.xlane.f32.xlu0 %v3985_v6 }
 0xaaa   :  { %v3926_v23 = vmul.f32 0.0078125, %v3894_v26  ;;  %v3892_v41 = vpop.xlane.xlu0 %3891  ;;  %v3988_v47 = vmul.f32 %v10357_v39, %v10357_v39 }
 0xaab   :  { %v3925_v16 = vmul.f32 0.0078125, %v3892_v41  ;;  %v3987_v50 = vmul.f32 %v10360_v51, %v10360_v51  ;;  %v10377_v41 = vld [vmem:[%s11335_s3] ss:$0 sm:$0xff] }
 0xaac   :  { %v10367_v57 = vsub.f32 %v10209_v12, %v3926_v23  ;;  %4049 = vadd.xlane.f32.xlu1 %v3988_v47 }
 0xaad   :  { %v10370_v3 = vsub.f32 %v10212_v35, %v3925_v16  ;;  %4047 = vadd.xlane.f32.xlu0 %v3987_v50 }
 0xaae   :  { %v3990_v25 = vmul.f32 %v10367_v57, %v10367_v57 }
 0xaaf   :  { %v3989_v53 = vmul.f32 %v10370_v3, %v10370_v3 }
 0xab0   :  { %4053 = vadd.xlane.f32.xlu1 %v3990_v25 }
 0xab1   :  { %4051 = vadd.xlane.f32.xlu0 %v3989_v53 }
 0xb01   :  { %v3994_v13 = vpop.xlane.xlu1 %3993 }
 0xb02   :  { %v4056_v40 = vmul.f32 0.0078125, %v3994_v13  ;;  %v3992_v7 = vpop.xlane.xlu0 %3991 }
 0xb03   :  { %v4055_v55 = vmul.f32 0.0078125, %v3992_v7 }
 0xb04   :  { %v4088_v28 = vadd.f32 1e-05, %v4056_v40  ;;  %v10381_v40 = vld [vmem:[%s11336_s8] ss:$0 sm:$0xff] }
 0xb05   :  { %v4087_v12 = vadd.f32 1e-05, %v4055_v55  ;;  %v3998_v52 = vpop.xlane.xlu1 %3997 }
 0xb06   :  { %7435 = vrsqrt.f32 %v4088_v28  ;;  %v4058_v11 = vmul.f32 0.0078125, %v3998_v52  ;;  %v3996_v35 = vpop.xlane.xlu0 %3995 }
 0xb07   :  { %7437 = vrsqrt.f32 %v4087_v12  ;;  %v4057_v30 = vmul.f32 0.0078125, %v3996_v35 }
 0xb08   :  { %v4090_v27 = vadd.f32 1e-05, %v4058_v11 }
 0xb09   :  { %v4089_v14 = vadd.f32 1e-05, %v4057_v30  ;;  %v4002_v2 = vpop.xlane.xlu1 %4001 }
 0xb0a   :  { %7439 = vrsqrt.f32 %v4090_v27  ;;  %v4060_v58 = vmul.f32 0.0078125, %v4002_v2  ;;  %v4000_v61 = vpop.xlane.xlu0 %3999 }
 0xb0b   :  { %7441 = vrsqrt.f32 %v4089_v14  ;;  %v4059_v0 = vmul.f32 0.0078125, %v4000_v61 }
 0xb0c   :  { %v4092_v1 = vadd.f32 1e-05, %v4060_v58 }
 0xb0d   :  { %v4091_v62 = vadd.f32 1e-05, %v4059_v0  ;;  %v4006_v60 = vpop.xlane.xlu1 %4005 }
 0xb0e   :  { %7443 = vrsqrt.f32 %v4092_v1  ;;  %v4062_v17 = vmul.f32 0.0078125, %v4006_v60  ;;  %v4004_v48 = vpop.xlane.xlu0 %4003 }
 0xb0f   :  { %7445 = vrsqrt.f32 %v4091_v62  ;;  %v4061_v6 = vmul.f32 0.0078125, %v4004_v48 }
 0xb10   :  { %v7436_v26 = vpop.eup %7435  ;;  %v4094_v23 = vadd.f32 1e-05, %v4062_v17 }
 0xb11   :  { %v7438_v47 = vpop.eup %7437  ;;  %v4093_v16 = vadd.f32 1e-05, %v4061_v6  ;;  %v4010_v50 = vpop.xlane.xlu1 %4009  ;;  %v4152_v25 = vmul.f32 %v7436_v26, %v10217_v4 }
 0xb12   :  { %7447 = vrsqrt.f32 %v4094_v23  ;;  %v4064_v53 = vmul.f32 0.0078125, %v4010_v50  ;;  %v4008_v13 = vpop.xlane.xlu0 %4007  ;;  %v4151_v7 = vmul.f32 %v7438_v47, %v10220_v29  ;;  %v11337_v47 = vld [vmem:[#allocation29_spill] sm:$0xff] }
 0xb13   :  { %7449 = vrsqrt.f32 %v4093_v16  ;;  %v4063_v55 = vmul.f32 0.0078125, %v4008_v13  ;;  %v4190_v28 = vmul.f32 %v10377_v41, %v4152_v25  ;;  %v11338_v16 = vmax.f32 %v11337_v47, 0.0 }
 0xb14   :  { %v7440_v12 = vpop.eup %7439  ;;  %v4096_v52 = vadd.f32 1e-05, %v4064_v53  ;;  %v4189_v11 = vmul.f32 %v10377_v41, %v4151_v7  ;;  %v11339_v7 = vld [vmem:[#allocation28_spill] sm:$0xff] }
 0xb15   :  { %v7442_v35 = vpop.eup %7441  ;;  %v4095_v30 = vadd.f32 1e-05, %v4063_v55  ;;  %v4014_v27 = vpop.xlane.xlu1 %4013  ;;  %v4228_v4 = vadd.f32 %v10381_v40, %v4190_v28  ;;  %v4154_v14 = vmul.f32 %v7440_v12, %v10227_v15  ;;  %v11340_v55 = vmax.f32 %v11339_v7, 0.0 }
 0xb16   :  { %7451 = vrsqrt.f32 %v4096_v52  ;;  %v4066_v2 = vmul.f32 0.0078125, %v4014_v27  ;;  %v4012_v58 = vpop.xlane.xlu0 %4011  ;;  %v4227_v29 = vadd.f32 %v10381_v40, %v4189_v11  ;;  %v4153_v61 = vmul.f32 %v7442_v35, %v10230_v49 }
 0xb17   :  { %7453 = vrsqrt.f32 %v4095_v30  ;;  %v4065_v0 = vmul.f32 0.0078125, %v4012_v58  ;;  %v4260_v1 = vmax.f32 %v4228_v4, 0.0  ;;  %v4192_v62 = vmul.f32 %v10377_v41, %v4154_v14 }
 0xb18   :  { %v7444_v60 = vpop.eup %7443  ;;  %v4098_v17 = vadd.f32 1e-05, %v4066_v2  ;;  %v4259_v48 = vmax.f32 %v4227_v29, 0.0  ;;  %v4191_v6 = vmul.f32 %v10377_v41, %v4153_v61  ;;  %v11341_v29 = vld [vmem:[#allocation31_spill] sm:$0xff] }
 0xb19   :  { %v7446_v26 = vpop.eup %7445  ;;  %v4097_v23 = vadd.f32 1e-05, %v4065_v0  ;;  %v4018_v15 = vpop.xlane.xlu1 %4017  ;;  %v10394_v50 = vadd.f32 %v4260_v1, %v11338_v16  ;;  %v4230_v25 = vadd.f32 %v10381_v40, %v4192_v62  ;;  %v4156_v49 = vmul.f32 %v7444_v60, %v10237_v31 }
 0xb1a   :  { %7455 = vrsqrt.f32 %v4098_v17  ;;  %v4068_v53 = vmul.f32 0.0078125, %v4018_v15  ;;  %v4016_v13 = vpop.xlane.xlu0 %4015  ;;  %v10400_v28 = vadd.f32 %v4259_v48, %v11340_v55  ;;  %v4229_v12 = vadd.f32 %v10381_v40, %v4191_v6  ;;  %v11343_v48 = vld [vmem:[#allocation30_spill] sm:$0xff]  ;;  %v11345_v55 = vld [vmem:[#allocation33_spill] sm:$0xff] }
 0xb1b   :  { %7457 = vrsqrt.f32 %v4097_v23  ;;  %v4067_v52 = vmul.f32 0.0078125, %v4016_v13  ;;  %4327 = vadd.xlane.f32.xlu1 %v10394_v50  ;;  %v4262_v11 = vmax.f32 %v4230_v25, 0.0  ;;  %v4194_v35 = vmul.f32 %v10377_v41, %v4156_v49 }
 0xb1c   :  { %v7448_v30 = vpop.eup %7447  ;;  %v4100_v27 = vadd.f32 1e-05, %v4068_v53  ;;  %4325 = vadd.xlane.f32.xlu0 %v10400_v28  ;;  %v4261_v31 = vmax.f32 %v4229_v12, 0.0  ;;  %v4155_v4 = vmul.f32 %v7446_v26, %v10240_v59  ;;  %v11342_v61 = vmax.f32 %v11341_v29, 0.0 }
 0xb1d   :  { %v7450_v14 = vpop.eup %7449  ;;  %v4099_v2 = vadd.f32 1e-05, %v4067_v52  ;;  %v4022_v58 = vpop.xlane.xlu1 %4021  ;;  %v4232_v1 = vadd.f32 %v10381_v40, %v4194_v35  ;;  %v4158_v62 = vmul.f32 %v7448_v30, %v10247_v18  ;;  %v11344_v6 = vmax.f32 %v11343_v48, 0.0 }
 0xb1e   :  { %v10409_v0 = vadd.f32 %v4262_v11, %v11342_v61  ;;  %7459 = vrsqrt.f32 %v4100_v27  ;;  %v4070_v60 = vmul.f32 0.0078125, %v4022_v58  ;;  %v4020_v17 = vpop.xlane.xlu0 %4019  ;;  %v4193_v59 = vmul.f32 %v10377_v41, %v4155_v4  ;;  %v11347_v61 = vld [vmem:[#allocation32_spill] sm:$0xff] }
 0xb1f   :  { %v10415_v23 = vadd.f32 %v4261_v31, %v11344_v6  ;;  %7461 = vrsqrt.f32 %v4099_v2  ;;  %v4069_v26 = vmul.f32 0.0078125, %v4020_v17  ;;  %v4264_v15 = vmax.f32 %v4232_v1, 0.0 }
 0xb20   :  { %4331 = vadd.xlane.f32.xlu1 %v10409_v0  ;;  %v4196_v47 = vmul.f32 %v10377_v41, %v4158_v62  ;;  %v7452_v16 = vpop.eup %7451  ;;  %v4102_v25 = vadd.f32 1e-05, %v4070_v60  ;;  %v4231_v18 = vadd.f32 %v10381_v40, %v4193_v59  ;;  %v4157_v49 = vmul.f32 %v7450_v14, %v10250_v22  ;;  %v11349_v59 = vld [vmem:[#allocation35_spill] sm:$0xff] }
 0xb21   :  { %4329 = vadd.xlane.f32.xlu0 %v10415_v23  ;;  %v7454_v53 = vpop.eup %7453  ;;  %v4101_v13 = vadd.f32 1e-05, %v4069_v26  ;;  %v4026_v7 = vpop.xlane.xlu1 %4025  ;;  %v11346_v12 = vmax.f32 %v11345_v55, 0.0  ;;  %v4160_v35 = vmul.f32 %v7452_v16, %v10257_v38  ;;  %v11348_v1 = vmax.f32 %v11347_v61, 0.0 }
 0xb22   :  { %v4234_v11 = vadd.f32 %v10381_v40, %v4196_v47  ;;  %7463 = vrsqrt.f32 %v4102_v25  ;;  %v4072_v30 = vmul.f32 0.0078125, %v4026_v7  ;;  %v4024_v27 = vpop.xlane.xlu0 %4023  ;;  %v4263_v31 = vmax.f32 %v4231_v18, 0.0 }
 0xb23   :  { %v10425_v52 = vadd.f32 %v4264_v15, %v11346_v12  ;;  %v4195_v4 = vmul.f32 %v10377_v41, %v4157_v49  ;;  %7465 = vrsqrt.f32 %v4101_v13  ;;  %v4071_v2 = vmul.f32 0.0078125, %v4024_v27 }
 0xb24   :  { %v4266_v22 = vmax.f32 %v4234_v11, 0.0  ;;  %v4198_v14 = vmul.f32 %v10377_v41, %v4160_v35  ;;  %v7456_v58 = vpop.eup %7455  ;;  %v4104_v29 = vadd.f32 1e-05, %v4072_v30  ;;  %v10434_v62 = vadd.f32 %v4263_v31, %v11348_v1  ;;  %v11351_v11 = vld [vmem:[#allocation34_spill] sm:$0xff] }
 0xb25   :  { %4335 = vadd.xlane.f32.xlu1 %v10425_v52  ;;  %v4233_v38 = vadd.f32 %v10381_v40, %v4195_v4  ;;  %v4159_v60 = vmul.f32 %v7454_v53, %v10260_v36  ;;  %v7458_v17 = vpop.eup %7457  ;;  %v4103_v48 = vadd.f32 1e-05, %v4071_v2  ;;  %v4030_v6 = vpop.xlane.xlu1 %4029  ;;  %v11350_v26 = vmax.f32 %v11349_v59, 0.0 }
 0xb26   :  { %v4236_v47 = vadd.f32 %v10381_v40, %v4198_v14  ;;  %v4162_v16 = vmul.f32 %v7456_v58, %v10267_v8  ;;  %7467 = vrsqrt.f32 %v4104_v29  ;;  %4333 = vadd.xlane.f32.xlu0 %v10434_v62  ;;  %v4074_v25 = vmul.f32 0.0078125, %v4030_v6  ;;  %v4028_v18 = vpop.xlane.xlu0 %4027 }
 0xb27   :  { %v10440_v15 = vadd.f32 %v4266_v22, %v11350_v26  ;;  %v4265_v49 = vmax.f32 %v4233_v38, 0.0  ;;  %v4197_v13 = vmul.f32 %v10377_v41, %v4159_v60  ;;  %7469 = vrsqrt.f32 %v4103_v48  ;;  %v11353_v22 = vld [vmem:[#allocation37_spill] sm:$0xff] }
 0xb28   :  { %v4073_v36 = vmul.f32 0.0078125, %v4028_v18  ;;  %v4268_v53 = vmax.f32 %v4236_v47, 0.0  ;;  %v4200_v7 = vmul.f32 %v10377_v41, %v4162_v16  ;;  %v7460_v55 = vpop.eup %7459  ;;  %v4106_v12 = vadd.f32 1e-05, %v4074_v25  ;;  %v11355_v47 = vld [vmem:[#allocation36_spill] sm:$0xff] }
 0xb29   :  { %4339 = vadd.xlane.f32.xlu1 %v10440_v15  ;;  %v11352_v35 = vmax.f32 %v11351_v11, 0.0  ;;  %v4235_v30 = vadd.f32 %v10381_v40, %v4197_v13  ;;  %v4161_v27 = vmul.f32 %v7458_v17, %v10270_v20  ;;  %v7462_v31 = vpop.eup %7461  ;;  %v4034_v2 = vpop.xlane.xlu1 %4033  ;;  %v11354_v14 = vmax.f32 %v11353_v22, 0.0 }
 0xb2a   :  { %v4105_v4 = vadd.f32 1e-05, %v4073_v36  ;;  %v4238_v29 = vadd.f32 %v10381_v40, %v4200_v7  ;;  %v4164_v61 = vmul.f32 %v7460_v55, %v10277_v10  ;;  %7471 = vrsqrt.f32 %v4106_v12  ;;  %v4032_v38 = vpop.xlane.xlu0 %4031 }
 0xb2b   :  { %v10450_v8 = vadd.f32 %v4265_v49, %v11352_v35  ;;  %v10456_v58 = vadd.f32 %v4268_v53, %v11354_v14  ;;  %v4076_v1 = vmul.f32 0.0078125, %v4034_v2  ;;  %v4267_v60 = vmax.f32 %v4235_v30, 0.0  ;;  %v11357_v53 = vld [vmem:[#allocation39_spill] sm:$0xff] }
 0xb2c   :  { %v4199_v48 = vmul.f32 %v10377_v41, %v4161_v27  ;;  %7473 = vrsqrt.f32 %v4105_v4  ;;  %v4075_v20 = vmul.f32 0.0078125, %v4032_v38  ;;  %v4270_v17 = vmax.f32 %v4238_v29, 0.0  ;;  %v7464_v59 = vpop.eup %7463  ;;  %v11359_v29 = vld [vmem:[#allocation38_spill] sm:$0xff] }
 0xb2d   :  { %4337 = vadd.xlane.f32.xlu0 %v10450_v8  ;;  %4343 = vadd.xlane.f32.xlu1 %v10456_v58  ;;  %v4202_v6 = vmul.f32 %v10377_v41, %v4164_v61  ;;  %v4108_v26 = vadd.f32 1e-05, %v4076_v1  ;;  %v11356_v16 = vmax.f32 %v11355_v47, 0.0  ;;  %v4163_v18 = vmul.f32 %v7462_v31, %v10280_v19  ;;  %v7466_v49 = vpop.eup %7465  ;;  %v4038_v36 = vpop.xlane.xlu1 %4037 }
 0xb2e   :  { %v4237_v25 = vadd.f32 %v10381_v40, %v4199_v48  ;;  %v4107_v13 = vadd.f32 1e-05, %v4075_v20  ;;  %v11358_v7 = vmax.f32 %v11357_v53, 0.0  ;;  %v4166_v11 = vmul.f32 %v7464_v59, %v10287_v46  ;;  %v4036_v30 = vpop.xlane.xlu0 %4035 }
 0xb2f   :  { %v10466_v10 = vadd.f32 %v4267_v60, %v11356_v16  ;;  %v4240_v12 = vadd.f32 %v10381_v40, %v4202_v6  ;;  %7475 = vrsqrt.f32 %v4108_v26  ;;  %v4078_v35 = vmul.f32 0.0078125, %v4038_v36 }
 0xb30   :  { %v10472_v55 = vadd.f32 %v4270_v17, %v11358_v7  ;;  %v4269_v27 = vmax.f32 %v4237_v25, 0.0  ;;  %v4201_v4 = vmul.f32 %v10377_v41, %v4163_v18  ;;  %7477 = vrsqrt.f32 %v4107_v13  ;;  %v7468_v22 = vpop.eup %7467  ;;  %v11361_v17 = vld [vmem:[#allocation41_spill] sm:$0xff] }
 0xb31   :  { %4341 = vadd.xlane.f32.xlu0 %v10466_v10  ;;  %v4077_v19 = vmul.f32 0.0078125, %v4036_v30  ;;  %v4272_v31 = vmax.f32 %v4240_v12, 0.0  ;;  %v4204_v2 = vmul.f32 %v10377_v41, %v4166_v11  ;;  %v4110_v14 = vadd.f32 1e-05, %v4078_v35  ;;  %v7470_v60 = vpop.eup %7469  ;;  %v4042_v20 = vpop.xlane.xlu1 %4041  ;;  %v11363_v12 = vld [vmem:[#allocation40_spill] sm:$0xff] }
 0xb32   :  { %4347 = vadd.xlane.f32.xlu1 %v10472_v55  ;;  %v11360_v61 = vmax.f32 %v11359_v29, 0.0  ;;  %v4239_v1 = vadd.f32 %v10381_v40, %v4201_v4  ;;  %v4165_v38 = vmul.f32 %v7466_v49, %v10290_v5  ;;  %v11362_v6 = vmax.f32 %v11361_v17, 0.0  ;;  %v4040_v25 = vpop.xlane.xlu0 %4039 }
 0xb33   :  { %v4109_v48 = vadd.f32 1e-05, %v4077_v19  ;;  %v4242_v26 = vadd.f32 %v10381_v40, %v4204_v2  ;;  %v4168_v47 = vmul.f32 %v7468_v22, %v10297_v44  ;;  %7479 = vrsqrt.f32 %v4110_v14 }
 0xb34   :  { %v10482_v46 = vadd.f32 %v4269_v27, %v11360_v61  ;;  %v10488_v59 = vadd.f32 %v4272_v31, %v11362_v6  ;;  %v4080_v16 = vmul.f32 0.0078125, %v4042_v20  ;;  %v4271_v18 = vmax.f32 %v4239_v1, 0.0  ;;  %v7472_v53 = vpop.eup %7471  ;;  %v11365_v31 = vld [vmem:[#allocation43_spill] sm:$0xff] }
 0xb35   :  { %v4203_v13 = vmul.f32 %v10377_v41, %v4165_v38  ;;  %7481 = vrsqrt.f32 %v4109_v48  ;;  %v4079_v5 = vmul.f32 0.0078125, %v4040_v25  ;;  %v4274_v49 = vmax.f32 %v4242_v26, 0.0  ;;  %v4046_v19 = vpop.xlane.xlu1 %4045  ;;  %v11367_v26 = vld [vmem:[#allocation42_spill] sm:$0xff] }
 0xb36   :  { %4345 = vadd.xlane.f32.xlu0 %v10482_v46  ;;  %4351 = vadd.xlane.f32.xlu1 %v10488_v59  ;;  %v4206_v36 = vmul.f32 %v10377_v41, %v4168_v47  ;;  %v4112_v7 = vadd.f32 1e-05, %v4080_v16  ;;  %v11364_v11 = vmax.f32 %v11363_v12, 0.0  ;;  %v4167_v30 = vmul.f32 %v7470_v60, %v10300_v43  ;;  %v7474_v27 = vpop.eup %7473  ;;  %v4044_v1 = vpop.xlane.xlu0 %4043 }
 0xb37   :  { %v4241_v35 = vadd.f32 %v10381_v40, %v4203_v13  ;;  %v4111_v4 = vadd.f32 1e-05, %v4079_v5  ;;  %v11366_v2 = vmax.f32 %v11365_v31, 0.0  ;;  %v4170_v29 = vmul.f32 %v7472_v53, %v10307_v42 }
 0xb38   :  { %v10498_v44 = vadd.f32 %v4271_v18, %v11364_v11  ;;  %v4244_v14 = vadd.f32 %v10381_v40, %v4206_v36  ;;  %7483 = vrsqrt.f32 %v4112_v7  ;;  %v4082_v61 = vmul.f32 0.0078125, %v4046_v19 }
 0xb39   :  { %v10504_v22 = vadd.f32 %v4274_v49, %v11366_v2  ;;  %v4273_v38 = vmax.f32 %v4241_v35, 0.0  ;;  %v4205_v48 = vmul.f32 %v10377_v41, %v4167_v30  ;;  %7485 = vrsqrt.f32 %v4111_v4  ;;  %v7476_v17 = vpop.eup %7475  ;;  %v4050_v5 = vpop.xlane.xlu1 %4049  ;;  %v11369_v49 = vld [vmem:[#allocation45_spill] sm:$0xff] }
 0xb3a   :  { %4349 = vadd.xlane.f32.xlu0 %v10498_v44  ;;  %v4081_v43 = vmul.f32 0.0078125, %v4044_v1  ;;  %v4276_v60 = vmax.f32 %v4244_v14, 0.0  ;;  %v4208_v20 = vmul.f32 %v10377_v41, %v4170_v29  ;;  %v4114_v6 = vadd.f32 1e-05, %v4082_v61  ;;  %v7478_v18 = vpop.eup %7477  ;;  %v4048_v35 = vpop.xlane.xlu0 %4047  ;;  %v11371_v14 = vld [vmem:[#allocation44_spill] sm:$0xff] }
 0xb3b   :  { %4355 = vadd.xlane.f32.xlu1 %v10504_v22  ;;  %v11368_v47 = vmax.f32 %v11367_v26, 0.0  ;;  %v4243_v16 = vadd.f32 %v10381_v40, %v4205_v48  ;;  %v4169_v25 = vmul.f32 %v7474_v27, %v10310_v24  ;;  %v11370_v36 = vmax.f32 %v11369_v49, 0.0 }
 0xb3c   :  { %v4113_v13 = vadd.f32 1e-05, %v4081_v43  ;;  %v4246_v7 = vadd.f32 %v10381_v40, %v4208_v20  ;;  %v4172_v12 = vmul.f32 %v7476_v17, %v10317_v9  ;;  %7487 = vrsqrt.f32 %v4114_v6 }
 0xb3d   :  { %v10514_v42 = vadd.f32 %v4273_v38, %v11368_v47  ;;  %v10520_v53 = vadd.f32 %v4276_v60, %v11370_v36  ;;  %v4084_v11 = vmul.f32 0.0078125, %v4050_v5  ;;  %v4275_v30 = vmax.f32 %v4243_v16, 0.0  ;;  %v7480_v31 = vpop.eup %7479  ;;  %v4054_v43 = vpop.xlane.xlu1 %4053  ;;  %v11373_v60 = vld [vmem:[#allocation47_spill] sm:$0xff] }
 0xb3e   :  { %v4207_v4 = vmul.f32 %v10377_v41, %v4169_v25  ;;  %7489 = vrsqrt.f32 %v4113_v13  ;;  %v4083_v24 = vmul.f32 0.0078125, %v4048_v35  ;;  %v4278_v27 = vmax.f32 %v4246_v7, 0.0  ;;  %v4052_v16 = vpop.xlane.xlu0 %4051  ;;  %v11375_v7 = vld [vmem:[#allocation46_spill] sm:$0xff] }
 0xb3f   :  { %4353 = vadd.xlane.f32.xlu0 %v10514_v42  ;;  %4359 = vadd.xlane.f32.xlu1 %v10520_v53  ;;  %v4210_v19 = vmul.f32 %v10377_v41, %v4172_v12  ;;  %v4116_v2 = vadd.f32 1e-05, %v4084_v11  ;;  %v11372_v29 = vmax.f32 %v11371_v14, 0.0  ;;  %v4171_v1 = vmul.f32 %v7478_v18, %v10320_v45  ;;  %v7482_v38 = vpop.eup %7481 }
 0xb40   :  { %v4245_v61 = vadd.f32 %v10381_v40, %v4207_v4  ;;  %v4115_v48 = vadd.f32 1e-05, %v4083_v24  ;;  %v11374_v20 = vmax.f32 %v11373_v60, 0.0  ;;  %v4174_v26 = vmul.f32 %v7480_v31, %v10327_v56  ;;  %v11377_v24 = vld [vmem:[#allocation49_spill] sm:$0xff] }
 0xb41   :  { %v10530_v9 = vadd.f32 %v4275_v30, %v11372_v29  ;;  %v4248_v6 = vadd.f32 %v10381_v40, %v4210_v19  ;;  %7491 = vrsqrt.f32 %v4116_v2  ;;  %v4086_v47 = vmul.f32 0.0078125, %v4054_v43 }
 0xb42   :  { %v10536_v17 = vadd.f32 %v4278_v27, %v11374_v20  ;;  %v4277_v25 = vmax.f32 %v4245_v61, 0.0  ;;  %v4209_v13 = vmul.f32 %v10377_v41, %v4171_v1  ;;  %7493 = vrsqrt.f32 %v4115_v48  ;;  %v7484_v49 = vpop.eup %7483  ;;  %v11379_v48 = vld [vmem:[#allocation48_spill] sm:$0xff] }
 0xb43   :  { %4357 = vadd.xlane.f32.xlu0 %v10530_v9  ;;  %v4085_v45 = vmul.f32 0.0078125, %v4052_v16  ;;  %v4280_v18 = vmax.f32 %v4248_v6, 0.0  ;;  %v4212_v5 = vmul.f32 %v10377_v41, %v4174_v26  ;;  %v4118_v36 = vadd.f32 1e-05, %v4086_v47  ;;  %v7486_v30 = vpop.eup %7485  ;;  %v11381_v26 = vld [vmem:[#allocation51_spill] sm:$0xff] }
 0xb44   :  { %4363 = vadd.xlane.f32.xlu1 %v10536_v17  ;;  %v11376_v12 = vmax.f32 %v11375_v7, 0.0  ;;  %v4247_v11 = vadd.f32 %v10381_v40, %v4209_v13  ;;  %v4173_v35 = vmul.f32 %v7482_v38, %v10330_v37  ;;  %v11378_v27 = vmax.f32 %v11377_v24, 0.0  ;;  %v11383_v7 = vld [vmem:[#allocation50_spill] sm:$0xff] }
 0xb45   :  { %v4117_v4 = vadd.f32 1e-05, %v4085_v45  ;;  %v4250_v31 = vadd.f32 %v10381_v40, %v4212_v5  ;;  %v4176_v2 = vmul.f32 %v7484_v49, %v10337_v21  ;;  %7495 = vrsqrt.f32 %v4118_v36 }
 0xb46   :  { %v10546_v56 = vadd.f32 %v4277_v25, %v11376_v12  ;;  %v10552_v19 = vadd.f32 %v4280_v18, %v11378_v27  ;;  %v4279_v14 = vmax.f32 %v4247_v11, 0.0  ;;  %v4211_v29 = vmul.f32 %v10377_v41, %v4173_v35  ;;  %v7488_v38 = vpop.eup %7487 }
 0xb47   :  { %v4175_v61 = vmul.f32 %v7486_v30, %v10340_v54  ;;  %7497 = vrsqrt.f32 %v4117_v4  ;;  %v4282_v37 = vmax.f32 %v4250_v31, 0.0  ;;  %v4214_v1 = vmul.f32 %v10377_v41, %v4176_v2  ;;  %v11385_v4 = vld [vmem:[#allocation53_spill] sm:$0xff]  ;;  %v11387_v2 = vld [vmem:[#allocation52_spill] sm:$0xff] }
 0xb48   :  { %4361 = vadd.xlane.f32.xlu0 %v10546_v56  ;;  %4367 = vadd.xlane.f32.xlu1 %v10552_v19  ;;  %v11380_v43 = vmax.f32 %v11379_v48, 0.0  ;;  %v4249_v21 = vadd.f32 %v10381_v40, %v4211_v29  ;;  %v7490_v6 = vpop.eup %7489  ;;  %v11382_v47 = vmax.f32 %v11381_v26, 0.0  ;;  %v4178_v25 = vmul.f32 %v7488_v38, %v10347_v34 }
 0xb49   :  { %v4213_v20 = vmul.f32 %v10377_v41, %v4175_v61  ;;  %v4252_v54 = vadd.f32 %v10381_v40, %v4214_v1  ;;  %v4177_v18 = vmul.f32 %v7490_v6, %v10350_v32  ;;  %v11384_v12 = vmax.f32 %v11383_v7, 0.0 }
 0xb4a   :  { %v10563_v60 = vadd.f32 %v4279_v14, %v11380_v43  ;;  %v10569_v16 = vadd.f32 %v4282_v37, %v11382_v47  ;;  %v4281_v13 = vmax.f32 %v4249_v21, 0.0  ;;  %v4216_v49 = vmul.f32 %v10377_v41, %v4178_v25 }
 0xb4b   :  { %v4251_v45 = vadd.f32 %v10381_v40, %v4213_v20  ;;  %v4284_v5 = vmax.f32 %v4252_v54, 0.0  ;;  %v7492_v36 = vpop.eup %7491  ;;  %v4215_v34 = vmul.f32 %v10377_v41, %v4177_v18  ;;  %v11386_v24 = vmax.f32 %v11385_v4, 0.0  ;;  %v11389_v20 = vld [vmem:[#allocation55_spill] sm:$0xff] }
 0xb4c   :  { %4365 = vadd.xlane.f32.xlu0 %v10563_v60  ;;  %4371 = vadd.xlane.f32.xlu1 %v10569_v16  ;;  %v10580_v11 = vadd.f32 %v4281_v13, %v11384_v12  ;;  %v7494_v30 = vpop.eup %7493  ;;  %v4254_v32 = vadd.f32 %v10381_v40, %v4216_v49  ;;  %v4180_v31 = vmul.f32 %v7492_v36, %v10357_v39  ;;  %v11388_v14 = vmax.f32 %v11387_v2, 0.0  ;;  %v11393_v12 = vld [vmem:[#allocation57_spill] sm:$0xff]  ;;  %v11397_v2 = vld [vmem:[#allocation59_spill] sm:$0xff] }
 0xb4d   :  { %v4283_v35 = vmax.f32 %v4251_v45, 0.0  ;;  %v10585_v27 = vadd.f32 %v4284_v5, %v11386_v24  ;;  %v4253_v61 = vadd.f32 %v10381_v40, %v4215_v34  ;;  %v4179_v37 = vmul.f32 %v7494_v30, %v10360_v51  ;;  %v11391_v51 = vld [vmem:[#allocation54_spill] sm:$0xff]  ;;  %v11395_v30 = vld [vmem:[#allocation56_spill] sm:$0xff] }
 0xb4e   :  { %v4286_v1 = vmax.f32 %v4254_v32, 0.0  ;;  %v4218_v38 = vmul.f32 %v10377_v41, %v4180_v31  ;;  %v11390_v6 = vmax.f32 %v11389_v20, 0.0  ;;  %v11392_v25 = vmax.f32 %v11391_v51, 0.0 }
 0xb4f   :  { %v10592_v29 = vadd.f32 %v4283_v35, %v11388_v14  ;;  %v7496_v48 = vpop.eup %7495  ;;  %v4285_v43 = vmax.f32 %v4253_v61, 0.0  ;;  %v4217_v21 = vmul.f32 %v10377_v41, %v4179_v37  ;;  %v11396_v4 = vmax.f32 %v11395_v30, 0.0  ;;  %v11399_v61 = vld [vmem:[#allocation58_spill] sm:$0xff] }
 0xb50   :  { %4369 = vadd.xlane.f32.xlu0 %v10580_v11  ;;  %4375 = vadd.xlane.f32.xlu1 %v10585_v27  ;;  %v10601_v26 = vadd.f32 %v4286_v1, %v11390_v6  ;;  %v4256_v47 = vadd.f32 %v10381_v40, %v4218_v38  ;;  %v4182_v54 = vmul.f32 %v7496_v48, %v10367_v57  ;;  %v11394_v57 = vmax.f32 %v11393_v12, 0.0 }
 0xb51   :  { %v7498_v39 = vpop.eup %7497  ;;  %v10608_v13 = vadd.f32 %v4285_v43, %v11392_v25  ;;  %v4255_v45 = vadd.f32 %v10381_v40, %v4217_v21  ;;  %v11400_v37 = vmax.f32 %v11399_v61, 0.0 }
 0xb52   :  { %v4181_v18 = vmul.f32 %v7498_v39, %v10370_v3  ;;  %v4288_v5 = vmax.f32 %v4256_v47, 0.0  ;;  %v4220_v49 = vmul.f32 %v10377_v41, %v4182_v54 }
 0xb53   :  { %v4287_v36 = vmax.f32 %v4255_v45, 0.0 }
 0xb54   :  { %4373 = vadd.xlane.f32.xlu0 %v10592_v29  ;;  %4379 = vadd.xlane.f32.xlu1 %v10601_v26  ;;  %v4219_v7 = vmul.f32 %v10377_v41, %v4181_v18  ;;  %v10617_v35 = vadd.f32 %v4288_v5, %v11394_v57  ;;  %v4258_v34 = vadd.f32 %v10381_v40, %v4220_v49  ;;  %v11398_v41 = vmax.f32 %v11397_v2, 0.0 }
 0xb55   :  { %v10623_v24 = vadd.f32 %v4287_v36, %v11396_v4 }
 0xb56   :  { %v4257_v3 = vadd.f32 %v10381_v40, %v4219_v7  ;;  %v4290_v32 = vmax.f32 %v4258_v34, 0.0 }
 0xb58   :  { %4377 = vadd.xlane.f32.xlu0 %v10608_v13  ;;  %4383 = vadd.xlane.f32.xlu1 %v10617_v35  ;;  %v4289_v31 = vmax.f32 %v4257_v3, 0.0  ;;  %v10629_v14 = vadd.f32 %v4290_v32, %v11398_v41 }
 0xb5a   :  { %v10634_v1 = vadd.f32 %v4289_v31, %v11400_v37 }
 0xb5c   :  { %4381 = vadd.xlane.f32.xlu0 %v10623_v24  ;;  %4387 = vadd.xlane.f32.xlu1 %v10629_v14 }
 0xb60   :  { %4385 = vadd.xlane.f32.xlu0 %v10634_v1 }
 0xba8   :  { %v4328_v38 = vpop.xlane.xlu1 %4327 }
 0xba9   :  { %v4390_v40 = vmul.f32 0.0078125, %v4328_v38  ;;  %v4326_v48 = vpop.xlane.xlu0 %4325 }
 0xbaa   :  { %v4389_v43 = vmul.f32 0.0078125, %v4326_v48 }
 0xbab   :  { %v10639_v21 = vsub.f32 %v10394_v50, %v4390_v40 }
 0xbac   :  { %v10642_v39 = vsub.f32 %v10400_v28, %v4389_v43 }
 0xbad   :  { %v4332_v20 = vpop.xlane.xlu1 %4331  ;;  %v4454_v54 = vmul.f32 %v10639_v21, %v10639_v21 }
 0xbae   :  { %v4392_v6 = vmul.f32 0.0078125, %v4332_v20  ;;  %v4330_v47 = vpop.xlane.xlu0 %4329  ;;  %v4453_v25 = vmul.f32 %v10642_v39, %v10642_v39 }
 0xbaf   :  { %v4391_v51 = vmul.f32 0.0078125, %v4330_v47  ;;  %4487 = vadd.xlane.f32.xlu1 %v4454_v54 }
 0xbb0   :  { %v10649_v45 = vsub.f32 %v10409_v0, %v4392_v6  ;;  %4485 = vadd.xlane.f32.xlu0 %v4453_v25 }
 0xbb1   :  { %v10652_v50 = vsub.f32 %v10415_v23, %v4391_v51 }
 0xbb2   :  { %v4336_v18 = vpop.xlane.xlu1 %4335  ;;  %v4456_v5 = vmul.f32 %v10649_v45, %v10649_v45 }
 0xbb3   :  { %v4394_v28 = vmul.f32 0.0078125, %v4336_v18  ;;  %v4455_v49 = vmul.f32 %v10652_v50, %v10652_v50  ;;  %v4334_v7 = vpop.xlane.xlu0 %4333 }
 0xbb4   :  { %4491 = vadd.xlane.f32.xlu1 %v4456_v5  ;;  %v4393_v0 = vmul.f32 0.0078125, %v4334_v7 }
 0xbb5   :  { %v10659_v36 = vsub.f32 %v10425_v52, %v4394_v28  ;;  %4489 = vadd.xlane.f32.xlu0 %v4455_v49 }
 0xbb6   :  { %v4340_v12 = vpop.xlane.xlu1 %4339  ;;  %v10664_v34 = vsub.f32 %v10434_v62, %v4393_v0 }
 0xbb7   :  { %v4396_v57 = vmul.f32 0.0078125, %v4340_v12  ;;  %v4458_v23 = vmul.f32 %v10659_v36, %v10659_v36 }
 0xbb8   :  { %v4457_v32 = vmul.f32 %v10664_v34, %v10664_v34 }
 0xbb9   :  { %v10667_v30 = vsub.f32 %v10440_v15, %v4396_v57  ;;  %4495 = vadd.xlane.f32.xlu1 %v4458_v23 }
 0xbba   :  { %v4338_v4 = vpop.xlane.xlu0 %4337  ;;  %v4344_v52 = vpop.xlane.xlu1 %4343  ;;  %4493 = vadd.xlane.f32.xlu0 %v4457_v32 }
 0xbbb   :  { %v4395_v3 = vmul.f32 0.0078125, %v4338_v4  ;;  %v4398_v31 = vmul.f32 0.0078125, %v4344_v52  ;;  %v4460_v2 = vmul.f32 %v10667_v30, %v10667_v30 }
 0xbbd   :  { %v10674_v41 = vsub.f32 %v10450_v8, %v4395_v3  ;;  %v10677_v62 = vsub.f32 %v10456_v58, %v4398_v31  ;;  %4499 = vadd.xlane.f32.xlu1 %v4460_v2 }
 0xbbe   :  { %v4342_v15 = vpop.xlane.xlu0 %4341 }
 0xbbf   :  { %v4397_v61 = vmul.f32 0.0078125, %v4342_v15  ;;  %v4348_v37 = vpop.xlane.xlu1 %4347  ;;  %v4459_v38 = vmul.f32 %v10674_v41, %v10674_v41  ;;  %v4462_v48 = vmul.f32 %v10677_v62, %v10677_v62 }
 0xbc0   :  { %v4400_v40 = vmul.f32 0.0078125, %v4348_v37 }
 0xbc1   :  { %v10684_v43 = vsub.f32 %v10466_v10, %v4397_v61  ;;  %4497 = vadd.xlane.f32.xlu0 %v4459_v38  ;;  %4503 = vadd.xlane.f32.xlu1 %v4462_v48 }
 0xbc2   :  { %v10687_v8 = vsub.f32 %v10472_v55, %v4400_v40 }
 0xbc3   :  { %v4346_v58 = vpop.xlane.xlu0 %4345  ;;  %v4352_v6 = vpop.xlane.xlu1 %4351  ;;  %v4461_v47 = vmul.f32 %v10684_v43, %v10684_v43 }
 0xbc4   :  { %v4399_v20 = vmul.f32 0.0078125, %v4346_v58  ;;  %v4402_v54 = vmul.f32 0.0078125, %v4352_v6  ;;  %v4464_v51 = vmul.f32 %v10687_v8, %v10687_v8 }
 0xbc5   :  { %4501 = vadd.xlane.f32.xlu0 %v4461_v47 }
 0xbc6   :  { %v10694_v25 = vsub.f32 %v10482_v46, %v4399_v20  ;;  %v10697_v10 = vsub.f32 %v10488_v59, %v4402_v54  ;;  %4507 = vadd.xlane.f32.xlu1 %v4464_v51 }
 0xbc7   :  { %v4350_v55 = vpop.xlane.xlu0 %4349 }
 0xbc8   :  { %v4401_v18 = vmul.f32 0.0078125, %v4350_v55  ;;  %v4356_v28 = vpop.xlane.xlu1 %4355  ;;  %v4463_v5 = vmul.f32 %v10694_v25, %v10694_v25  ;;  %v4466_v7 = vmul.f32 %v10697_v10, %v10697_v10 }
 0xbc9   :  { %v4404_v49 = vmul.f32 0.0078125, %v4356_v28 }
 0xbca   :  { %v10704_v0 = vsub.f32 %v10498_v44, %v4401_v18  ;;  %4505 = vadd.xlane.f32.xlu0 %v4463_v5  ;;  %4511 = vadd.xlane.f32.xlu1 %v4466_v7 }
 0xbcb   :  { %v10707_v46 = vsub.f32 %v10504_v22, %v4404_v49 }
 0xbcc   :  { %v4354_v59 = vpop.xlane.xlu0 %4353  ;;  %v4360_v57 = vpop.xlane.xlu1 %4359  ;;  %v4465_v23 = vmul.f32 %v10704_v0, %v10704_v0 }
 0xbcd   :  { %v4403_v12 = vmul.f32 0.0078125, %v4354_v59  ;;  %v4406_v4 = vmul.f32 0.0078125, %v4360_v57  ;;  %v4468_v3 = vmul.f32 %v10707_v46, %v10707_v46 }
 0xbce   :  { %4509 = vadd.xlane.f32.xlu0 %v4465_v23 }
 0xbcf   :  { %v10714_v52 = vsub.f32 %v10514_v42, %v4403_v12  ;;  %v10717_v44 = vsub.f32 %v10520_v53, %v4406_v4  ;;  %4515 = vadd.xlane.f32.xlu1 %v4468_v3 }
 0xbd0   :  { %v4358_v22 = vpop.xlane.xlu0 %4357 }
 0xbd1   :  { %v4405_v32 = vmul.f32 0.0078125, %v4358_v22  ;;  %v4364_v31 = vpop.xlane.xlu1 %4363  ;;  %v4467_v2 = vmul.f32 %v10714_v52, %v10714_v52  ;;  %v4470_v61 = vmul.f32 %v10717_v44, %v10717_v44 }
 0xbd2   :  { %v4408_v15 = vmul.f32 0.0078125, %v4364_v31 }
 0xbd3   :  { %v10724_v37 = vsub.f32 %v10530_v9, %v4405_v32  ;;  %4513 = vadd.xlane.f32.xlu0 %v4467_v2  ;;  %4519 = vadd.xlane.f32.xlu1 %v4470_v61 }
 0xbd4   :  { %v10727_v42 = vsub.f32 %v10536_v17, %v4408_v15 }
 0xbd5   :  { %v4362_v53 = vpop.xlane.xlu0 %4361  ;;  %v4368_v40 = vpop.xlane.xlu1 %4367  ;;  %v4469_v48 = vmul.f32 %v10724_v37, %v10724_v37 }
 0xbd6   :  { %v4407_v38 = vmul.f32 0.0078125, %v4362_v53  ;;  %v4410_v58 = vmul.f32 0.0078125, %v4368_v40  ;;  %v4472_v20 = vmul.f32 %v10727_v42, %v10727_v42 }
 0xbd7   :  { %4517 = vadd.xlane.f32.xlu0 %v4469_v48 }
 0xbd8   :  { %v10734_v6 = vsub.f32 %v10546_v56, %v4407_v38  ;;  %v10737_v9 = vsub.f32 %v10552_v19, %v4410_v58  ;;  %4523 = vadd.xlane.f32.xlu1 %v4472_v20 }
 0xbd9   :  { %v4366_v17 = vpop.xlane.xlu0 %4365  ;;  %v4372_v54 = vpop.xlane.xlu1 %4371 }
 0xbda   :  { %v4409_v47 = vmul.f32 0.0078125, %v4366_v17  ;;  %v4471_v51 = vmul.f32 %v10734_v6, %v10734_v6  ;;  %v4412_v55 = vmul.f32 0.0078125, %v4372_v54  ;;  %v4474_v18 = vmul.f32 %v10737_v9, %v10737_v9 }
 0xbdc   :  { %v10744_v28 = vsub.f32 %v10563_v60, %v4409_v47  ;;  %4521 = vadd.xlane.f32.xlu0 %v4471_v51  ;;  %v10747_v56 = vsub.f32 %v10569_v16, %v4412_v55  ;;  %4527 = vadd.xlane.f32.xlu1 %v4474_v18 }
 0xbdd   :  { %v4370_v19 = vpop.xlane.xlu0 %4369  ;;  %v4376_v49 = vpop.xlane.xlu1 %4375 }
 0xbde   :  { %v4411_v5 = vmul.f32 0.0078125, %v4370_v19  ;;  %v4473_v7 = vmul.f32 %v10744_v28, %v10744_v28  ;;  %v4414_v59 = vmul.f32 0.0078125, %v4376_v49  ;;  %v4476_v12 = vmul.f32 %v10747_v56, %v10747_v56  ;;  %v4865_v19 = vld [vmem:[%s11401_s14] sm:$0xff] }
 0xbdf   :  { %6706 = vmatprep.mubr.msk.f32.mxu1 %vm4899_vm11, %v4865_v19  ;;  %v4985_v49 = vld [vmem:[%s11402_s19 + $0x20] sm:$0xff]  ;;  %v5012_v19 = vld [vmem:[%s11402_s19 + $0xf8] sm:$0xff] }
 0xbe0   :  { %v10754_v57 = vsub.f32 %v10580_v11, %v4411_v5  ;;  %4525 = vadd.xlane.f32.xlu0 %v4473_v7  ;;  %v10757_v60 = vsub.f32 %v10585_v27, %v4414_v59  ;;  %4531 = vadd.xlane.f32.xlu1 %v4476_v12  ;;  %v4982_v5 = vld [vmem:[%s11402_s19 + $0x8] sm:$0xff]  ;;  %v4981_v7 = vld [vmem:[%s11402_s19] sm:$0xff]  ;;  %v4984_v59 = vld [vmem:[%s11402_s19 + $0x18] sm:$0xff] }
 0xbe1   :  { %v4374_v16 = vpop.xlane.xlu0 %4373  ;;  %v4380_v4 = vpop.xlane.xlu1 %4379  ;;  %v4988_v12 = vld [vmem:[%s11402_s19 + $0x38] sm:$0xff] }
 0xbe2   :  { %v4413_v23 = vmul.f32 0.0078125, %v4374_v16  ;;  %v4475_v3 = vmul.f32 %v10754_v57, %v10754_v57  ;;  %v4416_v22 = vmul.f32 0.0078125, %v4380_v4  ;;  %v4478_v32 = vmul.f32 %v10757_v60, %v10757_v60  ;;  %v4991_v16 = vld [vmem:[%s11402_s19 + $0x50] sm:$0xff] }
 0xbe3   :  { %v6967_v4 = vpack.c.bf16 %v4991_v16, %v4988_v12  ;;  %v5018_v12 = vld [vmem:[%s11402_s19 + $0x128] sm:$0xff]  ;;  %v5021_v16 = vld [vmem:[%s11402_s19 + $0x140] sm:$0xff] }
 0xbe4   :  { %v10764_v31 = vsub.f32 %v10592_v29, %v4413_v23  ;;  %4529 = vadd.xlane.f32.xlu0 %v4475_v3  ;;  %v10767_v11 = vsub.f32 %v10601_v26, %v4416_v22  ;;  %4535 = vadd.xlane.f32.xlu1 %v4478_v32  ;;  %v6965_v23 = vpack.c.bf16 %v4984_v59, %v4981_v7  ;;  %v4987_v3 = vld [vmem:[%s11402_s19 + $0x30] sm:$0xff]  ;;  %v4990_v22 = vld [vmem:[%s11402_s19 + $0x48] sm:$0xff] }
 0xbe5   :  { %v4378_v27 = vpop.xlane.xlu0 %4377  ;;  %v4384_v15 = vpop.xlane.xlu1 %4383  ;;  %v4994_v32 = vld [vmem:[%s11402_s19 + $0x68] sm:$0xff] }
 0xbe6   :  { %v4415_v2 = vmul.f32 0.0078125, %v4378_v27  ;;  %v4477_v61 = vmul.f32 %v10764_v31, %v10764_v31  ;;  %v4418_v53 = vmul.f32 0.0078125, %v4384_v15  ;;  %v4480_v38 = vmul.f32 %v10767_v11, %v10767_v11  ;;  %v4997_v27 = vld [vmem:[%s11402_s19 + $0x80] sm:$0xff]  ;;  %v5014_v59 = vld [vmem:[%s11402_s19 + $0x108] sm:$0xff] }
 0xbe7   :  { %v6971_v15 = vpack.c.bf16 %v4997_v27, %v4994_v32  ;;  %v6987_v32 = vpack.c.bf16 %v5021_v16, %v5018_v12  ;;  %v5017_v27 = vld [vmem:[%s11402_s19 + $0x120] sm:$0xff] }
 0xbe8   :  { %v10774_v40 = vsub.f32 %v10608_v13, %v4415_v2  ;;  %4533 = vadd.xlane.f32.xlu0 %v4477_v61  ;;  %v10777_v29 = vsub.f32 %v10617_v35, %v4418_v53  ;;  %4539 = vadd.xlane.f32.xlu1 %v4480_v38  ;;  %v6969_v2 = vpack.c.bf16 %v4990_v22, %v4987_v3  ;;  %v4993_v61 = vld [vmem:[%s11402_s19 + $0x60] sm:$0xff]  ;;  %v4996_v53 = vld [vmem:[%s11402_s19 + $0x78] sm:$0xff] }
 0xbe9   :  { %v4382_v26 = vpop.xlane.xlu0 %4381  ;;  %v4388_v58 = vpop.xlane.xlu1 %4387  ;;  %v5000_v38 = vld [vmem:[%s11402_s19 + $0x98] sm:$0xff] }
 0xbea   :  { %v4417_v48 = vmul.f32 0.0078125, %v4382_v26  ;;  %v4479_v20 = vmul.f32 %v10774_v40, %v10774_v40  ;;  %v4420_v17 = vmul.f32 0.0078125, %v4388_v58  ;;  %v4482_v47 = vmul.f32 %v10777_v29, %v10777_v29  ;;  %v5003_v26 = vld [vmem:[%s11402_s19 + $0xb0] sm:$0xff] }
 0xbeb   :  { %v6975_v58 = vpack.c.bf16 %v5003_v26, %v5000_v38 }
 0xbec   :  { %v10784_v54 = vsub.f32 %v10623_v24, %v4417_v48  ;;  %4537 = vadd.xlane.f32.xlu0 %v4479_v20  ;;  %v10787_v13 = vsub.f32 %v10629_v14, %v4420_v17  ;;  %4543 = vadd.xlane.f32.xlu1 %v4482_v47  ;;  %v6973_v48 = vpack.c.bf16 %v4996_v53, %v4993_v61  ;;  %v4999_v20 = vld [vmem:[%s11402_s19 + $0x90] sm:$0xff]  ;;  %v5002_v17 = vld [vmem:[%s11402_s19 + $0xa8] sm:$0xff]  ;;  %v5024_v61 = vld [vmem:[%s11402_s19 + $0x158] sm:$0xff] }
 0xbed   :  { %v4386_v35 = vpop.xlane.xlu0 %4385  ;;  %v5006_v47 = vld [vmem:[%s11402_s19 + $0xc8] sm:$0xff]  ;;  %v5027_v53 = vld [vmem:[%s11402_s19 + $0x170] sm:$0xff] }
 0xbee   :  { %v4419_v51 = vmul.f32 0.0078125, %v4386_v35  ;;  %v4481_v55 = vmul.f32 %v10784_v54, %v10784_v54  ;;  %v4484_v24 = vmul.f32 %v10787_v13, %v10787_v13  ;;  %v5009_v35 = vld [vmem:[%s11402_s19 + $0xe0] sm:$0xff] }
 0xbf0   :  { %v10794_v18 = vsub.f32 %v10634_v1, %v4419_v51  ;;  %4541 = vadd.xlane.f32.xlu0 %v4481_v55  ;;  %4547 = vadd.xlane.f32.xlu1 %v4484_v24  ;;  %v6963_v1 = vpack.c.bf16 %v4985_v49, %v4982_v5  ;;  %v6977_v51 = vpack.c.bf16 %v5002_v17, %v4999_v20  ;;  %v5005_v24 = vld [vmem:[%s11402_s19 + $0xc0] sm:$0xff]  ;;  %v5015_v5 = vld [vmem:[%s11402_s19 + $0x110] sm:$0xff] }
 0xbf1   :  { %v6979_v55 = vpack.c.bf16 %v5009_v35, %v5006_v47  ;;  %v6983_v7 = vpack.c.bf16 %v5015_v5, %v5012_v19  ;;  %v6991_v47 = vpack.c.bf16 %v5027_v53, %v5024_v61  ;;  %v5023_v35 = vld [vmem:[%s11402_s19 + $0x150] sm:$0xff] }
 0xbf2   :  { %v4483_v14 = vmul.f32 %v10794_v18, %v10794_v18  ;;  %6964 = vmatprep.subr.bf16.mxu0 %v6963_v1  ;;  %v5011_v1 = vld [vmem:[%s11402_s19 + $0xf0] sm:$0xff] }
 0xbf3   :  { %6966 = vmatpush1.bf16.msra.mxu0 %v6965_v23 }
 0xbf4   :  { %4545 = vadd.xlane.f32.xlu0 %v4483_v14  ;;  %6968 = vmatprep.subr.bf16.mxu0 %v6967_v4  ;;  %v5008_v14 = vld [vmem:[%s11402_s19 + $0xd8] sm:$0xff]  ;;  %v6985_v4 = vpack.c.bf16 %v5014_v59, %v5011_v1 }
 0xbf5   :  { %v6981_v49 = vpack.c.bf16 %v5008_v14, %v5005_v24 }
 0xbf7   :  { %6970 = vmatpush1.bf16.msra.mxu0 %v6969_v2  ;;  %v5020_v2 = vld [vmem:[%s11402_s19 + $0x138] sm:$0xff] }
 0xbf8   :  { %6972 = vmatprep.subr.bf16.mxu0 %v6971_v15 }
 0xbfb   :  { %6974 = vmatpush1.bf16.msra.mxu0 %v6973_v48 }
 0xbfc   :  { %6976 = vmatprep.subr.bf16.mxu0 %v6975_v58  ;;  %v6989_v58 = vpack.c.bf16 %v5020_v2, %v5017_v27 }
 0xbff   :  { %6978 = vmatpush1.bf16.msra.mxu0 %v6977_v51  ;;  %v5026_v51 = vld [vmem:[%s11402_s19 + $0x168] sm:$0xff] }
 0xc00   :  { %6980 = vmatprep.subr.bf16.mxu0 %v6979_v55  ;;  %v6993_v5 = vpack.c.bf16 %v5026_v51, %v5023_v35 }
 0xc03   :  { %6982 = vmatpush1.bf16.msra.mxu0 %v6981_v49 }
 0xc04   :  { %6984 = vmatprep.subr.bf16.mxu0 %v6983_v7 }
 0xc07   :  { %6986 = vmatpush1.bf16.msra.mxu0 %v6985_v4 }
 0xc08   :  { %6988 = vmatprep.subr.bf16.mxu0 %v6987_v32 }
 0xc0b   :  { %6990 = vmatpush1.bf16.msra.mxu0 %v6989_v58 }
 0xc0c   :  { %6992 = vmatprep.subr.bf16.mxu0 %v6991_v47 }
 0xc0f   :  { %6994 = vmatpush1.bf16.msra.mxu0 %v6993_v5 }
 0xc3c   :  { %v4488_v23 = vpop.xlane.xlu1 %4487 }
 0xc3d   :  { %v4550_v3 = vmul.f32 0.0078125, %v4488_v23  ;;  %v4486_v22 = vpop.xlane.xlu0 %4485 }
 0xc3e   :  { %v4549_v15 = vmul.f32 0.0078125, %v4486_v22 }
 0xc3f   :  { %v4582_v38 = vadd.f32 1e-05, %v4550_v3  ;;  %v10833_v3 = vld [vmem:[%s11403_s24] ss:$0 sm:$0xff] }
 0xc40   :  { %v4581_v26 = vadd.f32 1e-05, %v4549_v15 }
 0xc41   :  { %v4492_v48 = vpop.xlane.xlu1 %4491  ;;  %7499 = vrsqrt.f32 %v4582_v38 }
 0xc42   :  { %v4552_v20 = vmul.f32 0.0078125, %v4492_v48  ;;  %v4490_v17 = vpop.xlane.xlu0 %4489  ;;  %7501 = vrsqrt.f32 %v4581_v26  ;;  %v10838_v26 = vld [vmem:[%s11404_s30] ss:$0 sm:$0xff] }
 0xc43   :  { %v4551_v55 = vmul.f32 0.0078125, %v4490_v17 }
 0xc44   :  { %v4584_v24 = vadd.f32 1e-05, %v4552_v20 }
 0xc45   :  { %v4583_v14 = vadd.f32 1e-05, %v4551_v55 }
 0xc46   :  { %v4496_v19 = vpop.xlane.xlu1 %4495  ;;  %7503 = vrsqrt.f32 %v4584_v24 }
 0xc47   :  { %v4554_v49 = vmul.f32 0.0078125, %v4496_v19  ;;  %7505 = vrsqrt.f32 %v4583_v14  ;;  %v4494_v1 = vpop.xlane.xlu0 %4493 }
 0xc48   :  { %v4553_v59 = vmul.f32 0.0078125, %v4494_v1 }
 0xc49   :  { %v4586_v7 = vadd.f32 1e-05, %v4554_v49 }
 0xc4a   :  { %v4500_v12 = vpop.xlane.xlu1 %4499  ;;  %v4585_v23 = vadd.f32 1e-05, %v4553_v59 }
 0xc4b   :  { %7507 = vrsqrt.f32 %v4586_v7  ;;  %v4556_v16 = vmul.f32 0.0078125, %v4500_v12  ;;  %v7500_v4 = vpop.eup %7499 }
 0xc4c   :  { %v7502_v32 = vpop.eup %7501  ;;  %v4646_v27 = vmul.f32 %v7500_v4, %v10639_v21  ;;  %7509 = vrsqrt.f32 %v4585_v23 }
 0xc4d   :  { %v4588_v2 = vadd.f32 1e-05, %v4556_v16  ;;  %v4645_v53 = vmul.f32 %v7502_v32, %v10642_v39 }
 0xc4e   :  { %v4498_v22 = vpop.xlane.xlu0 %4497  ;;  %v4504_v61 = vpop.xlane.xlu1 %4503  ;;  %v4684_v48 = vmul.f32 %v10833_v3, %v4646_v27 }
 0xc4f   :  { %v4555_v15 = vmul.f32 0.0078125, %v4498_v22  ;;  %v4558_v38 = vmul.f32 0.0078125, %v4504_v61  ;;  %v4683_v17 = vmul.f32 %v10833_v3, %v4645_v53  ;;  %7511 = vrsqrt.f32 %v4588_v2 }
 0xc50   :  { %v7504_v20 = vpop.eup %7503  ;;  %v4722_v14 = vadd.f32 %v10838_v26, %v4684_v48 }
 0xc51   :  { %v4587_v58 = vadd.f32 1e-05, %v4555_v15  ;;  %v7506_v35 = vpop.eup %7505  ;;  %v4648_v51 = vmul.f32 %v7504_v20, %v10649_v45  ;;  %v4590_v21 = vadd.f32 1e-05, %v4558_v38  ;;  %v4721_v39 = vadd.f32 %v10838_v26, %v4683_v17 }
 0xc52   :  { %v4502_v47 = vpop.xlane.xlu0 %4501  ;;  %v4647_v19 = vmul.f32 %v7506_v35, %v10652_v50 }
 0xc53   :  { %v4557_v55 = vmul.f32 0.0078125, %v4502_v47  ;;  %v4508_v24 = vpop.xlane.xlu1 %4507  ;;  %7513 = vrsqrt.f32 %v4587_v58  ;;  %v4686_v1 = vmul.f32 %v10833_v3, %v4648_v51  ;;  %v4753_v16 = vmax.f32 %v4721_v39, %v4722_v14 }
 0xc54   :  { %v4685_v59 = vmul.f32 %v10833_v3, %v4647_v19  ;;  %v4560_v12 = vmul.f32 0.0078125, %v4508_v24  ;;  %7515 = vrsqrt.f32 %v4590_v21 }
 0xc55   :  { %v4589_v5 = vadd.f32 1e-05, %v4557_v55  ;;  %v7508_v49 = vpop.eup %7507  ;;  %v4724_v27 = vadd.f32 %v10838_v26, %v4686_v1  ;;  %v4754_v53 = vrot.slane %v4753_v16, 4 }
 0xc56   :  { %v4650_v23 = vmul.f32 %v7508_v49, %v10659_v36  ;;  %v7510_v4 = vpop.eup %7509  ;;  %v4723_v2 = vadd.f32 %v10838_v26, %v4685_v59  ;;  %v4592_v15 = vadd.f32 1e-05, %v4560_v12 }
 0xc57   :  { %v4506_v7 = vpop.xlane.xlu0 %4505  ;;  %v4512_v45 = vpop.xlane.xlu1 %4511  ;;  %7517 = vrsqrt.f32 %v4589_v5  ;;  %v4649_v32 = vmul.f32 %v7510_v4, %v10664_v34  ;;  %v4755_v21 = vmax.f32 %v4753_v16, %v4754_v53 }
 0xc58   :  { %v4559_v22 = vmul.f32 0.0078125, %v4506_v7  ;;  %v4688_v38 = vmul.f32 %v10833_v3, %v4650_v23  ;;  %v4562_v20 = vmul.f32 0.0078125, %v4512_v45  ;;  %v4760_v51 = vmax.f32 %v4723_v2, %v4724_v27 }
 0xc59   :  { %v4687_v48 = vmul.f32 %v10833_v3, %v4649_v32  ;;  %v7512_v58 = vpop.eup %7511  ;;  %7519 = vrsqrt.f32 %v4592_v15  ;;  %v4756_v16 = vrot.slane %v4755_v21, 2 }
 0xc5a   :  { %v4591_v36 = vadd.f32 1e-05, %v4559_v22  ;;  %v4726_v55 = vadd.f32 %v10838_v26, %v4688_v38  ;;  %v4652_v14 = vmul.f32 %v7512_v58, %v10667_v30  ;;  %v4594_v19 = vadd.f32 1e-05, %v4562_v20 }
 0xc5b   :  { %v4510_v50 = vpop.xlane.xlu0 %4509  ;;  %v4725_v24 = vadd.f32 %v10838_v26, %v4687_v48  ;;  %v4761_v45 = vrot.slane %v4760_v51, 4 }
 0xc5c   :  { %v4516_v61 = vpop.xlane.xlu1 %4515  ;;  %v4561_v47 = vmul.f32 0.0078125, %v4510_v50  ;;  %7521 = vrsqrt.f32 %v4591_v36  ;;  %v4690_v32 = vmul.f32 %v10833_v3, %v4652_v14  ;;  %v10862_v36 = vmax.f32 %v4755_v21, %v4756_v16 }
 0xc5d   :  { %v7514_v17 = vpop.eup %7513  ;;  %v4564_v1 = vmul.f32 0.0078125, %v4516_v61  ;;  %v4767_v22 = vmax.f32 %v4725_v24, %v4726_v55  ;;  %7523 = vrsqrt.f32 %v4594_v19  ;;  %v4762_v38 = vmax.f32 %v4760_v51, %v4761_v45 }
 0xc5e   :  { %v4651_v39 = vmul.f32 %v7514_v17, %v10674_v41  ;;  %v7516_v49 = vpop.eup %7515  ;;  %v4593_v7 = vadd.f32 1e-05, %v4561_v47  ;;  %v4728_v17 = vadd.f32 %v10838_v26, %v4690_v32 }
 0xc5f   :  { %v4654_v2 = vmul.f32 %v7516_v49, %v10677_v62  ;;  %v4596_v61 = vadd.f32 1e-05, %v4564_v1  ;;  %v4768_v20 = vrot.slane %v4767_v22, 4  ;;  %v4763_v21 = vrot.slane %v4762_v38, 2 }
 0xc60   :  { %v4514_v35 = vpop.xlane.xlu0 %4513  ;;  %v4520_v34 = vpop.xlane.xlu1 %4519  ;;  %v4689_v30 = vmul.f32 %v10833_v3, %v4651_v39  ;;  %7525 = vrsqrt.f32 %v4593_v7 }
 0xc61   :  { %v4566_v5 = vmul.f32 0.0078125, %v4520_v34  ;;  %v7518_v12 = vpop.eup %7517  ;;  %v4563_v50 = vmul.f32 0.0078125, %v4514_v35  ;;  %v4769_v7 = vmax.f32 %v4767_v22, %v4768_v20 }
 0xc62   :  { %v4653_v15 = vmul.f32 %v7518_v12, %v10684_v43  ;;  %v4727_v34 = vadd.f32 %v10838_v26, %v4689_v30  ;;  %v4692_v43 = vmul.f32 %v10833_v3, %v4654_v2 }
 0xc63   :  { %v4598_v23 = vadd.f32 1e-05, %v4566_v5  ;;  %v4595_v47 = vadd.f32 1e-05, %v4563_v50  ;;  %v7520_v35 = vpop.eup %7519 }
 0xc64   :  { %v4518_v59 = vpop.xlane.xlu0 %4517  ;;  %v4691_v24 = vmul.f32 %v10833_v3, %v4653_v15  ;;  %v4656_v1 = vmul.f32 %v7520_v35, %v10687_v8  ;;  %v4774_v12 = vmax.f32 %v4727_v34, %v4728_v17  ;;  %v4758_v15 = vrot.slane %v10862_v36, 1 }
 0xc65   :  { %v4524_v4 = vpop.xlane.xlu1 %4523  ;;  %v4565_v41 = vmul.f32 0.0078125, %v4518_v59  ;;  %7527 = vrsqrt.f32 %v4598_v23 }
 0xc66   :  { %v4568_v27 = vmul.f32 0.0078125, %v4524_v4  ;;  %v7522_v39 = vpop.eup %7521  ;;  %v4730_v4 = vadd.f32 %v10838_v26, %v4692_v43  ;;  %v4729_v16 = vadd.f32 %v10838_v26, %v4691_v24  ;;  %v4775_v20 = vrot.slane %v4774_v12, 4 }
 0xc67   :  { %v4597_v48 = vadd.f32 1e-05, %v4565_v41  ;;  %v4655_v32 = vmul.f32 %v7522_v39, %v10694_v25  ;;  %v7524_v30 = vpop.eup %7523  ;;  %v10872_v41 = vmax.f32 %v4762_v38, %v4763_v21 }
 0xc68   :  { %v4600_v62 = vadd.f32 1e-05, %v4568_v27  ;;  %v10876_v17 = vmax.f32 %v4729_v16, %v4730_v4 }
 0xc69   :  { %v4522_v53 = vpop.xlane.xlu0 %4521  ;;  %v4528_v58 = vpop.xlane.xlu1 %4527  ;;  %7529 = vrsqrt.f32 %v4597_v48  ;;  %v4693_v38 = vmul.f32 %v10833_v3, %v4655_v32 }
 0xc6a   :  { %v4567_v55 = vmul.f32 0.0078125, %v4522_v53  ;;  %7531 = vrsqrt.f32 %v4596_v61  ;;  %v4570_v51 = vmul.f32 0.0078125, %v4528_v58  ;;  %v7526_v2 = vpop.eup %7525  ;;  %v4694_v61 = vmul.f32 %v10833_v3, %v4656_v1 }
 0xc6b   :  { %7533 = vrsqrt.f32 %v4600_v62  ;;  %v4770_v58 = vrot.slane %v4769_v7, 2  ;;  %v4657_v43 = vmul.f32 %v7526_v2, %v10704_v0  ;;  %v4782_v0 = vrot.slane %v10876_v17, 4 }
 0xc6c   :  { %v4599_v19 = vadd.f32 1e-05, %v4567_v55  ;;  %7535 = vrsqrt.f32 %v4595_v47  ;;  %v4602_v59 = vadd.f32 1e-05, %v4570_v51  ;;  %v4658_v47 = vmul.f32 %v7524_v30, %v10697_v10 }
 0xc6d   :  { %v4526_v14 = vpop.xlane.xlu0 %4525  ;;  %v4532_v49 = vpop.xlane.xlu1 %4531  ;;  %v4765_v55 = vrot.slane %v10872_v41, 1  ;;  %v4732_v39 = vadd.f32 %v10838_v26, %v4694_v61  ;;  %v10885_v10 = vmax.f32 %v4769_v7, %v4770_v58 }
 0xc6e   :  { %v4569_v5 = vmul.f32 0.0078125, %v4526_v14  ;;  %7537 = vrsqrt.f32 %v4599_v19  ;;  %v4572_v23 = vmul.f32 0.0078125, %v4532_v49  ;;  %v10887_v49 = vmax.f32 %v4774_v12, %v4775_v20 }
 0xc6f   :  { %7539 = vrsqrt.f32 %v4602_v59  ;;  %v7528_v48 = vpop.eup %7527  ;;  %v4696_v4 = vmul.f32 %v10833_v3, %v4658_v47 }
 0xc70   :  { %v4601_v45 = vadd.f32 1e-05, %v4569_v5  ;;  %v4604_v22 = vadd.f32 1e-05, %v4572_v23  ;;  %v4662_v21 = vmul.f32 %v7528_v48, %v10717_v44  ;;  %v4731_v23 = vadd.f32 %v10838_v26, %v4693_v38 }
 0xc71   :  { %v4530_v50 = vpop.xlane.xlu0 %4529  ;;  %v4536_v27 = vpop.xlane.xlu1 %4535 }
 0xc72   :  { %7541 = vrsqrt.f32 %v4601_v45  ;;  %v4571_v8 = vmul.f32 0.0078125, %v4530_v50  ;;  %v4574_v53 = vmul.f32 0.0078125, %v4536_v27 }
 0xc73   :  { %7543 = vrsqrt.f32 %v4604_v22  ;;  %v7530_v62 = vpop.eup %7529  ;;  %v4700_v22 = vmul.f32 %v10833_v3, %v4662_v21 }
 0xc74   :  { %v4603_v25 = vadd.f32 1e-05, %v4571_v8  ;;  %v4606_v35 = vadd.f32 1e-05, %v4574_v53  ;;  %v7532_v14 = vpop.eup %7531  ;;  %v4661_v19 = vmul.f32 %v7530_v62, %v10724_v37  ;;  %v4695_v37 = vmul.f32 %v10833_v3, %v4657_v43 }
 0xc75   :  { %v4534_v34 = vpop.xlane.xlu0 %4533  ;;  %v4540_v51 = vpop.xlane.xlu1 %4539  ;;  %v4660_v58 = vmul.f32 %v7532_v14, %v10707_v46 }
 0xc76   :  { %7545 = vrsqrt.f32 %v4603_v25  ;;  %v4573_v24 = vmul.f32 0.0078125, %v4534_v34  ;;  %v7534_v5 = vpop.eup %7533  ;;  %v4576_v59 = vmul.f32 0.0078125, %v4540_v51  ;;  %v4699_v8 = vmul.f32 %v10833_v3, %v4661_v19 }
 0xc77   :  { %7547 = vrsqrt.f32 %v4606_v35  ;;  %v7536_v45 = vpop.eup %7535  ;;  %v4664_v16 = vmul.f32 %v7534_v5, %v10727_v42 }
 0xc78   :  { %v4605_v1 = vadd.f32 1e-05, %v4573_v24  ;;  %v7538_v32 = vpop.eup %7537  ;;  %v4608_v7 = vadd.f32 1e-05, %v4576_v59  ;;  %v4659_v20 = vmul.f32 %v7536_v45, %v10714_v52  ;;  %v4737_v24 = vadd.f32 %v10838_v26, %v4699_v8 }
 0xc79   :  { %v4538_v44 = vpop.xlane.xlu0 %4537  ;;  %v4544_v12 = vpop.xlane.xlu1 %4543  ;;  %v4663_v27 = vmul.f32 %v7538_v32, %v10734_v6  ;;  %v4702_v53 = vmul.f32 %v10833_v3, %v4664_v16 }
 0xc7a   :  { %7549 = vrsqrt.f32 %v4605_v1  ;;  %v4575_v50 = vmul.f32 0.0078125, %v4538_v44  ;;  %v7540_v30 = vpop.eup %7539  ;;  %v4578_v2 = vmul.f32 0.0078125, %v4544_v12 }
 0xc7b   :  { %v4666_v42 = vmul.f32 %v7540_v30, %v10737_v9  ;;  %7551 = vrsqrt.f32 %v4608_v7  ;;  %v4701_v25 = vmul.f32 %v10833_v3, %v4663_v27  ;;  %v4738_v9 = vadd.f32 %v10838_v26, %v4700_v22 }
 0xc7c   :  { %v7542_v61 = vpop.eup %7541  ;;  %v4607_v48 = vadd.f32 1e-05, %v4575_v50  ;;  %v4610_v34 = vadd.f32 1e-05, %v4578_v2  ;;  %v4740_v14 = vadd.f32 %v10838_v26, %v4702_v53  ;;  %v4788_v7 = vmax.f32 %v4731_v23, %v4732_v39 }
 0xc7d   :  { %v4665_v38 = vmul.f32 %v7542_v61, %v10744_v28  ;;  %v4542_v47 = vpop.xlane.xlu0 %4541  ;;  %v7544_v35 = vpop.eup %7543  ;;  %v4704_v6 = vmul.f32 %v10833_v3, %v4666_v42  ;;  %v4739_v5 = vadd.f32 %v10838_v26, %v4701_v25  ;;  %v4734_v50 = vadd.f32 %v10838_v26, %v4696_v4 }
 0xc7e   :  { %7553 = vrsqrt.f32 %v4607_v48  ;;  %v4577_v62 = vmul.f32 0.0078125, %v4542_v47  ;;  %v4548_v43 = vpop.xlane.xlu1 %4547  ;;  %v4668_v52 = vmul.f32 %v7544_v35, %v10747_v56  ;;  %v4809_v12 = vmax.f32 %v4737_v24, %v4738_v9 }
 0xc7f   :  { %v4703_v46 = vmul.f32 %v10833_v3, %v4665_v38  ;;  %7555 = vrsqrt.f32 %v4610_v34  ;;  %v4580_v21 = vmul.f32 0.0078125, %v4548_v43  ;;  %v4742_v1 = vadd.f32 %v10838_v26, %v4704_v6 }
 0xc80   :  { %v7546_v51 = vpop.eup %7545  ;;  %v4609_v28 = vadd.f32 1e-05, %v4577_v62  ;;  %v4706_v45 = vmul.f32 %v10833_v3, %v4668_v52  ;;  %v4733_v61 = vadd.f32 %v10838_v26, %v4695_v37  ;;  %v4698_v39 = vmul.f32 %v10833_v3, %v4660_v58 }
 0xc81   :  { %v7548_v19 = vpop.eup %7547  ;;  %v4741_v59 = vadd.f32 %v10838_v26, %v4703_v46  ;;  %v4546_v16 = vpop.xlane.xlu0 %4545  ;;  %v4667_v44 = vmul.f32 %v7546_v51, %v10754_v57  ;;  %v4612_v32 = vadd.f32 1e-05, %v4580_v21  ;;  %v4816_v57 = vmax.f32 %v4739_v5, %v4740_v14 }
 0xc82   :  { %v4670_v56 = vmul.f32 %v7548_v19, %v10757_v60  ;;  %7557 = vrsqrt.f32 %v4609_v28  ;;  %v4744_v30 = vadd.f32 %v10838_v26, %v4706_v45  ;;  %v4579_v2 = vmul.f32 0.0078125, %v4546_v16 }
 0xc83   :  { %v4705_v8 = vmul.f32 %v10833_v3, %v4667_v44  ;;  %7559 = vrsqrt.f32 %v4612_v32  ;;  %v4823_v53 = vmax.f32 %v4741_v59, %v4742_v1  ;;  %v4697_v23 = vmul.f32 %v10833_v3, %v4659_v20 }
 0xc84   :  { %v7550_v22 = vpop.eup %7549  ;;  %v4708_v27 = vmul.f32 %v10833_v3, %v4670_v56  ;;  %v4611_v48 = vadd.f32 1e-05, %v4579_v2  ;;  %v10929_v37 = vmax.f32 %v10862_v36, %v4758_v15  ;;  %v4810_v47 = vrot.slane %v4809_v12, 4 }
 0xc85   :  { %v4669_v60 = vmul.f32 %v7550_v22, %v10764_v31  ;;  %v7552_v42 = vpop.eup %7551  ;;  %v4743_v4 = vadd.f32 %v10838_v26, %v4705_v8  ;;  %v10934_v31 = vmax.f32 %v10872_v41, %v4765_v55  ;;  %v4817_v6 = vrot.slane %v4816_v57, 4 }
 0xc86   :  { %v4746_v25 = vadd.f32 %v10838_v26, %v4708_v27  ;;  %v4672_v35 = vmul.f32 %v7552_v42, %v10767_v11  ;;  %7561 = vrsqrt.f32 %v4611_v48  ;;  %v4824_v34 = vrot.slane %v4823_v53, 4 }
 0xc87   :  { %v4707_v38 = vmul.f32 %v10833_v3, %v4669_v60  ;;  %v4830_v20 = vmax.f32 %v4743_v4, %v4744_v30  ;;  %v4736_v36 = vadd.f32 %v10838_v26, %v4698_v39  ;;  %v4735_v15 = vadd.f32 %v10838_v26, %v4697_v23 }
 0xc88   :  { %v7554_v58 = vpop.eup %7553  ;;  %v4710_v41 = vmul.f32 %v10833_v3, %v4672_v35  ;;  %v4795_v55 = vmax.f32 %v4733_v61, %v4734_v50  ;;  %v4783_v11 = vmax.f32 %v10876_v17, %v4782_v0  ;;  %v4811_v14 = vmax.f32 %v4809_v12, %v4810_v47 }
 0xc89   :  { %v4745_v62 = vadd.f32 %v10838_v26, %v4707_v38  ;;  %v4671_v43 = vmul.f32 %v7554_v58, %v10774_v40  ;;  %v7556_v9 = vpop.eup %7555  ;;  %v4831_v24 = vrot.slane %v4830_v20, 4  ;;  %v4789_v21 = vrot.slane %v4788_v7, 4 }
 0xc8a   :  { %v4748_v40 = vadd.f32 %v10838_v26, %v4710_v41  ;;  %v4674_v28 = vmul.f32 %v7556_v9, %v10777_v29  ;;  %v4818_v19 = vmax.f32 %v4816_v57, %v4817_v6  ;;  %v4825_v5 = vmax.f32 %v4823_v53, %v4824_v34 }
 0xc8b   :  { %v4837_v46 = vmax.f32 %v4745_v62, %v4746_v25  ;;  %v4709_v52 = vmul.f32 %v10833_v3, %v4671_v43  ;;  %v4796_v56 = vrot.slane %v4795_v55, 4  ;;  %v4802_v32 = vmax.f32 %v4735_v15, %v4736_v36 }
 0xc8c   :  { %v7558_v51 = vpop.eup %7557  ;;  %v4712_v44 = vmul.f32 %v10833_v3, %v4674_v28  ;;  %v4832_v17 = vmax.f32 %v4830_v20, %v4831_v24  ;;  %v4777_v30 = vrot.slane %v10887_v49, 2  ;;  %v4790_v22 = vmax.f32 %v4788_v7, %v4789_v21 }
 0xc8d   :  { %v4747_v1 = vadd.f32 %v10838_v26, %v4709_v52  ;;  %v4673_v59 = vmul.f32 %v7558_v51, %v10784_v54  ;;  %v7560_v45 = vpop.eup %7559  ;;  %v4838_v16 = vrot.slane %v4837_v46, 4  ;;  %v4803_v8 = vrot.slane %v4802_v32, 4 }
 0xc8e   :  { %v4676_v12 = vmul.f32 %v7560_v45, %v10787_v13  ;;  %v4750_v29 = vadd.f32 %v10838_v26, %v4712_v44  ;;  %v4819_v27 = vrot.slane %v4818_v19, 2  ;;  %v4784_v61 = vrot.slane %v4783_v11, 2 }
 0xc8f   :  { %v4844_v0 = vmax.f32 %v4747_v1, %v4748_v40  ;;  %v4711_v50 = vmul.f32 %v10833_v3, %v4673_v59  ;;  %v4826_v53 = vrot.slane %v4825_v5, 2  ;;  %v4797_v60 = vmax.f32 %v4795_v55, %v4796_v56 }
 0xc90   :  { %v4714_v2 = vmul.f32 %v10833_v3, %v4676_v12  ;;  %v7562_v57 = vpop.eup %7561  ;;  %v4839_v42 = vmax.f32 %v4837_v46, %v4838_v16  ;;  %v4812_v23 = vrot.slane %v4811_v14, 2  ;;  %v4804_v4 = vmax.f32 %v4802_v32, %v4803_v8 }
 0xc91   :  { %v4749_v54 = vadd.f32 %v10838_v26, %v4711_v50  ;;  %v4845_v39 = vrot.slane %v4844_v0, 4  ;;  %v4675_v13 = vmul.f32 %v7562_v57, %v10794_v18  ;;  %v4833_v48 = vrot.slane %v4832_v17, 2 }
 0xc92   :  { %v4791_v25 = vrot.slane %v4790_v22, 2  ;;  %v4840_v38 = vrot.slane %v4839_v42, 2  ;;  %v4820_v47 = vmax.f32 %v4818_v19, %v4819_v27  ;;  %v4752_v20 = vadd.f32 %v10838_v26, %v4714_v2 }
 0xc93   :  { %v4846_v7 = vmax.f32 %v4844_v0, %v4845_v39  ;;  %v4851_v58 = vmax.f32 %v4749_v54, %v4750_v29  ;;  %v4713_v35 = vmul.f32 %v10833_v3, %v4675_v13  ;;  %v4778_v6 = vmax.f32 %v10887_v49, %v4777_v30 }
 0xc94   :  { %v4827_v34 = vmax.f32 %v4825_v5, %v4826_v53  ;;  %v4798_v62 = vrot.slane %v4797_v60, 2  ;;  %v4813_v36 = vmax.f32 %v4811_v14, %v4812_v23  ;;  %v4805_v15 = vrot.slane %v4804_v4, 2 }
 0xc95   :  { %v4847_v43 = vrot.slane %v4846_v7, 2  ;;  %v4852_v9 = vrot.slane %v4851_v58, 4  ;;  %v4751_v18 = vadd.f32 %v10838_v26, %v4713_v35  ;;  %v4834_v41 = vmax.f32 %v4832_v17, %v4833_v48 }
 0xc96   :  { %v4785_v55 = vmax.f32 %v4783_v11, %v4784_v61  ;;  %v4792_v24 = vmax.f32 %v4790_v22, %v4791_v25  ;;  %v4841_v46 = vmax.f32 %v4839_v42, %v4840_v38  ;;  %v4821_v51 = vrot.slane %v4820_v47, 1 }
 0xc97   :  { %v4853_v52 = vmax.f32 %v4851_v58, %v4852_v9  ;;  %v4772_v40 = vrot.slane %v10885_v10, 1  ;;  %v4848_v28 = vmax.f32 %v4846_v7, %v4847_v43  ;;  %v4858_v3 = vmax.f32 %v4751_v18, %v4752_v20  ;;  %v4866_v9 = vld [vmem:[%s11401_s14 + $0x8] sm:$0xff]  ;;  %v4983_v18 = vld [vmem:[%s11402_s19 + $0x10] sm:$0xff] }
 0xc98   :  { %v4779_v21 = vrot.slane %v4778_v6, 1  ;;  %v4799_v49 = vmax.f32 %v4797_v60, %v4798_v62  ;;  %v4828_v19 = vrot.slane %v4827_v34, 1  ;;  %v4814_v1 = vrot.slane %v4813_v36, 1 }
 0xc99   :  { %v4854_v5 = vrot.slane %v4853_v52, 2  ;;  %v4806_v59 = vmax.f32 %v4804_v4, %v4805_v15  ;;  %v4835_v14 = vrot.slane %v4834_v41, 1  ;;  %v4859_v45 = vrot.slane %v4858_v3, 4  ;;  %v4986_v15 = vld [vmem:[%s11402_s19 + $0x28] sm:$0xff] }
 0xc9a   :  { %v4786_v26 = vrot.slane %v4785_v55, 1  ;;  %v4793_v16 = vrot.slane %v4792_v24, 1  ;;  %v4842_v44 = vrot.slane %v4841_v46, 1  ;;  %v4773_v56 = vmax.f32 %v10885_v10, %v4772_v40 }
 0xc9b   :  { %v4855_v11 = vmax.f32 %v4853_v52, %v4854_v5  ;;  %v4822_v32 = vmax.f32 %v4820_v47, %v4821_v51  ;;  %v4849_v17 = vrot.slane %v4848_v28, 1  ;;  %v4860_v0 = vmax.f32 %v4858_v3, %v4859_v45  ;;  %v4995_v52 = vld [vmem:[%s11402_s19 + $0x70] sm:$0xff]  ;;  %v4998_v51 = vld [vmem:[%s11402_s19 + $0x88] sm:$0xff]  ;;  %v5004_v3 = vld [vmem:[%s11402_s19 + $0xb8] sm:$0xff] }
 0xc9c   :  { %v4780_v50 = vmax.f32 %v4778_v6, %v4779_v21  ;;  %v4800_v12 = vrot.slane %v4799_v49, 1  ;;  %v4829_v29 = vmax.f32 %v4827_v34, %v4828_v19  ;;  %v4807_v22 = vrot.slane %v4806_v59, 1  ;;  %v5010_v19 = vld [vmem:[%s11402_s19 + $0xe8] sm:$0xff]  ;;  %v5019_v45 = vld [vmem:[%s11402_s19 + $0x130] sm:$0xff] }
 0xc9d   :  { %v4856_v30 = vrot.slane %v4855_v11, 1  ;;  %v4815_v8 = vmax.f32 %v4813_v36, %v4814_v1  ;;  %v4836_v27 = vmax.f32 %v4834_v41, %v4835_v14  ;;  %v4861_v54 = vrot.slane %v4860_v0, 2  ;;  %v4989_v41 = vld [vmem:[%s11402_s19 + $0x40] sm:$0xff] }
 0xc9e   :  { %v4787_v2 = vmax.f32 %v4785_v55, %v4786_v26  ;;  %v4794_v61 = vmax.f32 %v4792_v24, %v4793_v16  ;;  %v4843_v57 = vmax.f32 %v4841_v46, %v4842_v44  ;;  %v4850_v53 = vmax.f32 %v4848_v28, %v4849_v17  ;;  %v4992_v24 = vld [vmem:[%s11402_s19 + $0x58] sm:$0xff]  ;;  %v5001_v28 = vld [vmem:[%s11402_s19 + $0xa0] sm:$0xff]  ;;  %v5022_v26 = vld [vmem:[%s11402_s19 + $0x148] sm:$0xff] }
 0xc9f   :  { %v4862_v60 = vmax.f32 %v4860_v0, %v4861_v54  ;;  %v4883_v10 = vsel %vm2561_vm4, %v10934_v31, %v10929_v37  ;;  %v4890_v42 = vsel %vm2561_vm4, %v4822_v32, %v4815_v8  ;;  %v4801_v39 = vmax.f32 %v4799_v49, %v4800_v12  ;;  %v5007_v49 = vld [vmem:[%s11402_s19 + $0xd0] sm:$0xff]  ;;  %v5013_v1 = vld [vmem:[%s11402_s19 + $0x100] sm:$0xff] }
 0xca0   :  { %v4857_v23 = vmax.f32 %v4855_v11, %v4856_v30  ;;  %v4884_v13 = vsel %vm2563_vm5, %v4773_v56, %v4883_v10  ;;  %v4891_v4 = vsel %vm2563_vm5, %v4829_v29, %v4890_v42  ;;  %v4808_v48 = vmax.f32 %v4806_v59, %v4807_v22  ;;  %v5016_v59 = vld [vmem:[%s11402_s19 + $0x118] sm:$0xff]  ;;  %v5025_v44 = vld [vmem:[%s11402_s19 + $0x160] sm:$0xff] }
 0xca1   :  { %v4863_v25 = vrot.slane %v4862_v60, 1  ;;  %v4885_v38 = vsel %vm2565_vm6, %v4780_v50, %v4884_v13  ;;  %v4892_v7 = vsel %vm2565_vm6, %v4836_v27, %v4891_v4  ;;  %v7649_v36 = vmov 0.0   ;;  %v5028_v11 = vld [vmem:[%s11402_s19 + $0x178] sm:$0xff]  ;;  %v5029_v0 = vld [vmem:[%s11405_s6] sm:$0x7] }
 0xca2   :  { %v4886_v58 = vsel %vm2567_vm7, %v4787_v2, %v4885_v38  ;;  %v4893_v37 = vsel %vm2567_vm7, %v4843_v57, %v4892_v7  ;;  %5110 = vmatprep.mubr.f32.mxu0 %v7649_v36  ;;  %v6995_v55 = vpack.c.bf16 %v4986_v15, %v4983_v18  ;;  %v6999_v46 = vpack.c.bf16 %v4992_v24, %v4989_v41 }
 0xca3   :  { %v4864_v31 = vmax.f32 %v4862_v60, %v4863_v25  ;;  %v4887_v47 = vsel %vm2569_vm8, %v4794_v61, %v4886_v58  ;;  %v4894_v20 = vsel %vm2569_vm8, %v4850_v53, %v4893_v37  ;;  %v7003_v40 = vpack.c.bf16 %v4998_v51, %v4995_v52  ;;  %v5276_v25 = vld [vmem:[%s11406_s20 + $0x8] sm:$0xff]  ;;  %v5275_v58 = vld [vmem:[%s11406_s20] sm:$0xff] }
 0xca4   :  { %v4888_v35 = vsel %vm2571_vm9, %v4801_v39, %v4887_v47  ;;  %v4895_v6 = vsel %vm2571_vm9, %v4857_v23, %v4894_v20  ;;  %v7007_v21 = vpack.c.bf16 %v5004_v3, %v5001_v28  ;;  %v7011_v5 = vpack.c.bf16 %v5010_v19, %v5007_v49  ;;  %v5383_v52 = vld [vmem:[%s11407_s27 + $0x8] sm:$0xff]  ;;  %v5385_v49 = vld [vmem:[%s11407_s27 + $0x18] sm:$0xff] }
 0xca5   :  { %v4889_v34 = vsel %vm2573_vm10, %v4808_v48, %v4888_v35  ;;  %v4896_v62 = vsel %vm2573_vm10, %v4864_v31, %v4895_v6  ;;  %v7015_v14 = vpack.c.bf16 %v5016_v59, %v5013_v1  ;;  %v7019_v16 = vpack.c.bf16 %v5022_v26, %v5019_v45  ;;  %v5387_v45 = vld [vmem:[%s11407_s27 + $0x28] sm:$0xff] }
 0xca6   :  { %v6959_v43 = vpack.c.bf16 %v4896_v62, %v4889_v34  ;;  %v7023_v56 = vpack.c.bf16 %v5028_v11, %v5025_v44  ;;  %v5041_v50 = vsub.s32 2, %v9637_v33  ;;  %v5034_v12 = vrot.slane %v5029_v0, %v9644_v63  ;;  %v5389_v44 = vld [vmem:[%s11407_s27 + $0x38] sm:$0xff] }
 0xca7   :  { %v5037_v29 = vsub.s32 1, %v9637_v33  ;;  %v5960_v33 = vld [vmem:[%s11414_s15] ss:$0 sm:$0xff] }
 0xca8   :  { %6960 = vmatprep.subr.bf16.mxu1 %v6959_v43  ;;  %v5042_v30 = vrot.slane %v5029_v0, %v5041_v50 }
 0xca9   :  { %6962 = vmatpush3.bf16.msra.mxu1 %v6959_v43  ;;  %v5038_v2 = vrot.slane %v5029_v0, %v5037_v29  ;;  %v5391_v0 = vld [vmem:[%s11407_s27 + $0x48] sm:$0xff] }
 0xcaa   :  { %6996 = vmatprep.subr.bf16.mxu1 %v6995_v55 }
 0xcac   :  { %6707 = vmatmul.mubr.msk.f32.vlgmr.msra.gmra.mrb[82].mxu1 %vm4899_vm11, %v4866_v9 }
 0xcad   :  { %6998 = vmatpush3.bf16.msra.mxu1 %v6995_v55 }
 0xcae   :  { %7000 = vmatprep.subr.bf16.mxu1 %v6999_v46 }
 0xcb1   :  { %7002 = vmatpush3.bf16.msra.mxu1 %v6999_v46  ;;  %v5382_v46 = vld [vmem:[%s11407_s27] sm:$0xff] }
 0xcb2   :  { %7004 = vmatprep.subr.bf16.mxu1 %v7003_v40  ;;  %v7035_v51 = vpack.c.bf16 %v5383_v52, %v5382_v46 }
 0xcb5   :  { %7006 = vmatpush3.bf16.msra.mxu1 %v7003_v40 }
 0xcb6   :  { %7008 = vmatprep.subr.bf16.mxu1 %v7007_v21 }
 0xcb9   :  { %7010 = vmatpush3.bf16.msra.mxu1 %v7007_v21  ;;  %v5384_v21 = vld [vmem:[%s11407_s27 + $0x10] sm:$0xff] }
 0xcba   :  { %7012 = vmatprep.subr.bf16.mxu1 %v7011_v5  ;;  %v7039_v59 = vpack.c.bf16 %v5385_v49, %v5384_v21  ;;  %v5535_v49 = vld [vmem:[%s11409_s1 + $0x68] sm:$0xff] }
 0xcbd   :  { %7014 = vmatpush3.bf16.msra.mxu1 %v7011_v5 }
 0xcbe   :  { %7016 = vmatprep.subr.bf16.mxu1 %v7015_v14 }
 0xcc1   :  { %7018 = vmatpush3.bf16.msra.mxu1 %v7015_v14  ;;  %v5386_v14 = vld [vmem:[%s11407_s27 + $0x20] sm:$0xff] }
 0xcc2   :  { %7020 = vmatprep.subr.bf16.mxu1 %v7019_v16  ;;  %v7043_v26 = vpack.c.bf16 %v5387_v45, %v5386_v14  ;;  %v5539_v14 = vld [vmem:[%s11409_s1 + $0x88] sm:$0xff]  ;;  %v5541_v45 = vld [vmem:[%s11409_s1 + $0x98] sm:$0xff] }
 0xcc5   :  { %7022 = vmatpush3.bf16.msra.mxu1 %v7019_v16  ;;  %v5388_v16 = vld [vmem:[%s11407_s27 + $0x30] sm:$0xff] }
 0xcc6   :  { %7024 = vmatprep.subr.bf16.mxu1 %v7023_v56  ;;  %v7047_v11 = vpack.c.bf16 %v5389_v44, %v5388_v16  ;;  %v7083_v16 = vpack.c.bf16 %v5541_v45, %v5539_v14  ;;  %v5538_v44 = vld [vmem:[%s11409_s1 + $0x80] sm:$0xff] }
 0xcc9   :  { %7026 = vmatpush3.bf16.msra.mxu1 %v7023_v56  ;;  %v5390_v56 = vld [vmem:[%s11407_s27 + $0x40] sm:$0xff] }
 0xcca   :  { %v7051_v50 = vpack.c.bf16 %v5391_v0, %v5390_v56  ;;  %v5543_v56 = vld [vmem:[%s11409_s1 + $0xa8] sm:$0xff]  ;;  %v5545_v0 = vld [vmem:[%s11409_s1 + $0xb8] sm:$0xff] }
 0xd7f   :  { %v10999_v32 = vpop.f32.mrb[82].mxu1 }
 0xd80   :  { %v11001_v17 = vpop.f32.mrb[83].mxu1 }
 0xd81   :  { %5111 = vmatmul.mubr.f32.vlgmr.msra.gmra.mrb[80].mxu0 %v11001_v17  ;;  %6741 = vmatprep.mubr.f32.mxu1 %v11001_v17 }
 0xd82   :  { %5116 = vmatprep.mubr.f32.mxu0 %v7649_v36  ;;  %6742 = vmatmul.mubr.f32.vlgmr.msra.gmra.mrb[84].mxu1 %v10999_v32 }
 0xd83   :  { %5630 = vmatprep.mubr.f32.mxu1 %v7649_v36 }
 0xd85   :  { %5117 = vmatmul.mubr.f32.gmra.mrb[82].mxu0 %v10999_v32 }
 0xe54   :  { %v5112_v22 = vpop.f32.mrb[80].mxu0 }
 0xe55   :  { %v5113_v8 = vadd.f32 %v5112_v22, %v5034_v12  ;;  %v5114_v27 = vpop.f32.mrb[81].mxu0  ;;  %v6743_v54 = vpop.f32.mrb[84].mxu1 }
 0xe56   :  { %v5195_v61 = vadd.f32 %v6743_v54, %v5042_v30  ;;  %v5189_v57 = vpop.f32.mrb[85].mxu1  ;;  %v5115_v39 = vadd.f32 %v5114_v27, %v5038_v2  ;;  %v5395_v27 = vld [vmem:[%s11407_s27 + $0x68] sm:$0xff] }
 0xe57   :  { %6748 = vmatprep.mubr.f32.mxu0 %v5113_v8  ;;  %v5190_v53 = vadd.f32 %v5189_v57, %v5042_v30  ;;  %v5393_v30 = vld [vmem:[%s11407_s27 + $0x58] sm:$0xff]  ;;  %v5394_v8 = vld [vmem:[%s11407_s27 + $0x60] sm:$0xff] }
 0xe58   :  { %v5118_v60 = vpop.f32.mrb[82].mxu0  ;;  %v7059_v54 = vpack.c.bf16 %v5395_v27, %v5394_v8  ;;  %v5547_v8 = vld [vmem:[%s11409_s1 + $0xc8] sm:$0xff]  ;;  %v5549_v27 = vld [vmem:[%s11409_s1 + $0xd8] sm:$0xff] }
 0xe59   :  { %v5120_v10 = vpop.f32.mrb[83].mxu0  ;;  %v7031_v42 = vpack.c.bf16 %v5195_v61, %v5190_v53  ;;  %v5119_v4 = vadd.f32 %v5118_v60, %v5034_v12  ;;  %v5392_v12 = vld [vmem:[%s11407_s27 + $0x50] sm:$0xff]  ;;  %v5397_v61 = vld [vmem:[%s11407_s27 + $0x78] sm:$0xff] }
 0xe5a   :  { %v5121_v23 = vadd.f32 %v5120_v10, %v5038_v2  ;;  %v7055_v22 = vpack.c.bf16 %v5393_v30, %v5392_v12  ;;  %v5396_v2 = vld [vmem:[%s11407_s27 + $0x70] sm:$0xff]  ;;  %v5957_v10 = vld [vmem:[%s11408_s28] ss:$0 sm:$0xff]  ;;  %v7087_v12 = vpack.c.bf16 %v5545_v0, %v5543_v56 }
 0xe5b   :  { %v7063_v57 = vpack.c.bf16 %v5397_v61, %v5396_v2  ;;  %v5542_v30 = vld [vmem:[%s11409_s1 + $0xa0] sm:$0xff]  ;;  %v7091_v2 = vpack.c.bf16 %v5549_v27, %v5547_v8 }
 0xe5c   :  { %v7027_v13 = vpack.c.bf16 %v5121_v23, %v5115_v39  ;;  %v5546_v61 = vld [vmem:[%s11409_s1 + $0xc0] sm:$0xff] }
 0xe5e   :  { %7028 = vmatprep.subr.bf16.mxu0 %v7027_v13 }
 0xe5f   :  { %7030 = vmatpush3.bf16.xpose.msra.mxu0 %v7027_v13 }
 0xe60   :  { %7032 = vmatprep.subr.bf16.mxu0 %v7031_v42 }
 0xe66   :  { %6749 = vmatmul.mubr.f32.vlgmr.msra.gmra.mrb[84].mxu0 %v5119_v4 }
 0xe67   :  { %7034 = vmatpush3.bf16.msra.mxu0 %v7031_v42 }
 0xe68   :  { %7036 = vmatprep.subr.bf16.mxu0 %v7035_v51 }
 0xf39   :  { %v6750_v48 = vpop.f32.mrb[84].mxu0 }
 0xf3a   :  { %v5274_v38 = vmul.f32 0.125, %v6750_v48  ;;  %v5264_v7 = vpop.f32.mrb[85].mxu0 }
 0xf3b   :  { %v5273_v37 = vmul.f32 0.125, %v5264_v7  ;;  %v5522_v7 = vld [vmem:[%s11409_s1] sm:$0xff] }
 0xf3c   :  { %v5278_v31 = vadd.f32 %v5276_v25, %v5274_v38  ;;  %v5523_v25 = vld [vmem:[%s11409_s1 + $0x8] sm:$0xff]  ;;  %v5525_v38 = vld [vmem:[%s11409_s1 + $0x18] sm:$0xff] }
 0xf3d   :  { %v5277_v47 = vadd.f32 %v5275_v58, %v5273_v37  ;;  %v7067_v58 = vpack.c.bf16 %v5525_v38, %v5523_v25  ;;  %v5524_v37 = vld [vmem:[%s11409_s1 + $0x10] sm:$0xff]  ;;  %v5647_v25 = vld [vmem:[%s11410_s2] sm:$0xff] }
 0xf3e   :  { %v5282_v20 = vsel %vm4899_vm11, %v5278_v31, -inf }
 0xf3f   :  { %5283 = vmax.xlane.f32.xlu1 %v5282_v20  ;;  %v5279_v35 = vsel %vm4899_vm11, %v5277_v47, -inf  ;;  %v7069_v20 = vpack.c.bf16 %v5524_v37, %v5522_v7  ;;  %7068 = vmatprep.subr.bf16.mxu1 %v7067_v58  ;;  %v5648_v7 = vld [vmem:[%s11410_s2 + $0x8] sm:$0xff]  ;;  %v5665_v58 = vld [vmem:[%s11410_s2 + $0x90] sm:$0xff]  ;;  %v5666_v37 = vld [vmem:[%s11410_s2 + $0x98] sm:$0xff] }
 0xf40   :  { %5280 = vmax.xlane.f32.xlu0 %v5279_v35 }
 0xf41   :  { %7070 = vmatpush1.bf16.msra.mxu1 %v7069_v20  ;;  %v5649_v20 = vld [vmem:[%s11410_s2 + $0x10] sm:$0xff] }
 0xfcc   :  { %v5284_v6 = vpop.xlane.xlu1 %5283 }
 0xfcd   :  { %v5286_v34 = vsub.f32 %v5278_v31, %v5284_v6  ;;  %v5281_v62 = vpop.xlane.xlu0 %5280  ;;  %v5527_v31 = vld [vmem:[%s11409_s1 + $0x28] sm:$0xff]  ;;  %v5526_v6 = vld [vmem:[%s11409_s1 + $0x20] sm:$0xff] }
 0xfce   :  { %v5285_v43 = vsub.f32 %v5277_v47, %v5281_v62  ;;  %v5529_v47 = vld [vmem:[%s11409_s1 + $0x38] sm:$0xff]  ;;  %v5531_v62 = vld [vmem:[%s11409_s1 + $0x48] sm:$0xff] }
 0xfcf   :  { %v5289_v9 = vmul.f32 1.442695, %v5286_v34  ;;  %v7071_v35 = vpack.c.bf16 %v5529_v47, %v5527_v31  ;;  %v5528_v34 = vld [vmem:[%s11409_s1 + $0x30] sm:$0xff]  ;;  %v7101_v31 = vpack.c.bf16 %v5648_v7, %v5647_v25  ;;  %v7103_v47 = vpack.c.bf16 %v5666_v37, %v5665_v58  ;;  %v5662_v7 = vld [vmem:[%s11410_s2 + $0x78] sm:$0xff]  ;;  %v5554_v37 = vld [vmem:[%s11413_s11] sm:$0x3] }
 0xfd0   :  { %v5287_v18 = vmul.f32 1.442695, %v5285_v43  ;;  %v5533_v43 = vld [vmem:[%s11409_s1 + $0x58] sm:$0xff]  ;;  %v5677_v25 = vld [vmem:[%s11410_s2 + $0xf0] sm:$0xff] }
 0xfd1   :  { %7563 = vpow2.f32 %v5289_v9  ;;  %v7073_v9 = vpack.c.bf16 %v5528_v34, %v5526_v6  ;;  %7072 = vmatprep.subr.bf16.mxu1 %v7071_v35  ;;  %v5650_v35 = vld [vmem:[%s11410_s2 + $0x18] sm:$0xff]  ;;  %v5667_v6 = vld [vmem:[%s11410_s2 + $0xa0] sm:$0xff]  ;;  %v5668_v34 = vld [vmem:[%s11410_s2 + $0xa8] sm:$0xff] }
 0xfd2   :  { %7565 = vpow2.f32 %v5287_v18  ;;  %v7075_v18 = vpack.c.bf16 %v5533_v43, %v5531_v62  ;;  %v7105_v62 = vpack.c.bf16 %v5650_v35, %v5649_v20  ;;  %v7107_v43 = vpack.c.bf16 %v5668_v34, %v5667_v6 }
 0xfd3   :  { %7074 = vmatpush1.bf16.msra.mxu1 %v7073_v9  ;;  %v5651_v9 = vld [vmem:[%s11410_s2 + $0x20] sm:$0xff] }
 0xfd4   :  { %7076 = vmatprep.subr.bf16.mxu1 %v7075_v18  ;;  %v5652_v18 = vld [vmem:[%s11410_s2 + $0x28] sm:$0xff] }
 0xfdb   :  { %v7564_v15 = vpop.eup %7563 }
 0xfdc   :  { %v7566_v41 = vpop.eup %7565  ;;  %v5294_v55 = vsel %vm4899_vm11, %v7564_v15, 0.0 }
 0xfdd   :  { %5295 = vadd.xlane.f32.xlu1 %v5294_v55  ;;  %v5291_v24 = vsel %vm4899_vm11, %v7566_v41, 0.0 }
 0xfde   :  { %5292 = vadd.xlane.f32.xlu0 %v5291_v24 }
0x106a   :  { %v5296_v40 = vpop.xlane.xlu1 %5295 }
0x106b   :  { %7567 = vrcp.f32 %v5296_v40  ;;  %v5293_v28 = vpop.xlane.xlu0 %5292 }
0x106c   :  { %7569 = vrcp.f32 %v5293_v28 }
0x1075   :  { %v7568_v3 = vpop.eup %7567 }
0x1076   :  { %v7570_v19 = vpop.eup %7569  ;;  %v5300_v1 = vmul.f32 %v7568_v3, %v7564_v15  ;;  %v5530_v15 = vld [vmem:[%s11409_s1 + $0x40] sm:$0xff] }
0x1077   :  { %v5299_v5 = vmul.f32 %v7570_v19, %v7566_v41  ;;  %v5532_v41 = vld [vmem:[%s11409_s1 + $0x50] sm:$0xff]  ;;  %v5537_v19 = vld [vmem:[%s11409_s1 + $0x78] sm:$0xff] }
0x1078   :  { %v7077_v55 = vpack.c.bf16 %v5532_v41, %v5530_v15  ;;  %v5669_v15 = vld [vmem:[%s11410_s2 + $0xb0] sm:$0xff]  ;;  %v5670_v41 = vld [vmem:[%s11410_s2 + $0xb8] sm:$0xff] }
0x1079   :  { %6755 = vmatprep.mubr.msk.f32.mxu0 %vm4899_vm11, %v5299_v5  ;;  %v5534_v5 = vld [vmem:[%s11409_s1 + $0x60] sm:$0xff] }
0x107a   :  { %6756 = vmatmul.mubr.msk.f32.vlgmr.msra.gmra.mrb[86].mxu0 %vm4899_vm11, %v5300_v1  ;;  %7078 = vmatpush1.bf16.msra.mxu1 %v7077_v55  ;;  %v7079_v1 = vpack.c.bf16 %v5537_v19, %v5535_v49  ;;  %v7109_v55 = vpack.c.bf16 %v5652_v18, %v5651_v9  ;;  %v5655_v19 = vld [vmem:[%s11410_s2 + $0x40] sm:$0xff] }
0x107b   :  { %7038 = vmatpush3.bf16.msra.mxu0 %v7035_v51 }
0x107c   :  { %7040 = vmatprep.subr.bf16.mxu0 %v7039_v59  ;;  %7080 = vmatprep.subr.bf16.mxu1 %v7079_v1  ;;  %v5673_v1 = vld [vmem:[%s11410_s2 + $0xd0] sm:$0xff] }
0x107f   :  { %7042 = vmatpush3.bf16.msra.mxu0 %v7039_v59  ;;  %v5536_v59 = vld [vmem:[%s11409_s1 + $0x70] sm:$0xff] }
0x1080   :  { %7044 = vmatprep.subr.bf16.mxu0 %v7043_v26 }
0x1083   :  { %7046 = vmatpush3.bf16.msra.mxu0 %v7043_v26  ;;  %v7081_v26 = vpack.c.bf16 %v5536_v59, %v5534_v5  ;;  %v5656_v5 = vld [vmem:[%s11410_s2 + $0x48] sm:$0xff]  ;;  %v5674_v59 = vld [vmem:[%s11410_s2 + $0xd8] sm:$0xff] }
0x1084   :  { %7048 = vmatprep.subr.bf16.mxu0 %v7047_v11  ;;  %v7117_v14 = vpack.c.bf16 %v5656_v5, %v5655_v19  ;;  %v7119_v45 = vpack.c.bf16 %v5674_v59, %v5673_v1 }
0x1085   :  { %7082 = vmatpush1.bf16.msra.mxu1 %v7081_v26  ;;  %v5657_v26 = vld [vmem:[%s11410_s2 + $0x50] sm:$0xff] }
0x1086   :  { %7084 = vmatprep.subr.bf16.mxu1 %v7083_v16  ;;  %v5658_v16 = vld [vmem:[%s11410_s2 + $0x58] sm:$0xff] }
0x1087   :  { %7050 = vmatpush3.bf16.msra.mxu0 %v7047_v11  ;;  %v5540_v11 = vld [vmem:[%s11409_s1 + $0x90] sm:$0xff]  ;;  %v7121_v56 = vpack.c.bf16 %v5658_v16, %v5657_v26 }
0x1088   :  { %7052 = vmatprep.subr.bf16.mxu0 %v7051_v50 }
0x108b   :  { %7054 = vmatpush3.bf16.msra.mxu0 %v7051_v50  ;;  %v7085_v50 = vpack.c.bf16 %v5540_v11, %v5538_v44  ;;  %v5675_v44 = vld [vmem:[%s11410_s2 + $0xe0] sm:$0xff]  ;;  %v5676_v11 = vld [vmem:[%s11410_s2 + $0xe8] sm:$0xff] }
0x108c   :  { %7056 = vmatprep.subr.bf16.mxu0 %v7055_v22  ;;  %v7123_v0 = vpack.c.bf16 %v5676_v11, %v5675_v44 }
0x108d   :  { %7086 = vmatpush1.bf16.msra.mxu1 %v7085_v50 }
0x108e   :  { %7088 = vmatprep.subr.bf16.mxu1 %v7087_v12 }
0x108f   :  { %7058 = vmatpush3.bf16.msra.mxu0 %v7055_v22  ;;  %v5544_v22 = vld [vmem:[%s11409_s1 + $0xb0] sm:$0xff] }
0x1090   :  { %7060 = vmatprep.subr.bf16.mxu0 %v7059_v54 }
0x1093   :  { %7062 = vmatpush3.bf16.msra.mxu0 %v7059_v54  ;;  %v7089_v54 = vpack.c.bf16 %v5544_v22, %v5542_v30 }
0x1094   :  { %7064 = vmatprep.subr.bf16.mxu0 %v7063_v57 }
0x1095   :  { %7090 = vmatpush1.bf16.msra.mxu1 %v7089_v54 }
0x1096   :  { %7092 = vmatprep.subr.bf16.mxu1 %v7091_v2 }
0x1097   :  { %7066 = vmatpush3.bf16.msra.mxu0 %v7063_v57  ;;  %v5548_v57 = vld [vmem:[%s11409_s1 + $0xd0] sm:$0xff] }
0x114d   :  { %v6757_v53 = vpop.f32.mrb[86].mxu0 }
0x114e   :  { %v5373_v60 = vpop.f32.mrb[87].mxu0 }
0x114f   :  { %6790 = vmatprep.mubr.f32.mxu0 %v5373_v60  ;;  %v5553_v60 = vld [vmem:[%s11409_s1 + $0xf8] sm:$0xff] }
0x1150   :  { %6791 = vmatmul.mubr.f32.vlgmr.msra.gmra.mrb[88].mxu0 %v6757_v53  ;;  %v5551_v53 = vld [vmem:[%s11409_s1 + $0xe8] sm:$0xff] }
0x1223   :  { %v6792_v42 = vpop.f32.mrb[88].mxu0 }
0x1224   :  { %v5477_v39 = vadd.f32 %v6792_v42, %v5957_v10  ;;  %v5471_v23 = vpop.f32.mrb[89].mxu0  ;;  %v7095_v42 = vpack.c.bf16 %v5553_v60, %v5551_v53  ;;  %v5959_v60 = vld [vmem:[%s11412_s10] ss:$0 sm:$0xff] }
0x1225   :  { %v5472_v13 = vadd.f32 %v5957_v10, %v5471_v23  ;;  %v7093_v10 = vpack.c.bf16 %v5548_v57, %v5546_v61  ;;  %v5552_v23 = vld [vmem:[%s11409_s1 + $0xf0] sm:$0xff]  ;;  %v5958_v61 = vld [vmem:[%s11411_s7] ss:$0 sm:$0xff] }
0x1226   :  { %v5481_v4 = vadd.f32 %v10999_v32, %v5477_v39  ;;  %v5550_v39 = vld [vmem:[%s11409_s1 + $0xe0] sm:$0xff] }
0x1227   :  { %v5480_v48 = vadd.f32 %v5472_v13, %v11001_v17  ;;  %7094 = vmatpush1.bf16.msra.mxu1 %v7093_v10  ;;  %v7097_v13 = vpack.c.bf16 %v5552_v23, %v5550_v39 }
0x1228   :  { %5486 = vadd.xlane.f32.xlu1 %v5481_v4  ;;  %7096 = vmatprep.subr.bf16.mxu1 %v7095_v42 }
0x1229   :  { %5484 = vadd.xlane.f32.xlu0 %v5480_v48 }
0x122b   :  { %7098 = vmatpush1.bf16.msra.mxu1 %v7097_v13  ;;  %v5659_v13 = vld [vmem:[%s11410_s2 + $0x60] sm:$0xff] }
0x12b5   :  { %v5487_v24 = vpop.xlane.xlu1 %5486 }
0x12b6   :  { %v5489_v46 = vmul.f32 0.0078125, %v5487_v24  ;;  %v5485_v52 = vpop.xlane.xlu0 %5484  ;;  %v7111_v24 = vpack.c.bf16 %v5670_v41, %v5669_v15 }
0x12b7   :  { %v5488_v51 = vmul.f32 0.0078125, %v5485_v52  ;;  %v5654_v52 = vld [vmem:[%s11410_s2 + $0x38] sm:$0xff] }
0x12b8   :  { %v11054_v40 = vsub.f32 %v5481_v4, %v5489_v46  ;;  %v5663_v4 = vld [vmem:[%s11410_s2 + $0x80] sm:$0xff]  ;;  %v5653_v46 = vld [vmem:[%s11410_s2 + $0x30] sm:$0xff] }
0x12b9   :  { %v11056_v28 = vsub.f32 %v5480_v48, %v5488_v51  ;;  %v5664_v48 = vld [vmem:[%s11410_s2 + $0x88] sm:$0xff]  ;;  %v5671_v51 = vld [vmem:[%s11410_s2 + $0xc0] sm:$0xff] }
0x12ba   :  { %v5493_v3 = vmul.f32 %v11054_v40, %v11054_v40  ;;  %v7099_v38 = vpack.c.bf16 %v5664_v48, %v5663_v4  ;;  %v5660_v4 = vld [vmem:[%s11410_s2 + $0x68] sm:$0xff] }
0x12bb   :  { %v5492_v21 = vmul.f32 %v11056_v28, %v11056_v28  ;;  %v7125_v48 = vpack.c.bf16 %v5660_v4, %v5659_v13 }
0x12bc   :  { %5496 = vadd.xlane.f32.xlu1 %v5493_v3  ;;  %7100 = vmatprep.subr.bf16.mxu0 %v7099_v38  ;;  %v5672_v3 = vld [vmem:[%s11410_s2 + $0xc8] sm:$0xff]  ;;  %v5678_v38 = vld [vmem:[%s11410_s2 + $0xf8] sm:$0xff] }
0x12bd   :  { %5494 = vadd.xlane.f32.xlu0 %v5492_v21  ;;  %7102 = vmatpush3.bf16.msra.mxu0 %v7101_v31  ;;  %v7113_v21 = vpack.c.bf16 %v5654_v52, %v5653_v46  ;;  %v7115_v49 = vpack.c.bf16 %v5672_v3, %v5671_v51  ;;  %v5559_v31 = vrot.slane %v5554_v37, %v9644_v63 }
0x12be   :  { %7104 = vmatprep.subr.bf16.mxu0 %v7103_v47 }
0x12c1   :  { %7106 = vmatpush3.bf16.msra.mxu0 %v7105_v62 }
0x12c2   :  { %7108 = vmatprep.subr.bf16.mxu0 %v7107_v43 }
0x12c5   :  { %7110 = vmatpush3.bf16.msra.mxu0 %v7109_v55 }
0x12c6   :  { %7112 = vmatprep.subr.bf16.mxu0 %v7111_v24 }
0x12c9   :  { %7114 = vmatpush3.bf16.msra.mxu0 %v7113_v21 }
0x12ca   :  { %7116 = vmatprep.subr.bf16.mxu0 %v7115_v49 }
0x12cd   :  { %7118 = vmatpush3.bf16.msra.mxu0 %v7117_v14 }
0x12ce   :  { %7120 = vmatprep.subr.bf16.mxu0 %v7119_v45 }
0x12d1   :  { %7122 = vmatpush3.bf16.msra.mxu0 %v7121_v56 }
0x12d2   :  { %7124 = vmatprep.subr.bf16.mxu0 %v7123_v0 }
0x12d5   :  { %7126 = vmatpush3.bf16.msra.mxu0 %v7125_v48 }
0x1349   :  { %v5497_v50 = vpop.xlane.xlu1 %5496 }
0x134a   :  { %v5499_v12 = vmul.f32 0.0078125, %v5497_v50  ;;  %v5495_v30 = vpop.xlane.xlu0 %5494 }
0x134b   :  { %v5498_v22 = vmul.f32 0.0078125, %v5495_v30 }
0x134c   :  { %v5501_v8 = vadd.f32 1e-05, %v5499_v12 }
0x134d   :  { %v5500_v27 = vadd.f32 1e-05, %v5498_v22 }
0x134e   :  { %7571 = vrsqrt.f32 %v5501_v8  ;;  %v5961_v8 = vld [vmem:[%s11415_s16] ss:$0 sm:$0xff] }
0x134f   :  { %7573 = vrsqrt.f32 %v5500_v27 }
0x1358   :  { %v7572_v54 = vpop.eup %7571 }
0x1359   :  { %v7574_v2 = vpop.eup %7573  ;;  %v5505_v53 = vmul.f32 %v7572_v54, %v11054_v40  ;;  %v5661_v40 = vld [vmem:[%s11410_s2 + $0x70] sm:$0xff]  ;;  %v5962_v54 = vld [vmem:[%s7846_s4] ss:$0 sm:$0xff]  ;;  %s7650_s4 = smov [#allocation2]  }
0x135a   :  { %v5504_v57 = vmul.f32 %v7574_v2, %v11056_v28  ;;  %v7127_v28 = vpack.c.bf16 %v5678_v38, %v5677_v25  ;;  %v7129_v58 = vpack.c.bf16 %v5662_v7, %v5661_v40  ;;  %s5852_s18 = sshll.u32 %s7650_s4, 4  ;;  %s5853_s18 = int_to_ptr.vmem [resolvable:$true] %s5852_s18 }
0x135b   :  { %v5513_v39 = vmul.f32 %v5958_v61, %v5505_v53  ;;  %s7583_s22 = scalar_lea.vmem %s5853_s18, 256  ;;  %p7588_p1 = scmp.lt.s32.totalorder %s5853_s18, %s5853_s18 }
0x135c   :  { %v5512_v10 = vmul.f32 %v5958_v61, %v5504_v57  ;;  %7128 = vmatprep.subr.bf16.mxu0 %v7127_v28  ;;  %p7584_p0 = scmp.ne.s32.totalorder %s5853_s18, %s7583_s22  ;;  %p7589_p2 = scmp.lt.s32.totalorder %s7583_s22, %s7583_s22 }
0x135d   :  { %v5521_v23 = vadd.f32 %v5959_v60, %v5513_v39  ;;  %7130 = vmatpush3.bf16.msra.mxu0 %v7129_v58 }
0x135e   :  { %v5520_v42 = vadd.f32 %v5959_v60, %v5512_v10  ;;  %p7590_p3 = por %p7589_p2, %p7588_p1 }
0x1360   :  { %5631 = vmatmul.mubr.f32.vlgmr.msra.gmra.mrb[86].mxu1 %v5520_v42  ;;  %p7591_p4 = pnand %p7590_p3, %p7584_p0 }
0x1361   :  { %5636 = vmatprep.mubr.f32.mxu1 %v7649_v36  ;;  %v5563_v36 = vrot.slane %v5554_v37, %v5037_v29 }
0x1364   :  { %5637 = vmatmul.mubr.f32.gmra.mrb[88].mxu1 %v5521_v23 }
0x1433   :  { %v5632_v47 = vpop.f32.mrb[86].mxu1 }
0x1434   :  { %v5633_v20 = vadd.f32 %v5632_v47, %v5559_v31  ;;  %v5634_v35 = vpop.f32.mrb[87].mxu1  ;;  %v5963_v47 = vld [vmem:[%s7851_s13] ss:$0 sm:$0xff] }
0x1435   :  { %v5635_v6 = vadd.f32 %v5634_v35, %v5563_v36  ;;  %v5964_v35 = vld [vmem:[%s7856_s9] ss:$0 sm:$0xff] }
0x1436   :  { %v5643_v43 = vmax.f32 %v5633_v20, 0.0 }
0x1437   :  { %v5644_v34 = vmax.f32 %v5635_v6, 0.0  ;;  %v5638_v62 = vpop.f32.mrb[88].mxu1 }
0x1438   :  { %v5639_v9 = vadd.f32 %v5638_v62, %v5559_v31  ;;  %v5640_v18 = vpop.f32.mrb[89].mxu1 }
0x1439   :  { %v5641_v15 = vadd.f32 %v5640_v18, %v5563_v36  ;;  %5750 = vmatprep.mubr.f32.mxu0 %v5644_v34 }
0x143a   :  { %5751 = vmatmul.mubr.f32.vlgmr.msra.gmra.mrb[90].mxu0 %v5643_v43  ;;  %v5645_v55 = vmax.f32 %v5639_v9, 0.0 }
0x143b   :  { %v5646_v41 = vmax.f32 %v5641_v15, 0.0 }
0x143d   :  { %5755 = vmatprep.mubr.f32.mxu0 %v5646_v41 }
0x143e   :  { %5756 = vmatmul.mubr.f32.gmra.mrb[92].mxu0 %v5645_v55 }
0x150d   :  { %v6289_v63 = vpop.f32.mrb[90].mxu0 }
0x150e   :  { %v6290_v29 = vpop.f32.mrb[91].mxu0 }
0x150f   :  { %v6291_v24 = vadd.f32 %v6290_v29, %v6289_v63 }
0x1511   :  { %v5753_v46 = vadd.f32 %v6291_v24, %v5960_v33  ;;  %v6292_v52 = vpop.f32.mrb[92].mxu0 }
0x1512   :  { %v6293_v51 = vpop.f32.mrb[93].mxu0 }
0x1513   :  { %v6294_v3 = vadd.f32 %v6293_v51, %v6292_v52  ;;  %v5761_v21 = vadd.f32 %v5753_v46, %v5520_v42 }
0x1515   :  { %v5758_v49 = vadd.f32 %v6294_v3, %v5960_v33  ;;  %5765 = vadd.xlane.f32.xlu0 %v5761_v21 }
0x1517   :  { %v5762_v19 = vadd.f32 %v5758_v49, %v5521_v23 }
0x1519   :  { %5767 = vadd.xlane.f32.xlu1 %v5762_v19 }
0x15a2   :  { %v5766_v5 = vpop.xlane.xlu0 %5765 }
0x15a3   :  { %v5769_v1 = vmul.f32 0.0078125, %v5766_v5 }
0x15a5   :  { %v5771_v59 = vsub.f32 %v5761_v21, %v5769_v1 }
0x15a6   :  { %v5768_v14 = vpop.xlane.xlu1 %5767 }
0x15a7   :  { %v5770_v45 = vmul.f32 0.0078125, %v5768_v14  ;;  %v5773_v26 = vmul.f32 %v5771_v59, %v5771_v59 }
0x15a9   :  { %v5772_v16 = vsub.f32 %v5762_v19, %v5770_v45  ;;  %5775 = vadd.xlane.f32.xlu0 %v5773_v26 }
0x15ab   :  { %v5774_v44 = vmul.f32 %v5772_v16, %v5772_v16 }
0x15ad   :  { %5777 = vadd.xlane.f32.xlu1 %v5774_v44 }
0x1636   :  { %v5776_v11 = vpop.xlane.xlu0 %5775 }
0x1637   :  { %v5779_v56 = vmul.f32 0.0078125, %v5776_v11 }
0x1639   :  { %v5781_v0 = vadd.f32 1e-05, %v5779_v56 }
0x163a   :  { %v5778_v50 = vpop.xlane.xlu1 %5777 }
0x163b   :  { %7575 = vrsqrt.f32 %v5781_v0  ;;  %v5780_v12 = vmul.f32 0.0078125, %v5778_v50 }
0x163d   :  { %v5782_v30 = vadd.f32 1e-05, %v5780_v12 }
0x163f   :  { %7577 = vrsqrt.f32 %v5782_v30 }
0x1645   :  { %v7576_v22 = vpop.eup %7575 }
0x1646   :  { %v5785_v27 = vmul.f32 %v7576_v22, %v5771_v59 }
0x1648   :  { %v5793_v2 = vmul.f32 %v5961_v8, %v5785_v27 }
0x1649   :  { %v7578_v61 = vpop.eup %7577 }
0x164a   :  { %v5801_v57 = vadd.f32 %v5962_v54, %v5793_v2  ;;  %v5786_v53 = vmul.f32 %v7578_v61, %v5772_v16 }
0x164c   :  { %v5803_v60 = vadd.f32 %v5801_v57, %v11001_v17  ;;  %v5794_v10 = vmul.f32 %v5961_v8, %v5786_v53 }
0x164e   :  { %5807 = vadd.xlane.f32.xlu0 %v5803_v60  ;;  %v5802_v42 = vadd.f32 %v5962_v54, %v5794_v10 }
0x1650   :  { %v5804_v39 = vadd.f32 %v10999_v32, %v5802_v42 }
0x1652   :  { %5809 = vadd.xlane.f32.xlu1 %v5804_v39 }
0x16db   :  { %v5808_v23 = vpop.xlane.xlu0 %5807 }
0x16dc   :  { %v5811_v13 = vmul.f32 0.0078125, %v5808_v23 }
0x16de   :  { %v5813_v4 = vsub.f32 %v5803_v60, %v5811_v13 }
0x16df   :  { %v5810_v48 = vpop.xlane.xlu1 %5809 }
0x16e0   :  { %v5812_v25 = vmul.f32 0.0078125, %v5810_v48  ;;  %v5815_v38 = vmul.f32 %v5813_v4, %v5813_v4 }
0x16e2   :  { %v5814_v28 = vsub.f32 %v5804_v39, %v5812_v25  ;;  %5817 = vadd.xlane.f32.xlu0 %v5815_v38 }
0x16e4   :  { %v5816_v40 = vmul.f32 %v5814_v28, %v5814_v28 }
0x16e6   :  { %5819 = vadd.xlane.f32.xlu1 %v5816_v40 }
0x176f   :  { %v5818_v7 = vpop.xlane.xlu0 %5817 }
0x1770   :  { %v5821_v17 = vmul.f32 0.0078125, %v5818_v7 }
0x1772   :  { %v5823_v58 = vadd.f32 1e-05, %v5821_v17 }
0x1773   :  { %v5820_v37 = vpop.xlane.xlu1 %5819 }
0x1774   :  { %7579 = vrsqrt.f32 %v5823_v58  ;;  %v5822_v31 = vmul.f32 0.0078125, %v5820_v37 }
0x1776   :  { %v5824_v32 = vadd.f32 1e-05, %v5822_v31 }
0x1778   :  { %7581 = vrsqrt.f32 %v5824_v32 }
0x177e   :  { %v7580_v36 = vpop.eup %7579 }
0x177f   :  { %v5827_v20 = vmul.f32 %v7580_v36, %v5813_v4 }
0x1781   :  { %v5835_v6 = vmul.f32 %v5963_v47, %v5827_v20 }
0x1782   :  { %v7582_v34 = vpop.eup %7581 }
0x1783   :  { %v5828_v62 = vmul.f32 %v7582_v34, %v5814_v28  ;;  %v5843_v43 = vadd.f32 %v5964_v35, %v5835_v6 }
0x1785   :  { %v5836_v9 = vmul.f32 %v5963_v47, %v5828_v62  ;;  %5845 = vst [vmem:[#allocation2] sm:$0xff] %v5843_v43 }
0x1787   :  { %v5844_v18 = vadd.f32 %v5964_v35, %v5836_v9 }
0x1789   :  { %5846 = vst [vmem:[#allocation2 + $0x8] sm:$0xff] %v5844_v18 }
0x178a   :  { %7594 = shalt.err (!%p7591_p4)
}
0x178b   :  { %s7595_s9 = scalar_lea.hbm %s7861_s12, 256 }
0x178c   :  { %p7596_p5 = scmp.ne.s32.totalorder %s7861_s12, %s7595_s9  ;;  %p7599_p6 = scmp.lt.u32.totalorder %s7595_s9, %s7861_s12 }
0x178e   :  { %p7601_p7 = pnand %p7599_p6, %p7596_p5 }
0x1790   :  { %7604 = shalt.err (!%p7601_p7)
}
0x1791   :  { %s7651_s13 = smov 128   ;;  %s7652_s23 = smov 8  }
0x1792   :  { %5858 = dma.vmem_to_hbm [thread:$0]  %s5853_s18, 256, %s7861_s12, [#allocation3], %s7651_s13, %s7651_s13, %s7652_s23  }
0x1793   :  { %7605 = dma.done.wait [#allocation3], 256  }
0x1794   :  { %7606 = vsyncadd [#allocation3], 4294967040 }
0x1795   :  { %5862 = vsyncpa [#allocation3], 1 }

</bundles_post_ra>
